<compile_context>
chip_gen: v7x
topology: tpu7x:2x2x1
jax: 0.10.0
libtpu: 0.0.40
codegen_flags: <defaults>
</compile_context>

<pallas_src>
import jax
import jax.numpy as jnp
from jax.experimental import pallas as pl
from jax.experimental.pallas import tpu as pltpu

EPS = 1e-5
LANES = 128


def basic_block_kernel(xpad_ref, w1_ref, w2_ref,
                       g1_ref, b1_ref, g2_ref, b2_ref,
                       out_ref, p1_ref, p2_ref, ypad_ref):
    # xpad_ref : (N, H+2, W+2, CP) f32  spatially + channel zero-padded input (NHWC)
    # w1_ref   : (9*CP, CP) bf16        conv1 weights, im2col layout (tap-major rows)
    # w2_ref   : (9*CP, CP) bf16        conv2 weights, im2col layout
    # g*/b*    : (1, CP)   f32          BN affine params (zero in padded channels)
    # out_ref  : (N*H*W, CP) f32        lane-dense flattened output
    # p1_ref   : (N*H*W, 9*CP) bf16     im2col patch matrix for conv1
    # p2_ref   : (N*H*W, 9*CP) bf16     im2col patch matrix for conv2
    # ypad_ref : (N, H+2, W+2, CP) f32  padded intermediate (only halo is zeroed)
    N, Hp, Wp, CP = xpad_ref.shape
    H, W = Hp - 2, Wp - 2
    M = N * H * W

    def batchnorm(y, g_ref, b_ref):
        # Training-mode BN: per-channel batch mean / biased variance over (N,H,W).
        mean = jnp.mean(y, axis=0, keepdims=True)
        var = jnp.mean(jnp.square(y - mean), axis=0, keepdims=True)
        return (y - mean) * jax.lax.rsqrt(var + EPS) * g_ref[...] + b_ref[...]

    # ---- conv1: build im2col patches (single bf16 MXU matmul, f32 accumulate) ----
    identity = None
    for kh in range(3):
        for kw in range(3):
            t = kh * 3 + kw
            tap = xpad_ref[:, kh:kh + H, kw:kw + W, :].reshape(M, CP)
            if t == 4:
                # Center tap == the unpadded input: reuse it as the residual.
                identity = tap
            p1_ref[:, t * CP:(t + 1) * CP] = tap.astype(p1_ref.dtype)

    y = jnp.dot(p1_ref[...], w1_ref[...], preferred_element_type=jnp.float32)
    y = jnp.maximum(batchnorm(y, g1_ref, b1_ref), 0.0)            # (M, CP) f32

    # ---- spatially pad the intermediate: zero only the 1-pixel halo strips ----
    zrow = jnp.zeros((N, 1, Wp, CP), ypad_ref.dtype)
    zcol = jnp.zeros((N, Hp, 1, CP), ypad_ref.dtype)
    ypad_ref[:, 0:1, :, :] = zrow
    ypad_ref[:, H + 1:H + 2, :, :] = zrow
    ypad_ref[:, :, 0:1, :] = zcol
    ypad_ref[:, :, W + 1:W + 2, :] = zcol
    ypad_ref[:, 1:H + 1, 1:W + 1, :] = y.reshape(N, H, W, CP)

    # ---- conv2: im2col patches again, single bf16 MXU matmul ----
    for kh in range(3):
        for kw in range(3):
            t = kh * 3 + kw
            tap = ypad_ref[:, kh:kh + H, kw:kw + W, :].reshape(M, CP)
            p2_ref[:, t * CP:(t + 1) * CP] = tap.astype(p2_ref.dtype)

    y2 = jnp.dot(p2_ref[...], w2_ref[...], preferred_element_type=jnp.float32)
    y2 = batchnorm(y2, g2_ref, b2_ref)

    # ---- residual add (downsample=None => identity == input) + ReLU ----
    out_ref[...] = jnp.maximum(y2 + identity, 0.0)


def basic_block(x_nchw, w1_hwio, w2_hwio, g1, b1, g2, b2):
    """x_nchw: (N,C,H,W) f32; conv weights in HWIO (3,3,Cin,Cout). Returns NCHW."""
    N, C, H, W = x_nchw.shape
    planes = w1_hwio.shape[-1]
    assert planes == C, "stride=1 / downsample=None requires inplanes == planes"

    CP = max(LANES, ((C + LANES - 1) // LANES) * LANES)   # lane-dense channel count
    M = N * H * W

    # NCHW -> NHWC, spatial pad by 1, channel pad to CP (zeros).
    x_nhwc = jnp.transpose(x_nchw, (0, 2, 3, 1))
    xpad = jnp.pad(x_nhwc, ((0, 0), (1, 1), (1, 1), (0, CP - C)))

    def pack_w(w):
        # HWIO (3,3,cin,cout) -> zero-pad channels to CP -> (9*CP, CP) bf16,
        # rows ordered tap-major then cin (matches im2col column order).
        wp = jnp.pad(w, ((0, 0), (0, 0), (0, CP - w.shape[2]), (0, CP - w.shape[3])))
        return wp.reshape(9 * CP, CP).astype(jnp.bfloat16)

    def pack_p(p):
        # Pad BN params with zeros so padded channels stay exactly zero.
        return jnp.pad(p, (0, CP - p.shape[0])).reshape(1, CP).astype(jnp.float32)

    w1p, w2p = pack_w(w1_hwio), pack_w(w2_hwio)
    g1p, b1p, g2p, b2p = pack_p(g1), pack_p(b1), pack_p(g2), pack_p(b2)

    vmem = pl.BlockSpec(memory_space=pltpu.MemorySpace.VMEM)

    out_flat = pl.pallas_call(
        basic_block_kernel,
        out_shape=jax.ShapeDtypeStruct((M, CP), jnp.float32),
        in_specs=[vmem] * 7,
        out_specs=vmem,
        scratch_shapes=[
            pltpu.VMEM((M, 9 * CP), jnp.bfloat16),          # conv1 im2col patches
            pltpu.VMEM((M, 9 * CP), jnp.bfloat16),          # conv2 im2col patches
            pltpu.VMEM((N, H + 2, W + 2, CP), jnp.float32),  # padded intermediate
        ],
        compiler_params=pltpu.CompilerParams(
            vmem_limit_bytes=48 * 1024 * 1024),
    )(xpad, w1p, w2p, g1p, b1p, g2p, b2p)

    out_nhwc = out_flat.reshape(N, H, W, CP)[..., :planes]
    return jnp.transpose(out_nhwc, (0, 3, 1, 2))


def basic_block_reference(x_nchw, w1_hwio, w2_hwio, g1, b1, g2, b2,
                          conv_dtype=jnp.float32):
    """Plain-JAX reference mirroring the PyTorch forward (train-mode BN).

    conv_dtype=bfloat16 reproduces the kernel's bf16 MXU operands
    (accumulation and all BN/ReLU/residual math stay f32)."""
    x = jnp.transpose(x_nchw, (0, 2, 3, 1))

    def conv(a, w):
        return jax.lax.conv_general_dilated(
            a.astype(conv_dtype), w.astype(conv_dtype),
            window_strides=(1, 1), padding=((1, 1), (1, 1)),
            dimension_numbers=("NHWC", "HWIO", "NHWC"),
            preferred_element_type=jnp.float32)

    def bn(y, g, b):
        mean = jnp.mean(y, axis=(0, 1, 2), keepdims=True)
        var = jnp.mean((y - mean) ** 2, axis=(0, 1, 2), keepdims=True)
        return (y - mean) * jax.lax.rsqrt(var + EPS) * g + b

    out = jnp.maximum(bn(conv(x, w1_hwio), g1, b1), 0.0)
    out = bn(conv(out, w2_hwio), g2, b2)
    out = jnp.maximum(out + x, 0.0)
    return jnp.transpose(out, (0, 3, 1, 2))


if __name__ == "__main__":
    # BasicBlock(inplanes=4, planes=4, stride=1, downsample=None)
    N, C, H, W = 2, 4, 16, 16
    planes = C

    key = jax.random.PRNGKey(0)
    ks = jax.random.split(key, 7)
    x = jax.random.normal(ks[0], (N, C, H, W), jnp.float32)
    w1 = jax.random.normal(ks[1], (3, 3, C, planes), jnp.float32) * 0.1
    w2 = jax.random.normal(ks[2], (3, 3, planes, planes), jnp.float32) * 0.1
    g1 = 1.0 + 0.1 * jax.random.normal(ks[3], (planes,), jnp.float32)
    b1 = 0.1 * jax.random.normal(ks[4], (planes,), jnp.float32)
    g2 = 1.0 + 0.1 * jax.random.normal(ks[5], (planes,), jnp.float32)
    b2 = 0.1 * jax.random.normal(ks[6], (planes,), jnp.float32)

    out = jax.block_until_ready(basic_block(x, w1, w2, g1, b1, g2, b2))
    assert out.shape == (N, planes, H, W)

    # Tight check vs. a reference that matches the kernel's bf16 conv operands.
    ref_bf16 = basic_block_reference(x, w1, w2, g1, b1, g2, b2,
                                     conv_dtype=jnp.bfloat16)
    assert jnp.allclose(out, ref_bf16, atol=2e-3, rtol=2e-3), \
        "mismatch vs bf16-matched reference"

    # Sanity check vs. the full-f32 PyTorch-equivalent forward (bf16 tolerance).
    ref_f32 = basic_block_reference(x, w1, w2, g1, b1, g2, b2,
                                    conv_dtype=jnp.float32)
    assert jnp.allclose(out, ref_f32, atol=5e-2, rtol=5e-2), \
        "mismatch vs f32 reference"

    print("KERNEL_OK")
</pallas_src>

<mosaic_0001>
module attributes {stable_mosaic.version = 11 : i64} {
  func.func @basic_block_kernel(%arg0: memref<2x18x18x128xf32, #tpu.memory_space<vmem>>, %arg1: memref<1152x128xbf16, #tpu.memory_space<vmem>>, %arg2: memref<1152x128xbf16, #tpu.memory_space<vmem>>, %arg3: memref<1x128xf32, #tpu.memory_space<vmem>>, %arg4: memref<1x128xf32, #tpu.memory_space<vmem>>, %arg5: memref<1x128xf32, #tpu.memory_space<vmem>>, %arg6: memref<1x128xf32, #tpu.memory_space<vmem>>, %arg7: memref<512x128xf32, #tpu.memory_space<vmem>>, %arg8: memref<512x1152xbf16, #tpu.memory_space<vmem>>, %arg9: memref<512x1152xbf16, #tpu.memory_space<vmem>>, %arg10: memref<2x18x18x128xf32, #tpu.memory_space<vmem>>) attributes {dimension_semantics = [], scalar_prefetch = 0 : i64, scratch_operands = 3 : i64, tpu.core_type = #tpu.core_type<tc>} {
    %c0 = arith.constant 0 : index
    %c0_0 = arith.constant 0 : index
    %c0_1 = arith.constant 0 : index
    %c0_2 = arith.constant 0 : index
    %0 = vector.load %arg0[%c0, %c0_0, %c0_1, %c0_2] : memref<2x18x18x128xf32, #tpu.memory_space<vmem>>, vector<2x16x16x128xf32>
    %1 = vector.shape_cast %0 : vector<2x16x16x128xf32> to vector<512x128xf32>
    %2 = arith.truncf %1 : vector<512x128xf32> to vector<512x128xbf16>
    %c0_3 = arith.constant 0 : index
    %c0_4 = arith.constant 0 : index
    %3 = vector.load %arg8[%c0_3, %c0_4] : memref<512x1152xbf16, #tpu.memory_space<vmem>>, vector<512x128xbf16>
    tpu.vector_store %arg8[%c0_3, %c0_4], %2 {strides = array<i32>} : memref<512x1152xbf16, #tpu.memory_space<vmem>>, vector<512x128xbf16>,
    %c0_5 = arith.constant 0 : index
    %c0_6 = arith.constant 0 : index
    %c1 = arith.constant 1 : index
    %c0_7 = arith.constant 0 : index
    %4 = vector.load %arg0[%c0_5, %c0_6, %c1, %c0_7] : memref<2x18x18x128xf32, #tpu.memory_space<vmem>>, vector<2x16x16x128xf32>
    %5 = vector.shape_cast %4 : vector<2x16x16x128xf32> to vector<512x128xf32>
    %6 = arith.truncf %5 : vector<512x128xf32> to vector<512x128xbf16>
    %c0_8 = arith.constant 0 : index
    %c128 = arith.constant 128 : index
    %7 = vector.load %arg8[%c0_8, %c128] : memref<512x1152xbf16, #tpu.memory_space<vmem>>, vector<512x128xbf16>
    tpu.vector_store %arg8[%c0_8, %c128], %6 {strides = array<i32>} : memref<512x1152xbf16, #tpu.memory_space<vmem>>, vector<512x128xbf16>,
    %c0_9 = arith.constant 0 : index
    %c0_10 = arith.constant 0 : index
    %c2 = arith.constant 2 : index
    %c0_11 = arith.constant 0 : index
    %8 = vector.load %arg0[%c0_9, %c0_10, %c2, %c0_11] : memref<2x18x18x128xf32, #tpu.memory_space<vmem>>, vector<2x16x16x128xf32>
    %9 = vector.shape_cast %8 : vector<2x16x16x128xf32> to vector<512x128xf32>
    %10 = arith.truncf %9 : vector<512x128xf32> to vector<512x128xbf16>
    %c0_12 = arith.constant 0 : index
    %c256 = arith.constant 256 : index
    %11 = vector.load %arg8[%c0_12, %c256] : memref<512x1152xbf16, #tpu.memory_space<vmem>>, vector<512x128xbf16>
    tpu.vector_store %arg8[%c0_12, %c256], %10 {strides = array<i32>} : memref<512x1152xbf16, #tpu.memory_space<vmem>>, vector<512x128xbf16>,
    %c0_13 = arith.constant 0 : index
    %c1_14 = arith.constant 1 : index
    %c0_15 = arith.constant 0 : index
    %c0_16 = arith.constant 0 : index
    %12 = vector.load %arg0[%c0_13, %c1_14, %c0_15, %c0_16] : memref<2x18x18x128xf32, #tpu.memory_space<vmem>>, vector<2x16x16x128xf32>
    %13 = vector.shape_cast %12 : vector<2x16x16x128xf32> to vector<512x128xf32>
    %14 = arith.truncf %13 : vector<512x128xf32> to vector<512x128xbf16>
    %c0_17 = arith.constant 0 : index
    %c384 = arith.constant 384 : index
    %15 = vector.load %arg8[%c0_17, %c384] : memref<512x1152xbf16, #tpu.memory_space<vmem>>, vector<512x128xbf16>
    tpu.vector_store %arg8[%c0_17, %c384], %14 {strides = array<i32>} : memref<512x1152xbf16, #tpu.memory_space<vmem>>, vector<512x128xbf16>,
    %c0_18 = arith.constant 0 : index
    %c1_19 = arith.constant 1 : index
    %c1_20 = arith.constant 1 : index
    %c0_21 = arith.constant 0 : index
    %16 = vector.load %arg0[%c0_18, %c1_19, %c1_20, %c0_21] : memref<2x18x18x128xf32, #tpu.memory_space<vmem>>, vector<2x16x16x128xf32>
    %17 = vector.shape_cast %16 : vector<2x16x16x128xf32> to vector<512x128xf32>
    %18 = arith.truncf %17 : vector<512x128xf32> to vector<512x128xbf16>
    %c0_22 = arith.constant 0 : index
    %c512 = arith.constant 512 : index
    %19 = vector.load %arg8[%c0_22, %c512] : memref<512x1152xbf16, #tpu.memory_space<vmem>>, vector<512x128xbf16>
    tpu.vector_store %arg8[%c0_22, %c512], %18 {strides = array<i32>} : memref<512x1152xbf16, #tpu.memory_space<vmem>>, vector<512x128xbf16>,
    %c0_23 = arith.constant 0 : index
    %c1_24 = arith.constant 1 : index
    %c2_25 = arith.constant 2 : index
    %c0_26 = arith.constant 0 : index
    %20 = vector.load %arg0[%c0_23, %c1_24, %c2_25, %c0_26] : memref<2x18x18x128xf32, #tpu.memory_space<vmem>>, vector<2x16x16x128xf32>
    %21 = vector.shape_cast %20 : vector<2x16x16x128xf32> to vector<512x128xf32>
    %22 = arith.truncf %21 : vector<512x128xf32> to vector<512x128xbf16>
    %c0_27 = arith.constant 0 : index
    %c640 = arith.constant 640 : index
    %23 = vector.load %arg8[%c0_27, %c640] : memref<512x1152xbf16, #tpu.memory_space<vmem>>, vector<512x128xbf16>
    tpu.vector_store %arg8[%c0_27, %c640], %22 {strides = array<i32>} : memref<512x1152xbf16, #tpu.memory_space<vmem>>, vector<512x128xbf16>,
    %c0_28 = arith.constant 0 : index
    %c2_29 = arith.constant 2 : index
    %c0_30 = arith.constant 0 : index
    %c0_31 = arith.constant 0 : index
    %24 = vector.load %arg0[%c0_28, %c2_29, %c0_30, %c0_31] : memref<2x18x18x128xf32, #tpu.memory_space<vmem>>, vector<2x16x16x128xf32>
    %25 = vector.shape_cast %24 : vector<2x16x16x128xf32> to vector<512x128xf32>
    %26 = arith.truncf %25 : vector<512x128xf32> to vector<512x128xbf16>
    %c0_32 = arith.constant 0 : index
    %c768 = arith.constant 768 : index
    %27 = vector.load %arg8[%c0_32, %c768] : memref<512x1152xbf16, #tpu.memory_space<vmem>>, vector<512x128xbf16>
    tpu.vector_store %arg8[%c0_32, %c768], %26 {strides = array<i32>} : memref<512x1152xbf16, #tpu.memory_space<vmem>>, vector<512x128xbf16>,
    %c0_33 = arith.constant 0 : index
    %c2_34 = arith.constant 2 : index
    %c1_35 = arith.constant 1 : index
    %c0_36 = arith.constant 0 : index
    %28 = vector.load %arg0[%c0_33, %c2_34, %c1_35, %c0_36] : memref<2x18x18x128xf32, #tpu.memory_space<vmem>>, vector<2x16x16x128xf32>
    %29 = vector.shape_cast %28 : vector<2x16x16x128xf32> to vector<512x128xf32>
    %30 = arith.truncf %29 : vector<512x128xf32> to vector<512x128xbf16>
    %c0_37 = arith.constant 0 : index
    %c896 = arith.constant 896 : index
    %31 = vector.load %arg8[%c0_37, %c896] : memref<512x1152xbf16, #tpu.memory_space<vmem>>, vector<512x128xbf16>
    tpu.vector_store %arg8[%c0_37, %c896], %30 {strides = array<i32>} : memref<512x1152xbf16, #tpu.memory_space<vmem>>, vector<512x128xbf16>,
    %c0_38 = arith.constant 0 : index
    %c2_39 = arith.constant 2 : index
    %c2_40 = arith.constant 2 : index
    %c0_41 = arith.constant 0 : index
    %32 = vector.load %arg0[%c0_38, %c2_39, %c2_40, %c0_41] : memref<2x18x18x128xf32, #tpu.memory_space<vmem>>, vector<2x16x16x128xf32>
    %33 = vector.shape_cast %32 : vector<2x16x16x128xf32> to vector<512x128xf32>
    %34 = arith.truncf %33 : vector<512x128xf32> to vector<512x128xbf16>
    %c0_42 = arith.constant 0 : index
    %c1024 = arith.constant 1024 : index
    %35 = vector.load %arg8[%c0_42, %c1024] : memref<512x1152xbf16, #tpu.memory_space<vmem>>, vector<512x128xbf16>
    tpu.vector_store %arg8[%c0_42, %c1024], %34 {strides = array<i32>} : memref<512x1152xbf16, #tpu.memory_space<vmem>>, vector<512x128xbf16>,
    %c0_43 = arith.constant 0 : index
    %c0_44 = arith.constant 0 : index
    %36 = vector.load %arg8[%c0_43, %c0_44] : memref<512x1152xbf16, #tpu.memory_space<vmem>>, vector<512x1152xbf16>
    %c0_45 = arith.constant 0 : index
    %c0_46 = arith.constant 0 : index
    %37 = vector.load %arg1[%c0_45, %c0_46] : memref<1152x128xbf16, #tpu.memory_space<vmem>>, vector<1152x128xbf16>
    %cst = arith.constant dense<0.000000e+00> : vector<512x128xf32>
    %38 = tpu.matmul %36, %37, %cst {dimension_numbers = #tpu.dot_dimension_numbers<[1], [0], [0], [1], [0, 0, 1, 1], [], []>} : vector<512x1152xbf16>, vector<1152x128xbf16>, vector<512x128xf32> -> vector<512x128xf32>
    %cst_47 = arith.constant dense<0.000000e+00> : vector<128xf32>
    %39 = vector.multi_reduction <add>, %38, %cst_47 [0] : vector<512x128xf32> to vector<128xf32>
    %40 = vector.shape_cast %39 : vector<128xf32> to vector<1x128xf32>
    %cst_48 = arith.constant 5.120000e+02 : f32
    %41 = vector.broadcast %cst_48 : f32 to vector<1x128xf32>
    %42 = arith.divf %40, %41 : vector<1x128xf32>
    %43 = vector.broadcast %42 : vector<1x128xf32> to vector<512x128xf32>
    %44 = arith.subf %38, %43 : vector<512x128xf32>
    %45 = arith.mulf %44, %44 : vector<512x128xf32>
    %cst_49 = arith.constant dense<0.000000e+00> : vector<128xf32>
    %46 = vector.multi_reduction <add>, %45, %cst_49 [0] : vector<512x128xf32> to vector<128xf32>
    %47 = vector.shape_cast %46 : vector<128xf32> to vector<1x128xf32>
    %cst_50 = arith.constant 5.120000e+02 : f32
    %48 = vector.broadcast %cst_50 : f32 to vector<1x128xf32>
    %49 = arith.divf %47, %48 : vector<1x128xf32>
    %50 = vector.broadcast %42 : vector<1x128xf32> to vector<512x128xf32>
    %51 = arith.subf %38, %50 : vector<512x128xf32>
    %cst_51 = arith.constant 9.99999974E-6 : f32
    %52 = vector.broadcast %cst_51 : f32 to vector<1x128xf32>
    %53 = arith.addf %49, %52 : vector<1x128xf32>
    %54 = math.rsqrt %53 : vector<1x128xf32>
    %55 = vector.broadcast %54 : vector<1x128xf32> to vector<512x128xf32>
    %56 = arith.mulf %51, %55 : vector<512x128xf32>
    %c0_52 = arith.constant 0 : index
    %c0_53 = arith.constant 0 : index
    %57 = vector.load %arg3[%c0_52, %c0_53] : memref<1x128xf32, #tpu.memory_space<vmem>>, vector<1x128xf32>
    %58 = vector.broadcast %57 : vector<1x128xf32> to vector<512x128xf32>
    %59 = arith.mulf %56, %58 : vector<512x128xf32>
    %c0_54 = arith.constant 0 : index
    %c0_55 = arith.constant 0 : index
    %60 = vector.load %arg4[%c0_54, %c0_55] : memref<1x128xf32, #tpu.memory_space<vmem>>, vector<1x128xf32>
    %61 = vector.broadcast %60 : vector<1x128xf32> to vector<512x128xf32>
    %62 = arith.addf %59, %61 : vector<512x128xf32>
    %cst_56 = arith.constant 0.000000e+00 : f32
    %63 = vector.broadcast %cst_56 : f32 to vector<512x128xf32>
    %64 = arith.maximumf %62, %63 : vector<512x128xf32>
    %cst_57 = arith.constant 0.000000e+00 : f32
    %65 = vector.broadcast %cst_57 : f32 to vector<2x1x18x128xf32>
    %cst_58 = arith.constant 0.000000e+00 : f32
    %66 = vector.broadcast %cst_58 : f32 to vector<2x18x1x128xf32>
    %c0_59 = arith.constant 0 : index
    %c0_60 = arith.constant 0 : index
    %c0_61 = arith.constant 0 : index
    %c0_62 = arith.constant 0 : index
    %67 = vector.load %arg10[%c0_59, %c0_60, %c0_61, %c0_62] : memref<2x18x18x128xf32, #tpu.memory_space<vmem>>, vector<2x1x18x128xf32>
    tpu.vector_store %arg10[%c0_59, %c0_60, %c0_61, %c0_62], %65 {strides = array<i32>} : memref<2x18x18x128xf32, #tpu.memory_space<vmem>>, vector<2x1x18x128xf32>,
    %c0_63 = arith.constant 0 : index
    %c17 = arith.constant 17 : index
    %c0_64 = arith.constant 0 : index
    %c0_65 = arith.constant 0 : index
    %68 = vector.load %arg10[%c0_63, %c17, %c0_64, %c0_65] : memref<2x18x18x128xf32, #tpu.memory_space<vmem>>, vector<2x1x18x128xf32>
    tpu.vector_store %arg10[%c0_63, %c17, %c0_64, %c0_65], %65 {strides = array<i32>} : memref<2x18x18x128xf32, #tpu.memory_space<vmem>>, vector<2x1x18x128xf32>,
    %c0_66 = arith.constant 0 : index
    %c0_67 = arith.constant 0 : index
    %c0_68 = arith.constant 0 : index
    %c0_69 = arith.constant 0 : index
    %69 = vector.load %arg10[%c0_66, %c0_67, %c0_68, %c0_69] : memref<2x18x18x128xf32, #tpu.memory_space<vmem>>, vector<2x18x1x128xf32>
    tpu.vector_store %arg10[%c0_66, %c0_67, %c0_68, %c0_69], %66 {strides = array<i32>} : memref<2x18x18x128xf32, #tpu.memory_space<vmem>>, vector<2x18x1x128xf32>,
    %c0_70 = arith.constant 0 : index
    %c0_71 = arith.constant 0 : index
    %c17_72 = arith.constant 17 : index
    %c0_73 = arith.constant 0 : index
    %70 = vector.load %arg10[%c0_70, %c0_71, %c17_72, %c0_73] : memref<2x18x18x128xf32, #tpu.memory_space<vmem>>, vector<2x18x1x128xf32>
    tpu.vector_store %arg10[%c0_70, %c0_71, %c17_72, %c0_73], %66 {strides = array<i32>} : memref<2x18x18x128xf32, #tpu.memory_space<vmem>>, vector<2x18x1x128xf32>,
    %71 = vector.shape_cast %64 : vector<512x128xf32> to vector<2x16x16x128xf32>
    %c0_74 = arith.constant 0 : index
    %c1_75 = arith.constant 1 : index
    %c1_76 = arith.constant 1 : index
    %c0_77 = arith.constant 0 : index
    %72 = vector.load %arg10[%c0_74, %c1_75, %c1_76, %c0_77] : memref<2x18x18x128xf32, #tpu.memory_space<vmem>>, vector<2x16x16x128xf32>
    tpu.vector_store %arg10[%c0_74, %c1_75, %c1_76, %c0_77], %71 {strides = array<i32>} : memref<2x18x18x128xf32, #tpu.memory_space<vmem>>, vector<2x16x16x128xf32>,
    %c0_78 = arith.constant 0 : index
    %c0_79 = arith.constant 0 : index
    %c0_80 = arith.constant 0 : index
    %c0_81 = arith.constant 0 : index
    %73 = vector.load %arg10[%c0_78, %c0_79, %c0_80, %c0_81] : memref<2x18x18x128xf32, #tpu.memory_space<vmem>>, vector<2x16x16x128xf32>
    %74 = vector.shape_cast %73 : vector<2x16x16x128xf32> to vector<512x128xf32>
    %75 = arith.truncf %74 : vector<512x128xf32> to vector<512x128xbf16>
    %c0_82 = arith.constant 0 : index
    %c0_83 = arith.constant 0 : index
    %76 = vector.load %arg9[%c0_82, %c0_83] : memref<512x1152xbf16, #tpu.memory_space<vmem>>, vector<512x128xbf16>
    tpu.vector_store %arg9[%c0_82, %c0_83], %75 {strides = array<i32>} : memref<512x1152xbf16, #tpu.memory_space<vmem>>, vector<512x128xbf16>,
    %c0_84 = arith.constant 0 : index
    %c0_85 = arith.constant 0 : index
    %c1_86 = arith.constant 1 : index
    %c0_87 = arith.constant 0 : index
    %77 = vector.load %arg10[%c0_84, %c0_85, %c1_86, %c0_87] : memref<2x18x18x128xf32, #tpu.memory_space<vmem>>, vector<2x16x16x128xf32>
    %78 = vector.shape_cast %77 : vector<2x16x16x128xf32> to vector<512x128xf32>
    %79 = arith.truncf %78 : vector<512x128xf32> to vector<512x128xbf16>
    %c0_88 = arith.constant 0 : index
    %c128_89 = arith.constant 128 : index
    %80 = vector.load %arg9[%c0_88, %c128_89] : memref<512x1152xbf16, #tpu.memory_space<vmem>>, vector<512x128xbf16>
    tpu.vector_store %arg9[%c0_88, %c128_89], %79 {strides = array<i32>} : memref<512x1152xbf16, #tpu.memory_space<vmem>>, vector<512x128xbf16>,
    %c0_90 = arith.constant 0 : index
    %c0_91 = arith.constant 0 : index
    %c2_92 = arith.constant 2 : index
    %c0_93 = arith.constant 0 : index
    %81 = vector.load %arg10[%c0_90, %c0_91, %c2_92, %c0_93] : memref<2x18x18x128xf32, #tpu.memory_space<vmem>>, vector<2x16x16x128xf32>
    %82 = vector.shape_cast %81 : vector<2x16x16x128xf32> to vector<512x128xf32>
    %83 = arith.truncf %82 : vector<512x128xf32> to vector<512x128xbf16>
    %c0_94 = arith.constant 0 : index
    %c256_95 = arith.constant 256 : index
    %84 = vector.load %arg9[%c0_94, %c256_95] : memref<512x1152xbf16, #tpu.memory_space<vmem>>, vector<512x128xbf16>
    tpu.vector_store %arg9[%c0_94, %c256_95], %83 {strides = array<i32>} : memref<512x1152xbf16, #tpu.memory_space<vmem>>, vector<512x128xbf16>,
    %c0_96 = arith.constant 0 : index
    %c1_97 = arith.constant 1 : index
    %c0_98 = arith.constant 0 : index
    %c0_99 = arith.constant 0 : index
    %85 = vector.load %arg10[%c0_96, %c1_97, %c0_98, %c0_99] : memref<2x18x18x128xf32, #tpu.memory_space<vmem>>, vector<2x16x16x128xf32>
    %86 = vector.shape_cast %85 : vector<2x16x16x128xf32> to vector<512x128xf32>
    %87 = arith.truncf %86 : vector<512x128xf32> to vector<512x128xbf16>
    %c0_100 = arith.constant 0 : index
    %c384_101 = arith.constant 384 : index
    %88 = vector.load %arg9[%c0_100, %c384_101] : memref<512x1152xbf16, #tpu.memory_space<vmem>>, vector<512x128xbf16>
    tpu.vector_store %arg9[%c0_100, %c384_101], %87 {strides = array<i32>} : memref<512x1152xbf16, #tpu.memory_space<vmem>>, vector<512x128xbf16>,
    %c0_102 = arith.constant 0 : index
    %c1_103 = arith.constant 1 : index
    %c1_104 = arith.constant 1 : index
    %c0_105 = arith.constant 0 : index
    %89 = vector.load %arg10[%c0_102, %c1_103, %c1_104, %c0_105] : memref<2x18x18x128xf32, #tpu.memory_space<vmem>>, vector<2x16x16x128xf32>
    %90 = vector.shape_cast %89 : vector<2x16x16x128xf32> to vector<512x128xf32>
    %91 = arith.truncf %90 : vector<512x128xf32> to vector<512x128xbf16>
    %c0_106 = arith.constant 0 : index
    %c512_107 = arith.constant 512 : index
    %92 = vector.load %arg9[%c0_106, %c512_107] : memref<512x1152xbf16, #tpu.memory_space<vmem>>, vector<512x128xbf16>
    tpu.vector_store %arg9[%c0_106, %c512_107], %91 {strides = array<i32>} : memref<512x1152xbf16, #tpu.memory_space<vmem>>, vector<512x128xbf16>,
    %c0_108 = arith.constant 0 : index
    %c1_109 = arith.constant 1 : index
    %c2_110 = arith.constant 2 : index
    %c0_111 = arith.constant 0 : index
    %93 = vector.load %arg10[%c0_108, %c1_109, %c2_110, %c0_111] : memref<2x18x18x128xf32, #tpu.memory_space<vmem>>, vector<2x16x16x128xf32>
    %94 = vector.shape_cast %93 : vector<2x16x16x128xf32> to vector<512x128xf32>
    %95 = arith.truncf %94 : vector<512x128xf32> to vector<512x128xbf16>
    %c0_112 = arith.constant 0 : index
    %c640_113 = arith.constant 640 : index
    %96 = vector.load %arg9[%c0_112, %c640_113] : memref<512x1152xbf16, #tpu.memory_space<vmem>>, vector<512x128xbf16>
    tpu.vector_store %arg9[%c0_112, %c640_113], %95 {strides = array<i32>} : memref<512x1152xbf16, #tpu.memory_space<vmem>>, vector<512x128xbf16>,
    %c0_114 = arith.constant 0 : index
    %c2_115 = arith.constant 2 : index
    %c0_116 = arith.constant 0 : index
    %c0_117 = arith.constant 0 : index
    %97 = vector.load %arg10[%c0_114, %c2_115, %c0_116, %c0_117] : memref<2x18x18x128xf32, #tpu.memory_space<vmem>>, vector<2x16x16x128xf32>
    %98 = vector.shape_cast %97 : vector<2x16x16x128xf32> to vector<512x128xf32>
    %99 = arith.truncf %98 : vector<512x128xf32> to vector<512x128xbf16>
    %c0_118 = arith.constant 0 : index
    %c768_119 = arith.constant 768 : index
    %100 = vector.load %arg9[%c0_118, %c768_119] : memref<512x1152xbf16, #tpu.memory_space<vmem>>, vector<512x128xbf16>
    tpu.vector_store %arg9[%c0_118, %c768_119], %99 {strides = array<i32>} : memref<512x1152xbf16, #tpu.memory_space<vmem>>, vector<512x128xbf16>,
    %c0_120 = arith.constant 0 : index
    %c2_121 = arith.constant 2 : index
    %c1_122 = arith.constant 1 : index
    %c0_123 = arith.constant 0 : index
    %101 = vector.load %arg10[%c0_120, %c2_121, %c1_122, %c0_123] : memref<2x18x18x128xf32, #tpu.memory_space<vmem>>, vector<2x16x16x128xf32>
    %102 = vector.shape_cast %101 : vector<2x16x16x128xf32> to vector<512x128xf32>
    %103 = arith.truncf %102 : vector<512x128xf32> to vector<512x128xbf16>
    %c0_124 = arith.constant 0 : index
    %c896_125 = arith.constant 896 : index
    %104 = vector.load %arg9[%c0_124, %c896_125] : memref<512x1152xbf16, #tpu.memory_space<vmem>>, vector<512x128xbf16>
    tpu.vector_store %arg9[%c0_124, %c896_125], %103 {strides = array<i32>} : memref<512x1152xbf16, #tpu.memory_space<vmem>>, vector<512x128xbf16>,
    %c0_126 = arith.constant 0 : index
    %c2_127 = arith.constant 2 : index
    %c2_128 = arith.constant 2 : index
    %c0_129 = arith.constant 0 : index
    %105 = vector.load %arg10[%c0_126, %c2_127, %c2_128, %c0_129] : memref<2x18x18x128xf32, #tpu.memory_space<vmem>>, vector<2x16x16x128xf32>
    %106 = vector.shape_cast %105 : vector<2x16x16x128xf32> to vector<512x128xf32>
    %107 = arith.truncf %106 : vector<512x128xf32> to vector<512x128xbf16>
    %c0_130 = arith.constant 0 : index
    %c1024_131 = arith.constant 1024 : index
    %108 = vector.load %arg9[%c0_130, %c1024_131] : memref<512x1152xbf16, #tpu.memory_space<vmem>>, vector<512x128xbf16>
    tpu.vector_store %arg9[%c0_130, %c1024_131], %107 {strides = array<i32>} : memref<512x1152xbf16, #tpu.memory_space<vmem>>, vector<512x128xbf16>,
    %c0_132 = arith.constant 0 : index
    %c0_133 = arith.constant 0 : index
    %109 = vector.load %arg9[%c0_132, %c0_133] : memref<512x1152xbf16, #tpu.memory_space<vmem>>, vector<512x1152xbf16>
    %c0_134 = arith.constant 0 : index
    %c0_135 = arith.constant 0 : index
    %110 = vector.load %arg2[%c0_134, %c0_135] : memref<1152x128xbf16, #tpu.memory_space<vmem>>, vector<1152x128xbf16>
    %cst_136 = arith.constant dense<0.000000e+00> : vector<512x128xf32>
    %111 = tpu.matmul %109, %110, %cst_136 {dimension_numbers = #tpu.dot_dimension_numbers<[1], [0], [0], [1], [0, 0, 1, 1], [], []>} : vector<512x1152xbf16>, vector<1152x128xbf16>, vector<512x128xf32> -> vector<512x128xf32>
    %cst_137 = arith.constant dense<0.000000e+00> : vector<128xf32>
    %112 = vector.multi_reduction <add>, %111, %cst_137 [0] : vector<512x128xf32> to vector<128xf32>
    %113 = vector.shape_cast %112 : vector<128xf32> to vector<1x128xf32>
    %cst_138 = arith.constant 5.120000e+02 : f32
    %114 = vector.broadcast %cst_138 : f32 to vector<1x128xf32>
    %115 = arith.divf %113, %114 : vector<1x128xf32>
    %116 = vector.broadcast %115 : vector<1x128xf32> to vector<512x128xf32>
    %117 = arith.subf %111, %116 : vector<512x128xf32>
    %118 = arith.mulf %117, %117 : vector<512x128xf32>
    %cst_139 = arith.constant dense<0.000000e+00> : vector<128xf32>
    %119 = vector.multi_reduction <add>, %118, %cst_139 [0] : vector<512x128xf32> to vector<128xf32>
    %120 = vector.shape_cast %119 : vector<128xf32> to vector<1x128xf32>
    %cst_140 = arith.constant 5.120000e+02 : f32
    %121 = vector.broadcast %cst_140 : f32 to vector<1x128xf32>
    %122 = arith.divf %120, %121 : vector<1x128xf32>
    %123 = vector.broadcast %115 : vector<1x128xf32> to vector<512x128xf32>
    %124 = arith.subf %111, %123 : vector<512x128xf32>
    %cst_141 = arith.constant 9.99999974E-6 : f32
    %125 = vector.broadcast %cst_141 : f32 to vector<1x128xf32>
    %126 = arith.addf %122, %125 : vector<1x128xf32>
    %127 = math.rsqrt %126 : vector<1x128xf32>
    %128 = vector.broadcast %127 : vector<1x128xf32> to vector<512x128xf32>
    %129 = arith.mulf %124, %128 : vector<512x128xf32>
    %c0_142 = arith.constant 0 : index
    %c0_143 = arith.constant 0 : index
    %130 = vector.load %arg5[%c0_142, %c0_143] : memref<1x128xf32, #tpu.memory_space<vmem>>, vector<1x128xf32>
    %131 = vector.broadcast %130 : vector<1x128xf32> to vector<512x128xf32>
    %132 = arith.mulf %129, %131 : vector<512x128xf32>
    %c0_144 = arith.constant 0 : index
    %c0_145 = arith.constant 0 : index
    %133 = vector.load %arg6[%c0_144, %c0_145] : memref<1x128xf32, #tpu.memory_space<vmem>>, vector<1x128xf32>
    %134 = vector.broadcast %133 : vector<1x128xf32> to vector<512x128xf32>
    %135 = arith.addf %132, %134 : vector<512x128xf32>
    %136 = arith.addf %135, %17 : vector<512x128xf32>
    %cst_146 = arith.constant 0.000000e+00 : f32
    %137 = vector.broadcast %cst_146 : f32 to vector<512x128xf32>
    %138 = arith.maximumf %136, %137 : vector<512x128xf32>
    %c0_147 = arith.constant 0 : index
    %c0_148 = arith.constant 0 : index
    %139 = vector.load %arg7[%c0_147, %c0_148] : memref<512x128xf32, #tpu.memory_space<vmem>>, vector<512x128xf32>
    tpu.vector_store %arg7[%c0_147, %c0_148], %138 {strides = array<i32>} : memref<512x128xf32, #tpu.memory_space<vmem>>, vector<512x128xf32>,
    return
  }
}

</mosaic_0001>

<bundles_post_ra>
// kernel: tpu_custom_call.1
= control target key start
LH: loop header
LB: loop body
LE: loop exit
PB: predicated region body
PF: predicated region fallthrough
CT: control target
= control target key end

     0   :  { %v16431_v1 = vmov 0   ;;  %s16423_s0 = inlined_call_operand.vmem [shape: f32[2,18,18,128], index: 0, kind: input, shape index: {}]   ;;  %s16424_s1 = inlined_call_operand.vmem [shape: bf16[1152,128], index: 1, kind: input, shape index: {}]   ;;  %s16425_s2 = inlined_call_operand.vmem [shape: bf16[1152,128], index: 2, kind: input, shape index: {}]   ;;  %s16426_s3 = inlined_call_operand.vmem [shape: f32[1,128], index: 3, kind: input, shape index: {}]   ;;  %s16427_s4 = inlined_call_operand.vmem [shape: f32[1,128], index: 4, kind: input, shape index: {}]   ;;  %s16428_s5 = inlined_call_operand.vmem [shape: f32[1,128], index: 5, kind: input, shape index: {}]   ;;  %s16429_s6 = inlined_call_operand.vmem [shape: f32[1,128], index: 6, kind: input, shape index: {}]   ;;  %s16430_s7 = inlined_call_operand.hbm [shape: f32[512,128], index: 7, kind: output, shape index: {}]  }
   0x1   :  { %v9889_v0 = vld [vmem:[%s16424_s1] sm:$0xff]   ;;  %2046 = vmatprep.subr.bf16.mxu0 %v16431_v1  ;;  %v9890_v2 = vld [vmem:[%s16424_s1 + $0x8] sm:$0xff]   ;;  %v9891_v3 = vld [vmem:[%s16424_s1 + $0x10] sm:$0xff]  }
   0x2   :  { %2047 = vmatpush1.bf16.msra.mxu0 %v9889_v0  ;;  %v9892_v4 = vld [vmem:[%s16424_s1 + $0x18] sm:$0xff]   ;;  %v9893_v5 = vld [vmem:[%s16424_s1 + $0x20] sm:$0xff]   ;;  %v157_v7 = vld [vmem:[%s16423_s0 + $0x9] sm:$0xff] }
   0x3   :  { %2048 = vmatprep.subr.bf16.mxu0 %v16431_v1  ;;  %v156_v6 = vld [vmem:[%s16423_s0 + $0x1] sm:$0xff]  ;;  %v9895_v10 = vld [vmem:[%s16424_s1 + $0x30] sm:$0xff]   ;;  %v9896_v11 = vld [vmem:[%s16424_s1 + $0x38] sm:$0xff]  }
   0x4   :  { %v220_v8 = vpack.c.bf16 %v157_v7, %v156_v6  ;;  %v9894_v9 = vld [vmem:[%s16424_s1 + $0x28] sm:$0xff]   ;;  %v9897_v12 = vld [vmem:[%s16424_s1 + $0x40] sm:$0xff]   ;;  %v9899_v14 = vld [vmem:[%s16424_s1 + $0x50] sm:$0xff]  }
   0x5   :  { %v9898_v13 = vld [vmem:[%s16424_s1 + $0x48] sm:$0xff]   ;;  %v9900_v15 = vld [vmem:[%s16424_s1 + $0x58] sm:$0xff]   ;;  %v9901_v16 = vld [vmem:[%s16424_s1 + $0x60] sm:$0xff]  }
   0x6   :  { %2049 = vmatpush1.bf16.msra.mxu0 %v9890_v2  ;;  %2078 = vmatprep.mubr.bf16.mxu0 %v220_v8  ;;  %v9902_v17 = vld [vmem:[%s16424_s1 + $0x68] sm:$0xff]   ;;  %v9903_v18 = vld [vmem:[%s16424_s1 + $0x70] sm:$0xff]   ;;  %v9904_v19 = vld [vmem:[%s16424_s1 + $0x78] sm:$0xff]  }
   0x7   :  { %2050 = vmatprep.subr.bf16.mxu0 %v16431_v1  ;;  %v28_v20 = vld [vmem:[%s16423_s0] sm:$0xff]  ;;  %v29_v21 = vld [vmem:[%s16423_s0 + $0x8] sm:$0xff]  ;;  %v30_v27 = vld [vmem:[%s16423_s0 + $0x18] sm:$0xff] }
   0x8   :  { %v158_v22 = vld [vmem:[%s16423_s0 + $0x19] sm:$0xff]  ;;  %v159_v23 = vld [vmem:[%s16423_s0 + $0x21] sm:$0xff]  ;;  %v92_v25 = vpack.c.bf16 %v29_v21, %v28_v20  ;;  %v160_v29 = vld [vmem:[%s16423_s0 + $0x31] sm:$0xff] }
   0x9   :  { %v9905_v24 = vld [vmem:[%s16424_s1 + $0x80] sm:$0xff]   ;;  %v221_v26 = vpack.c.bf16 %v159_v23, %v158_v22  ;;  %v9906_v31 = vld [vmem:[%s16424_s1 + $0x88] sm:$0xff]   ;;  %v9907_v32 = vld [vmem:[%s16424_s1 + $0x90] sm:$0xff]  }
   0xa   :  { %2051 = vmatpush1.bf16.msra.mxu0 %v9891_v3  ;;  %v31_v28 = vld [vmem:[%s16423_s0 + $0x20] sm:$0xff]  ;;  %v32_v35 = vld [vmem:[%s16423_s0 + $0x30] sm:$0xff]  ;;  %v33_v36 = vld [vmem:[%s16423_s0 + $0x38] sm:$0xff] }
   0xb   :  { %2052 = vmatprep.subr.bf16.mxu0 %v16431_v1  ;;  %v161_v30 = vld [vmem:[%s16423_s0 + $0x39] sm:$0xff]  ;;  %v10285_v33 = vpack.c.bf16 %v31_v28, %v30_v27  ;;  %v162_v37 = vld [vmem:[%s16423_s0 + $0x49] sm:$0xff]  ;;  %v163_v38 = vld [vmem:[%s16423_s0 + $0x51] sm:$0xff]  ;;  %v10308_v41 = vpack.c.bf16 %v33_v36, %v32_v35 }
   0xc   :  { %v222_v34 = vpack.c.bf16 %v161_v30, %v160_v29  ;;  %v9908_v39 = vld [vmem:[%s16424_s1 + $0x98] sm:$0xff]   ;;  %v9909_v40 = vld [vmem:[%s16424_s1 + $0xa0] sm:$0xff]   ;;  %v223_v42 = vpack.c.bf16 %v163_v38, %v162_v37  ;;  %v34_v43 = vld [vmem:[%s16423_s0 + $0x48] sm:$0xff] }
   0xd   :  { %v35_v44 = vld [vmem:[%s16423_s0 + $0x50] sm:$0xff]  ;;  %v164_v45 = vld [vmem:[%s16423_s0 + $0x61] sm:$0xff]  ;;  %v166_v53 = vld [vmem:[%s16423_s0 + $0x79] sm:$0xff] }
   0xe   :  { %2053 = vmatpush1.bf16.msra.mxu0 %v9892_v4  ;;  %v165_v46 = vld [vmem:[%s16423_s0 + $0x69] sm:$0xff]  ;;  %v10331_v49 = vpack.c.bf16 %v35_v44, %v34_v43  ;;  %v36_v51 = vld [vmem:[%s16423_s0 + $0x60] sm:$0xff]  ;;  %v9912_v55 = vld [vmem:[%s16424_s1 + $0xb8] sm:$0xff]  }
   0xf   :  { %2054 = vmatprep.subr.bf16.mxu0 %v16431_v1  ;;  %v9910_v47 = vld [vmem:[%s16424_s1 + $0xa8] sm:$0xff]   ;;  %v9911_v48 = vld [vmem:[%s16424_s1 + $0xb0] sm:$0xff]   ;;  %v224_v50 = vpack.c.bf16 %v165_v46, %v164_v45  ;;  %v9913_v56 = vld [vmem:[%s16424_s1 + $0xc0] sm:$0xff]  }
  0x10   :  { %v37_v52 = vld [vmem:[%s16423_s0 + $0x68] sm:$0xff]  ;;  %v38_v59 = vld [vmem:[%s16423_s0 + $0x78] sm:$0xff]  ;;  %v39_v60 = vld [vmem:[%s16423_s0 + $0x80] sm:$0xff] }
  0x11   :  { %v167_v54 = vld [vmem:[%s16423_s0 + $0x81] sm:$0xff]  ;;  %v10354_v57 = vpack.c.bf16 %v37_v52, %v36_v51  ;;  %v168_v61 = vld [vmem:[%s16423_s0 + $0x91] sm:$0xff]  ;;  %v169_v62 = vld [vmem:[%s16423_s0 + $0x99] sm:$0xff]  ;;  %v10377_v2 = vpack.c.bf16 %v39_v60, %v38_v59 }
  0x12   :  { %2055 = vmatpush1.bf16.msra.mxu0 %v9893_v5  ;;  %v225_v58 = vpack.c.bf16 %v167_v54, %v166_v53  ;;  %v9914_v63 = vld [vmem:[%s16424_s1 + $0xc8] sm:$0xff]   ;;  %v9915_v0 = vld [vmem:[%s16424_s1 + $0xd0] sm:$0xff]   ;;  %v226_v3 = vpack.c.bf16 %v169_v62, %v168_v61  ;;  %v41_v5 = vld [vmem:[%s16423_s0 + $0x98] sm:$0xff] }
  0x13   :  { %2056 = vmatprep.subr.bf16.mxu0 %v16431_v1  ;;  %v40_v4 = vld [vmem:[%s16423_s0 + $0x90] sm:$0xff]  ;;  %v175_v20 = vld [vmem:[%s16423_s0 + $0xe1] sm:$0xff]  ;;  %v46_v23 = vld [vmem:[%s16423_s0 + $0xd8] sm:$0xff] }
  0x14   :  { %v170_v6 = vld [vmem:[%s16423_s0 + $0xa9] sm:$0xff]  ;;  %v171_v7 = vld [vmem:[%s16423_s0 + $0xb1] sm:$0xff]  ;;  %v10394_v8 = vpack.c.bf16 %v41_v5, %v40_v4  ;;  %v177_v27 = vld [vmem:[%s16423_s0 + $0xf9] sm:$0xff] }
  0x15   :  { %v48_v30 = vld [vmem:[%s16423_s0 + $0xf0] sm:$0xff] }
  0x16   :  { %2057 = vmatpush1.bf16.msra.mxu0 %v9894_v9  ;;  %v227_v9 = vpack.c.bf16 %v171_v7, %v170_v6 }
  0x17   :  { %2058 = vmatprep.subr.bf16.mxu0 %v16431_v1 }
  0x1a   :  { %2059 = vmatpush1.bf16.msra.mxu0 %v9895_v10  ;;  %v42_v10 = vld [vmem:[%s16423_s0 + $0xa8] sm:$0xff] }
  0x1b   :  { %2060 = vmatprep.subr.bf16.mxu0 %v16431_v1 }
  0x1e   :  { %2061 = vmatpush1.bf16.msra.mxu0 %v9896_v11  ;;  %v43_v11 = vld [vmem:[%s16423_s0 + $0xb0] sm:$0xff] }
  0x1f   :  { %2062 = vmatprep.subr.bf16.mxu0 %v16431_v1 }
  0x22   :  { %2063 = vmatpush1.bf16.msra.mxu0 %v9897_v12  ;;  %v9916_v12 = vld [vmem:[%s16424_s1 + $0xd8] sm:$0xff]  }
  0x23   :  { %2064 = vmatprep.subr.bf16.mxu0 %v16431_v1 }
  0x26   :  { %2065 = vmatpush1.bf16.msra.mxu0 %v9898_v13  ;;  %v172_v13 = vld [vmem:[%s16423_s0 + $0xc1] sm:$0xff] }
  0x27   :  { %2066 = vmatprep.subr.bf16.mxu0 %v16431_v1 }
  0x2a   :  { %2067 = vmatpush1.bf16.msra.mxu0 %v9899_v14  ;;  %v173_v14 = vld [vmem:[%s16423_s0 + $0xc9] sm:$0xff] }
  0x2b   :  { %2068 = vmatprep.subr.bf16.mxu0 %v16431_v1 }
  0x2e   :  { %2069 = vmatpush1.bf16.msra.mxu0 %v9900_v15  ;;  %v10413_v15 = vpack.c.bf16 %v43_v11, %v42_v10 }
  0x2f   :  { %2070 = vmatprep.subr.bf16.mxu0 %v16431_v1 }
  0x32   :  { %2071 = vmatpush1.bf16.msra.mxu0 %v9901_v16  ;;  %v228_v16 = vpack.c.bf16 %v173_v14, %v172_v13 }
  0x33   :  { %2072 = vmatprep.subr.bf16.mxu0 %v16431_v1 }
  0x36   :  { %2073 = vmatpush1.bf16.msra.mxu0 %v9902_v17  ;;  %v44_v17 = vld [vmem:[%s16423_s0 + $0xc0] sm:$0xff] }
  0x37   :  { %2074 = vmatprep.subr.bf16.mxu0 %v16431_v1 }
  0x3a   :  { %2075 = vmatpush1.bf16.msra.mxu0 %v9903_v18  ;;  %v45_v18 = vld [vmem:[%s16423_s0 + $0xc8] sm:$0xff] }
  0x3b   :  { %2076 = vmatprep.subr.bf16.mxu0 %v16431_v1  ;;  %v10428_v21 = vpack.c.bf16 %v45_v18, %v44_v17 }
  0x3e   :  { %2077 = vmatpush1.bf16.msra.mxu0 %v9904_v19  ;;  %v174_v19 = vld [vmem:[%s16423_s0 + $0xd9] sm:$0xff] }
  0x3f   :  { %2335 = vmatprep.subr.bf16.mxu0 %v16431_v1  ;;  %v229_v22 = vpack.c.bf16 %v175_v20, %v174_v19 }
  0x41   :  { %2079 = vmatmul.mubr.bf16.vlgmr.msra.gmra.mrb[0].mxu0 %v92_v25  ;;  %v9917_v25 = vld [vmem:[%s16424_s1 + $0xe0] sm:$0xff]  }
  0x42   :  { %2336 = vmatpush1.bf16.msra.mxu0 %v9905_v24  ;;  %2086 = vmatprep.mubr.bf16.mxu0 %v221_v26  ;;  %v47_v24 = vld [vmem:[%s16423_s0 + $0xe0] sm:$0xff]  ;;  %v176_v26 = vld [vmem:[%s16423_s0 + $0xf1] sm:$0xff] }
  0x43   :  { %2337 = vmatprep.subr.bf16.mxu0 %v16431_v1  ;;  %v10447_v28 = vpack.c.bf16 %v47_v24, %v46_v23  ;;  %v230_v29 = vpack.c.bf16 %v177_v27, %v176_v26 }
  0x46   :  { %2338 = vmatpush1.bf16.msra.mxu0 %v9906_v31  ;;  %v49_v31 = vld [vmem:[%s16423_s0 + $0xf8] sm:$0xff] }
  0x47   :  { %2339 = vmatprep.subr.bf16.mxu0 %v16431_v1  ;;  %v10462_v35 = vpack.c.bf16 %v49_v31, %v48_v30 }
  0x49   :  { %2087 = vmatmul.mubr.bf16.gmra.mrb[4].mxu0 %v10285_v33 }
  0x4a   :  { %2094 = vmatprep.mubr.bf16.mxu0 %v222_v34  ;;  %2340 = vmatpush1.bf16.msra.mxu0 %v9907_v32  ;;  %v178_v32 = vld [vmem:[%s16423_s0 + $0x109] sm:$0xff]  ;;  %v179_v34 = vld [vmem:[%s16423_s0 + $0x111] sm:$0xff] }
  0x4b   :  { %2341 = vmatprep.subr.bf16.mxu0 %v16431_v1 }
  0x4e   :  { %2342 = vmatpush1.bf16.msra.mxu0 %v9908_v39 }
  0x4f   :  { %2343 = vmatprep.subr.bf16.mxu0 %v16431_v1 }
  0x51   :  { %2095 = vmatmul.mubr.bf16.gmra.mrb[8].mxu0 %v10308_v41 }
  0x52   :  { %2102 = vmatprep.mubr.bf16.mxu0 %v223_v42  ;;  %2344 = vmatpush1.bf16.msra.mxu0 %v9909_v40 }
  0x53   :  { %2345 = vmatprep.subr.bf16.mxu0 %v16431_v1 }
  0x56   :  { %2346 = vmatpush1.bf16.msra.mxu0 %v9910_v47 }
  0x57   :  { %2347 = vmatprep.subr.bf16.mxu0 %v16431_v1 }
  0x59   :  { %2103 = vmatmul.mubr.bf16.gmra.mrb[12].mxu0 %v10331_v49 }
  0x5a   :  { %2110 = vmatprep.mubr.bf16.mxu0 %v224_v50  ;;  %2348 = vmatpush1.bf16.msra.mxu0 %v9911_v48 }
  0x5b   :  { %2349 = vmatprep.subr.bf16.mxu0 %v16431_v1 }
  0x5e   :  { %2350 = vmatpush1.bf16.msra.mxu0 %v9912_v55 }
  0x5f   :  { %2351 = vmatprep.subr.bf16.mxu0 %v16431_v1 }
  0x61   :  { %2111 = vmatmul.mubr.bf16.gmra.mrb[16].mxu0 %v10354_v57 }
  0x62   :  { %2118 = vmatprep.mubr.bf16.mxu0 %v225_v58  ;;  %2352 = vmatpush1.bf16.msra.mxu0 %v9913_v56 }
  0x63   :  { %2353 = vmatprep.subr.bf16.mxu0 %v16431_v1 }
  0x66   :  { %2354 = vmatpush1.bf16.msra.mxu0 %v9914_v63 }
  0x67   :  { %2355 = vmatprep.subr.bf16.mxu0 %v16431_v1 }
  0x69   :  { %2119 = vmatmul.mubr.bf16.gmra.mrb[20].mxu0 %v10377_v2 }
  0x6a   :  { %2126 = vmatprep.mubr.bf16.mxu0 %v226_v3  ;;  %2356 = vmatpush1.bf16.msra.mxu0 %v9915_v0 }
  0x6b   :  { %2357 = vmatprep.subr.bf16.mxu0 %v16431_v1 }
  0x6e   :  { %2358 = vmatpush1.bf16.msra.mxu0 %v9916_v12 }
  0x6f   :  { %2359 = vmatprep.subr.bf16.mxu0 %v16431_v1 }
  0x71   :  { %2127 = vmatmul.mubr.bf16.gmra.mrb[24].mxu0 %v10394_v8 }
  0x72   :  { %2134 = vmatprep.mubr.bf16.mxu0 %v227_v9  ;;  %2360 = vmatpush1.bf16.msra.mxu0 %v9917_v25 }
  0x73   :  { %2361 = vmatprep.subr.bf16.mxu0 %v16431_v1 }
  0x79   :  { %2135 = vmatmul.mubr.bf16.gmra.mrb[28].mxu0 %v10413_v15 }
  0x7a   :  { %2142 = vmatprep.mubr.bf16.mxu0 %v228_v16 }
  0x81   :  { %2143 = vmatmul.mubr.bf16.gmra.mrb[32].mxu0 %v10428_v21 }
  0x82   :  { %2150 = vmatprep.mubr.bf16.mxu0 %v229_v22 }
  0x89   :  { %2151 = vmatmul.mubr.bf16.gmra.mrb[36].mxu0 %v10447_v28 }
  0x8a   :  { %2158 = vmatprep.mubr.bf16.mxu0 %v230_v29 }
  0x8b   :  { %12 = vsyncpa [#allocation6], 0  ;;  %v231_v36 = vpack.c.bf16 %v179_v34, %v178_v32  ;;  %v9918_v37 = vld [vmem:[%s16424_s1 + $0xe8] sm:$0xff]   ;;  %v51_v39 = vld [vmem:[%s16423_s0 + $0x110] sm:$0xff] }
  0x8c   :  { %v50_v38 = vld [vmem:[%s16423_s0 + $0x108] sm:$0xff]  ;;  %2362 = vmatpush1.bf16.msra.mxu0 %v9918_v37  ;;  %v52_v45 = vld [vmem:[%s16423_s0 + $0x120] sm:$0xff]  ;;  %v9919_v52 = vld [vmem:[%s16424_s1 + $0xf0] sm:$0xff]  }
  0x8d   :  { %v180_v40 = vld [vmem:[%s16423_s0 + $0x121] sm:$0xff]  ;;  %v181_v42 = vld [vmem:[%s16423_s0 + $0x129] sm:$0xff]  ;;  %2363 = vmatprep.subr.bf16.mxu0 %v16431_v1  ;;  %v10481_v43 = vpack.c.bf16 %v51_v39, %v50_v38  ;;  %v182_v47 = vld [vmem:[%s16423_s0 + $0x139] sm:$0xff] }
  0x8e   :  { %v232_v44 = vpack.c.bf16 %v181_v42, %v180_v40  ;;  %v53_v46 = vld [vmem:[%s16423_s0 + $0x128] sm:$0xff]  ;;  %v54_v53 = vld [vmem:[%s16423_s0 + $0x138] sm:$0xff]  ;;  %v55_v54 = vld [vmem:[%s16423_s0 + $0x140] sm:$0xff] }
  0x8f   :  { %v183_v48 = vld [vmem:[%s16423_s0 + $0x141] sm:$0xff]  ;;  %v10496_v50 = vpack.c.bf16 %v53_v46, %v52_v45  ;;  %v184_v55 = vld [vmem:[%s16423_s0 + $0x151] sm:$0xff]  ;;  %v185_v56 = vld [vmem:[%s16423_s0 + $0x159] sm:$0xff]  ;;  %v10515_v58 = vpack.c.bf16 %v55_v54, %v54_v53 }
  0x90   :  { %v233_v51 = vpack.c.bf16 %v183_v48, %v182_v47  ;;  %2364 = vmatpush1.bf16.msra.mxu0 %v9919_v52  ;;  %v234_v59 = vpack.c.bf16 %v185_v56, %v184_v55  ;;  %v56_v60 = vld [vmem:[%s16423_s0 + $0x150] sm:$0xff]  ;;  %v57_v61 = vld [vmem:[%s16423_s0 + $0x158] sm:$0xff]  ;;  %v58_v5 = vld [vmem:[%s16423_s0 + $0x168] sm:$0xff] }
  0x91   :  { %2159 = vmatmul.mubr.bf16.gmra.mrb[40].mxu0 %v10462_v35  ;;  %2365 = vmatprep.subr.bf16.mxu0 %v16431_v1  ;;  %v186_v62 = vld [vmem:[%s16423_s0 + $0x169] sm:$0xff]  ;;  %v187_v63 = vld [vmem:[%s16423_s0 + $0x171] sm:$0xff]  ;;  %v10530_v0 = vpack.c.bf16 %v57_v61, %v56_v60  ;;  %v189_v9 = vld [vmem:[%s16423_s0 + $0x1b9] sm:$0xff] }
  0x92   :  { %2166 = vmatprep.mubr.bf16.mxu0 %v231_v36  ;;  %v235_v3 = vpack.c.bf16 %v187_v63, %v186_v62  ;;  %v9920_v4 = vld [vmem:[%s16424_s1 + $0xf8] sm:$0xff]   ;;  %v59_v6 = vld [vmem:[%s16423_s0 + $0x170] sm:$0xff]  ;;  %v62_v19 = vld [vmem:[%s16423_s0 + $0x1c8] sm:$0xff] }
  0x93   :  { %v188_v7 = vld [vmem:[%s16423_s0 + $0x1b1] sm:$0xff]  ;;  %v10549_v10 = vpack.c.bf16 %v59_v6, %v58_v5  ;;  %v190_v14 = vld [vmem:[%s16423_s0 + $0x1c9] sm:$0xff]  ;;  %v192_v22 = vld [vmem:[%s16423_s0 + $0x1e1] sm:$0xff] }
  0x94   :  { %2366 = vmatpush1.bf16.msra.mxu0 %v9920_v4  ;;  %v236_v11 = vpack.c.bf16 %v189_v9, %v188_v7  ;;  %v60_v12 = vld [vmem:[%s16423_s0 + $0x1b0] sm:$0xff]  ;;  %v61_v13 = vld [vmem:[%s16423_s0 + $0x1b8] sm:$0xff]  ;;  %v64_v26 = vld [vmem:[%s16423_s0 + $0x1e0] sm:$0xff] }
  0x95   :  { %2624 = vmatprep.subr.bf16.mxu0 %v16431_v1  ;;  %v191_v16 = vld [vmem:[%s16423_s0 + $0x1d1] sm:$0xff]  ;;  %v108_v17 = vpack.c.bf16 %v61_v13, %v60_v12  ;;  %v193_v23 = vld [vmem:[%s16423_s0 + $0x1e9] sm:$0xff]  ;;  %v194_v29 = vld [vmem:[%s16423_s0 + $0x1f9] sm:$0xff] }
  0x96   :  { %v237_v18 = vpack.c.bf16 %v191_v16, %v190_v14  ;;  %v63_v20 = vld [vmem:[%s16423_s0 + $0x1d0] sm:$0xff]  ;;  %v238_v25 = vpack.c.bf16 %v193_v23, %v192_v22  ;;  %v65_v27 = vld [vmem:[%s16423_s0 + $0x1e8] sm:$0xff]  ;;  %v66_v34 = vld [vmem:[%s16423_s0 + $0x1f8] sm:$0xff] }
  0x97   :  { %v10576_v24 = vpack.c.bf16 %v63_v20, %v62_v19  ;;  %v195_v30 = vld [vmem:[%s16423_s0 + $0x201] sm:$0xff]  ;;  %v10591_v31 = vpack.c.bf16 %v65_v27, %v64_v26  ;;  %v196_v37 = vld [vmem:[%s16423_s0 + $0x211] sm:$0xff]  ;;  %v197_v38 = vld [vmem:[%s16423_s0 + $0x219] sm:$0xff] }
  0x98   :  { %v239_v32 = vpack.c.bf16 %v195_v30, %v194_v29  ;;  %v67_v36 = vld [vmem:[%s16423_s0 + $0x200] sm:$0xff]  ;;  %v240_v40 = vpack.c.bf16 %v197_v38, %v196_v37  ;;  %v68_v42 = vld [vmem:[%s16423_s0 + $0x210] sm:$0xff]  ;;  %v73_v60 = vld [vmem:[%s16423_s0 + $0x248] sm:$0xff] }
  0x99   :  { %2167 = vmatmul.mubr.bf16.gmra.mrb[44].mxu0 %v10481_v43  ;;  %v10606_v39 = vpack.c.bf16 %v67_v36, %v66_v34  ;;  %v198_v45 = vld [vmem:[%s16423_s0 + $0x229] sm:$0xff]  ;;  %v199_v46 = vld [vmem:[%s16423_s0 + $0x231] sm:$0xff]  ;;  %v200_v53 = vld [vmem:[%s16423_s0 + $0x241] sm:$0xff] }
  0x9a   :  { %2174 = vmatprep.mubr.bf16.mxu0 %v232_v44  ;;  %v69_v44 = vld [vmem:[%s16423_s0 + $0x218] sm:$0xff]  ;;  %v241_v48 = vpack.c.bf16 %v199_v46, %v198_v45  ;;  %v71_v52 = vld [vmem:[%s16423_s0 + $0x230] sm:$0xff]  ;;  %v203_v62 = vld [vmem:[%s16423_s0 + $0x261] sm:$0xff] }
  0x9b   :  { %v10621_v47 = vpack.c.bf16 %v69_v44, %v68_v42  ;;  %v201_v54 = vld [vmem:[%s16423_s0 + $0x249] sm:$0xff]  ;;  %v202_v61 = vld [vmem:[%s16423_s0 + $0x259] sm:$0xff]  ;;  %v204_v6 = vld [vmem:[%s16423_s0 + $0x271] sm:$0xff] }
  0x9c   :  { %v242_v56 = vpack.c.bf16 %v201_v54, %v200_v53  ;;  %v74_v4 = vld [vmem:[%s16423_s0 + $0x258] sm:$0xff]  ;;  %v75_v5 = vld [vmem:[%s16423_s0 + $0x260] sm:$0xff]  ;;  %v76_v12 = vld [vmem:[%s16423_s0 + $0x270] sm:$0xff] }
  0x9d   :  { %v205_v7 = vld [vmem:[%s16423_s0 + $0x279] sm:$0xff]  ;;  %v10666_v9 = vpack.c.bf16 %v75_v5, %v74_v4  ;;  %v206_v14 = vld [vmem:[%s16423_s0 + $0x289] sm:$0xff]  ;;  %v207_v16 = vld [vmem:[%s16423_s0 + $0x291] sm:$0xff] }
  0x9e   :  { %v77_v13 = vld [vmem:[%s16423_s0 + $0x278] sm:$0xff]  ;;  %v78_v19 = vld [vmem:[%s16423_s0 + $0x288] sm:$0xff]  ;;  %v79_v20 = vld [vmem:[%s16423_s0 + $0x290] sm:$0xff] }
  0x9f   :  { %v208_v22 = vld [vmem:[%s16423_s0 + $0x2a1] sm:$0xff]  ;;  %v209_v23 = vld [vmem:[%s16423_s0 + $0x2a9] sm:$0xff]  ;;  %v210_v30 = vld [vmem:[%s16423_s0 + $0x2b9] sm:$0xff] }
  0xa0   :  { %v246_v26 = vpack.c.bf16 %v209_v23, %v208_v22  ;;  %v80_v27 = vld [vmem:[%s16423_s0 + $0x2a0] sm:$0xff]  ;;  %v81_v29 = vld [vmem:[%s16423_s0 + $0x2a8] sm:$0xff]  ;;  %v82_v37 = vld [vmem:[%s16423_s0 + $0x2b8] sm:$0xff] }
  0xa1   :  { %2175 = vmatmul.mubr.bf16.gmra.mrb[48].mxu0 %v10496_v50  ;;  %v10711_v34 = vpack.c.bf16 %v81_v29, %v80_v27  ;;  %v83_v38 = vld [vmem:[%s16423_s0 + $0x2c0] sm:$0xff]  ;;  %v84_v46 = vld [vmem:[%s16423_s0 + $0x2d0] sm:$0xff]  ;;  %v89_v5 = vld [vmem:[%s16423_s0 + $0x308] sm:$0xff] }
  0xa2   :  { %2182 = vmatprep.mubr.bf16.mxu0 %v233_v51  ;;  %v70_v51 = vld [vmem:[%s16423_s0 + $0x228] sm:$0xff]  ;;  %v213_v42 = vld [vmem:[%s16423_s0 + $0x2d9] sm:$0xff]  ;;  %v10726_v44 = vpack.c.bf16 %v83_v38, %v82_v37 }
  0xa3   :  { %v10636_v55 = vpack.c.bf16 %v71_v52, %v70_v51  ;;  %v214_v51 = vld [vmem:[%s16423_s0 + $0x2e9] sm:$0xff]  ;;  %v215_v52 = vld [vmem:[%s16423_s0 + $0x2f1] sm:$0xff]  ;;  %v88_v4 = vld [vmem:[%s16423_s0 + $0x300] sm:$0xff] }
  0xa4   :  { %v249_v54 = vpack.c.bf16 %v215_v52, %v214_v51  ;;  %v9921_v22 = vld [vmem:[%s16424_s1 + $0x100] sm:$0xff]   ;;  %v288_v29 = vld [vmem:[%s16423_s0 + $0x32] sm:$0xff]  ;;  %v290_v37 = vld [vmem:[%s16423_s0 + $0x4a] sm:$0xff] }
  0xa5   :  { %v287_v23 = vld [vmem:[%s16423_s0 + $0x22] sm:$0xff]  ;;  %v291_v38 = vld [vmem:[%s16423_s0 + $0x52] sm:$0xff]  ;;  %v294_v52 = vld [vmem:[%s16423_s0 + $0x7a] sm:$0xff] }
  0xa9   :  { %2183 = vmatmul.mubr.bf16.gmra.mrb[52].mxu0 %v10515_v58 }
  0xaa   :  { %2190 = vmatprep.mubr.bf16.mxu0 %v234_v59  ;;  %v72_v59 = vld [vmem:[%s16423_s0 + $0x240] sm:$0xff] }
  0xab   :  { %v10651_v63 = vpack.c.bf16 %v73_v60, %v72_v59  ;;  %v87_v59 = vld [vmem:[%s16423_s0 + $0x2f0] sm:$0xff]  ;;  %v216_v60 = vld [vmem:[%s16423_s0 + $0x301] sm:$0xff] }
  0xb1   :  { %2191 = vmatmul.mubr.bf16.gmra.mrb[56].mxu0 %v10530_v0 }
  0xb2   :  { %2198 = vmatprep.mubr.bf16.mxu0 %v235_v3  ;;  %v243_v3 = vpack.c.bf16 %v203_v62, %v202_v61  ;;  %v217_v61 = vld [vmem:[%s16423_s0 + $0x309] sm:$0xff] }
  0xb9   :  { %2199 = vmatmul.mubr.bf16.gmra.mrb[60].mxu0 %v10549_v10 }
  0xba   :  { %2206 = vmatprep.mubr.bf16.mxu0 %v236_v11  ;;  %v244_v11 = vpack.c.bf16 %v205_v7, %v204_v6  ;;  %v218_v6 = vld [vmem:[%s16423_s0 + $0x319] sm:$0xff]  ;;  %v219_v7 = vld [vmem:[%s16423_s0 + $0x321] sm:$0xff] }
  0xc1   :  { %2207 = vmatmul.mubr.bf16.gmra.mrb[64].mxu0 %v108_v17  ;;  %v10681_v17 = vpack.c.bf16 %v77_v13, %v76_v12  ;;  %v251_v12 = vpack.c.bf16 %v219_v7, %v218_v6  ;;  %v90_v13 = vld [vmem:[%s16423_s0 + $0x318] sm:$0xff]  ;;  %v301_v7 = vld [vmem:[%s16423_s0 + $0xca] sm:$0xff] }
  0xc2   :  { %2214 = vmatprep.mubr.bf16.mxu0 %v237_v18  ;;  %v245_v18 = vpack.c.bf16 %v207_v16, %v206_v14  ;;  %v91_v14 = vld [vmem:[%s16423_s0 + $0x320] sm:$0xff] }
  0xc3   :  { %v10780_v16 = vpack.c.bf16 %v91_v14, %v90_v13  ;;  %v9933_v13 = vld [vmem:[%s16424_s1 + $0x160] sm:$0xff]  }
  0xc4   :  { %v303_v14 = vld [vmem:[%s16423_s0 + $0xe2] sm:$0xff] }
  0xc9   :  { %2215 = vmatmul.mubr.bf16.gmra.mrb[68].mxu0 %v10576_v24 }
  0xca   :  { %2222 = vmatprep.mubr.bf16.mxu0 %v238_v25  ;;  %v10696_v25 = vpack.c.bf16 %v79_v20, %v78_v19  ;;  %v285_v19 = vld [vmem:[%s16423_s0 + $0xa] sm:$0xff] }
  0xd1   :  { %2223 = vmatmul.mubr.bf16.gmra.mrb[72].mxu0 %v10591_v31 }
  0xd2   :  { %2230 = vmatprep.mubr.bf16.mxu0 %v239_v32  ;;  %v211_v32 = vld [vmem:[%s16423_s0 + $0x2c1] sm:$0xff] }
  0xd3   :  { %v247_v36 = vpack.c.bf16 %v211_v32, %v210_v30  ;;  %v289_v30 = vld [vmem:[%s16423_s0 + $0x3a] sm:$0xff] }
  0xd4   :  { %v9924_v32 = vld [vmem:[%s16424_s1 + $0x118] sm:$0xff]  }
  0xd9   :  { %2231 = vmatmul.mubr.bf16.gmra.mrb[76].mxu0 %v10606_v39 }
  0xda   :  { %2238 = vmatprep.mubr.bf16.mxu0 %v240_v40  ;;  %v212_v40 = vld [vmem:[%s16423_s0 + $0x2d1] sm:$0xff] }
  0xdb   :  { %v248_v45 = vpack.c.bf16 %v213_v42, %v212_v40  ;;  %v9926_v40 = vld [vmem:[%s16424_s1 + $0x128] sm:$0xff]   ;;  %v10840_v42 = vpack.c.bf16 %v291_v38, %v290_v37  ;;  %v8358_v37 = vld [vmem:[%s16423_s0 + $0x180] sm:$0xff] }
  0xdc   :  { %v8359_v38 = vld [vmem:[%s16423_s0 + $0x188] sm:$0xff] }
  0xe1   :  { %2239 = vmatmul.mubr.bf16.gmra.mrb[80].mxu0 %v10621_v47 }
  0xe2   :  { %2246 = vmatprep.mubr.bf16.mxu0 %v241_v48  ;;  %v85_v48 = vld [vmem:[%s16423_s0 + $0x2d8] sm:$0xff] }
  0xe3   :  { %v10741_v53 = vpack.c.bf16 %v85_v48, %v84_v46  ;;  %v293_v46 = vld [vmem:[%s16423_s0 + $0x6a] sm:$0xff]  ;;  %v9928_v48 = vld [vmem:[%s16424_s1 + $0x138] sm:$0xff]  }
  0xe9   :  { %2247 = vmatmul.mubr.bf16.gmra.mrb[84].mxu0 %v10636_v55 }
  0xea   :  { %2254 = vmatprep.mubr.bf16.mxu0 %v242_v56  ;;  %v86_v56 = vld [vmem:[%s16423_s0 + $0x2e8] sm:$0xff] }
  0xeb   :  { %v10756_v62 = vpack.c.bf16 %v87_v59, %v86_v56  ;;  %v9930_v56 = vld [vmem:[%s16424_s1 + $0x148] sm:$0xff]  }
  0xf1   :  { %2255 = vmatmul.mubr.bf16.gmra.mrb[88].mxu0 %v10651_v63 }
  0xf2   :  { %2262 = vmatprep.mubr.bf16.mxu0 %v243_v3  ;;  %v250_v3 = vpack.c.bf16 %v217_v61, %v216_v60  ;;  %v296_v60 = vld [vmem:[%s16423_s0 + $0x92] sm:$0xff]  ;;  %v297_v61 = vld [vmem:[%s16423_s0 + $0x9a] sm:$0xff] }
  0xf9   :  { %2263 = vmatmul.mubr.bf16.gmra.mrb[92].mxu0 %v10666_v9 }
  0xfa   :  { %2270 = vmatprep.mubr.bf16.mxu0 %v244_v11  ;;  %v10771_v11 = vpack.c.bf16 %v89_v5, %v88_v4  ;;  %v9932_v4 = vld [vmem:[%s16424_s1 + $0x158] sm:$0xff]  }
  0xfb   :  { %v299_v5 = vld [vmem:[%s16423_s0 + $0xb2] sm:$0xff] }
 0x101   :  { %2271 = vmatmul.mubr.bf16.gmra.mrb[96].mxu0 %v10681_v17 }
 0x102   :  { %2278 = vmatprep.mubr.bf16.mxu0 %v245_v18  ;;  %v284_v18 = vld [vmem:[%s16423_s0 + $0x2] sm:$0xff] }
 0x103   :  { %v348_v20 = vpack.c.bf16 %v285_v19, %v284_v18  ;;  %v305_v19 = vld [vmem:[%s16423_s0 + $0xfa] sm:$0xff] }
 0x109   :  { %2279 = vmatmul.mubr.bf16.gmra.mrb[100].mxu0 %v10696_v25 }
 0x10a   :  { %2286 = vmatprep.mubr.bf16.mxu0 %v246_v26  ;;  %v9922_v26 = vld [vmem:[%s16424_s1 + $0x108] sm:$0xff]  }
 0x111   :  { %2287 = vmatmul.mubr.bf16.gmra.mrb[104].mxu0 %v10711_v34 }
 0x112   :  { %2294 = vmatprep.mubr.bf16.mxu0 %v247_v36  ;;  %v10822_v36 = vpack.c.bf16 %v289_v30, %v288_v29  ;;  %v9935_v29 = vld [vmem:[%s16424_s1 + $0x170] sm:$0xff]   ;;  %v311_v30 = vld [vmem:[%s16423_s0 + $0x142] sm:$0xff] }
 0x119   :  { %2295 = vmatmul.mubr.bf16.gmra.mrb[108].mxu0 %v10726_v44 }
 0x11a   :  { %2302 = vmatprep.mubr.bf16.mxu0 %v248_v45  ;;  %v292_v45 = vld [vmem:[%s16423_s0 + $0x62] sm:$0xff] }
 0x11b   :  { %v10858_v51 = vpack.c.bf16 %v293_v46, %v292_v45  ;;  %v314_v45 = vld [vmem:[%s16423_s0 + $0x16a] sm:$0xff]  ;;  %v315_v46 = vld [vmem:[%s16423_s0 + $0x172] sm:$0xff] }
 0x121   :  { %2303 = vmatmul.mubr.bf16.gmra.mrb[112].mxu0 %v10741_v53 }
 0x122   :  { %2310 = vmatprep.mubr.bf16.mxu0 %v249_v54  ;;  %v295_v54 = vld [vmem:[%s16423_s0 + $0x82] sm:$0xff] }
 0x123   :  { %v10876_v59 = vpack.c.bf16 %v295_v54, %v294_v52  ;;  %v317_v52 = vld [vmem:[%s16423_s0 + $0x1ba] sm:$0xff] }
 0x129   :  { %2311 = vmatmul.mubr.bf16.gmra.mrb[116].mxu0 %v10756_v62 }
 0x12a   :  { %2318 = vmatprep.mubr.bf16.mxu0 %v250_v3  ;;  %v10891_v3 = vpack.c.bf16 %v297_v61, %v296_v60  ;;  %v320_v60 = vld [vmem:[%s16423_s0 + $0x1e2] sm:$0xff] }
 0x131   :  { %2319 = vmatmul.mubr.bf16.gmra.mrb[120].mxu0 %v10771_v11 }
 0x132   :  { %2326 = vmatprep.mubr.bf16.mxu0 %v251_v12 }
 0x139   :  { %2327 = vmatmul.mubr.bf16.gmra.mrb[124].mxu0 %v10780_v16 }
 0x13a   :  { %2367 = vmatprep.mubr.bf16.mxu0 %v10285_v33  ;;  %v286_v33 = vld [vmem:[%s16423_s0 + $0x1a] sm:$0xff] }
 0x13b   :  { %v10804_v27 = vpack.c.bf16 %v287_v23, %v286_v33  ;;  %v307_v33 = vld [vmem:[%s16423_s0 + $0x112] sm:$0xff] }
 0x141   :  { %2368 = vmatmul.mubr.bf16.vlgmr.msra.gmra.mrb[0].mxu0 %v348_v20 }
 0x142   :  { %2625 = vmatpush1.bf16.msra.mxu0 %v9921_v22  ;;  %2375 = vmatprep.mubr.bf16.mxu0 %v10308_v41  ;;  %v9923_v41 = vld [vmem:[%s16424_s1 + $0x110] sm:$0xff]   ;;  %v9934_v22 = vld [vmem:[%s16424_s1 + $0x168] sm:$0xff]  }
 0x143   :  { %2626 = vmatprep.subr.bf16.mxu0 %v16431_v1 }
 0x146   :  { %2627 = vmatpush1.bf16.msra.mxu0 %v9922_v26  ;;  %v309_v26 = vld [vmem:[%s16423_s0 + $0x12a] sm:$0xff] }
 0x147   :  { %2628 = vmatprep.subr.bf16.mxu0 %v16431_v1 }
 0x149   :  { %2376 = vmatmul.mubr.bf16.gmra.mrb[4].mxu0 %v10804_v27 }
 0x14a   :  { %2383 = vmatprep.mubr.bf16.mxu0 %v10331_v49  ;;  %2629 = vmatpush1.bf16.msra.mxu0 %v9923_v41  ;;  %v9925_v49 = vld [vmem:[%s16424_s1 + $0x120] sm:$0xff]  }
 0x14b   :  { %2630 = vmatprep.subr.bf16.mxu0 %v16431_v1 }
 0x14e   :  { %2631 = vmatpush1.bf16.msra.mxu0 %v9924_v32 }
 0x14f   :  { %2632 = vmatprep.subr.bf16.mxu0 %v16431_v1 }
 0x151   :  { %2384 = vmatmul.mubr.bf16.gmra.mrb[8].mxu0 %v10822_v36 }
 0x152   :  { %2391 = vmatprep.mubr.bf16.mxu0 %v10354_v57  ;;  %2633 = vmatpush1.bf16.msra.mxu0 %v9925_v49  ;;  %v9927_v57 = vld [vmem:[%s16424_s1 + $0x130] sm:$0xff]   ;;  %v313_v49 = vld [vmem:[%s16423_s0 + $0x15a] sm:$0xff] }
 0x153   :  { %2634 = vmatprep.subr.bf16.mxu0 %v16431_v1 }
 0x156   :  { %2635 = vmatpush1.bf16.msra.mxu0 %v9926_v40 }
 0x157   :  { %2636 = vmatprep.subr.bf16.mxu0 %v16431_v1 }
 0x159   :  { %2392 = vmatmul.mubr.bf16.gmra.mrb[12].mxu0 %v10840_v42 }
 0x15a   :  { %2399 = vmatprep.mubr.bf16.mxu0 %v10377_v2  ;;  %2637 = vmatpush1.bf16.msra.mxu0 %v9927_v57  ;;  %v9929_v2 = vld [vmem:[%s16424_s1 + $0x140] sm:$0xff]   ;;  %v492_v57 = vpack.c.bf16 %v8359_v38, %v8358_v37  ;;  %v342_v37 = vld [vmem:[%s16423_s0 + $0x2ea] sm:$0xff] }
 0x15b   :  { %2638 = vmatprep.subr.bf16.mxu0 %v16431_v1 }
 0x15e   :  { %2639 = vmatpush1.bf16.msra.mxu0 %v9928_v48  ;;  %v11006_v48 = vpack.c.bf16 %v315_v46, %v314_v45  ;;  %v8391_v45 = vld [vmem:[%s16423_s0 + $0x338] sm:$0xff] }
 0x15f   :  { %2640 = vmatprep.subr.bf16.mxu0 %v16431_v1 }
 0x161   :  { %2400 = vmatmul.mubr.bf16.gmra.mrb[16].mxu0 %v10858_v51 }
 0x162   :  { %2407 = vmatprep.mubr.bf16.mxu0 %v10394_v8  ;;  %2641 = vmatpush1.bf16.msra.mxu0 %v9929_v2  ;;  %v9931_v8 = vld [vmem:[%s16424_s1 + $0x150] sm:$0xff]  }
 0x163   :  { %2642 = vmatprep.subr.bf16.mxu0 %v16431_v1  ;;  %v316_v2 = vld [vmem:[%s16423_s0 + $0x1b2] sm:$0xff] }
 0x164   :  { %v364_v54 = vpack.c.bf16 %v317_v52, %v316_v2  ;;  %v347_v52 = vld [vmem:[%s16423_s0 + $0x322] sm:$0xff] }
 0x166   :  { %2643 = vmatpush1.bf16.msra.mxu0 %v9930_v56  ;;  %v318_v56 = vld [vmem:[%s16423_s0 + $0x1ca] sm:$0xff] }
 0x167   :  { %2644 = vmatprep.subr.bf16.mxu0 %v16431_v1 }
 0x169   :  { %2408 = vmatmul.mubr.bf16.gmra.mrb[20].mxu0 %v10876_v59 }
 0x16a   :  { %2415 = vmatprep.mubr.bf16.mxu0 %v10413_v15  ;;  %2645 = vmatpush1.bf16.msra.mxu0 %v9931_v8  ;;  %v298_v15 = vld [vmem:[%s16423_s0 + $0xaa] sm:$0xff] }
 0x16b   :  { %2646 = vmatprep.subr.bf16.mxu0 %v16431_v1  ;;  %v10905_v6 = vpack.c.bf16 %v299_v5, %v298_v15  ;;  %v324_v5 = vld [vmem:[%s16423_s0 + $0x212] sm:$0xff] }
 0x16e   :  { %2647 = vmatpush1.bf16.msra.mxu0 %v9932_v4  ;;  %v322_v4 = vld [vmem:[%s16423_s0 + $0x1fa] sm:$0xff] }
 0x16f   :  { %2648 = vmatprep.subr.bf16.mxu0 %v16431_v1 }
 0x171   :  { %2416 = vmatmul.mubr.bf16.gmra.mrb[24].mxu0 %v10891_v3 }
 0x172   :  { %2423 = vmatprep.mubr.bf16.mxu0 %v10428_v21  ;;  %v300_v21 = vld [vmem:[%s16423_s0 + $0xc2] sm:$0xff]  ;;  %2649 = vmatpush1.bf16.msra.mxu0 %v9933_v13 }
 0x173   :  { %v10915_v12 = vpack.c.bf16 %v301_v7, %v300_v21  ;;  %2650 = vmatprep.subr.bf16.mxu0 %v16431_v1  ;;  %v326_v7 = vld [vmem:[%s16423_s0 + $0x22a] sm:$0xff] }
 0x176   :  { %2651 = vmatpush1.bf16.msra.mxu0 %v9934_v22  ;;  %v332_v22 = vld [vmem:[%s16423_s0 + $0x272] sm:$0xff] }
 0x177   :  { %2652 = vmatprep.subr.bf16.mxu0 %v16431_v1 }
 0x179   :  { %2424 = vmatmul.mubr.bf16.gmra.mrb[28].mxu0 %v10905_v6 }
 0x17a   :  { %2431 = vmatprep.mubr.bf16.mxu0 %v10447_v28  ;;  %v302_v28 = vld [vmem:[%s16423_s0 + $0xda] sm:$0xff]  ;;  %2653 = vmatpush1.bf16.msra.mxu0 %v9935_v29 }
 0x17b   :  { %v10929_v18 = vpack.c.bf16 %v303_v14, %v302_v28  ;;  %2654 = vmatprep.subr.bf16.mxu0 %v16431_v1  ;;  %v328_v28 = vld [vmem:[%s16423_s0 + $0x242] sm:$0xff] }
 0x181   :  { %2432 = vmatmul.mubr.bf16.gmra.mrb[32].mxu0 %v10915_v12 }
 0x182   :  { %2439 = vmatprep.mubr.bf16.mxu0 %v10462_v35  ;;  %v304_v35 = vld [vmem:[%s16423_s0 + $0xf2] sm:$0xff] }
 0x183   :  { %v10939_v20 = vpack.c.bf16 %v305_v19, %v304_v35  ;;  %v330_v35 = vld [vmem:[%s16423_s0 + $0x25a] sm:$0xff] }
 0x189   :  { %2440 = vmatmul.mubr.bf16.gmra.mrb[36].mxu0 %v10929_v18 }
 0x18a   :  { %2447 = vmatprep.mubr.bf16.mxu0 %v10481_v43  ;;  %v306_v43 = vld [vmem:[%s16423_s0 + $0x10a] sm:$0xff] }
 0x18b   :  { %v10953_v23 = vpack.c.bf16 %v307_v33, %v306_v43  ;;  %v334_v33 = vld [vmem:[%s16423_s0 + $0x28a] sm:$0xff] }
 0x191   :  { %2448 = vmatmul.mubr.bf16.gmra.mrb[40].mxu0 %v10939_v20 }
 0x192   :  { %2455 = vmatprep.mubr.bf16.mxu0 %v10496_v50  ;;  %v308_v50 = vld [vmem:[%s16423_s0 + $0x122] sm:$0xff] }
 0x193   :  { %v10963_v41 = vpack.c.bf16 %v309_v26, %v308_v50  ;;  %v336_v26 = vld [vmem:[%s16423_s0 + $0x2a2] sm:$0xff] }
 0x199   :  { %2456 = vmatmul.mubr.bf16.gmra.mrb[44].mxu0 %v10953_v23 }
 0x19a   :  { %2463 = vmatprep.mubr.bf16.mxu0 %v10515_v58  ;;  %v310_v58 = vld [vmem:[%s16423_s0 + $0x13a] sm:$0xff] }
 0x19b   :  { %v10977_v32 = vpack.c.bf16 %v311_v30, %v310_v58  ;;  %v338_v58 = vld [vmem:[%s16423_s0 + $0x2ba] sm:$0xff] }
 0x1a1   :  { %2464 = vmatmul.mubr.bf16.gmra.mrb[48].mxu0 %v10963_v41 }
 0x1a2   :  { %2471 = vmatprep.mubr.bf16.mxu0 %v10530_v0  ;;  %v312_v0 = vld [vmem:[%s16423_s0 + $0x152] sm:$0xff] }
 0x1a3   :  { %v10993_v40 = vpack.c.bf16 %v313_v49, %v312_v0  ;;  %v340_v0 = vld [vmem:[%s16423_s0 + $0x2d2] sm:$0xff] }
 0x1a9   :  { %2472 = vmatmul.mubr.bf16.gmra.mrb[52].mxu0 %v10977_v32 }
 0x1aa   :  { %2479 = vmatprep.mubr.bf16.mxu0 %v10549_v10  ;;  %v9936_v10 = vld [vmem:[%s16424_s1 + $0x178] sm:$0xff]  }
 0x1ab   :  { %2655 = vmatpush1.bf16.msra.mxu0 %v9936_v10  ;;  %v8390_v10 = vld [vmem:[%s16423_s0 + $0x330] sm:$0xff] }
 0x1ac   :  { %2913 = vmatprep.subr.bf16.mxu0 %v16431_v1  ;;  %v508_v2 = vpack.c.bf16 %v8391_v45, %v8390_v10  ;;  %v8409_v45 = vld [vmem:[%s16423_s0 + $0xe1] sm:$0xff] }
 0x1b1   :  { %2480 = vmatmul.mubr.bf16.gmra.mrb[56].mxu0 %v10993_v40 }
 0x1b2   :  { %2487 = vmatprep.mubr.bf16.mxu0 %v492_v57  ;;  %v344_v57 = vld [vmem:[%s16423_s0 + $0x302] sm:$0xff] }
 0x1b9   :  { %2488 = vmatmul.mubr.bf16.gmra.mrb[60].mxu0 %v11006_v48 }
 0x1ba   :  { %2495 = vmatprep.mubr.bf16.mxu0 %v10576_v24  ;;  %v319_v24 = vld [vmem:[%s16423_s0 + $0x1d2] sm:$0xff] }
 0x1bb   :  { %v11023_v8 = vpack.c.bf16 %v319_v24, %v318_v56  ;;  %v8392_v56 = vld [vmem:[%s16423_s0 + $0x19] sm:$0xff]  ;;  %v8393_v24 = vld [vmem:[%s16423_s0 + $0x21] sm:$0xff] }
 0x1c1   :  { %2496 = vmatmul.mubr.bf16.gmra.mrb[64].mxu0 %v364_v54 }
 0x1c2   :  { %2503 = vmatprep.mubr.bf16.mxu0 %v10591_v31  ;;  %v321_v31 = vld [vmem:[%s16423_s0 + $0x1ea] sm:$0xff] }
 0x1c3   :  { %v11033_v61 = vpack.c.bf16 %v321_v31, %v320_v60  ;;  %v605_v60 = vpack.c.bf16 %v8393_v24, %v8392_v56  ;;  %v9937_v31 = vld [vmem:[%s16424_s1 + $0x180] sm:$0xff]   ;;  %v8413_v24 = vld [vmem:[%s16423_s0 + $0x111] sm:$0xff] }
 0x1c9   :  { %2504 = vmatmul.mubr.bf16.gmra.mrb[68].mxu0 %v11023_v8 }
 0x1ca   :  { %2511 = vmatprep.mubr.bf16.mxu0 %v10606_v39  ;;  %v323_v39 = vld [vmem:[%s16423_s0 + $0x202] sm:$0xff] }
 0x1cb   :  { %v11043_v15 = vpack.c.bf16 %v323_v39, %v322_v4  ;;  %v8395_v4 = vld [vmem:[%s16423_s0 + $0x39] sm:$0xff]  ;;  %v9938_v39 = vld [vmem:[%s16424_s1 + $0x188] sm:$0xff]  }
 0x1d1   :  { %2512 = vmatmul.mubr.bf16.gmra.mrb[72].mxu0 %v11033_v61 }
 0x1d2   :  { %2519 = vmatprep.mubr.bf16.mxu0 %v10621_v47  ;;  %v325_v47 = vld [vmem:[%s16423_s0 + $0x21a] sm:$0xff] }
 0x1d3   :  { %v11053_v21 = vpack.c.bf16 %v325_v47, %v324_v5  ;;  %v8396_v47 = vld [vmem:[%s16423_s0 + $0x49] sm:$0xff] }
 0x1d9   :  { %2520 = vmatmul.mubr.bf16.gmra.mrb[76].mxu0 %v11043_v15 }
 0x1da   :  { %2527 = vmatprep.mubr.bf16.mxu0 %v10636_v55  ;;  %v327_v55 = vld [vmem:[%s16423_s0 + $0x232] sm:$0xff] }
 0x1db   :  { %v11063_v13 = vpack.c.bf16 %v327_v55, %v326_v7  ;;  %v8397_v7 = vld [vmem:[%s16423_s0 + $0x51] sm:$0xff] }
 0x1dc   :  { %v9940_v55 = vld [vmem:[%s16424_s1 + $0x198] sm:$0xff]  }
 0x1e1   :  { %2528 = vmatmul.mubr.bf16.gmra.mrb[80].mxu0 %v11053_v21 }
 0x1e2   :  { %2535 = vmatprep.mubr.bf16.mxu0 %v10651_v63  ;;  %v329_v63 = vld [vmem:[%s16423_s0 + $0x24a] sm:$0xff] }
 0x1e3   :  { %v11073_v14 = vpack.c.bf16 %v329_v63, %v328_v28  ;;  %v11210_v28 = vpack.c.bf16 %v8397_v7, %v8396_v47  ;;  %v8398_v63 = vld [vmem:[%s16423_s0 + $0x61] sm:$0xff] }
 0x1e4   :  { %v9953_v7 = vld [vmem:[%s16424_s1 + $0x208] sm:$0xff]  }
 0x1e9   :  { %2536 = vmatmul.mubr.bf16.gmra.mrb[84].mxu0 %v11063_v13 }
 0x1ea   :  { %2543 = vmatprep.mubr.bf16.mxu0 %v10666_v9  ;;  %v331_v9 = vld [vmem:[%s16423_s0 + $0x262] sm:$0xff] }
 0x1eb   :  { %v11083_v19 = vpack.c.bf16 %v331_v9, %v330_v35  ;;  %v8399_v35 = vld [vmem:[%s16423_s0 + $0x69] sm:$0xff] }
 0x1ec   :  { %v9942_v9 = vld [vmem:[%s16424_s1 + $0x1a8] sm:$0xff]  }
 0x1f1   :  { %2544 = vmatmul.mubr.bf16.gmra.mrb[88].mxu0 %v11073_v14 }
 0x1f2   :  { %2551 = vmatprep.mubr.bf16.mxu0 %v10681_v17  ;;  %v333_v17 = vld [vmem:[%s16423_s0 + $0x27a] sm:$0xff] }
 0x1f3   :  { %v11093_v43 = vpack.c.bf16 %v333_v17, %v332_v22  ;;  %v11228_v22 = vpack.c.bf16 %v8399_v35, %v8398_v63  ;;  %v8400_v17 = vld [vmem:[%s16423_s0 + $0x79] sm:$0xff]  ;;  %v9954_v63 = vld [vmem:[%s16424_s1 + $0x210] sm:$0xff]  }
 0x1f9   :  { %2552 = vmatmul.mubr.bf16.gmra.mrb[92].mxu0 %v11083_v19 }
 0x1fa   :  { %2559 = vmatprep.mubr.bf16.mxu0 %v10696_v25  ;;  %v335_v25 = vld [vmem:[%s16423_s0 + $0x292] sm:$0xff] }
 0x1fb   :  { %v11103_v50 = vpack.c.bf16 %v335_v25, %v334_v33  ;;  %v8401_v33 = vld [vmem:[%s16423_s0 + $0x81] sm:$0xff]  ;;  %v9944_v25 = vld [vmem:[%s16424_s1 + $0x1b8] sm:$0xff]  }
 0x201   :  { %2560 = vmatmul.mubr.bf16.gmra.mrb[96].mxu0 %v11093_v43 }
 0x202   :  { %2567 = vmatprep.mubr.bf16.mxu0 %v10711_v34  ;;  %v337_v34 = vld [vmem:[%s16423_s0 + $0x2aa] sm:$0xff] }
 0x203   :  { %v11113_v29 = vpack.c.bf16 %v337_v34, %v336_v26  ;;  %v11246_v26 = vpack.c.bf16 %v8401_v33, %v8400_v17  ;;  %v8402_v34 = vld [vmem:[%s16423_s0 + $0x91] sm:$0xff]  ;;  %v9956_v17 = vld [vmem:[%s16424_s1 + $0x220] sm:$0xff]  }
 0x204   :  { %v8486_v33 = vld [vmem:[%s16423_s0 + $0x182] sm:$0xff] }
 0x209   :  { %2568 = vmatmul.mubr.bf16.gmra.mrb[100].mxu0 %v11103_v50 }
 0x20a   :  { %2575 = vmatprep.mubr.bf16.mxu0 %v10726_v44  ;;  %v339_v44 = vld [vmem:[%s16423_s0 + $0x2c2] sm:$0xff] }
 0x20b   :  { %v11123_v30 = vpack.c.bf16 %v339_v44, %v338_v58  ;;  %v8403_v58 = vld [vmem:[%s16423_s0 + $0x99] sm:$0xff]  ;;  %v9946_v44 = vld [vmem:[%s16424_s1 + $0x1c8] sm:$0xff]  }
 0x211   :  { %2576 = vmatmul.mubr.bf16.gmra.mrb[104].mxu0 %v11113_v29 }
 0x212   :  { %2583 = vmatprep.mubr.bf16.mxu0 %v10741_v53  ;;  %v341_v53 = vld [vmem:[%s16423_s0 + $0x2da] sm:$0xff] }
 0x213   :  { %v11133_v49 = vpack.c.bf16 %v341_v53, %v340_v0  ;;  %v11264_v0 = vpack.c.bf16 %v8403_v58, %v8402_v34  ;;  %v8404_v53 = vld [vmem:[%s16423_s0 + $0xa9] sm:$0xff]  ;;  %v9957_v34 = vld [vmem:[%s16424_s1 + $0x1f8] sm:$0xff]  }
 0x214   :  { %v9958_v58 = vld [vmem:[%s16424_s1 + $0x228] sm:$0xff]  }
 0x219   :  { %2584 = vmatmul.mubr.bf16.gmra.mrb[108].mxu0 %v11123_v30 }
 0x21a   :  { %2591 = vmatprep.mubr.bf16.mxu0 %v10756_v62  ;;  %v343_v62 = vld [vmem:[%s16423_s0 + $0x2f2] sm:$0xff] }
 0x21b   :  { %v11143_v38 = vpack.c.bf16 %v343_v62, %v342_v37  ;;  %v8405_v37 = vld [vmem:[%s16423_s0 + $0xb1] sm:$0xff] }
 0x21c   :  { %v11279_v62 = vpack.c.bf16 %v8405_v37, %v8404_v53  ;;  %v9959_v53 = vld [vmem:[%s16424_s1 + $0x230] sm:$0xff]  }
 0x221   :  { %2592 = vmatmul.mubr.bf16.gmra.mrb[112].mxu0 %v11133_v49 }
 0x222   :  { %2599 = vmatprep.mubr.bf16.mxu0 %v10771_v11  ;;  %v345_v11 = vld [vmem:[%s16423_s0 + $0x30a] sm:$0xff] }
 0x223   :  { %v11159_v46 = vpack.c.bf16 %v345_v11, %v344_v57  ;;  %v9948_v57 = vld [vmem:[%s16424_s1 + $0x1d8] sm:$0xff]   ;;  %v8407_v11 = vld [vmem:[%s16423_s0 + $0xc9] sm:$0xff] }
 0x229   :  { %2600 = vmatmul.mubr.bf16.gmra.mrb[116].mxu0 %v11143_v38 }
 0x22a   :  { %2607 = vmatprep.mubr.bf16.mxu0 %v10780_v16  ;;  %v346_v16 = vld [vmem:[%s16423_s0 + $0x31a] sm:$0xff] }
 0x22b   :  { %v11168_v54 = vpack.c.bf16 %v347_v52, %v346_v16  ;;  %v9949_v16 = vld [vmem:[%s16424_s1 + $0x1e0] sm:$0xff]  }
 0x22c   :  { %v8411_v52 = vld [vmem:[%s16423_s0 + $0xf9] sm:$0xff] }
 0x231   :  { %2608 = vmatmul.mubr.bf16.gmra.mrb[120].mxu0 %v11159_v46 }
 0x232   :  { %2615 = vmatprep.mubr.bf16.mxu0 %v508_v2 }
 0x239   :  { %2616 = vmatmul.mubr.bf16.gmra.mrb[124].mxu0 %v11168_v54 }
 0x23a   :  { %2656 = vmatprep.mubr.bf16.mxu0 %v10804_v27  ;;  %v8394_v27 = vld [vmem:[%s16423_s0 + $0x31] sm:$0xff] }
 0x23b   :  { %v11192_v5 = vpack.c.bf16 %v8395_v4, %v8394_v27  ;;  %v8415_v27 = vld [vmem:[%s16423_s0 + $0x129] sm:$0xff] }
 0x241   :  { %2657 = vmatmul.mubr.bf16.vlgmr.msra.gmra.mrb[0].mxu0 %v605_v60 }
 0x242   :  { %2914 = vmatpush1.bf16.msra.mxu0 %v9937_v31  ;;  %2664 = vmatprep.mubr.bf16.mxu0 %v10822_v36  ;;  %v9939_v36 = vld [vmem:[%s16424_s1 + $0x190] sm:$0xff]   ;;  %v9950_v31 = vld [vmem:[%s16424_s1 + $0x1e8] sm:$0xff]  }
 0x243   :  { %2915 = vmatprep.subr.bf16.mxu0 %v16431_v1 }
 0x246   :  { %2916 = vmatpush1.bf16.msra.mxu0 %v9938_v39  ;;  %v8417_v39 = vld [vmem:[%s16423_s0 + $0x141] sm:$0xff] }
 0x247   :  { %2917 = vmatprep.subr.bf16.mxu0 %v16431_v1 }
 0x249   :  { %2665 = vmatmul.mubr.bf16.gmra.mrb[4].mxu0 %v11192_v5 }
 0x24a   :  { %2672 = vmatprep.mubr.bf16.mxu0 %v10840_v42  ;;  %2918 = vmatpush1.bf16.msra.mxu0 %v9939_v36  ;;  %v9941_v42 = vld [vmem:[%s16424_s1 + $0x1a0] sm:$0xff]  }
 0x24b   :  { %2919 = vmatprep.subr.bf16.mxu0 %v16431_v1  ;;  %v9951_v36 = vld [vmem:[%s16424_s1 + $0x200] sm:$0xff]  }
 0x24c   :  { %8940 = vmatprep.subr.bf16.mxu1 %v9951_v36 }
 0x24d   :  { %8941 = vmatpush3.bf16.msra.mxu1 %v9951_v36 }
 0x24e   :  { %2920 = vmatpush1.bf16.msra.mxu0 %v9940_v55  ;;  %v8418_v55 = vld [vmem:[%s16423_s0 + $0x151] sm:$0xff]  ;;  %8942 = vmatprep.subr.bf16.mxu1 %v9953_v7 }
 0x24f   :  { %2921 = vmatprep.subr.bf16.mxu0 %v16431_v1 }
 0x251   :  { %2673 = vmatmul.mubr.bf16.gmra.mrb[8].mxu0 %v11210_v28  ;;  %8943 = vmatpush3.bf16.msra.mxu1 %v9953_v7  ;;  %v8655_v7 = vld [vmem:[%s16423_s0 + $0x82] sm:$0xff] }
 0x252   :  { %2680 = vmatprep.mubr.bf16.mxu0 %v10858_v51  ;;  %2922 = vmatpush1.bf16.msra.mxu0 %v9941_v42  ;;  %v9943_v51 = vld [vmem:[%s16424_s1 + $0x1b0] sm:$0xff]   ;;  %v8419_v42 = vld [vmem:[%s16423_s0 + $0x159] sm:$0xff] }
 0x253   :  { %2923 = vmatprep.subr.bf16.mxu0 %v16431_v1  ;;  %v11374_v35 = vpack.c.bf16 %v8419_v42, %v8418_v55  ;;  %8944 = vmatprep.subr.bf16.mxu1 %v9954_v63 }
 0x255   :  { %8945 = vmatpush3.bf16.msra.mxu1 %v9954_v63  ;;  %v8431_v63 = vld [vmem:[%s16423_s0 + $0x219] sm:$0xff] }
 0x256   :  { %2924 = vmatpush1.bf16.msra.mxu0 %v9942_v9  ;;  %v8420_v9 = vld [vmem:[%s16423_s0 + $0x169] sm:$0xff] }
 0x257   :  { %2925 = vmatprep.subr.bf16.mxu0 %v16431_v1 }
 0x259   :  { %2681 = vmatmul.mubr.bf16.gmra.mrb[12].mxu0 %v11228_v22 }
 0x25a   :  { %2688 = vmatprep.mubr.bf16.mxu0 %v10876_v59  ;;  %2926 = vmatpush1.bf16.msra.mxu0 %v9943_v51  ;;  %v9945_v59 = vld [vmem:[%s16424_s1 + $0x1c0] sm:$0xff]   ;;  %v8421_v51 = vld [vmem:[%s16423_s0 + $0x171] sm:$0xff] }
 0x25b   :  { %2927 = vmatprep.subr.bf16.mxu0 %v16431_v1 }
 0x25e   :  { %2928 = vmatpush1.bf16.msra.mxu0 %v9944_v25  ;;  %v11396_v25 = vpack.c.bf16 %v8421_v51, %v8420_v9  ;;  %v8432_v9 = vld [vmem:[%s16423_s0 + $0x229] sm:$0xff]  ;;  %v8657_v51 = vld [vmem:[%s16423_s0 + $0x9a] sm:$0xff] }
 0x25f   :  { %2929 = vmatprep.subr.bf16.mxu0 %v16431_v1 }
 0x261   :  { %2689 = vmatmul.mubr.bf16.gmra.mrb[16].mxu0 %v11246_v26 }
 0x262   :  { %2696 = vmatprep.mubr.bf16.mxu0 %v10891_v3  ;;  %2930 = vmatpush1.bf16.msra.mxu0 %v9945_v59  ;;  %v9947_v3 = vld [vmem:[%s16424_s1 + $0x1d0] sm:$0xff]  }
 0x263   :  { %2931 = vmatprep.subr.bf16.mxu0 %v16431_v1 }
 0x266   :  { %2932 = vmatpush1.bf16.msra.mxu0 %v9946_v44  ;;  %v8422_v44 = vld [vmem:[%s16423_s0 + $0x181] sm:$0xff] }
 0x267   :  { %2933 = vmatprep.subr.bf16.mxu0 %v16431_v1 }
 0x269   :  { %2697 = vmatmul.mubr.bf16.gmra.mrb[20].mxu0 %v11264_v0 }
 0x26a   :  { %2704 = vmatprep.mubr.bf16.mxu0 %v10905_v6  ;;  %2934 = vmatpush1.bf16.msra.mxu0 %v9947_v3  ;;  %v8406_v6 = vld [vmem:[%s16423_s0 + $0xc1] sm:$0xff]  ;;  %v8423_v3 = vld [vmem:[%s16423_s0 + $0x189] sm:$0xff] }
 0x26b   :  { %2935 = vmatprep.subr.bf16.mxu0 %v16431_v1  ;;  %v11293_v10 = vpack.c.bf16 %v8407_v11, %v8406_v6  ;;  %v11417_v37 = vpack.c.bf16 %v8423_v3, %v8422_v44  ;;  %v9960_v6 = vld [vmem:[%s16424_s1 + $0x238] sm:$0xff]   ;;  %v8435_v3 = vld [vmem:[%s16423_s0 + $0x249] sm:$0xff] }
 0x26c   :  { %v8648_v11 = vld [vmem:[%s16423_s0 + $0x32] sm:$0xff] }
 0x26e   :  { %2936 = vmatpush1.bf16.msra.mxu0 %v9948_v57  ;;  %v8424_v57 = vld [vmem:[%s16423_s0 + $0x1c9] sm:$0xff] }
 0x26f   :  { %2937 = vmatprep.subr.bf16.mxu0 %v16431_v1 }
 0x271   :  { %2705 = vmatmul.mubr.bf16.gmra.mrb[24].mxu0 %v11279_v62 }
 0x272   :  { %2712 = vmatprep.mubr.bf16.mxu0 %v10915_v12  ;;  %v8408_v12 = vld [vmem:[%s16423_s0 + $0xd9] sm:$0xff]  ;;  %2938 = vmatpush1.bf16.msra.mxu0 %v9949_v16 }
 0x273   :  { %v11303_v2 = vpack.c.bf16 %v8409_v45, %v8408_v12  ;;  %2939 = vmatprep.subr.bf16.mxu0 %v16431_v1  ;;  %v8649_v12 = vld [vmem:[%s16423_s0 + $0x3a] sm:$0xff]  ;;  %v8425_v45 = vld [vmem:[%s16423_s0 + $0x1d1] sm:$0xff] }
 0x274   :  { %v1118_v16 = vpack.c.bf16 %v8649_v12, %v8648_v11  ;;  %v8437_v11 = vld [vmem:[%s16423_s0 + $0x261] sm:$0xff] }
 0x276   :  { %2940 = vmatpush1.bf16.msra.mxu0 %v9950_v31  ;;  %8956 = vmatprep.mubr.bf16.mxu1 %v1118_v16  ;;  %v8427_v31 = vld [vmem:[%s16423_s0 + $0x1e9] sm:$0xff] }
 0x277   :  { %2941 = vmatprep.subr.bf16.mxu0 %v16431_v1  ;;  %v8663_v16 = vld [vmem:[%s16423_s0 + $0xe2] sm:$0xff] }
 0x279   :  { %2713 = vmatmul.mubr.bf16.gmra.mrb[28].mxu0 %v11293_v10 }
 0x27a   :  { %2720 = vmatprep.mubr.bf16.mxu0 %v10929_v18  ;;  %v8410_v18 = vld [vmem:[%s16423_s0 + $0xf1] sm:$0xff] }
 0x27b   :  { %v11317_v56 = vpack.c.bf16 %v8411_v52, %v8410_v18  ;;  %v8650_v18 = vld [vmem:[%s16423_s0 + $0x4a] sm:$0xff]  ;;  %v8651_v52 = vld [vmem:[%s16423_s0 + $0x52] sm:$0xff] }
 0x281   :  { %2721 = vmatmul.mubr.bf16.gmra.mrb[32].mxu0 %v11303_v2 }
 0x282   :  { %2728 = vmatprep.mubr.bf16.mxu0 %v10939_v20  ;;  %v8412_v20 = vld [vmem:[%s16423_s0 + $0x109] sm:$0xff] }
 0x283   :  { %v11327_v60 = vpack.c.bf16 %v8413_v24, %v8412_v20  ;;  %v1119_v20 = vpack.c.bf16 %v8651_v52, %v8650_v18  ;;  %v621_v24 = vpack.c.bf16 %v8425_v45, %v8424_v57  ;;  %v8436_v57 = vld [vmem:[%s16423_s0 + $0x259] sm:$0xff] }
 0x284   :  { %v8662_v45 = vld [vmem:[%s16423_s0 + $0xda] sm:$0xff]  ;;  %v11536_v52 = vpack.c.bf16 %v8437_v11, %v8436_v57  ;;  %v8449_v57 = vld [vmem:[%s16423_s0 + $0x2f1] sm:$0xff] }
 0x285   :  { %v1125_v18 = vpack.c.bf16 %v8663_v16, %v8662_v45  ;;  %v8675_v11 = vld [vmem:[%s16423_s0 + $0x172] sm:$0xff]  ;;  %v8451_v16 = vld [vmem:[%s16423_s0 + $0x309] sm:$0xff] }
 0x289   :  { %2729 = vmatmul.mubr.bf16.gmra.mrb[36].mxu0 %v11317_v56 }
 0x28a   :  { %2736 = vmatprep.mubr.bf16.mxu0 %v10953_v23  ;;  %v8414_v23 = vld [vmem:[%s16423_s0 + $0x121] sm:$0xff] }
 0x28b   :  { %v11341_v4 = vpack.c.bf16 %v8415_v27, %v8414_v23  ;;  %v8428_v27 = vld [vmem:[%s16423_s0 + $0x1f9] sm:$0xff] }
 0x291   :  { %2737 = vmatmul.mubr.bf16.gmra.mrb[40].mxu0 %v11327_v60 }
 0x292   :  { %2744 = vmatprep.mubr.bf16.mxu0 %v10963_v41  ;;  %v8416_v41 = vld [vmem:[%s16423_s0 + $0x139] sm:$0xff] }
 0x293   :  { %v11354_v47 = vpack.c.bf16 %v8417_v39, %v8416_v41  ;;  %v8653_v41 = vld [vmem:[%s16423_s0 + $0x6a] sm:$0xff]  ;;  %v8429_v39 = vld [vmem:[%s16423_s0 + $0x201] sm:$0xff] }
 0x294   :  { %v11472_v42 = vpack.c.bf16 %v8429_v39, %v8428_v27  ;;  %v8441_v27 = vld [vmem:[%s16423_s0 + $0x291] sm:$0xff] }
 0x295   :  { %v8667_v39 = vld [vmem:[%s16423_s0 + $0x112] sm:$0xff] }
 0x299   :  { %2745 = vmatmul.mubr.bf16.gmra.mrb[44].mxu0 %v11341_v4 }
 0x29a   :  { %2752 = vmatprep.mubr.bf16.mxu0 %v10977_v32  ;;  %v9952_v32 = vld [vmem:[%s16424_s1 + $0x1f0] sm:$0xff]  }
 0x29b   :  { %2942 = vmatpush1.bf16.msra.mxu0 %v9952_v32  ;;  %v8654_v32 = vld [vmem:[%s16423_s0 + $0x7a] sm:$0xff] }
 0x29c   :  { %2943 = vmatprep.subr.bf16.mxu0 %v16431_v1  ;;  %v1121_v55 = vpack.c.bf16 %v8655_v7, %v8654_v32  ;;  %v8443_v7 = vld [vmem:[%s16423_s0 + $0x2a9] sm:$0xff] }
 0x29f   :  { %2944 = vmatpush1.bf16.msra.mxu0 %v9957_v34  ;;  %v8659_v34 = vld [vmem:[%s16423_s0 + $0xb2] sm:$0xff] }
 0x2a1   :  { %2753 = vmatmul.mubr.bf16.gmra.mrb[48].mxu0 %v11354_v47 }
 0x2a2   :  { %2760 = vmatprep.mubr.bf16.mxu0 %v10993_v40  ;;  %v9955_v40 = vld [vmem:[%s16424_s1 + $0x218] sm:$0xff]  }
 0x2a3   :  { %8946 = vmatprep.subr.bf16.mxu1 %v9955_v40 }
 0x2a4   :  { %8947 = vmatpush3.bf16.msra.mxu1 %v9955_v40 }
 0x2a5   :  { %8948 = vmatprep.subr.bf16.mxu1 %v9956_v17 }
 0x2a8   :  { %8949 = vmatpush3.bf16.msra.mxu1 %v9956_v17  ;;  %v8433_v17 = vld [vmem:[%s16423_s0 + $0x231] sm:$0xff] }
 0x2a9   :  { %2761 = vmatmul.mubr.bf16.gmra.mrb[52].mxu0 %v11374_v35  ;;  %8950 = vmatprep.subr.bf16.mxu1 %v9958_v58  ;;  %v11504_v44 = vpack.c.bf16 %v8433_v17, %v8432_v9  ;;  %v8445_v9 = vld [vmem:[%s16423_s0 + $0x2c1] sm:$0xff] }
 0x2aa   :  { %2768 = vmatprep.mubr.bf16.mxu0 %v11006_v48  ;;  %v8487_v48 = vld [vmem:[%s16423_s0 + $0x18a] sm:$0xff]  ;;  %v8671_v17 = vld [vmem:[%s16423_s0 + $0x142] sm:$0xff] }
 0x2ab   :  { %v11398_v59 = vpack.c.bf16 %v8487_v48, %v8486_v33  ;;  %v8658_v48 = vld [vmem:[%s16423_s0 + $0xaa] sm:$0xff] }
 0x2ac   :  { %8951 = vmatpush3.bf16.msra.mxu1 %v9958_v58  ;;  %v1123_v58 = vpack.c.bf16 %v8659_v34, %v8658_v48  ;;  %v8447_v34 = vld [vmem:[%s16423_s0 + $0x2d9] sm:$0xff] }
 0x2ad   :  { %8952 = vmatprep.subr.bf16.mxu1 %v9959_v53 }
 0x2b0   :  { %8953 = vmatpush3.bf16.msra.mxu1 %v9959_v53 }
 0x2b1   :  { %2769 = vmatmul.mubr.bf16.gmra.mrb[56].mxu0 %v11396_v25  ;;  %8954 = vmatprep.subr.bf16.mxu1 %v9960_v6 }
 0x2b2   :  { %2776 = vmatprep.mubr.bf16.mxu0 %v11398_v59 }
 0x2b4   :  { %8955 = vmatpush3.bf16.msra.mxu1 %v9960_v6  ;;  %v8661_v6 = vld [vmem:[%s16423_s0 + $0xca] sm:$0xff] }
 0x2b5   :  { %6199 = vmatprep.subr.bf16.mxu1 %v16431_v1 }
 0x2b7   :  { %8957 = vmatmul.mubr.bf16.vlgmr.msra.gmra.mrb[0].mxu1 %v1119_v20  ;;  %v8439_v20 = vld [vmem:[%s16423_s0 + $0x279] sm:$0xff] }
 0x2b9   :  { %2777 = vmatmul.mubr.bf16.gmra.mrb[60].mxu0 %v11417_v37 }
 0x2ba   :  { %2784 = vmatprep.mubr.bf16.mxu0 %v11023_v8  ;;  %v8426_v8 = vld [vmem:[%s16423_s0 + $0x1e1] sm:$0xff] }
 0x2bb   :  { %v11450_v23 = vpack.c.bf16 %v8427_v31, %v8426_v8  ;;  %v8440_v8 = vld [vmem:[%s16423_s0 + $0x289] sm:$0xff]  ;;  %v8665_v31 = vld [vmem:[%s16423_s0 + $0xfa] sm:$0xff] }
 0x2bc   :  { %v11568_v32 = vpack.c.bf16 %v8441_v27, %v8440_v8  ;;  %v8518_v8 = vld [vmem:[%s16423_s0 + $0x332] sm:$0xff] }
 0x2c1   :  { %2785 = vmatmul.mubr.bf16.gmra.mrb[64].mxu0 %v621_v24 }
 0x2c2   :  { %2792 = vmatprep.mubr.bf16.mxu0 %v11033_v61  ;;  %v8652_v61 = vld [vmem:[%s16423_s0 + $0x62] sm:$0xff] }
 0x2c3   :  { %v1120_v36 = vpack.c.bf16 %v8653_v41, %v8652_v61  ;;  %v8666_v41 = vld [vmem:[%s16423_s0 + $0x10a] sm:$0xff] }
 0x2c5   :  { %8960 = vmatprep.mubr.bf16.mxu1 %v1120_v36  ;;  %v1127_v36 = vpack.c.bf16 %v8667_v39, %v8666_v41  ;;  %v8455_v41 = vld [vmem:[%s16423_s0 + $0x339] sm:$0xff] }
 0x2c6   :  { %8961 = vmatmul.mubr.bf16.gmra.mrb[4].mxu1 %v1121_v55 }
 0x2c9   :  { %2793 = vmatmul.mubr.bf16.gmra.mrb[68].mxu0 %v11450_v23 }
 0x2ca   :  { %2800 = vmatprep.mubr.bf16.mxu0 %v11043_v15  ;;  %v8430_v15 = vld [vmem:[%s16423_s0 + $0x211] sm:$0xff] }
 0x2cb   :  { %v11482_v40 = vpack.c.bf16 %v8431_v63, %v8430_v15  ;;  %v8444_v15 = vld [vmem:[%s16423_s0 + $0x2b9] sm:$0xff]  ;;  %v8669_v63 = vld [vmem:[%s16423_s0 + $0x12a] sm:$0xff] }
 0x2cc   :  { %v11600_v48 = vpack.c.bf16 %v8445_v9, %v8444_v15  ;;  %v8521_v15 = vld [vmem:[%s16423_s0 + $0x38] sm:$0xff]  ;;  %v8683_v9 = vld [vmem:[%s16423_s0 + $0x202] sm:$0xff] }
 0x2d1   :  { %2801 = vmatmul.mubr.bf16.gmra.mrb[72].mxu0 %v11472_v42 }
 0x2d2   :  { %2808 = vmatprep.mubr.bf16.mxu0 %v11053_v21  ;;  %v8656_v21 = vld [vmem:[%s16423_s0 + $0x92] sm:$0xff] }
 0x2d3   :  { %v1122_v33 = vpack.c.bf16 %v8657_v51, %v8656_v21  ;;  %v8670_v51 = vld [vmem:[%s16423_s0 + $0x13a] sm:$0xff] }
 0x2d5   :  { %8964 = vmatprep.mubr.bf16.mxu1 %v1122_v33  ;;  %v1129_v33 = vpack.c.bf16 %v8671_v17, %v8670_v51  ;;  %v8523_v17 = vld [vmem:[%s16423_s0 + $0x50] sm:$0xff] }
 0x2d6   :  { %8965 = vmatmul.mubr.bf16.gmra.mrb[8].mxu1 %v1123_v58 }
 0x2d9   :  { %2809 = vmatmul.mubr.bf16.gmra.mrb[76].mxu0 %v11482_v40 }
 0x2da   :  { %2816 = vmatprep.mubr.bf16.mxu0 %v11063_v13  ;;  %v8434_v13 = vld [vmem:[%s16423_s0 + $0x241] sm:$0xff] }
 0x2db   :  { %v11514_v53 = vpack.c.bf16 %v8435_v3, %v8434_v13  ;;  %v8448_v13 = vld [vmem:[%s16423_s0 + $0x2e9] sm:$0xff]  ;;  %v8673_v3 = vld [vmem:[%s16423_s0 + $0x15a] sm:$0xff] }
 0x2dc   :  { %v11632_v45 = vpack.c.bf16 %v8449_v57, %v8448_v13  ;;  %v8525_v13 = vld [vmem:[%s16423_s0 + $0x68] sm:$0xff]  ;;  %v8687_v57 = vld [vmem:[%s16423_s0 + $0x232] sm:$0xff] }
 0x2e1   :  { %2817 = vmatmul.mubr.bf16.gmra.mrb[80].mxu0 %v11504_v44 }
 0x2e2   :  { %2824 = vmatprep.mubr.bf16.mxu0 %v11073_v14  ;;  %v8660_v14 = vld [vmem:[%s16423_s0 + $0xc2] sm:$0xff] }
 0x2e3   :  { %v1124_v12 = vpack.c.bf16 %v8661_v6, %v8660_v14  ;;  %v8674_v6 = vld [vmem:[%s16423_s0 + $0x16a] sm:$0xff] }
 0x2e5   :  { %8968 = vmatprep.mubr.bf16.mxu1 %v1124_v12  ;;  %v1131_v12 = vpack.c.bf16 %v8675_v11, %v8674_v6  ;;  %v8527_v11 = vld [vmem:[%s16423_s0 + $0x80] sm:$0xff] }
 0x2e6   :  { %8969 = vmatmul.mubr.bf16.gmra.mrb[12].mxu1 %v1125_v18 }
 0x2e9   :  { %2825 = vmatmul.mubr.bf16.gmra.mrb[84].mxu0 %v11514_v53 }
 0x2ea   :  { %2832 = vmatprep.mubr.bf16.mxu0 %v11083_v19  ;;  %v8438_v19 = vld [vmem:[%s16423_s0 + $0x271] sm:$0xff] }
 0x2eb   :  { %v11546_v24 = vpack.c.bf16 %v8439_v20, %v8438_v19  ;;  %v8678_v19 = vld [vmem:[%s16423_s0 + $0x19a] sm:$0xff]  ;;  %v8679_v20 = vld [vmem:[%s16423_s0 + $0x1a2] sm:$0xff] }
 0x2f1   :  { %2833 = vmatmul.mubr.bf16.gmra.mrb[88].mxu0 %v11536_v52 }
 0x2f2   :  { %2840 = vmatprep.mubr.bf16.mxu0 %v11093_v43  ;;  %v8664_v43 = vld [vmem:[%s16423_s0 + $0xf2] sm:$0xff] }
 0x2f3   :  { %v1126_v61 = vpack.c.bf16 %v8665_v31, %v8664_v43  ;;  %v1133_v43 = vpack.c.bf16 %v8679_v20, %v8678_v19  ;;  %v8690_v19 = vld [vmem:[%s16423_s0 + $0x25a] sm:$0xff]  ;;  %v8691_v20 = vld [vmem:[%s16423_s0 + $0x262] sm:$0xff] }
 0x2f5   :  { %8972 = vmatprep.mubr.bf16.mxu1 %v1126_v61  ;;  %v8454_v61 = vld [vmem:[%s16423_s0 + $0x331] sm:$0xff] }
 0x2f6   :  { %8973 = vmatmul.mubr.bf16.gmra.mrb[16].mxu1 %v1127_v36  ;;  %v11677_v39 = vpack.c.bf16 %v8455_v41, %v8454_v61  ;;  %v8520_v36 = vld [vmem:[%s16423_s0 + $0x30] sm:$0xff]  ;;  %v8532_v41 = vld [vmem:[%s16423_s0 + $0xc0] sm:$0xff] }
 0x2f7   :  { %v862_v51 = vpack.c.bf16 %v8521_v15, %v8520_v36  ;;  %v8692_v36 = vld [vmem:[%s16423_s0 + $0x272] sm:$0xff]  ;;  %v8694_v15 = vld [vmem:[%s16423_s0 + $0x28a] sm:$0xff] }
 0x2f9   :  { %2841 = vmatmul.mubr.bf16.gmra.mrb[92].mxu0 %v11546_v24 }
 0x2fa   :  { %2848 = vmatprep.mubr.bf16.mxu0 %v11103_v50  ;;  %v8442_v50 = vld [vmem:[%s16423_s0 + $0x2a1] sm:$0xff] }
 0x2fb   :  { %v11578_v55 = vpack.c.bf16 %v8443_v7, %v8442_v50  ;;  %v8680_v50 = vld [vmem:[%s16423_s0 + $0x1e2] sm:$0xff]  ;;  %v8681_v7 = vld [vmem:[%s16423_s0 + $0x1ea] sm:$0xff] }
 0x301   :  { %2849 = vmatmul.mubr.bf16.gmra.mrb[96].mxu0 %v11568_v32 }
 0x302   :  { %2856 = vmatprep.mubr.bf16.mxu0 %v11113_v29  ;;  %v8668_v29 = vld [vmem:[%s16423_s0 + $0x122] sm:$0xff] }
 0x303   :  { %v1128_v21 = vpack.c.bf16 %v8669_v63, %v8668_v29  ;;  %v1134_v29 = vpack.c.bf16 %v8681_v7, %v8680_v50  ;;  %v8682_v63 = vld [vmem:[%s16423_s0 + $0x1fa] sm:$0xff]  ;;  %v8533_v50 = vld [vmem:[%s16423_s0 + $0xc8] sm:$0xff] }
 0x305   :  { %8976 = vmatprep.mubr.bf16.mxu1 %v1128_v21  ;;  %v1135_v21 = vpack.c.bf16 %v8683_v9, %v8682_v63  ;;  %v868_v9 = vpack.c.bf16 %v8533_v50, %v8532_v41 }
 0x306   :  { %8977 = vmatmul.mubr.bf16.gmra.mrb[20].mxu1 %v1129_v33 }
 0x309   :  { %2857 = vmatmul.mubr.bf16.gmra.mrb[100].mxu0 %v11578_v55 }
 0x30a   :  { %2864 = vmatprep.mubr.bf16.mxu0 %v11123_v30  ;;  %v8446_v30 = vld [vmem:[%s16423_s0 + $0x2d1] sm:$0xff] }
 0x30b   :  { %v11610_v58 = vpack.c.bf16 %v8447_v34, %v8446_v30  ;;  %v8524_v30 = vld [vmem:[%s16423_s0 + $0x60] sm:$0xff]  ;;  %v8684_v34 = vld [vmem:[%s16423_s0 + $0x212] sm:$0xff] }
 0x30c   :  { %v864_v6 = vpack.c.bf16 %v8525_v13, %v8524_v30 }
 0x311   :  { %2865 = vmatmul.mubr.bf16.gmra.mrb[104].mxu0 %v11600_v48 }
 0x312   :  { %2872 = vmatprep.mubr.bf16.mxu0 %v11133_v49  ;;  %v8672_v49 = vld [vmem:[%s16423_s0 + $0x152] sm:$0xff] }
 0x313   :  { %v1130_v14 = vpack.c.bf16 %v8673_v3, %v8672_v49  ;;  %v8686_v3 = vld [vmem:[%s16423_s0 + $0x22a] sm:$0xff] }
 0x315   :  { %8980 = vmatprep.mubr.bf16.mxu1 %v1130_v14  ;;  %v1137_v14 = vpack.c.bf16 %v8687_v57, %v8686_v3  ;;  %v8539_v3 = vld [vmem:[%s16423_s0 + $0x110] sm:$0xff] }
 0x316   :  { %8981 = vmatmul.mubr.bf16.gmra.mrb[24].mxu1 %v1131_v12 }
 0x317   :  { %8984 = vmatprep.mubr.bf16.mxu1 %v11398_v59  ;;  %v8452_v59 = vld [vmem:[%s16423_s0 + $0x319] sm:$0xff] }
 0x319   :  { %2873 = vmatmul.mubr.bf16.gmra.mrb[108].mxu0 %v11610_v58 }
 0x31a   :  { %2880 = vmatprep.mubr.bf16.mxu0 %v11143_v38  ;;  %v8450_v38 = vld [vmem:[%s16423_s0 + $0x301] sm:$0xff] }
 0x31b   :  { %v11643_v18 = vpack.c.bf16 %v8451_v16, %v8450_v38  ;;  %v8528_v38 = vld [vmem:[%s16423_s0 + $0x90] sm:$0xff]  ;;  %v8688_v16 = vld [vmem:[%s16423_s0 + $0x242] sm:$0xff] }
 0x31e   :  { %8985 = vmatmul.mubr.bf16.gmra.mrb[28].mxu1 %v1133_v43  ;;  %v8531_v43 = vld [vmem:[%s16423_s0 + $0xb0] sm:$0xff] }
 0x31f   :  { %8988 = vmatprep.mubr.bf16.mxu1 %v1134_v29  ;;  %v8695_v29 = vld [vmem:[%s16423_s0 + $0x292] sm:$0xff] }
 0x320   :  { %v1141_v63 = vpack.c.bf16 %v8695_v29, %v8694_v15  ;;  %v8546_v15 = vld [vmem:[%s16423_s0 + $0x168] sm:$0xff]  ;;  %v8547_v29 = vld [vmem:[%s16423_s0 + $0x170] sm:$0xff] }
 0x321   :  { %2881 = vmatmul.mubr.bf16.gmra.mrb[112].mxu0 %v11632_v45 }
 0x322   :  { %2888 = vmatprep.mubr.bf16.mxu0 %v11159_v46  ;;  %v8453_v46 = vld [vmem:[%s16423_s0 + $0x321] sm:$0xff] }
 0x323   :  { %v11665_v31 = vpack.c.bf16 %v8453_v46, %v8452_v59  ;;  %v8529_v59 = vld [vmem:[%s16423_s0 + $0x98] sm:$0xff] }
 0x326   :  { %8989 = vmatmul.mubr.bf16.gmra.mrb[32].mxu1 %v1135_v21  ;;  %v8535_v21 = vld [vmem:[%s16423_s0 + $0xe0] sm:$0xff] }
 0x329   :  { %2889 = vmatmul.mubr.bf16.gmra.mrb[116].mxu0 %v11643_v18 }
 0x32a   :  { %2896 = vmatprep.mubr.bf16.mxu0 %v11168_v54  ;;  %v8519_v54 = vld [vmem:[%s16423_s0 + $0x33a] sm:$0xff] }
 0x32b   :  { %v11667_v27 = vpack.c.bf16 %v8519_v54, %v8518_v8  ;;  %v1139_v8 = vpack.c.bf16 %v8691_v20, %v8690_v19  ;;  %v866_v54 = vpack.c.bf16 %v8529_v59, %v8528_v38  ;;  %v8703_v38 = vld [vmem:[%s16423_s0 + $0x2f2] sm:$0xff]  ;;  %v8543_v59 = vld [vmem:[%s16423_s0 + $0x140] sm:$0xff] }
 0x331   :  { %2897 = vmatmul.mubr.bf16.gmra.mrb[120].mxu0 %v11665_v31 }
 0x332   :  { %2904 = vmatprep.mubr.bf16.mxu0 %v11667_v27 }
 0x339   :  { %2905 = vmatmul.mubr.bf16.gmra.mrb[124].mxu0 %v11677_v39 }
 0x33a   :  { %2945 = vmatprep.mubr.bf16.mxu0 %v11192_v5  ;;  %v8522_v5 = vld [vmem:[%s16423_s0 + $0x48] sm:$0xff] }
 0x33b   :  { %v863_v33 = vpack.c.bf16 %v8523_v17, %v8522_v5  ;;  %v8536_v5 = vld [vmem:[%s16423_s0 + $0xf0] sm:$0xff]  ;;  %v8696_v17 = vld [vmem:[%s16423_s0 + $0x2a2] sm:$0xff] }
 0x341   :  { %2946 = vmatmul.mubr.bf16.vlgmr.msra.gmra.mrb[0].mxu0 %v862_v51 }
 0x342   :  { %2953 = vmatprep.mubr.bf16.mxu0 %v11210_v28  ;;  %v8685_v28 = vld [vmem:[%s16423_s0 + $0x21a] sm:$0xff] }
 0x343   :  { %v1136_v49 = vpack.c.bf16 %v8685_v28, %v8684_v34  ;;  %v8698_v34 = vld [vmem:[%s16423_s0 + $0x2ba] sm:$0xff]  ;;  %v8699_v28 = vld [vmem:[%s16423_s0 + $0x2c2] sm:$0xff] }
 0x344   :  { %v1143_v13 = vpack.c.bf16 %v8699_v28, %v8698_v34  ;;  %v8550_v28 = vld [vmem:[%s16423_s0 + $0x198] sm:$0xff] }
 0x345   :  { %8992 = vmatprep.mubr.bf16.mxu1 %v1136_v49 }
 0x346   :  { %8993 = vmatmul.mubr.bf16.gmra.mrb[36].mxu1 %v1137_v14  ;;  %v8540_v14 = vld [vmem:[%s16423_s0 + $0x120] sm:$0xff] }
 0x349   :  { %2954 = vmatmul.mubr.bf16.gmra.mrb[4].mxu0 %v863_v33  ;;  %v8537_v33 = vld [vmem:[%s16423_s0 + $0xf8] sm:$0xff] }
 0x34a   :  { %2961 = vmatprep.mubr.bf16.mxu0 %v11228_v22  ;;  %v8526_v22 = vld [vmem:[%s16423_s0 + $0x78] sm:$0xff]  ;;  %v870_v49 = vpack.c.bf16 %v8537_v33, %v8536_v5  ;;  %v8615_v5 = vld [vmem:[%s16423_s0 + $0x1a1] sm:$0xff] }
 0x34b   :  { %v865_v12 = vpack.c.bf16 %v8527_v11, %v8526_v22  ;;  %v8541_v22 = vld [vmem:[%s16423_s0 + $0x128] sm:$0xff] }
 0x351   :  { %2962 = vmatmul.mubr.bf16.gmra.mrb[8].mxu0 %v864_v6  ;;  %v8700_v6 = vld [vmem:[%s16423_s0 + $0x2d2] sm:$0xff] }
 0x352   :  { %2969 = vmatprep.mubr.bf16.mxu0 %v11246_v26  ;;  %v8689_v26 = vld [vmem:[%s16423_s0 + $0x24a] sm:$0xff] }
 0x353   :  { %v1138_v46 = vpack.c.bf16 %v8689_v26, %v8688_v16  ;;  %v872_v26 = vpack.c.bf16 %v8541_v22, %v8540_v14  ;;  %v8552_v14 = vld [vmem:[%s16423_s0 + $0x1e0] sm:$0xff] }
 0x355   :  { %8996 = vmatprep.mubr.bf16.mxu1 %v1138_v46 }
 0x356   :  { %8997 = vmatmul.mubr.bf16.gmra.mrb[40].mxu1 %v1139_v8 }
 0x359   :  { %2970 = vmatmul.mubr.bf16.gmra.mrb[12].mxu0 %v865_v12  ;;  %v8702_v12 = vld [vmem:[%s16423_s0 + $0x2ea] sm:$0xff] }
 0x35a   :  { %2977 = vmatprep.mubr.bf16.mxu0 %v11264_v0  ;;  %v8530_v0 = vld [vmem:[%s16423_s0 + $0xa8] sm:$0xff]  ;;  %v1145_v16 = vpack.c.bf16 %v8703_v38, %v8702_v12 }
 0x35b   :  { %v867_v61 = vpack.c.bf16 %v8531_v43, %v8530_v0  ;;  %v8545_v0 = vld [vmem:[%s16423_s0 + $0x158] sm:$0xff]  ;;  %v8704_v43 = vld [vmem:[%s16423_s0 + $0x302] sm:$0xff] }
 0x361   :  { %2978 = vmatmul.mubr.bf16.gmra.mrb[16].mxu0 %v866_v54 }
 0x362   :  { %2985 = vmatprep.mubr.bf16.mxu0 %v11279_v62  ;;  %v8693_v62 = vld [vmem:[%s16423_s0 + $0x27a] sm:$0xff] }
 0x363   :  { %v1140_v7 = vpack.c.bf16 %v8693_v62, %v8692_v36  ;;  %v8707_v62 = vld [vmem:[%s16423_s0 + $0x322] sm:$0xff] }
 0x365   :  { %9000 = vmatprep.mubr.bf16.mxu1 %v1140_v7 }
 0x366   :  { %9001 = vmatmul.mubr.bf16.gmra.mrb[44].mxu1 %v1141_v63 }
 0x369   :  { %2986 = vmatmul.mubr.bf16.gmra.mrb[20].mxu0 %v867_v61  ;;  %v8705_v61 = vld [vmem:[%s16423_s0 + $0x30a] sm:$0xff] }
 0x36a   :  { %2993 = vmatprep.mubr.bf16.mxu0 %v11293_v10  ;;  %v8534_v10 = vld [vmem:[%s16423_s0 + $0xd8] sm:$0xff]  ;;  %v1146_v36 = vpack.c.bf16 %v8705_v61, %v8704_v43 }
 0x36b   :  { %v869_v51 = vpack.c.bf16 %v8535_v21, %v8534_v10 }
 0x371   :  { %2994 = vmatmul.mubr.bf16.gmra.mrb[24].mxu0 %v868_v9  ;;  %v875_v9 = vpack.c.bf16 %v8547_v29, %v8546_v15 }
 0x372   :  { %3001 = vmatprep.mubr.bf16.mxu0 %v11303_v2  ;;  %v8697_v2 = vld [vmem:[%s16423_s0 + $0x2aa] sm:$0xff] }
 0x373   :  { %v1142_v30 = vpack.c.bf16 %v8697_v2, %v8696_v17  ;;  %v8711_v2 = vld [vmem:[%s16423_s0 + $0x352] sm:$0xff] }
 0x375   :  { %9004 = vmatprep.mubr.bf16.mxu1 %v1142_v30 }
 0x376   :  { %9005 = vmatmul.mubr.bf16.gmra.mrb[48].mxu1 %v1143_v13  ;;  %v8551_v13 = vld [vmem:[%s16423_s0 + $0x1a0] sm:$0xff] }
 0x379   :  { %3002 = vmatmul.mubr.bf16.gmra.mrb[28].mxu0 %v869_v51  ;;  %v8614_v51 = vld [vmem:[%s16423_s0 + $0x199] sm:$0xff] }
 0x37a   :  { %3009 = vmatprep.mubr.bf16.mxu0 %v11317_v56  ;;  %v8538_v56 = vld [vmem:[%s16423_s0 + $0x108] sm:$0xff]  ;;  %v1005_v33 = vpack.c.bf16 %v8615_v5, %v8614_v51 }
 0x37b   :  { %v871_v57 = vpack.c.bf16 %v8539_v3, %v8538_v56  ;;  %v877_v56 = vpack.c.bf16 %v8551_v13, %v8550_v28  ;;  %v8569_v28 = vld [vmem:[%s16423_s0 + $0x2a8] sm:$0xff] }
 0x381   :  { %3010 = vmatmul.mubr.bf16.gmra.mrb[32].mxu0 %v870_v49 }
 0x382   :  { %3017 = vmatprep.mubr.bf16.mxu0 %v11327_v60  ;;  %v8701_v60 = vld [vmem:[%s16423_s0 + $0x2da] sm:$0xff] }
 0x383   :  { %v1144_v11 = vpack.c.bf16 %v8701_v60, %v8700_v6  ;;  %v8553_v6 = vld [vmem:[%s16423_s0 + $0x1e8] sm:$0xff] }
 0x384   :  { %v878_v60 = vpack.c.bf16 %v8553_v6, %v8552_v14  ;;  %v8570_v14 = vld [vmem:[%s16423_s0 + $0x2b8] sm:$0xff] }
 0x385   :  { %9008 = vmatprep.mubr.bf16.mxu1 %v1144_v11  ;;  %v8554_v11 = vld [vmem:[%s16423_s0 + $0x1f8] sm:$0xff] }
 0x386   :  { %9009 = vmatmul.mubr.bf16.gmra.mrb[52].mxu1 %v1145_v16 }
 0x387   :  { %9012 = vmatprep.mubr.bf16.mxu1 %v1146_v36  ;;  %v8561_v36 = vld [vmem:[%s16423_s0 + $0x248] sm:$0xff] }
 0x389   :  { %3018 = vmatmul.mubr.bf16.gmra.mrb[36].mxu0 %v871_v57 }
 0x38a   :  { %3025 = vmatprep.mubr.bf16.mxu0 %v11341_v4  ;;  %v8542_v4 = vld [vmem:[%s16423_s0 + $0x138] sm:$0xff]  ;;  %v11836_v46 = vpop.f32.mrb[0].mxu1 }
 0x38b   :  { %v11838_v19 = vpop.f32.mrb[1].mxu1  ;;  %v873_v20 = vpack.c.bf16 %v8543_v59, %v8542_v4  ;;  %v8557_v4 = vld [vmem:[%s16423_s0 + $0x218] sm:$0xff] }
 0x38c   :  { %v11840_v8 = vpop.f32.mrb[2].mxu1 }
 0x38d   :  { %v11842_v54 = vpop.f32.mrb[3].mxu1 }
 0x391   :  { %3026 = vmatmul.mubr.bf16.gmra.mrb[40].mxu0 %v872_v26 }
 0x392   :  { %3033 = vmatprep.mubr.bf16.mxu0 %v11354_v47  ;;  %v8544_v47 = vld [vmem:[%s16423_s0 + $0x150] sm:$0xff] }
 0x393   :  { %v874_v41 = vpack.c.bf16 %v8545_v0, %v8544_v47  ;;  %v8558_v47 = vld [vmem:[%s16423_s0 + $0x228] sm:$0xff] }
 0x399   :  { %3034 = vmatmul.mubr.bf16.gmra.mrb[44].mxu0 %v873_v20  ;;  %v11863_v7 = vpop.f32.mrb[4].mxu1 }
 0x39a   :  { %3041 = vmatprep.mubr.bf16.mxu0 %v11374_v35  ;;  %v8706_v35 = vld [vmem:[%s16423_s0 + $0x31a] sm:$0xff]  ;;  %v11873_v63 = vpop.f32.mrb[5].mxu1 }
 0x39b   :  { %v1147_v50 = vpack.c.bf16 %v8707_v62, %v8706_v35  ;;  %v11875_v10 = vpop.f32.mrb[6].mxu1 }
 0x39c   :  { %v11877_v21 = vpop.f32.mrb[7].mxu1 }
 0x39d   :  { %9013 = vmatmul.mubr.bf16.gmra.mrb[56].mxu1 %v1147_v50  ;;  %v8562_v50 = vld [vmem:[%s16423_s0 + $0x258] sm:$0xff] }
 0x39e   :  { %9016 = vmatprep.mubr.bf16.mxu1 %v11667_v27  ;;  %v8549_v27 = vld [vmem:[%s16423_s0 + $0x188] sm:$0xff] }
 0x3a1   :  { %3042 = vmatmul.mubr.bf16.gmra.mrb[48].mxu0 %v874_v41 }
 0x3a2   :  { %3049 = vmatprep.mubr.bf16.mxu0 %v11396_v25  ;;  %v8548_v25 = vld [vmem:[%s16423_s0 + $0x180] sm:$0xff] }
 0x3a3   :  { %v876_v17 = vpack.c.bf16 %v8549_v27, %v8548_v25  ;;  %v8565_v27 = vld [vmem:[%s16423_s0 + $0x278] sm:$0xff] }
 0x3a9   :  { %3050 = vmatmul.mubr.bf16.gmra.mrb[52].mxu0 %v875_v9  ;;  %v11898_v34 = vpop.f32.mrb[8].mxu1 }
 0x3aa   :  { %3057 = vmatprep.mubr.bf16.mxu0 %v11417_v37  ;;  %v8710_v37 = vld [vmem:[%s16423_s0 + $0x34a] sm:$0xff]  ;;  %v11906_v49 = vpop.f32.mrb[9].mxu1 }
 0x3ab   :  { %v1149_v30 = vpack.c.bf16 %v8711_v2, %v8710_v37  ;;  %v11908_v3 = vpop.f32.mrb[10].mxu1 }
 0x3ac   :  { %v11910_v57 = vpop.f32.mrb[11].mxu1 }
 0x3ad   :  { %9017 = vmatmul.mubr.bf16.gmra.mrb[60].mxu1 %v1149_v30 }
 0x3b1   :  { %3058 = vmatmul.mubr.bf16.gmra.mrb[56].mxu0 %v876_v17  ;;  %v8566_v17 = vld [vmem:[%s16423_s0 + $0x288] sm:$0xff] }
 0x3b2   :  { %3065 = vmatprep.mubr.bf16.mxu0 %v1005_v33 }
 0x3b9   :  { %3066 = vmatmul.mubr.bf16.gmra.mrb[60].mxu0 %v877_v56  ;;  %v11919_v22 = vpop.f32.mrb[12].mxu1 }
 0x3ba   :  { %3073 = vmatprep.mubr.bf16.mxu0 %v11450_v23  ;;  %v8555_v23 = vld [vmem:[%s16423_s0 + $0x200] sm:$0xff]  ;;  %v11928_v12 = vpop.f32.mrb[13].mxu1 }
 0x3bb   :  { %v879_v38 = vpack.c.bf16 %v8555_v23, %v8554_v11  ;;  %v11930_v16 = vpop.f32.mrb[14].mxu1 }
 0x3bc   :  { %v11932_v26 = vpop.f32.mrb[15].mxu1 }
 0x3c1   :  { %3074 = vmatmul.mubr.bf16.gmra.mrb[64].mxu0 %v878_v60 }
 0x3c2   :  { %3081 = vmatprep.mubr.bf16.mxu0 %v11472_v42  ;;  %v8556_v42 = vld [vmem:[%s16423_s0 + $0x210] sm:$0xff] }
 0x3c3   :  { %v880_v59 = vpack.c.bf16 %v8557_v4, %v8556_v42 }
 0x3c9   :  { %3082 = vmatmul.mubr.bf16.gmra.mrb[68].mxu0 %v879_v38  ;;  %v11941_v20 = vpop.f32.mrb[16].mxu1  ;;  %v8573_v38 = vld [vmem:[%s16423_s0 + $0x2d8] sm:$0xff] }
 0x3ca   :  { %3089 = vmatprep.mubr.bf16.mxu0 %v11482_v40  ;;  %v8559_v40 = vld [vmem:[%s16423_s0 + $0x230] sm:$0xff]  ;;  %v11950_v0 = vpop.f32.mrb[17].mxu1 }
 0x3cb   :  { %v881_v43 = vpack.c.bf16 %v8559_v40, %v8558_v47  ;;  %v11952_v61 = vpop.f32.mrb[18].mxu1 }
 0x3cc   :  { %v11954_v41 = vpop.f32.mrb[19].mxu1 }
 0x3d1   :  { %3090 = vmatmul.mubr.bf16.gmra.mrb[72].mxu0 %v880_v59  ;;  %v8574_v59 = vld [vmem:[%s16423_s0 + $0x2e8] sm:$0xff] }
 0x3d2   :  { %3097 = vmatprep.mubr.bf16.mxu0 %v11504_v44  ;;  %v8560_v44 = vld [vmem:[%s16423_s0 + $0x240] sm:$0xff] }
 0x3d3   :  { %v882_v35 = vpack.c.bf16 %v8561_v36, %v8560_v44 }
 0x3d9   :  { %3098 = vmatmul.mubr.bf16.gmra.mrb[76].mxu0 %v881_v43  ;;  %v11963_v62 = vpop.f32.mrb[20].mxu1 }
 0x3da   :  { %3105 = vmatprep.mubr.bf16.mxu0 %v11514_v53  ;;  %v8563_v53 = vld [vmem:[%s16423_s0 + $0x260] sm:$0xff]  ;;  %v11972_v15 = vpop.f32.mrb[21].mxu1 }
 0x3db   :  { %v883_v29 = vpack.c.bf16 %v8563_v53, %v8562_v50  ;;  %v11974_v9 = vpop.f32.mrb[22].mxu1 }
 0x3dc   :  { %v11976_v25 = vpop.f32.mrb[23].mxu1 }
 0x3e1   :  { %3106 = vmatmul.mubr.bf16.gmra.mrb[80].mxu0 %v882_v35 }
 0x3e2   :  { %3113 = vmatprep.mubr.bf16.mxu0 %v11536_v52  ;;  %v8564_v52 = vld [vmem:[%s16423_s0 + $0x270] sm:$0xff] }
 0x3e3   :  { %v884_v51 = vpack.c.bf16 %v8565_v27, %v8564_v52  ;;  %v8576_v52 = vld [vmem:[%s16423_s0 + $0x300] sm:$0xff] }
 0x3e9   :  { %3114 = vmatmul.mubr.bf16.gmra.mrb[84].mxu0 %v883_v29  ;;  %v11985_v5 = vpop.f32.mrb[24].mxu1 }
 0x3ea   :  { %3121 = vmatprep.mubr.bf16.mxu0 %v11546_v24  ;;  %v8567_v24 = vld [vmem:[%s16423_s0 + $0x290] sm:$0xff]  ;;  %v11994_v37 = vpop.f32.mrb[25].mxu1 }
 0x3eb   :  { %v885_v2 = vpack.c.bf16 %v8567_v24, %v8566_v17  ;;  %v11996_v33 = vpop.f32.mrb[26].mxu1 }
 0x3ec   :  { %v11998_v30 = vpop.f32.mrb[27].mxu1 }
 0x3f1   :  { %3122 = vmatmul.mubr.bf16.gmra.mrb[88].mxu0 %v884_v51  ;;  %v12007_v56 = vpop.f32.mrb[28].mxu1 }
 0x3f2   :  { %3129 = vmatprep.mubr.bf16.mxu0 %v11568_v32  ;;  %v8568_v32 = vld [vmem:[%s16423_s0 + $0x2a0] sm:$0xff]  ;;  %v12016_v6 = vpop.f32.mrb[29].mxu1 }
 0x3f3   :  { %v886_v13 = vpack.c.bf16 %v8569_v28, %v8568_v32  ;;  %v12018_v11 = vpop.f32.mrb[30].mxu1  ;;  %v8578_v28 = vld [vmem:[%s16423_s0 + $0x318] sm:$0xff] }
 0x3f4   :  { %v12020_v23 = vpop.f32.mrb[31].mxu1 }
 0x3f9   :  { %3130 = vmatmul.mubr.bf16.gmra.mrb[92].mxu0 %v885_v2  ;;  %v12029_v4 = vpop.f32.mrb[32].mxu1 }
 0x3fa   :  { %3137 = vmatprep.mubr.bf16.mxu0 %v11578_v55  ;;  %v8571_v55 = vld [vmem:[%s16423_s0 + $0x2c0] sm:$0xff]  ;;  %v12038_v40 = vpop.f32.mrb[33].mxu1 }
 0x3fb   :  { %v887_v60 = vpack.c.bf16 %v8571_v55, %v8570_v14  ;;  %v12043_v35 = vpop.f32.mrb[34].mxu1 }
 0x401   :  { %3138 = vmatmul.mubr.bf16.gmra.mrb[96].mxu0 %v886_v13 }
 0x402   :  { %3145 = vmatprep.mubr.bf16.mxu0 %v11600_v48  ;;  %v8572_v48 = vld [vmem:[%s16423_s0 + $0x2d0] sm:$0xff] }
 0x403   :  { %v888_v42 = vpack.c.bf16 %v8573_v38, %v8572_v48 }
 0x409   :  { %3146 = vmatmul.mubr.bf16.gmra.mrb[100].mxu0 %v887_v60 }
 0x40a   :  { %3153 = vmatprep.mubr.bf16.mxu0 %v11610_v58  ;;  %v8575_v58 = vld [vmem:[%s16423_s0 + $0x2f0] sm:$0xff] }
 0x40b   :  { %v889_v36 = vpack.c.bf16 %v8575_v58, %v8574_v59  ;;  %v8580_v58 = vld [vmem:[%s16423_s0 + $0x330] sm:$0xff] }
 0x411   :  { %3154 = vmatmul.mubr.bf16.gmra.mrb[104].mxu0 %v888_v42 }
 0x412   :  { %3161 = vmatprep.mubr.bf16.mxu0 %v11632_v45  ;;  %v12045_v45 = vpop.f32.mrb[35].mxu1 }
 0x414   :  { %v2947_v47 = vpop.f32.mrb[0].mxu0 }
 0x415   :  { %v12041_v43 = vadd.f32 %v11838_v19, %v2947_v47  ;;  %v2949_v44 = vpop.f32.mrb[1].mxu0  ;;  %v8577_v19 = vld [vmem:[%s16423_s0 + $0x308] sm:$0xff] }
 0x416   :  { %v2950_v50 = vpop.f32.mrb[2].mxu0  ;;  %v890_v24 = vpack.c.bf16 %v8577_v19, %v8576_v52  ;;  %v8646_v47 = vld [vmem:[%s16423_s0 + $0x349] sm:$0xff] }
 0x417   :  { %v12048_v53 = vadd.f32 %v11842_v54, %v2950_v50  ;;  %v2952_v29 = vpop.f32.mrb[3].mxu0 }
 0x419   :  { %3162 = vmatmul.mubr.bf16.gmra.mrb[108].mxu0 %v889_v36 }
 0x41a   :  { %3169 = vmatprep.mubr.bf16.mxu0 %v11643_v18  ;;  %v12063_v18 = vpop.f32.mrb[36].mxu1 }
 0x41b   :  { %v12072_v14 = vpop.f32.mrb[37].mxu1 }
 0x41c   :  { %v2955_v27 = vpop.f32.mrb[4].mxu0  ;;  %v12077_v48 = vpop.f32.mrb[38].mxu1 }
 0x41d   :  { %v12058_v51 = vadd.f32 %v11836_v46, %v2955_v27  ;;  %v2957_v17 = vpop.f32.mrb[5].mxu0  ;;  %v8579_v46 = vld [vmem:[%s16423_s0 + $0x320] sm:$0xff] }
 0x41e   :  { %v2958_v54 = vpop.f32.mrb[6].mxu0  ;;  %v891_v60 = vpack.c.bf16 %v8579_v46, %v8578_v28 }
 0x41f   :  { %16528 = vst [vmem:[#allocation8_spill] sm:$0xff] %v12058_v51  ;;  %v12061_v2 = vadd.f32 %v11840_v8, %v2958_v54  ;;  %v2960_v32 = vpop.f32.mrb[7].mxu0 }
 0x421   :  { %16529 = vst [vmem:[#allocation9_spill] sm:$0xff] %v12061_v2  ;;  %3170 = vmatmul.mubr.bf16.gmra.mrb[112].mxu0 %v890_v24  ;;  %v8582_v24 = vld [vmem:[%s16423_s0 + $0x348] sm:$0xff] }
 0x422   :  { %3177 = vmatprep.mubr.bf16.mxu0 %v11665_v31  ;;  %v12079_v31 = vpop.f32.mrb[39].mxu1 }
 0x424   :  { %v2963_v13 = vpop.f32.mrb[8].mxu0 }
 0x425   :  { %v12075_v8 = vadd.f32 %v11873_v63, %v2963_v13  ;;  %v2965_v55 = vpop.f32.mrb[9].mxu0  ;;  %v8581_v63 = vld [vmem:[%s16423_s0 + $0x338] sm:$0xff] }
 0x426   :  { %v2966_v38 = vpop.f32.mrb[10].mxu0  ;;  %v892_v50 = vpack.c.bf16 %v8581_v63, %v8580_v58 }
 0x427   :  { %v12082_v42 = vadd.f32 %v11877_v21, %v2966_v38  ;;  %v2968_v59 = vpop.f32.mrb[11].mxu0  ;;  %v8647_v21 = vld [vmem:[%s16423_s0 + $0x351] sm:$0xff] }
 0x428   :  { %v1021_v52 = vpack.c.bf16 %v8647_v21, %v8646_v47 }
 0x429   :  { %3178 = vmatmul.mubr.bf16.gmra.mrb[116].mxu0 %v891_v60  ;;  %v12103_v17 = vpop.f32.mrb[40].mxu1 }
 0x42a   :  { %3185 = vmatprep.mubr.bf16.mxu0 %v11677_v39  ;;  %v12111_v32 = vpop.f32.mrb[41].mxu1 }
 0x42b   :  { %v12116_v13 = vpop.f32.mrb[42].mxu1 }
 0x42c   :  { %v2971_v44 = vpop.f32.mrb[12].mxu0  ;;  %v12118_v60 = vpop.f32.mrb[43].mxu1 }
 0x42d   :  { %v12098_v36 = vadd.f32 %v11863_v7, %v2971_v44  ;;  %v2973_v39 = vpop.f32.mrb[13].mxu0  ;;  %v8583_v7 = vld [vmem:[%s16423_s0 + $0x350] sm:$0xff] }
 0x42e   :  { %v2974_v29 = vpop.f32.mrb[14].mxu0  ;;  %v893_v46 = vpack.c.bf16 %v8583_v7, %v8582_v24 }
 0x42f   :  { %16530 = vst [vmem:[#allocation10_spill] sm:$0xff] %v12098_v36  ;;  %v12101_v19 = vadd.f32 %v11875_v10, %v2974_v29  ;;  %v2976_v27 = vpop.f32.mrb[15].mxu0 }
 0x431   :  { %16531 = vst [vmem:[#allocation11_spill] sm:$0xff] %v12101_v19  ;;  %3186 = vmatmul.mubr.bf16.gmra.mrb[120].mxu0 %v892_v50 }
 0x432   :  { %3193 = vmatprep.mubr.bf16.mxu0 %v1021_v52 }
 0x434   :  { %v2979_v54 = vpop.f32.mrb[16].mxu0 }
 0x435   :  { %v12114_v28 = vadd.f32 %v11906_v49, %v2979_v54  ;;  %v2981_v10 = vpop.f32.mrb[17].mxu0 }
 0x436   :  { %v2982_v55 = vpop.f32.mrb[18].mxu0 }
 0x437   :  { %16532 = vst [vmem:[#allocation12_spill] sm:$0xff] %v12114_v28  ;;  %v12121_v38 = vadd.f32 %v11910_v57, %v2982_v55  ;;  %v2984_v59 = vpop.f32.mrb[19].mxu0 }
 0x439   :  { %3194 = vmatmul.mubr.bf16.gmra.mrb[124].mxu0 %v893_v46  ;;  %v12129_v39 = vpop.f32.mrb[44].mxu1 }
 0x43a   :  { %v12131_v29 = vpop.f32.mrb[45].mxu1 }
 0x43b   :  { %v12136_v27 = vpop.f32.mrb[46].mxu1 }
 0x43c   :  { %v2987_v58 = vpop.f32.mrb[20].mxu0 }
 0x43d   :  { %v12124_v63 = vadd.f32 %v11898_v34, %v2987_v58  ;;  %v2989_v47 = vpop.f32.mrb[21].mxu0  ;;  %v12138_v34 = vpop.f32.mrb[47].mxu1  ;;  %v3491_v58 = vadd.f32 %v12048_v53, %v12041_v43 }
 0x43e   :  { %v2990_v21 = vpop.f32.mrb[22].mxu0 }
 0x43f   :  { %16533 = vst [vmem:[#allocation13_spill] sm:$0xff] %v12124_v63  ;;  %v12127_v49 = vadd.f32 %v11908_v3, %v2990_v21  ;;  %v2992_v44 = vpop.f32.mrb[23].mxu0  ;;  %v3492_v21 = vadd.f32 %v3491_v58, %v12058_v51 }
 0x441   :  { %16534 = vst [vmem:[#allocation14_spill] sm:$0xff] %v12127_v49 }
 0x444   :  { %v2995_v50 = vpop.f32.mrb[24].mxu0 }
 0x445   :  { %v12134_v57 = vadd.f32 %v11928_v12, %v2995_v50  ;;  %v2997_v52 = vpop.f32.mrb[25].mxu0 }
 0x446   :  { %v2998_v24 = vpop.f32.mrb[26].mxu0 }
 0x447   :  { %16535 = vst [vmem:[#allocation15_spill] sm:$0xff] %v12134_v57  ;;  %v12141_v7 = vadd.f32 %v11932_v26, %v2998_v24  ;;  %v3000_v3 = vpop.f32.mrb[27].mxu0 }
 0x448   :  { %v3493_v3 = vadd.f32 %v3492_v21, %v12061_v2 }
 0x449   :  { %16536 = vst [vmem:[#allocation16_spill] sm:$0xff] %v12141_v7  ;;  %v12151_v47 = vpop.f32.mrb[48].mxu1 }
 0x44a   :  { %v12154_v44 = vpop.f32.mrb[49].mxu1 }
 0x44b   :  { %v12159_v52 = vpop.f32.mrb[50].mxu1 }
 0x44c   :  { %v3003_v54 = vpop.f32.mrb[28].mxu0 }
 0x44d   :  { %v12144_v10 = vadd.f32 %v11919_v22, %v3003_v54  ;;  %v3005_v46 = vpop.f32.mrb[29].mxu0 }
 0x44e   :  { %v3006_v55 = vpop.f32.mrb[30].mxu0 }
 0x44f   :  { %v12147_v59 = vadd.f32 %v11930_v16, %v3006_v55  ;;  %v3008_v12 = vpop.f32.mrb[31].mxu0  ;;  %v12161_v16 = vpop.f32.mrb[51].mxu1  ;;  %v3494_v55 = vadd.f32 %v3493_v3, %v12075_v8 }
 0x451   :  { %16537 = vst [vmem:[#allocation17_spill] sm:$0xff] %v12147_v59  ;;  %v3495_v58 = vadd.f32 %v3494_v55, %v12082_v42 }
 0x453   :  { %v3496_v1 = vadd.f32 %v3495_v58, %v12098_v36 }
 0x454   :  { %v3011_v26 = vpop.f32.mrb[32].mxu0 }
 0x455   :  { %v12157_v50 = vadd.f32 %v11950_v0, %v3011_v26  ;;  %v3013_v22 = vpop.f32.mrb[33].mxu0 }
 0x456   :  { %v3014_v24 = vpop.f32.mrb[34].mxu0 }
 0x457   :  { %16538 = vst [vmem:[#allocation18_spill] sm:$0xff] %v12157_v50  ;;  %v12165_v54 = vadd.f32 %v11954_v41, %v3014_v24  ;;  %v3016_v46 = vpop.f32.mrb[35].mxu0  ;;  %v3497_v41 = vadd.f32 %v3496_v1, %v12101_v19 }
 0x459   :  { %16539 = vst [vmem:[#allocation19_spill] sm:$0xff] %v12165_v54  ;;  %v12176_v2 = vpop.f32.mrb[52].mxu1  ;;  %v3498_v46 = vadd.f32 %v3497_v41, %v12114_v28 }
 0x45a   :  { %v12179_v3 = vpop.f32.mrb[53].mxu1 }
 0x45b   :  { %v3499_v1 = vadd.f32 %v3498_v46, %v12121_v38 }
 0x45c   :  { %v3019_v12 = vpop.f32.mrb[36].mxu0 }
 0x45d   :  { %v12170_v0 = vadd.f32 %v11941_v20, %v3019_v12  ;;  %v3021_v26 = vpop.f32.mrb[37].mxu0  ;;  %v12185_v12 = vpop.f32.mrb[54].mxu1 }
 0x45e   :  { %v3022_v22 = vpop.f32.mrb[38].mxu0  ;;  %v12187_v26 = vpop.f32.mrb[55].mxu1 }
 0x45f   :  { %16540 = vst [vmem:[#allocation20_spill] sm:$0xff] %v12170_v0  ;;  %v12174_v51 = vadd.f32 %v11952_v61, %v3022_v22  ;;  %v3024_v21 = vpop.f32.mrb[39].mxu0 }
 0x460   :  { %v3500_v21 = vadd.f32 %v3499_v1, %v12124_v63 }
 0x464   :  { %v3027_v24 = vpop.f32.mrb[40].mxu0 }
 0x465   :  { %v12183_v20 = vadd.f32 %v11972_v15, %v3027_v24  ;;  %v3029_v55 = vpop.f32.mrb[41].mxu0 }
 0x466   :  { %v3030_v58 = vpop.f32.mrb[42].mxu0  ;;  %v3501_v55 = vadd.f32 %v3500_v21, %v12127_v49 }
 0x467   :  { %v12190_v61 = vadd.f32 %v11976_v25, %v3030_v58  ;;  %v3032_v22 = vpop.f32.mrb[43].mxu0 }
 0x468   :  { %v3502_v25 = vadd.f32 %v3501_v55, %v12134_v57 }
 0x469   :  { %16541 = vst [vmem:[#allocation21_spill] sm:$0xff] %v12190_v61 }
 0x46a   :  { %v3503_v1 = vadd.f32 %v3502_v25, %v12141_v7 }
 0x46c   :  { %v3035_v19 = vpop.f32.mrb[44].mxu0 }
 0x46d   :  { %v12195_v41 = vadd.f32 %v11963_v62, %v3035_v19  ;;  %v3037_v15 = vpop.f32.mrb[45].mxu0 }
 0x46e   :  { %v3038_v24 = vpop.f32.mrb[46].mxu0 }
 0x46f   :  { %v12199_v28 = vadd.f32 %v11974_v9, %v3038_v24  ;;  %v3040_v36 = vpop.f32.mrb[47].mxu0  ;;  %v3504_v9 = vadd.f32 %v3503_v1, %v12144_v10 }
 0x470   :  { %v12202_v58 = vpop.f32.mrb[56].mxu1 }
 0x471   :  { %v12204_v46 = vpop.f32.mrb[57].mxu1  ;;  %v3505_v55 = vadd.f32 %v3504_v9, %v12147_v59 }
 0x472   :  { %v12210_v15 = vpop.f32.mrb[58].mxu1 }
 0x473   :  { %v12212_v49 = vpop.f32.mrb[59].mxu1  ;;  %v3506_v25 = vadd.f32 %v3505_v55, %v12157_v50 }
 0x474   :  { %v3043_v22 = vpop.f32.mrb[48].mxu0 }
 0x475   :  { %v12208_v62 = vadd.f32 %v11994_v37, %v3043_v22  ;;  %v3045_v19 = vpop.f32.mrb[49].mxu0  ;;  %v3507_v1 = vadd.f32 %v3506_v25, %v12165_v54 }
 0x476   :  { %v3046_v21 = vpop.f32.mrb[50].mxu0 }
 0x477   :  { %v12216_v36 = vadd.f32 %v11998_v30, %v3046_v21  ;;  %v3048_v24 = vpop.f32.mrb[51].mxu0  ;;  %v3508_v30 = vadd.f32 %v3507_v1, %v12170_v0 }
 0x47c   :  { %v3051_v57 = vpop.f32.mrb[52].mxu0 }
 0x47d   :  { %v12221_v37 = vadd.f32 %v11985_v5, %v3051_v57  ;;  %v3053_v22 = vpop.f32.mrb[53].mxu0 }
 0x47e   :  { %v3054_v19 = vpop.f32.mrb[54].mxu0 }
 0x47f   :  { %v12224_v7 = vadd.f32 %v11996_v33, %v3054_v19  ;;  %v3056_v63 = vpop.f32.mrb[55].mxu0  ;;  %v3509_v33 = vadd.f32 %v3508_v30, %v12174_v51 }
 0x480   :  { %v12228_v21 = vpop.f32.mrb[60].mxu1 }
 0x481   :  { %v12230_v9 = vpop.f32.mrb[61].mxu1  ;;  %v3510_v19 = vadd.f32 %v3509_v33, %v12183_v20 }
 0x482   :  { %v12235_v57 = vpop.f32.mrb[62].mxu1 }
 0x483   :  { %v12237_v50 = vpop.f32.mrb[63].mxu1  ;;  %v3511_v0 = vadd.f32 %v3510_v19, %v12190_v61 }
 0x484   :  { %v3059_v24 = vpop.f32.mrb[56].mxu0 }
 0x485   :  { %v12233_v55 = vadd.f32 %v12016_v6, %v3059_v24  ;;  %v3061_v5 = vpop.f32.mrb[57].mxu0  ;;  %v3512_v54 = vadd.f32 %v3511_v0, %v12195_v41 }
 0x486   :  { %v3062_v22 = vpop.f32.mrb[58].mxu0 }
 0x487   :  { %v12241_v63 = vadd.f32 %v12020_v23, %v3062_v22  ;;  %v3064_v25 = vpop.f32.mrb[59].mxu0  ;;  %v3513_v23 = vadd.f32 %v3512_v54, %v12199_v28 }
 0x489   :  { %v3514_v25 = vadd.f32 %v3513_v23, %v12208_v62 }
 0x48b   :  { %v3515_v0 = vadd.f32 %v3514_v25, %v12216_v36 }
 0x48c   :  { %v3067_v1 = vpop.f32.mrb[60].mxu0 }
 0x48d   :  { %v12246_v6 = vadd.f32 %v12007_v56, %v3067_v1  ;;  %v3069_v24 = vpop.f32.mrb[61].mxu0 }
 0x48e   :  { %v3070_v5 = vpop.f32.mrb[62].mxu0 }
 0x48f   :  { %v12250_v59 = vadd.f32 %v12018_v11, %v3070_v5  ;;  %v3072_v30 = vpop.f32.mrb[63].mxu0  ;;  %v3516_v11 = vadd.f32 %v3515_v0, %v12221_v37 }
 0x491   :  { %v3517_v23 = vadd.f32 %v3516_v11, %v12224_v7 }
 0x494   :  { %v3075_v22 = vpop.f32.mrb[64].mxu0 }
 0x495   :  { %v12255_v33 = vadd.f32 %v12038_v40, %v3075_v22  ;;  %v3077_v19 = vpop.f32.mrb[65].mxu0 }
 0x496   :  { %v3078_v61 = vpop.f32.mrb[66].mxu0 }
 0x497   :  { %v12258_v56 = vadd.f32 %v12045_v45, %v3078_v61  ;;  %v3080_v1 = vpop.f32.mrb[67].mxu0  ;;  %v3518_v45 = vadd.f32 %v3517_v23, %v12233_v55 }
 0x499   :  { %v3519_v19 = vadd.f32 %v3518_v45, %v12241_v63 }
 0x49c   :  { %v3083_v24 = vpop.f32.mrb[68].mxu0 }
 0x49d   :  { %v12263_v5 = vadd.f32 %v12029_v4, %v3083_v24  ;;  %v3085_v54 = vpop.f32.mrb[69].mxu0  ;;  %v3520_v4 = vadd.f32 %v3519_v19, %v12246_v6 }
 0x49e   :  { %v3086_v30 = vpop.f32.mrb[70].mxu0 }
 0x49f   :  { %v12267_v40 = vadd.f32 %v12043_v35, %v3086_v30  ;;  %v3088_v22 = vpop.f32.mrb[71].mxu0  ;;  %v3521_v35 = vadd.f32 %v3520_v4, %v12250_v59 }
 0x4a1   :  { %v3522_v30 = vadd.f32 %v3521_v35, %v12255_v33 }
 0x4a3   :  { %v3523_v19 = vadd.f32 %v3522_v30, %v12258_v56 }
 0x4a4   :  { %v3091_v61 = vpop.f32.mrb[72].mxu0 }
 0x4a5   :  { %v12272_v25 = vadd.f32 %v12072_v14, %v3091_v61  ;;  %v3093_v1 = vpop.f32.mrb[73].mxu0 }
 0x4a6   :  { %v3094_v0 = vpop.f32.mrb[74].mxu0 }
 0x4a7   :  { %v12276_v24 = vadd.f32 %v12079_v31, %v3094_v0  ;;  %v3096_v11 = vpop.f32.mrb[75].mxu0  ;;  %v3524_v31 = vadd.f32 %v3523_v19, %v12263_v5 }
 0x4a9   :  { %v3525_v35 = vadd.f32 %v3524_v31, %v12267_v40 }
 0x4ac   :  { %v3099_v54 = vpop.f32.mrb[76].mxu0 }
 0x4ad   :  { %v12281_v23 = vadd.f32 %v12063_v18, %v3099_v54  ;;  %v3101_v22 = vpop.f32.mrb[77].mxu0 }
 0x4ae   :  { %v3102_v45 = vpop.f32.mrb[78].mxu0 }
 0x4af   :  { %v12284_v14 = vadd.f32 %v12077_v48, %v3102_v45  ;;  %v3104_v61 = vpop.f32.mrb[79].mxu0  ;;  %v3526_v48 = vadd.f32 %v3525_v35, %v12272_v25 }
 0x4b1   :  { %v3527_v45 = vadd.f32 %v3526_v48, %v12276_v24 }
 0x4b4   :  { %v3107_v1 = vpop.f32.mrb[80].mxu0 }
 0x4b5   :  { %v12289_v0 = vadd.f32 %v12111_v32, %v3107_v1  ;;  %v3109_v4 = vpop.f32.mrb[81].mxu0  ;;  %v3528_v32 = vadd.f32 %v3527_v45, %v12281_v23 }
 0x4b6   :  { %v3110_v11 = vpop.f32.mrb[82].mxu0 }
 0x4b7   :  { %v12293_v18 = vadd.f32 %v12118_v60, %v3110_v11  ;;  %v3112_v54 = vpop.f32.mrb[83].mxu0  ;;  %v3529_v60 = vadd.f32 %v3528_v32, %v12284_v14 }
 0x4b9   :  { %v3530_v11 = vadd.f32 %v3529_v60, %v12289_v0 }
 0x4bb   :  { %v3531_v45 = vadd.f32 %v3530_v11, %v12293_v18 }
 0x4bc   :  { %v3115_v22 = vpop.f32.mrb[84].mxu0 }
 0x4bd   :  { %v12298_v30 = vadd.f32 %v12103_v17, %v3115_v22  ;;  %v3117_v61 = vpop.f32.mrb[85].mxu0 }
 0x4be   :  { %v3118_v19 = vpop.f32.mrb[86].mxu0 }
 0x4bf   :  { %v12302_v1 = vadd.f32 %v12116_v13, %v3118_v19  ;;  %v3120_v31 = vpop.f32.mrb[87].mxu0  ;;  %v3532_v13 = vadd.f32 %v3531_v45, %v12298_v30 }
 0x4c1   :  { %v3533_v60 = vadd.f32 %v3532_v13, %v12302_v1 }
 0x4c4   :  { %v3123_v4 = vpop.f32.mrb[88].mxu0 }
 0x4c5   :  { %v12307_v35 = vadd.f32 %v12131_v29, %v3123_v4  ;;  %v3125_v54 = vpop.f32.mrb[89].mxu0 }
 0x4c6   :  { %v3126_v48 = vpop.f32.mrb[90].mxu0 }
 0x4c7   :  { %v12310_v17 = vadd.f32 %v12138_v34, %v3126_v48  ;;  %v3128_v22 = vpop.f32.mrb[91].mxu0  ;;  %v3534_v34 = vadd.f32 %v3533_v60, %v12307_v35 }
 0x4c9   :  { %v3535_v48 = vadd.f32 %v3534_v34, %v12310_v17 }
 0x4cc   :  { %v3131_v61 = vpop.f32.mrb[92].mxu0 }
 0x4cd   :  { %v12315_v19 = vadd.f32 %v12129_v39, %v3131_v61  ;;  %v3133_v32 = vpop.f32.mrb[93].mxu0 }
 0x4ce   :  { %v3134_v31 = vpop.f32.mrb[94].mxu0 }
 0x4cf   :  { %v12319_v29 = vadd.f32 %v12136_v27, %v3134_v31  ;;  %v3136_v4 = vpop.f32.mrb[95].mxu0  ;;  %v3536_v39 = vadd.f32 %v3535_v48, %v12315_v19 }
 0x4d1   :  { %v3537_v27 = vadd.f32 %v3536_v39, %v12319_v29 }
 0x4d4   :  { %v3139_v54 = vpop.f32.mrb[96].mxu0 }
 0x4d5   :  { %v12324_v11 = vadd.f32 %v12154_v44, %v3139_v54  ;;  %v3141_v22 = vpop.f32.mrb[97].mxu0 }
 0x4d6   :  { %v3142_v45 = vpop.f32.mrb[98].mxu0 }
 0x4d7   :  { %16542 = vst [vmem:[#allocation22_spill] sm:$0xff] %v12324_v11  ;;  %v12328_v61 = vadd.f32 %v12161_v16, %v3142_v45  ;;  %v3144_v13 = vpop.f32.mrb[99].mxu0  ;;  %v3538_v31 = vadd.f32 %v3537_v27, %v12324_v11 }
 0x4d9   :  { %16543 = vst [vmem:[#allocation23_spill] sm:$0xff] %v12328_v61  ;;  %v3539_v48 = vadd.f32 %v3538_v31, %v12328_v61 }
 0x4dc   :  { %v3147_v32 = vpop.f32.mrb[100].mxu0 }
 0x4dd   :  { %v12333_v60 = vadd.f32 %v12151_v47, %v3147_v32  ;;  %v3149_v4 = vpop.f32.mrb[101].mxu0 }
 0x4de   :  { %v3150_v34 = vpop.f32.mrb[102].mxu0 }
 0x4df   :  { %16544 = vst [vmem:[#allocation24_spill] sm:$0xff] %v12333_v60  ;;  %v12336_v44 = vadd.f32 %v12159_v52, %v3150_v34  ;;  %v3152_v54 = vpop.f32.mrb[103].mxu0  ;;  %v3540_v16 = vadd.f32 %v3539_v48, %v12333_v60 }
 0x4e1   :  { %16545 = vst [vmem:[#allocation25_spill] sm:$0xff] %v12336_v44  ;;  %v3541_v27 = vadd.f32 %v3540_v16, %v12336_v44 }
 0x4e4   :  { %v3155_v22 = vpop.f32.mrb[104].mxu0 }
 0x4e5   :  { %v12341_v45 = vadd.f32 %v12179_v3, %v3155_v22  ;;  %v3157_v39 = vpop.f32.mrb[105].mxu0 }
 0x4e6   :  { %v3158_v13 = vpop.f32.mrb[106].mxu0 }
 0x4e7   :  { %16546 = vst [vmem:[#allocation26_spill] sm:$0xff] %v12341_v45  ;;  %v12345_v47 = vadd.f32 %v12187_v26, %v3158_v13  ;;  %v3160_v32 = vpop.f32.mrb[107].mxu0  ;;  %v3542_v52 = vadd.f32 %v3541_v27, %v12341_v45 }
 0x4e9   :  { %16547 = vst [vmem:[#allocation27_spill] sm:$0xff] %v12345_v47  ;;  %v3543_v34 = vadd.f32 %v3542_v52, %v12345_v47 }
 0x4ec   :  { %v3163_v4 = vpop.f32.mrb[108].mxu0 }
 0x4ed   :  { %v3453_v31 = vadd.f32 %v12176_v2, %v3163_v4  ;;  %v3165_v54 = vpop.f32.mrb[109].mxu0 }
 0x4ee   :  { %v3166_v48 = vpop.f32.mrb[110].mxu0 }
 0x4ef   :  { %v3544_v60 = vadd.f32 %v3543_v34, %v3453_v31  ;;  %v3456_v3 = vadd.f32 %v12185_v12, %v3166_v48  ;;  %v3168_v22 = vpop.f32.mrb[111].mxu0 }
 0x4f1   :  { %v3545_v39 = vadd.f32 %v3544_v60, %v3456_v3 }
 0x4f4   :  { %v3171_v61 = vpop.f32.mrb[112].mxu0 }
 0x4f5   :  { %v3461_v16 = vadd.f32 %v12204_v46, %v3171_v61  ;;  %v3173_v26 = vpop.f32.mrb[113].mxu0 }
 0x4f6   :  { %v3174_v13 = vpop.f32.mrb[114].mxu0 }
 0x4f7   :  { %v3546_v32 = vadd.f32 %v3545_v39, %v3461_v16  ;;  %v3464_v27 = vadd.f32 %v12212_v49, %v3174_v13  ;;  %v3176_v45 = vpop.f32.mrb[115].mxu0 }
 0x4f9   :  { %v3547_v44 = vadd.f32 %v3546_v32, %v3464_v27 }
 0x4fc   :  { %v3179_v52 = vpop.f32.mrb[116].mxu0 }
 0x4fd   :  { %v3469_v2 = vadd.f32 %v12202_v58, %v3179_v52  ;;  %v3181_v4 = vpop.f32.mrb[117].mxu0 }
 0x4fe   :  { %v3182_v54 = vpop.f32.mrb[118].mxu0 }
 0x4ff   :  { %v3548_v34 = vadd.f32 %v3547_v44, %v3469_v2  ;;  %v3472_v12 = vadd.f32 %v12210_v15, %v3182_v54  ;;  %v3184_v48 = vpop.f32.mrb[119].mxu0 }
 0x501   :  { %v3549_v60 = vadd.f32 %v3548_v34, %v3472_v12 }
 0x504   :  { %v3187_v22 = vpop.f32.mrb[120].mxu0 }
 0x505   :  { %v3477_v46 = vadd.f32 %v12230_v9, %v3187_v22  ;;  %v3189_v61 = vpop.f32.mrb[121].mxu0 }
 0x506   :  { %v3190_v26 = vpop.f32.mrb[122].mxu0 }
 0x507   :  { %v3550_v39 = vadd.f32 %v3549_v60, %v3477_v46  ;;  %v3480_v49 = vadd.f32 %v12237_v50, %v3190_v26  ;;  %v3192_v45 = vpop.f32.mrb[123].mxu0 }
 0x509   :  { %v3551_v13 = vadd.f32 %v3550_v39, %v3480_v49 }
 0x50c   :  { %v3195_v32 = vpop.f32.mrb[124].mxu0 }
 0x50d   :  { %v3485_v58 = vadd.f32 %v12228_v21, %v3195_v32  ;;  %v3197_v52 = vpop.f32.mrb[125].mxu0  ;;  %v16550_v32 = vld [vmem:[#allocation9_spill] sm:$0xff] }
 0x50e   :  { %v3198_v4 = vpop.f32.mrb[126].mxu0 }
 0x50f   :  { %v3552_v44 = vadd.f32 %v3551_v13, %v3485_v58  ;;  %v3488_v15 = vadd.f32 %v12235_v57, %v3198_v4  ;;  %v3200_v54 = vpop.f32.mrb[127].mxu0 }
 0x510   :  { %v16551_v54 = vld [vmem:[#allocation10_spill] sm:$0xff] }
 0x511   :  { %v3553_v34 = vadd.f32 %v3552_v44, %v3488_v15 }
 0x513   :  { %v3554_v48 = vrot.slane %v3553_v34, 4 }
 0x515   :  { %v3555_v47 = vadd.f32 %v3554_v48, %v3553_v34 }
 0x517   :  { %v3556_v9 = vrot.slane %v3555_v47, 2 }
 0x519   :  { %v3557_v22 = vadd.f32 %v3556_v9, %v3555_v47  ;;  %v16552_v9 = vld [vmem:[#allocation11_spill] sm:$0xff] }
 0x51b   :  { %v3558_v61 = vrot.slane %v3557_v22, 1 }
 0x51d   :  { %v3559_v60 = vadd.f32 %v3558_v61, %v3557_v22 }
 0x51f   :  { %v12359_v11 = vmul.f32 0.001953125, %v3559_v60  ;;  %v16553_v60 = vld [vmem:[#allocation12_spill] sm:$0xff] }
 0x521   :  { %v12362_v50 = vsub.f32 %v3453_v31, %v12359_v11  ;;  %v12365_v21 = vsub.f32 %v3456_v3, %v12359_v11  ;;  %v12368_v26 = vsub.f32 %v3461_v16, %v12359_v11  ;;  %v12371_v57 = vsub.f32 %v3464_v27, %v12359_v11 }
 0x522   :  { %v12374_v39 = vsub.f32 %v3469_v2, %v12359_v11  ;;  %v12377_v47 = vsub.f32 %v3472_v12, %v12359_v11  ;;  %v12380_v45 = vsub.f32 %v3477_v46, %v12359_v11  ;;  %v12383_v31 = vsub.f32 %v3480_v49, %v12359_v11  ;;  %v16549_v12 = vld [vmem:[#allocation8_spill] sm:$0xff] }
 0x523   :  { %v12386_v3 = vsub.f32 %v3485_v58, %v12359_v11  ;;  %v12389_v16 = vsub.f32 %v3488_v15, %v12359_v11  ;;  %v12393_v27 = vsub.f32 %v12041_v43, %v12359_v11  ;;  %v12397_v2 = vsub.f32 %v12048_v53, %v12359_v11 }
 0x524   :  { %16548 = vst [vmem:[#allocation28_spill] sm:$0xff] %v12380_v45  ;;  %v12401_v46 = vsub.f32 %v16549_v12, %v12359_v11  ;;  %v12409_v58 = vsub.f32 %v16550_v32, %v12359_v11  ;;  %v12413_v43 = vsub.f32 %v12075_v8, %v12359_v11  ;;  %v12419_v4 = vsub.f32 %v12082_v42, %v12359_v11 }
 0x525   :  { %v3626_v49 = vmul.f32 %v12393_v27, %v12393_v27  ;;  %v3627_v13 = vmul.f32 %v12397_v2, %v12397_v2  ;;  %v12425_v34 = vsub.f32 %v16551_v54, %v12359_v11  ;;  %v12431_v22 = vsub.f32 %v16552_v9, %v12359_v11 }
 0x526   :  { %v3628_v53 = vmul.f32 %v12401_v46, %v12401_v46  ;;  %v3629_v44 = vmul.f32 %v12409_v58, %v12409_v58  ;;  %v3630_v8 = vmul.f32 %v12413_v43, %v12413_v43  ;;  %v3631_v42 = vmul.f32 %v12419_v4, %v12419_v4 }
 0x527   :  { %v3690_v52 = vadd.f32 %v3627_v13, %v3626_v49  ;;  %v12437_v12 = vsub.f32 %v16553_v60, %v12359_v11  ;;  %v3632_v49 = vmul.f32 %v12425_v34, %v12425_v34  ;;  %v12443_v32 = vsub.f32 %v12121_v38, %v12359_v11 }
 0x529   :  { %v3691_v15 = vadd.f32 %v3690_v52, %v3628_v53  ;;  %16554 = vst [vmem:[#allocation8_spill] sm:$0xff] %v12437_v12  ;;  %v3633_v53 = vmul.f32 %v12431_v22, %v12431_v22  ;;  %v3634_v54 = vmul.f32 %v12437_v12, %v12437_v12  ;;  %v3635_v38 = vmul.f32 %v12443_v32, %v12443_v32 }
 0x52b   :  { %v3692_v48 = vadd.f32 %v3691_v15, %v3629_v44  ;;  %v16555_v44 = vld [vmem:[#allocation13_spill] sm:$0xff] }
 0x52c   :  { %v12449_v15 = vsub.f32 %v16555_v44, %v12359_v11  ;;  %v16561_v44 = vld [vmem:[#allocation16_spill] sm:$0xff] }
 0x52d   :  { %v3693_v61 = vadd.f32 %v3692_v48, %v3630_v8  ;;  %v16557_v48 = vld [vmem:[#allocation14_spill] sm:$0xff]  ;;  %v12467_v12 = vsub.f32 %v16561_v44, %v12359_v11 }
 0x52e   :  { %16556 = vst [vmem:[#allocation9_spill] sm:$0xff] %v12449_v15  ;;  %v12455_v9 = vsub.f32 %v16557_v48, %v12359_v11  ;;  %v12473_v48 = vsub.f32 %v12144_v10, %v12359_v11  ;;  %v16564_v44 = vld [vmem:[#allocation18_spill] sm:$0xff] }
 0x52f   :  { %v3694_v13 = vadd.f32 %v3693_v61, %v3631_v42  ;;  %v16559_v61 = vld [vmem:[#allocation15_spill] sm:$0xff] }
 0x530   :  { %16558 = vst [vmem:[#allocation10_spill] sm:$0xff] %v12455_v9  ;;  %v12461_v60 = vsub.f32 %v16559_v61, %v12359_v11  ;;  %v16562_v61 = vld [vmem:[#allocation17_spill] sm:$0xff]  ;;  %v3640_v10 = vmul.f32 %v12473_v48, %v12473_v48 }
 0x531   :  { %v3695_v52 = vadd.f32 %v3694_v13, %v3632_v49  ;;  %v3636_v49 = vmul.f32 %v12449_v15, %v12449_v15  ;;  %v12479_v15 = vsub.f32 %v16562_v61, %v12359_v11 }
 0x532   :  { %16560 = vst [vmem:[#allocation11_spill] sm:$0xff] %v12461_v60 }
 0x533   :  { %v3696_v8 = vadd.f32 %v3695_v52, %v3633_v53  ;;  %v3637_v53 = vmul.f32 %v12455_v9, %v12455_v9  ;;  %16563 = vst [vmem:[#allocation12_spill] sm:$0xff] %v12479_v15  ;;  %v12485_v9 = vsub.f32 %v16564_v44, %v12359_v11 }
 0x535   :  { %v3697_v42 = vadd.f32 %v3696_v8, %v3634_v54  ;;  %v3638_v54 = vmul.f32 %v12461_v60, %v12461_v60  ;;  %v3642_v44 = vmul.f32 %v12485_v9, %v12485_v9 }
 0x537   :  { %v3698_v13 = vadd.f32 %v3697_v42, %v3635_v38  ;;  %v3639_v38 = vmul.f32 %v12467_v12, %v12467_v12 }
 0x539   :  { %v3699_v52 = vadd.f32 %v3698_v13, %v3636_v49  ;;  %v16565_v13 = vld [vmem:[#allocation19_spill] sm:$0xff] }
 0x53a   :  { %v12491_v60 = vsub.f32 %v16565_v13, %v12359_v11  ;;  %v12507_v13 = vsub.f32 %v12174_v51, %v12359_v11  ;;  %v16569_v51 = vld [vmem:[#allocation21_spill] sm:$0xff] }
 0x53b   :  { %v3700_v8 = vadd.f32 %v3699_v52, %v3637_v53  ;;  %v3641_v53 = vmul.f32 %v12479_v15, %v12479_v15  ;;  %v12516_v15 = vsub.f32 %v12183_v20, %v12359_v11  ;;  %v9963_v20 = vld [vmem:[%s16425_s2 + $0x10] sm:$0xff]  }
 0x53c   :  { %16566 = vst [vmem:[#allocation13_spill] sm:$0xff] %v12491_v60 }
 0x53d   :  { %v3701_v42 = vadd.f32 %v3700_v8, %v3638_v54  ;;  %v9961_v54 = vld [vmem:[%s16425_s2] sm:$0xff]  }
 0x53e   :  { %v16567_v8 = vld [vmem:[#allocation20_spill] sm:$0xff]  ;;  %6200 = vmatpush1.bf16.msra.mxu1 %v9961_v54  ;;  %v12523_v54 = vsub.f32 %v16569_v51, %v12359_v11  ;;  %v12548_v51 = vsub.f32 %v12208_v62, %v12359_v11 }
 0x53f   :  { %v3702_v49 = vadd.f32 %v3701_v42, %v3639_v38  ;;  %v12500_v61 = vsub.f32 %v16567_v8, %v12359_v11  ;;  %v16568_v42 = vmov 0   ;;  %v9962_v8 = vld [vmem:[%s16425_s2 + $0x8] sm:$0xff]   ;;  %v9965_v62 = vld [vmem:[%s16425_s2 + $0x20] sm:$0xff]  }
 0x540   :  { %6201 = vmatprep.subr.bf16.mxu1 %v16568_v42 }
 0x541   :  { %v3703_v52 = vadd.f32 %v3702_v49, %v3640_v10  ;;  %v3643_v10 = vmul.f32 %v12491_v60, %v12491_v60  ;;  %v12532_v60 = vsub.f32 %v12195_v41, %v12359_v11  ;;  %v9964_v41 = vld [vmem:[%s16425_s2 + $0x18] sm:$0xff]  }
 0x542   :  { %6202 = vmatpush1.bf16.msra.mxu1 %v9962_v8  ;;  %v12539_v8 = vsub.f32 %v12199_v28, %v12359_v11  ;;  %v12555_v28 = vsub.f32 %v12216_v36, %v12359_v11  ;;  %v12571_v36 = vsub.f32 %v12224_v7, %v12359_v11  ;;  %v12587_v7 = vsub.f32 %v12241_v63, %v12359_v11 }
 0x543   :  { %v3704_v38 = vadd.f32 %v3703_v52, %v3641_v53  ;;  %v3644_v53 = vmul.f32 %v12500_v61, %v12500_v61  ;;  %6203 = vmatprep.subr.bf16.mxu1 %v16568_v42  ;;  %v12603_v63 = vsub.f32 %v12250_v59, %v12359_v11  ;;  %v12619_v59 = vsub.f32 %v12258_v56, %v12359_v11 }
 0x544   :  { %v12635_v56 = vsub.f32 %v12267_v40, %v12359_v11  ;;  %v12651_v40 = vsub.f32 %v12276_v24, %v12359_v11 }
 0x545   :  { %v3705_v49 = vadd.f32 %v3704_v38, %v3642_v44  ;;  %v3645_v44 = vmul.f32 %v12507_v13, %v12507_v13 }
 0x546   :  { %6204 = vmatpush1.bf16.msra.mxu1 %v9963_v20  ;;  %v3649_v20 = vmul.f32 %v12539_v8, %v12539_v8 }
 0x547   :  { %v3706_v52 = vadd.f32 %v3705_v49, %v3643_v10  ;;  %v3646_v10 = vmul.f32 %v12516_v15, %v12516_v15  ;;  %6205 = vmatprep.subr.bf16.mxu1 %v16568_v42 }
 0x549   :  { %v3707_v38 = vadd.f32 %v3706_v52, %v3644_v53  ;;  %v3647_v53 = vmul.f32 %v12523_v54, %v12523_v54 }
 0x54a   :  { %6206 = vmatpush1.bf16.msra.mxu1 %v9964_v41  ;;  %v3651_v41 = vmul.f32 %v12555_v28, %v12555_v28 }
 0x54b   :  { %v3708_v49 = vadd.f32 %v3707_v38, %v3645_v44  ;;  %v3648_v44 = vmul.f32 %v12532_v60, %v12532_v60  ;;  %6207 = vmatprep.subr.bf16.mxu1 %v16568_v42 }
 0x54d   :  { %v3709_v52 = vadd.f32 %v3708_v49, %v3646_v10  ;;  %v12564_v49 = vsub.f32 %v12221_v37, %v12359_v11  ;;  %v9966_v37 = vld [vmem:[%s16425_s2 + $0x28] sm:$0xff]  }
 0x54e   :  { %6208 = vmatpush1.bf16.msra.mxu1 %v9965_v62  ;;  %v3653_v62 = vmul.f32 %v12571_v36, %v12571_v36 }
 0x54f   :  { %v3710_v38 = vadd.f32 %v3709_v52, %v3647_v53  ;;  %v3650_v53 = vmul.f32 %v12548_v51, %v12548_v51  ;;  %6209 = vmatprep.subr.bf16.mxu1 %v16568_v42 }
 0x551   :  { %v3711_v10 = vadd.f32 %v3710_v38, %v3648_v44  ;;  %v12580_v38 = vsub.f32 %v12233_v55, %v12359_v11  ;;  %v9967_v55 = vld [vmem:[%s16425_s2 + $0x30] sm:$0xff]  }
 0x552   :  { %6210 = vmatpush1.bf16.msra.mxu1 %v9966_v37  ;;  %v3655_v37 = vmul.f32 %v12587_v7, %v12587_v7 }
 0x553   :  { %v3712_v52 = vadd.f32 %v3711_v10, %v3649_v20  ;;  %v3652_v20 = vmul.f32 %v12564_v49, %v12564_v49  ;;  %6211 = vmatprep.subr.bf16.mxu1 %v16568_v42 }
 0x555   :  { %v3713_v44 = vadd.f32 %v3712_v52, %v3650_v53  ;;  %v12596_v52 = vsub.f32 %v12246_v6, %v12359_v11  ;;  %v9968_v6 = vld [vmem:[%s16425_s2 + $0x38] sm:$0xff]  }
 0x556   :  { %6212 = vmatpush1.bf16.msra.mxu1 %v9967_v55  ;;  %v3657_v55 = vmul.f32 %v12603_v63, %v12603_v63 }
 0x557   :  { %v3714_v10 = vadd.f32 %v3713_v44, %v3651_v41  ;;  %v3654_v41 = vmul.f32 %v12580_v38, %v12580_v38  ;;  %6213 = vmatprep.subr.bf16.mxu1 %v16568_v42 }
 0x559   :  { %v3715_v53 = vadd.f32 %v3714_v10, %v3652_v20  ;;  %v12612_v10 = vsub.f32 %v12255_v33, %v12359_v11  ;;  %v9969_v33 = vld [vmem:[%s16425_s2 + $0x40] sm:$0xff]  }
 0x55a   :  { %6214 = vmatpush1.bf16.msra.mxu1 %v9968_v6  ;;  %v3659_v6 = vmul.f32 %v12619_v59, %v12619_v59 }
 0x55b   :  { %v3716_v44 = vadd.f32 %v3715_v53, %v3653_v62  ;;  %v3656_v62 = vmul.f32 %v12596_v52, %v12596_v52  ;;  %6215 = vmatprep.subr.bf16.mxu1 %v16568_v42 }
 0x55d   :  { %v3717_v20 = vadd.f32 %v3716_v44, %v3654_v41  ;;  %v12628_v44 = vsub.f32 %v12263_v5, %v12359_v11  ;;  %v9970_v5 = vld [vmem:[%s16425_s2 + $0x48] sm:$0xff]  }
 0x55e   :  { %6216 = vmatpush1.bf16.msra.mxu1 %v9969_v33  ;;  %v3661_v33 = vmul.f32 %v12635_v56, %v12635_v56 }
 0x55f   :  { %v3718_v53 = vadd.f32 %v3717_v20, %v3655_v37  ;;  %v3658_v37 = vmul.f32 %v12612_v10, %v12612_v10  ;;  %6217 = vmatprep.subr.bf16.mxu1 %v16568_v42 }
 0x561   :  { %v3719_v41 = vadd.f32 %v3718_v53, %v3656_v62  ;;  %v12644_v53 = vsub.f32 %v12272_v25, %v12359_v11  ;;  %v9971_v25 = vld [vmem:[%s16425_s2 + $0x50] sm:$0xff]  }
 0x562   :  { %6218 = vmatpush1.bf16.msra.mxu1 %v9970_v5  ;;  %v12670_v5 = vsub.f32 %v12284_v14, %v12359_v11 }
 0x563   :  { %v3720_v20 = vadd.f32 %v3719_v41, %v3657_v55  ;;  %v3660_v55 = vmul.f32 %v12628_v44, %v12628_v44  ;;  %6219 = vmatprep.subr.bf16.mxu1 %v16568_v42  ;;  %v3662_v24 = vmul.f32 %v12644_v53, %v12644_v53 }
 0x564   :  { %16570 = vst [vmem:[#allocation14_spill] sm:$0xff] %v12670_v5 }
 0x565   :  { %v3721_v62 = vadd.f32 %v3720_v20, %v3658_v37  ;;  %v9974_v20 = vld [vmem:[%s16425_s2 + $0x200] sm:$0xff]  }
 0x566   :  { %6220 = vmatpush1.bf16.msra.mxu1 %v9971_v25  ;;  %9020 = vmatprep.subr.bf16.mxu0 %v9974_v20 }
 0x567   :  { %v3722_v41 = vadd.f32 %v3721_v62, %v3659_v6  ;;  %v12663_v6 = vsub.f32 %v12281_v23, %v12359_v11  ;;  %6221 = vmatprep.subr.bf16.mxu1 %v16568_v42  ;;  %v9972_v23 = vld [vmem:[%s16425_s2 + $0x58] sm:$0xff]   ;;  %9021 = vmatpush3.bf16.msra.mxu0 %v9974_v20  ;;  %v3665_v20 = vmul.f32 %v12670_v5, %v12670_v5 }
 0x569   :  { %v3723_v37 = vadd.f32 %v3722_v41, %v3660_v55  ;;  %v3663_v55 = vmul.f32 %v12651_v40, %v12651_v40  ;;  %v3664_v14 = vmul.f32 %v12663_v6, %v12663_v6 }
 0x56a   :  { %6222 = vmatpush1.bf16.msra.mxu1 %v9972_v23 }
 0x56b   :  { %v3724_v62 = vadd.f32 %v3723_v37, %v3661_v33  ;;  %v9976_v33 = vld [vmem:[%s16425_s2 + $0x208] sm:$0xff]   ;;  %v12682_v37 = vsub.f32 %v12289_v0, %v12359_v11  ;;  %6223 = vmatprep.subr.bf16.mxu1 %v16568_v42  ;;  %v9973_v0 = vld [vmem:[%s16425_s2 + $0x60] sm:$0xff]  }
 0x56c   :  { %9022 = vmatprep.subr.bf16.mxu0 %v9976_v33 }
 0x56d   :  { %v3725_v41 = vadd.f32 %v3724_v62, %v3662_v24  ;;  %16571 = vst [vmem:[#allocation15_spill] sm:$0xff] %v12682_v37  ;;  %v12689_v24 = vsub.f32 %v12293_v18, %v12359_v11  ;;  %9023 = vmatpush3.bf16.msra.mxu0 %v9976_v33  ;;  %v3666_v18 = vmul.f32 %v12682_v37, %v12682_v37 }
 0x56e   :  { %6224 = vmatpush1.bf16.msra.mxu1 %v9973_v0 }
 0x56f   :  { %v3726_v25 = vadd.f32 %v3725_v41, %v3663_v55  ;;  %16572 = vst [vmem:[#allocation16_spill] sm:$0xff] %v12689_v24  ;;  %v9977_v55 = vld [vmem:[%s16425_s2 + $0x210] sm:$0xff]   ;;  %v12701_v41 = vsub.f32 %v12298_v30, %v12359_v11  ;;  %6225 = vmatprep.subr.bf16.mxu1 %v16568_v42  ;;  %v3667_v33 = vmul.f32 %v12689_v24, %v12689_v24  ;;  %v9975_v30 = vld [vmem:[%s16425_s2 + $0x68] sm:$0xff]   ;;  %v16580_v24 = vld [vmem:[#allocation23_spill] sm:$0xff] }
 0x570   :  { %9024 = vmatprep.subr.bf16.mxu0 %v9977_v55  ;;  %v12860_v37 = vsub.f32 %v16580_v24, %v12359_v11  ;;  %v9985_v24 = vld [vmem:[%s16425_s2 + $0x238] sm:$0xff]  }
 0x571   :  { %v3727_v62 = vadd.f32 %v3726_v25, %v3664_v14  ;;  %16573 = vst [vmem:[#allocation17_spill] sm:$0xff] %v12701_v41  ;;  %v12708_v14 = vsub.f32 %v12302_v1, %v12359_v11  ;;  %9025 = vmatpush3.bf16.msra.mxu0 %v9977_v55  ;;  %v12726_v1 = vmul.f32 %v12701_v41, %v12701_v41  ;;  %v16579_v41 = vmov 0.0  }
 0x572   :  { %6226 = vmatpush1.bf16.msra.mxu1 %v9975_v30 }
 0x573   :  { %v3728_v23 = vadd.f32 %v3727_v62, %v3665_v20  ;;  %16574 = vst [vmem:[#allocation18_spill] sm:$0xff] %v12708_v14  ;;  %v12718_v20 = vld [vmem:[%s16425_s2 + $0x218] sm:$0xff]   ;;  %v12722_v62 = vsub.f32 %v12307_v35, %v12359_v11  ;;  %6227 = vmatprep.subr.bf16.mxu1 %v16568_v42  ;;  %v12818_v35 = vsub.f32 %v12310_v17, %v12359_v11 }
 0x574   :  { %9026 = vmatprep.subr.bf16.mxu0 %v12718_v20  ;;  %v3669_v55 = vmul.f32 %v12708_v14, %v12708_v14  ;;  %v12833_v17 = vsub.f32 %v12315_v19, %v12359_v11  ;;  %v9981_v19 = vld [vmem:[%s16425_s2 + $0x78] sm:$0xff]  }
 0x575   :  { %v3729_v25 = vadd.f32 %v3728_v23, %v3666_v18  ;;  %16575 = vst [vmem:[#allocation19_spill] sm:$0xff] %v12722_v62  ;;  %v16459_v18 = vmov 0.0   ;;  %16576 = vst [vmem:[#allocation20_spill] sm:$0xff] %v12818_v35  ;;  %9027 = vmatpush3.bf16.msra.mxu0 %v12718_v20  ;;  %v3670_v30 = vmul.f32 %v12722_v62, %v12722_v62  ;;  %v3671_v20 = vmul.f32 %v12818_v35, %v12818_v35  ;;  %v16577_v62 = vld [vmem:[#allocation22_spill] sm:$0xff] }
 0x576   :  { %4032 = vst [vmem:[#allocation4] sm:$0xff] %v16459_v18  ;;  %4033 = vst [vmem:[#allocation4 + $0x8] sm:$0xff] %v16459_v18  ;;  %v12852_v14 = vsub.f32 %v16577_v62, %v12359_v11 }
 0x577   :  { %v12728_v0 = vadd.f32 %v3729_v25, %v3667_v33  ;;  %4034 = vst [vmem:[#allocation4 + $0x10] sm:$0x3] %v16459_v18  ;;  %4035 = vst [vmem:[#allocation4 + $0x1b0] sm:$0xff] %v16459_v18  ;;  %v9978_v33 = vld [vmem:[%s16425_s2 + $0x70] sm:$0xff]   ;;  %v9980_v25 = vld [vmem:[%s16425_s2 + $0x220] sm:$0xff]  }
 0x578   :  { %4036 = vst [vmem:[#allocation4 + $0x1b8] sm:$0xff] %v16459_v18  ;;  %4037 = vst [vmem:[#allocation4 + $0x1c0] sm:$0x3] %v16459_v18  ;;  %6228 = vmatpush1.bf16.msra.mxu1 %v9978_v33  ;;  %9028 = vmatprep.subr.bf16.mxu0 %v9980_v25 }
 0x579   :  { %4039 = vst [vmem:[#allocation4 + $0x198] sm:$0xff] %v16459_v18  ;;  %4040 = vst [vmem:[#allocation4 + $0x1a0] sm:$0xff] %v16459_v18  ;;  %v3731_v23 = vadd.f32 %v12728_v0, %v12726_v1  ;;  %6229 = vmatprep.subr.bf16.mxu1 %v16568_v42  ;;  %v12840_v1 = vsub.f32 %v12319_v29, %v12359_v11  ;;  %9029 = vmatpush3.bf16.msra.mxu0 %v9980_v25 }
 0x57a   :  { %4041 = vst [vmem:[#allocation4 + $0x1a8] sm:$0x3] %v16459_v18  ;;  %4042 = vst [vmem:[#allocation4 + $0x348] sm:$0xff] %v16459_v18  ;;  %v3672_v29 = vmul.f32 %v12833_v17, %v12833_v17 }
 0x57b   :  { %4043 = vst [vmem:[#allocation4 + $0x350] sm:$0xff] %v16459_v18  ;;  %4044 = vst [vmem:[#allocation4 + $0x358] sm:$0x3] %v16459_v18  ;;  %v3673_v62 = vmul.f32 %v12840_v1, %v12840_v1 }
 0x57c   :  { %4046 = vst [vmem:[#allocation4 + $0x18] sm:$0x1] %v16459_v18  ;;  %4047 = vst [vmem:[#allocation4 + $0x30] sm:$0x1] %v16459_v18  ;;  %6230 = vmatpush1.bf16.msra.mxu1 %v9981_v19 }
 0x57d   :  { %4048 = vst [vmem:[#allocation4 + $0x48] sm:$0x1] %v16459_v18  ;;  %4049 = vst [vmem:[#allocation4 + $0x60] sm:$0x1] %v16459_v18  ;;  %6488 = vmatprep.subr.bf16.mxu1 %v16568_v42 }
 0x57e   :  { %4050 = vst [vmem:[#allocation4 + $0x78] sm:$0x1] %v16459_v18  ;;  %4051 = vst [vmem:[#allocation4 + $0x90] sm:$0x1] %v16459_v18  ;;  %v4311_v33 = vld [vmem:[#allocation4 + $0x9] sm:$0xff] }
 0x57f   :  { %4052 = vst [vmem:[#allocation4 + $0xa8] sm:$0x1] %v16459_v18  ;;  %4053 = vst [vmem:[#allocation4 + $0xc0] sm:$0x1] %v16459_v18 }
 0x580   :  { %4054 = vst [vmem:[#allocation4 + $0xd8] sm:$0x1] %v16459_v18  ;;  %4055 = vst [vmem:[#allocation4 + $0xf0] sm:$0x1] %v16459_v18 }
 0x581   :  { %4056 = vst [vmem:[#allocation4 + $0x108] sm:$0x1] %v16459_v18  ;;  %4057 = vst [vmem:[#allocation4 + $0x120] sm:$0x1] %v16459_v18 }
 0x582   :  { %4058 = vst [vmem:[#allocation4 + $0x138] sm:$0x1] %v16459_v18  ;;  %4059 = vst [vmem:[#allocation4 + $0x150] sm:$0x1] %v16459_v18 }
 0x583   :  { %4060 = vst [vmem:[#allocation4 + $0x168] sm:$0x1] %v16459_v18  ;;  %4061 = vst [vmem:[#allocation4 + $0x180] sm:$0x1] %v16459_v18 }
 0x584   :  { %4064 = vst [vmem:[#allocation4 + $0x1c8] sm:$0x1] %v16459_v18  ;;  %4065 = vst [vmem:[#allocation4 + $0x1e0] sm:$0x1] %v16459_v18 }
 0x585   :  { %4066 = vst [vmem:[#allocation4 + $0x1f8] sm:$0x1] %v16459_v18  ;;  %4067 = vst [vmem:[#allocation4 + $0x210] sm:$0x1] %v16459_v18 }
 0x586   :  { %4068 = vst [vmem:[#allocation4 + $0x228] sm:$0x1] %v16459_v18  ;;  %4069 = vst [vmem:[#allocation4 + $0x240] sm:$0x1] %v16459_v18 }
 0x587   :  { %4070 = vst [vmem:[#allocation4 + $0x258] sm:$0x1] %v16459_v18  ;;  %4071 = vst [vmem:[#allocation4 + $0x270] sm:$0x1] %v16459_v18 }
 0x588   :  { %4072 = vst [vmem:[#allocation4 + $0x288] sm:$0x1] %v16459_v18  ;;  %4073 = vst [vmem:[#allocation4 + $0x2a0] sm:$0x1] %v16459_v18 }
 0x589   :  { %4074 = vst [vmem:[#allocation4 + $0x2b8] sm:$0x1] %v16459_v18  ;;  %4075 = vst [vmem:[#allocation4 + $0x2d0] sm:$0x1] %v16459_v18 }
 0x58a   :  { %4076 = vst [vmem:[#allocation4 + $0x2e8] sm:$0x1] %v16459_v18  ;;  %4077 = vst [vmem:[#allocation4 + $0x300] sm:$0x1] %v16459_v18 }
 0x58b   :  { %4078 = vst [vmem:[#allocation4 + $0x318] sm:$0x1] %v16459_v18  ;;  %4079 = vst [vmem:[#allocation4 + $0x330] sm:$0x1] %v16459_v18 }
 0x58c   :  { %4082 = vst [vmem:[#allocation4 + $0x29] sm:$0x1] %v16459_v18  ;;  %4083 = vst [vmem:[#allocation4 + $0x41] sm:$0x1] %v16459_v18 }
 0x58d   :  { %4084 = vst [vmem:[#allocation4 + $0x59] sm:$0x1] %v16459_v18  ;;  %4085 = vst [vmem:[#allocation4 + $0x71] sm:$0x1] %v16459_v18 }
 0x58e   :  { %4086 = vst [vmem:[#allocation4 + $0x89] sm:$0x1] %v16459_v18  ;;  %4087 = vst [vmem:[#allocation4 + $0xa1] sm:$0x1] %v16459_v18 }
 0x58f   :  { %4088 = vst [vmem:[#allocation4 + $0xb9] sm:$0x1] %v16459_v18  ;;  %4089 = vst [vmem:[#allocation4 + $0xd1] sm:$0x1] %v16459_v18 }
 0x590   :  { %4090 = vst [vmem:[#allocation4 + $0xe9] sm:$0x1] %v16459_v18  ;;  %4091 = vst [vmem:[#allocation4 + $0x101] sm:$0x1] %v16459_v18 }
 0x591   :  { %4092 = vst [vmem:[#allocation4 + $0x119] sm:$0x1] %v16459_v18  ;;  %4093 = vst [vmem:[#allocation4 + $0x131] sm:$0x1] %v16459_v18 }
 0x592   :  { %4094 = vst [vmem:[#allocation4 + $0x149] sm:$0x1] %v16459_v18  ;;  %4095 = vst [vmem:[#allocation4 + $0x161] sm:$0x1] %v16459_v18 }
 0x593   :  { %4096 = vst [vmem:[#allocation4 + $0x179] sm:$0x1] %v16459_v18  ;;  %4097 = vst [vmem:[#allocation4 + $0x191] sm:$0x1] %v16459_v18 }
 0x594   :  { %4100 = vst [vmem:[#allocation4 + $0x1d9] sm:$0x1] %v16459_v18  ;;  %4101 = vst [vmem:[#allocation4 + $0x1f1] sm:$0x1] %v16459_v18 }
 0x595   :  { %4102 = vst [vmem:[#allocation4 + $0x209] sm:$0x1] %v16459_v18  ;;  %4103 = vst [vmem:[#allocation4 + $0x221] sm:$0x1] %v16459_v18 }
 0x596   :  { %4104 = vst [vmem:[#allocation4 + $0x239] sm:$0x1] %v16459_v18  ;;  %4105 = vst [vmem:[#allocation4 + $0x251] sm:$0x1] %v16459_v18 }
 0x597   :  { %4106 = vst [vmem:[#allocation4 + $0x269] sm:$0x1] %v16459_v18  ;;  %4107 = vst [vmem:[#allocation4 + $0x281] sm:$0x1] %v16459_v18 }
 0x598   :  { %4108 = vst [vmem:[#allocation4 + $0x299] sm:$0x1] %v16459_v18  ;;  %4109 = vst [vmem:[#allocation4 + $0x2b1] sm:$0x1] %v16459_v18 }
 0x599   :  { %4110 = vst [vmem:[#allocation4 + $0x2c9] sm:$0x1] %v16459_v18  ;;  %4111 = vst [vmem:[#allocation4 + $0x2e1] sm:$0x1] %v16459_v18 }
 0x59a   :  { %4112 = vst [vmem:[#allocation4 + $0x2f9] sm:$0x1] %v16459_v18  ;;  %4113 = vst [vmem:[#allocation4 + $0x311] sm:$0x1] %v16459_v18 }
 0x59b   :  { %4114 = vst [vmem:[#allocation4 + $0x329] sm:$0x1] %v16459_v18  ;;  %4115 = vst [vmem:[#allocation4 + $0x341] sm:$0x1] %v16459_v18 }
 0x59c   :  { %4045 = vst [vmem:[#allocation4] sm:$0x1] %v16459_v18  ;;  %4081 = vst [vmem:[#allocation4 + $0x11] sm:$0x1] %v16459_v18 }
 0x59d   :  { %4062 = vst [vmem:[#allocation4 + $0x198] sm:$0x1] %v16459_v18  ;;  %4063 = vst [vmem:[#allocation4 + $0x1b0] sm:$0x1] %v16459_v18 }
 0x59e   :  { %4080 = vst [vmem:[#allocation4 + $0x348] sm:$0x1] %v16459_v18  ;;  %4098 = vst [vmem:[#allocation4 + $0x1a9] sm:$0x1] %v16459_v18 }
 0x59f   :  { %4099 = vst [vmem:[#allocation4 + $0x1c1] sm:$0x1] %v16459_v18  ;;  %4116 = vst [vmem:[#allocation4 + $0x359] sm:$0x1] %v16459_v18  ;;  %v3732_v18 = vadd.f32 %v3731_v23, %v3669_v55  ;;  %v9982_v55 = vld [vmem:[%s16425_s2 + $0x228] sm:$0xff]  }
 0x5a0   :  { %v4310_v23 = vld [vmem:[#allocation4 + $0x1] sm:$0xff]  ;;  %16578 = vst [vmem:[#allocation21_spill] sm:$0xff] %v12852_v14  ;;  %9030 = vmatprep.subr.bf16.mxu0 %v9982_v55 }
 0x5a1   :  { %v3733_v0 = vadd.f32 %v3732_v18, %v3670_v30  ;;  %v4374_v18 = vpack.c.bf16 %v4311_v33, %v4310_v23  ;;  %9031 = vmatpush3.bf16.msra.mxu0 %v9982_v55  ;;  %v16582_v23 = vld [vmem:[#allocation25_spill] sm:$0xff] }
 0x5a2   :  { %v12882_v33 = vsub.f32 %v16582_v23, %v12359_v11 }
 0x5a3   :  { %v3734_v35 = vadd.f32 %v3733_v0, %v3671_v20  ;;  %v4182_v30 = vld [vmem:[#allocation4] sm:$0xff]  ;;  %6231 = vmatprep.mubr.bf16.mxu1 %v4374_v18  ;;  %v9983_v20 = vld [vmem:[%s16425_s2 + $0x230] sm:$0xff]  }
 0x5a4   :  { %v4246_v25 = vpack.c.bf16 %v16579_v41, %v4182_v30  ;;  %v9984_v41 = vld [vmem:[%s16425_s2 + $0x80] sm:$0xff]   ;;  %9032 = vmatprep.subr.bf16.mxu0 %v9983_v20  ;;  %v16583_v30 = vld [vmem:[#allocation26_spill] sm:$0xff]  ;;  %v3677_v23 = vmul.f32 %v12882_v33, %v12882_v33 }
 0x5a5   :  { %v3735_v5 = vadd.f32 %v3734_v35, %v3672_v29  ;;  %v16581_v0 = vld [vmem:[#allocation24_spill] sm:$0xff]  ;;  %v3674_v35 = vmul.f32 %v12852_v14, %v12852_v14  ;;  %v3675_v29 = vmul.f32 %v12860_v37, %v12860_v37  ;;  %9033 = vmatpush3.bf16.msra.mxu0 %v9983_v20 }
 0x5a6   :  { %6232 = vmatmul.mubr.bf16.vlgmr.msra.gmra.mrb[64].mxu1 %v4246_v25  ;;  %v12875_v19 = vsub.f32 %v16581_v0, %v12359_v11  ;;  %9034 = vmatprep.subr.bf16.mxu0 %v9985_v24  ;;  %v12888_v25 = vsub.f32 %v16583_v30, %v12359_v11 }
 0x5a7   :  { %v3736_v55 = vadd.f32 %v3735_v5, %v3673_v62  ;;  %6489 = vmatpush1.bf16.msra.mxu1 %v9984_v41  ;;  %v16584_v41 = vld [vmem:[#allocation27_spill] sm:$0xff] }
 0x5a8   :  { %6490 = vmatprep.subr.bf16.mxu1 %v16568_v42  ;;  %v3676_v5 = vmul.f32 %v12875_v19, %v12875_v19  ;;  %v12894_v0 = vsub.f32 %v16584_v41, %v12359_v11  ;;  %v3678_v20 = vmul.f32 %v12888_v25, %v12888_v25  ;;  %v3680_v11 = vmul.f32 %v12362_v50, %v12362_v50 }
 0x5a9   :  { %v3737_v18 = vadd.f32 %v3736_v55, %v3674_v35  ;;  %9035 = vmatpush3.bf16.msra.mxu0 %v9985_v24  ;;  %v9986_v55 = vld [vmem:[%s16425_s2 + $0x88] sm:$0xff]   ;;  %v3681_v24 = vmul.f32 %v12365_v21, %v12365_v21  ;;  %v3683_v41 = vmul.f32 %v12371_v57, %v12371_v57 }
 0x5ab   :  { %v3738_v62 = vadd.f32 %v3737_v18, %v3675_v29  ;;  %v3679_v29 = vmul.f32 %v12894_v0, %v12894_v0  ;;  %6491 = vmatpush1.bf16.msra.mxu1 %v9986_v55  ;;  %v3685_v55 = vmul.f32 %v12377_v47, %v12377_v47 }
 0x5ac   :  { %6492 = vmatprep.subr.bf16.mxu1 %v16568_v42 }
 0x5ad   :  { %v3739_v14 = vadd.f32 %v3738_v62, %v3676_v5 }
 0x5af   :  { %v3740_v35 = vadd.f32 %v3739_v14, %v3677_v23  ;;  %v3682_v14 = vmul.f32 %v12368_v26, %v12368_v26 }
 0x5b1   :  { %v3741_v18 = vadd.f32 %v3740_v35, %v3678_v20  ;;  %v3684_v20 = vmul.f32 %v12374_v39, %v12374_v39 }
 0x5b3   :  { %v3742_v30 = vadd.f32 %v3741_v18, %v3679_v29  ;;  %v3686_v18 = vmul.f32 %v12380_v45, %v12380_v45 }
 0x5b5   :  { %v3743_v5 = vadd.f32 %v3742_v30, %v3680_v11  ;;  %v9987_v30 = vld [vmem:[%s16425_s2 + $0x90] sm:$0xff]  }
 0x5b6   :  { %6493 = vmatpush1.bf16.msra.mxu1 %v9987_v30 }
 0x5b7   :  { %v3744_v62 = vadd.f32 %v3743_v5, %v3681_v24  ;;  %v3687_v24 = vmul.f32 %v12383_v31, %v12383_v31  ;;  %6494 = vmatprep.subr.bf16.mxu1 %v16568_v42 }
 0x5b9   :  { %v3745_v23 = vadd.f32 %v3744_v62, %v3682_v14  ;;  %v3688_v14 = vmul.f32 %v12386_v3, %v12386_v3 }
 0x5bb   :  { %v3746_v35 = vadd.f32 %v3745_v23, %v3683_v41  ;;  %v3689_v41 = vmul.f32 %v12389_v16, %v12389_v16 }
 0x5bd   :  { %v3747_v29 = vadd.f32 %v3746_v35, %v3684_v20 }
 0x5bf   :  { %v3748_v11 = vadd.f32 %v3747_v29, %v3685_v55 }
 0x5c1   :  { %v3749_v5 = vadd.f32 %v3748_v11, %v3686_v18  ;;  %v9988_v18 = vld [vmem:[%s16425_s2 + $0x98] sm:$0xff]  }
 0x5c2   :  { %6495 = vmatpush1.bf16.msra.mxu1 %v9988_v18 }
 0x5c3   :  { %v3750_v62 = vadd.f32 %v3749_v5, %v3687_v24  ;;  %6496 = vmatprep.subr.bf16.mxu1 %v16568_v42 }
 0x5c5   :  { %v3751_v23 = vadd.f32 %v3750_v62, %v3688_v14  ;;  %v9989_v14 = vld [vmem:[%s16425_s2 + $0xa0] sm:$0xff]  }
 0x5c6   :  { %6497 = vmatpush1.bf16.msra.mxu1 %v9989_v14 }
 0x5c7   :  { %v3752_v20 = vadd.f32 %v3751_v23, %v3689_v41  ;;  %v12942_v41 = vld [vmem:[%s16426_s3] ss:$0 sm:$0xff]  ;;  %6498 = vmatprep.subr.bf16.mxu1 %v16568_v42 }
 0x5c9   :  { %v3753_v35 = vrot.slane %v3752_v20, 4 }
 0x5cb   :  { %v3754_v55 = vadd.f32 %v3753_v35, %v3752_v20 }
 0x5cd   :  { %v3755_v29 = vrot.slane %v3754_v55, 2 }
 0x5cf   :  { %v3756_v45 = vadd.f32 %v3755_v29, %v3754_v55  ;;  %v12962_v55 = vld [vmem:[%s16427_s4] ss:$0 sm:$0xff] }
 0x5d0   :  { %16585 = vst [vmem:[#allocation22_spill] sm:$0xff] %v12962_v55 }
 0x5d1   :  { %v3757_v11 = vrot.slane %v3756_v45, 1 }
 0x5d3   :  { %v3758_v30 = vadd.f32 %v3757_v11, %v3756_v45 }
 0x5d5   :  { %v3759_v24 = vmul.f32 0.001953125, %v3758_v30 }
 0x5d7   :  { %v3760_v5 = vadd.f32 1e-05, %v3759_v24 }
 0x5d9   :  { %10033 = vrsqrt.f32 %v3760_v5  ;;  %v16589_v5 = vld [vmem:[#allocation11_spill] sm:$0xff] }
 0x5e3   :  { %v12937_v62 = vpop.eup %10033 }
 0x5e4   :  { %v3825_v45 = vmul.f32 %v12937_v62, %v12389_v16  ;;  %v12949_v23 = vmul.f32 %v12937_v62, %v12393_v27  ;;  %v12953_v20 = vmul.f32 %v12937_v62, %v12397_v2  ;;  %v12957_v35 = vmul.f32 %v12937_v62, %v12401_v46 }
 0x5e5   :  { %v12966_v16 = vmul.f32 %v12937_v62, %v12409_v58  ;;  %v12970_v27 = vmul.f32 %v12937_v62, %v12413_v43  ;;  %v12974_v2 = vmul.f32 %v12937_v62, %v12419_v4  ;;  %v12978_v46 = vmul.f32 %v12937_v62, %v12425_v34  ;;  %v16586_v58 = vld [vmem:[#allocation8_spill] sm:$0xff]  ;;  %v16587_v4 = vld [vmem:[#allocation9_spill] sm:$0xff]  ;;  %v16588_v34 = vld [vmem:[#allocation10_spill] sm:$0xff] }
 0x5e6   :  { %v3896_v29 = vmul.f32 %v12942_v41, %v3825_v45  ;;  %v12983_v18 = vmul.f32 %v12937_v62, %v12431_v22  ;;  %v12987_v11 = vmul.f32 %v12937_v62, %v16586_v58  ;;  %v12991_v43 = vmul.f32 %v12937_v62, %v12443_v32  ;;  %v16591_v58 = vld [vmem:[#allocation12_spill] sm:$0xff] }
 0x5e7   :  { %v12995_v30 = vmul.f32 %v12937_v62, %v16587_v4  ;;  %v12999_v24 = vmul.f32 %v12937_v62, %v16588_v34  ;;  %v13003_v22 = vmul.f32 %v12937_v62, %v16589_v5  ;;  %v13007_v14 = vmul.f32 %v12937_v62, %v12467_v12  ;;  %v16592_v5 = vld [vmem:[#allocation13_spill] sm:$0xff] }
 0x5e8   :  { %v3967_v45 = vadd.f32 %v12962_v55, %v3896_v29  ;;  %v13012_v32 = vmul.f32 %v12937_v62, %v12473_v48  ;;  %v13016_v4 = vmul.f32 %v12937_v62, %v16591_v58  ;;  %v13020_v34 = vmul.f32 %v12937_v62, %v12485_v9  ;;  %v16599_v55 = vld [vmem:[#allocation16_spill] sm:$0xff] }
 0x5e9   :  { %16590 = vst [vmem:[#allocation23_spill] sm:$0xff] %v13003_v22  ;;  %v13024_v22 = vmul.f32 %v12937_v62, %v16592_v5  ;;  %v13028_v12 = vmul.f32 %v12937_v62, %v12500_v61  ;;  %v13032_v48 = vmul.f32 %v12937_v62, %v12507_v13  ;;  %v13036_v29 = vmul.f32 %v12937_v62, %v12516_v15 }
 0x5ea   :  { %v4031_v58 = vmax.f32 %v3967_v45, 0.0  ;;  %v13040_v9 = vmul.f32 %v12937_v62, %v12523_v54  ;;  %v13044_v5 = vmul.f32 %v12937_v62, %v12532_v60  ;;  %v13048_v61 = vmul.f32 %v12937_v62, %v12539_v8  ;;  %v16596_v45 = vld [vmem:[#allocation14_spill] sm:$0xff] }
 0x5eb   :  { %v13052_v13 = vmul.f32 %v12937_v62, %v12548_v51  ;;  %v13056_v15 = vmul.f32 %v12937_v62, %v12555_v28  ;;  %v13060_v54 = vmul.f32 %v12937_v62, %v12564_v49  ;;  %v13064_v60 = vmul.f32 %v12937_v62, %v12571_v36 }
 0x5ec   :  { %4181 = vst [vmem:[#allocation4 + $0x339] sm:$0xff] %v4031_v58  ;;  %v13068_v8 = vmul.f32 %v12937_v62, %v12580_v38  ;;  %v13072_v51 = vmul.f32 %v12937_v62, %v12587_v7  ;;  %v13076_v28 = vmul.f32 %v12937_v62, %v12596_v52  ;;  %v13080_v49 = vmul.f32 %v12937_v62, %v12603_v63  ;;  %v16598_v58 = vld [vmem:[#allocation15_spill] sm:$0xff] }
 0x5ed   :  { %v13084_v36 = vmul.f32 %v12937_v62, %v12612_v10  ;;  %v13088_v38 = vmul.f32 %v12937_v62, %v12619_v59  ;;  %v13092_v7 = vmul.f32 %v12937_v62, %v12628_v44  ;;  %v13096_v52 = vmul.f32 %v12937_v62, %v12635_v56 }
 0x5ee   :  { %v13100_v63 = vmul.f32 %v12937_v62, %v12644_v53  ;;  %v13104_v10 = vmul.f32 %v12937_v62, %v12651_v40  ;;  %v13108_v59 = vmul.f32 %v12937_v62, %v12663_v6  ;;  %v13112_v44 = vmul.f32 %v12937_v62, %v16596_v45 }
 0x5ef   :  { %v13116_v56 = vmul.f32 %v12937_v62, %v16598_v58  ;;  %v13120_v53 = vmul.f32 %v12937_v62, %v16599_v55  ;;  %v13140_v55 = vmul.f32 %v12937_v62, %v12833_v17  ;;  %v13159_v17 = vmul.f32 %v12937_v62, %v12875_v19 }
 0x5f0   :  { %16593 = vst [vmem:[#allocation24_spill] sm:$0xff] %v13100_v63  ;;  %16594 = vst [vmem:[#allocation25_spill] sm:$0xff] %v13104_v10  ;;  %v16600_v63 = vld [vmem:[#allocation17_spill] sm:$0xff]  ;;  %v16601_v10 = vld [vmem:[#allocation18_spill] sm:$0xff]  ;;  %v13179_v19 = vmul.f32 %v12937_v62, %v12365_v21 }
 0x5f1   :  { %16595 = vst [vmem:[#allocation26_spill] sm:$0xff] %v13108_v59  ;;  %16597 = vst [vmem:[#allocation27_spill] sm:$0xff] %v13112_v44  ;;  %v13124_v40 = vmul.f32 %v12937_v62, %v16600_v63  ;;  %v13128_v6 = vmul.f32 %v12937_v62, %v16601_v10  ;;  %v16603_v59 = vld [vmem:[#allocation19_spill] sm:$0xff]  ;;  %v16604_v44 = vld [vmem:[#allocation20_spill] sm:$0xff]  ;;  %v13144_v63 = vmul.f32 %v12937_v62, %v12840_v1 }
 0x5f2   :  { %v13132_v45 = vmul.f32 %v12937_v62, %v16603_v59  ;;  %v13136_v58 = vmul.f32 %v12937_v62, %v16604_v44  ;;  %v9990_v10 = vld [vmem:[%s16425_s2 + $0xa8] sm:$0xff]   ;;  %v13155_v44 = vmul.f32 %v12937_v62, %v12860_v37  ;;  %v13163_v1 = vmul.f32 %v12937_v62, %v12882_v33  ;;  %v16607_v21 = vld [vmem:[#allocation28_spill] sm:$0xff] }
 0x5f3   :  { %16602 = vst [vmem:[#allocation8_spill] sm:$0xff] %v13128_v6  ;;  %16605 = vst [vmem:[#allocation9_spill] sm:$0xff] %v13144_v63  ;;  %v16606_v6 = vld [vmem:[#allocation21_spill] sm:$0xff]  ;;  %v13167_v63 = vmul.f32 %v12937_v62, %v12888_v25  ;;  %v13175_v37 = vmul.f32 %v12937_v62, %v12362_v50  ;;  %6499 = vmatpush1.bf16.msra.mxu1 %v9990_v10  ;;  %v13183_v33 = vmul.f32 %v12937_v62, %v12368_v26 }
 0x5f4   :  { %v13151_v59 = vmul.f32 %v12937_v62, %v16606_v6  ;;  %v13171_v6 = vmul.f32 %v12937_v62, %v12894_v0  ;;  %v13187_v25 = vmul.f32 %v12937_v62, %v12371_v57  ;;  %v13191_v0 = vmul.f32 %v12937_v62, %v12374_v39  ;;  %6500 = vmatprep.subr.bf16.mxu1 %v16568_v42 }
 0x5f5   :  { %v13195_v50 = vmul.f32 %v12937_v62, %v12377_v47  ;;  %v13200_v10 = vmul.f32 %v12937_v62, %v16607_v21  ;;  %v13204_v26 = vmul.f32 %v12937_v62, %v12383_v31  ;;  %v13208_v57 = vmul.f32 %v12937_v62, %v12386_v3 }
 0x5f6   :  { %v13212_v39 = vmul.f32 %v12942_v41, %v12949_v23  ;;  %v13216_v47 = vmul.f32 %v12942_v41, %v12953_v20  ;;  %v13220_v21 = vmul.f32 %v12942_v41, %v12957_v35  ;;  %v13224_v31 = vmul.f32 %v12942_v41, %v12966_v16 }
 0x5f7   :  { %v13228_v3 = vmul.f32 %v12942_v41, %v12970_v27  ;;  %v13232_v62 = vmul.f32 %v12942_v41, %v12974_v2  ;;  %v13236_v23 = vmul.f32 %v12942_v41, %v12978_v46  ;;  %v13240_v20 = vmul.f32 %v12942_v41, %v12983_v18  ;;  %v16608_v46 = vld [vmem:[#allocation23_spill] sm:$0xff] }
 0x5f8   :  { %v13244_v35 = vmul.f32 %v12942_v41, %v12987_v11  ;;  %v13248_v16 = vmul.f32 %v12942_v41, %v12991_v43  ;;  %v13252_v27 = vmul.f32 %v12942_v41, %v12995_v30  ;;  %v13256_v2 = vmul.f32 %v12942_v41, %v12999_v24 }
 0x5f9   :  { %v13260_v18 = vmul.f32 %v12942_v41, %v16608_v46  ;;  %v13264_v11 = vmul.f32 %v12942_v41, %v13007_v14  ;;  %v13268_v43 = vmul.f32 %v12942_v41, %v13012_v32  ;;  %v13272_v30 = vmul.f32 %v12942_v41, %v13016_v4 }
 0x5fa   :  { %v13276_v24 = vmul.f32 %v12942_v41, %v13020_v34  ;;  %v13280_v46 = vmul.f32 %v12942_v41, %v13024_v22  ;;  %v13284_v14 = vmul.f32 %v12942_v41, %v13028_v12  ;;  %v13288_v32 = vmul.f32 %v12942_v41, %v13032_v48 }
 0x5fb   :  { %v13292_v4 = vmul.f32 %v12942_v41, %v13036_v29  ;;  %v13296_v34 = vmul.f32 %v12942_v41, %v13040_v9  ;;  %v13300_v22 = vmul.f32 %v12942_v41, %v13044_v5  ;;  %v13304_v12 = vmul.f32 %v12942_v41, %v13048_v61 }
 0x5fc   :  { %v13308_v48 = vmul.f32 %v12942_v41, %v13052_v13  ;;  %v13312_v29 = vmul.f32 %v12942_v41, %v13056_v15  ;;  %v13316_v9 = vmul.f32 %v12942_v41, %v13060_v54  ;;  %v13320_v5 = vmul.f32 %v12942_v41, %v13064_v60 }
 0x5fd   :  { %v13324_v61 = vmul.f32 %v12942_v41, %v13068_v8  ;;  %v13328_v13 = vmul.f32 %v12942_v41, %v13072_v51  ;;  %v13332_v15 = vmul.f32 %v12942_v41, %v13076_v28  ;;  %v13336_v54 = vmul.f32 %v12942_v41, %v13080_v49 }
 0x5fe   :  { %v13340_v60 = vmul.f32 %v12942_v41, %v13084_v36  ;;  %v13344_v8 = vmul.f32 %v12942_v41, %v13088_v38  ;;  %v13348_v51 = vmul.f32 %v12942_v41, %v13092_v7  ;;  %v13352_v28 = vmul.f32 %v12942_v41, %v13096_v52 }
 0x5ff   :  { %16609 = vst [vmem:[#allocation10_spill] sm:$0xff] %v13332_v15  ;;  %16610 = vst [vmem:[#allocation11_spill] sm:$0xff] %v13336_v54  ;;  %v16613_v15 = vld [vmem:[#allocation24_spill] sm:$0xff]  ;;  %v16614_v54 = vld [vmem:[#allocation25_spill] sm:$0xff]  ;;  %v13372_v52 = vmul.f32 %v12942_v41, %v13116_v56  ;;  %v13392_v56 = vmul.f32 %v12942_v41, %v13136_v58  ;;  %v13411_v58 = vmul.f32 %v12942_v41, %v13155_v44 }
 0x600   :  { %16611 = vst [vmem:[#allocation12_spill] sm:$0xff] %v13340_v60  ;;  %16612 = vst [vmem:[#allocation13_spill] sm:$0xff] %v13344_v8  ;;  %v13356_v49 = vmul.f32 %v12942_v41, %v16613_v15  ;;  %v13360_v36 = vmul.f32 %v12942_v41, %v16614_v54  ;;  %v16616_v60 = vld [vmem:[#allocation26_spill] sm:$0xff]  ;;  %v16617_v8 = vld [vmem:[#allocation27_spill] sm:$0xff]  ;;  %v13376_v15 = vmul.f32 %v12942_v41, %v13120_v53 }
 0x601   :  { %v13364_v38 = vmul.f32 %v12942_v41, %v16616_v60  ;;  %v13368_v7 = vmul.f32 %v12942_v41, %v16617_v8  ;;  %v13380_v54 = vmul.f32 %v12942_v41, %v13124_v40  ;;  %v13388_v8 = vmul.f32 %v12942_v41, %v13132_v45  ;;  %v9991_v45 = vld [vmem:[%s16425_s2 + $0xb0] sm:$0xff]  }
 0x602   :  { %16615 = vst [vmem:[#allocation14_spill] sm:$0xff] %v13360_v36  ;;  %16618 = vst [vmem:[#allocation15_spill] sm:$0xff] %v13376_v15  ;;  %v16619_v36 = vld [vmem:[#allocation8_spill] sm:$0xff]  ;;  %v13396_v53 = vmul.f32 %v12942_v41, %v13140_v55  ;;  %v16620_v15 = vld [vmem:[#allocation9_spill] sm:$0xff]  ;;  %v13415_v55 = vmul.f32 %v12942_v41, %v13159_v17  ;;  %v13431_v44 = vmul.f32 %v12942_v41, %v13175_v37  ;;  %6501 = vmatpush1.bf16.msra.mxu1 %v9991_v45 }
 0x603   :  { %v13384_v60 = vmul.f32 %v12942_v41, %v16619_v36  ;;  %v13400_v40 = vmul.f32 %v12942_v41, %v16620_v15  ;;  %v13404_v36 = vmul.f32 %v12942_v41, %v13151_v59  ;;  %v13419_v15 = vmul.f32 %v12942_v41, %v13163_v1  ;;  %6502 = vmatprep.subr.bf16.mxu1 %v16568_v42 }
 0x604   :  { %v13423_v59 = vmul.f32 %v12942_v41, %v13167_v63  ;;  %v13435_v17 = vmul.f32 %v12942_v41, %v13179_v19  ;;  %v13439_v1 = vmul.f32 %v12942_v41, %v13183_v33  ;;  %v13443_v63 = vmul.f32 %v12942_v41, %v13187_v25 }
 0x605   :  { %16621 = vst [vmem:[#allocation16_spill] sm:$0xff] %v13404_v36  ;;  %v13427_v36 = vmul.f32 %v12942_v41, %v13171_v6  ;;  %v13447_v6 = vmul.f32 %v12942_v41, %v13191_v0  ;;  %v13451_v37 = vmul.f32 %v12942_v41, %v13195_v50  ;;  %v13455_v19 = vmul.f32 %v12942_v41, %v13200_v10  ;;  %v16622_v0 = vld [vmem:[#allocation22_spill] sm:$0xff] }
 0x606   :  { %v13460_v33 = vmul.f32 %v12942_v41, %v13204_v26  ;;  %v13464_v25 = vmul.f32 %v12942_v41, %v13208_v57  ;;  %v13468_v45 = vadd.f32 %v16622_v0, %v13212_v39  ;;  %v13472_v50 = vadd.f32 %v16622_v0, %v13216_v47 }
 0x607   :  { %v13476_v10 = vadd.f32 %v16622_v0, %v13220_v21  ;;  %v13480_v26 = vadd.f32 %v16622_v0, %v13224_v31  ;;  %v13484_v41 = vadd.f32 %v16622_v0, %v13228_v3  ;;  %v13488_v57 = vadd.f32 %v16622_v0, %v13232_v62 }
 0x608   :  { %v13492_v39 = vadd.f32 %v16622_v0, %v13236_v23  ;;  %v13496_v47 = vadd.f32 %v16622_v0, %v13240_v20  ;;  %v13500_v21 = vadd.f32 %v16622_v0, %v13244_v35  ;;  %v13504_v31 = vadd.f32 %v16622_v0, %v13248_v16 }
 0x609   :  { %v13508_v3 = vadd.f32 %v16622_v0, %v13252_v27  ;;  %v13512_v62 = vadd.f32 %v16622_v0, %v13256_v2  ;;  %v13516_v23 = vadd.f32 %v16622_v0, %v13260_v18  ;;  %v13520_v20 = vadd.f32 %v16622_v0, %v13264_v11 }
 0x60a   :  { %v13524_v35 = vadd.f32 %v16622_v0, %v13268_v43  ;;  %v13528_v16 = vadd.f32 %v16622_v0, %v13272_v30  ;;  %v13532_v27 = vadd.f32 %v16622_v0, %v13276_v24  ;;  %v13536_v2 = vadd.f32 %v16622_v0, %v13280_v46 }
 0x60b   :  { %16623 = vst [vmem:[#allocation17_spill] sm:$0xff] %v13520_v20  ;;  %v13540_v18 = vadd.f32 %v16622_v0, %v13284_v14  ;;  %v13544_v11 = vadd.f32 %v16622_v0, %v13288_v32  ;;  %v13548_v43 = vadd.f32 %v16622_v0, %v13292_v4  ;;  %v13552_v30 = vadd.f32 %v16622_v0, %v13296_v34 }
 0x60c   :  { %16624 = vst [vmem:[#allocation18_spill] sm:$0xff] %v13524_v35  ;;  %16625 = vst [vmem:[#allocation19_spill] sm:$0xff] %v13528_v16  ;;  %v13556_v24 = vadd.f32 %v16622_v0, %v13300_v22  ;;  %v13560_v46 = vadd.f32 %v16622_v0, %v13304_v12  ;;  %v13564_v14 = vadd.f32 %v16622_v0, %v13308_v48  ;;  %v16629_v48 = vld [vmem:[#allocation10_spill] sm:$0xff] }
 0x60d   :  { %v13568_v32 = vadd.f32 %v16622_v0, %v13312_v29  ;;  %v13572_v4 = vadd.f32 %v16622_v0, %v13316_v9  ;;  %v13576_v34 = vadd.f32 %v16622_v0, %v13320_v5  ;;  %v13580_v22 = vadd.f32 %v16622_v0, %v13324_v61 }
 0x60e   :  { %v13584_v12 = vadd.f32 %v16622_v0, %v13328_v13  ;;  %v13588_v29 = vadd.f32 %v16622_v0, %v16629_v48  ;;  %v13604_v13 = vadd.f32 %v16622_v0, %v13348_v51  ;;  %v13608_v48 = vadd.f32 %v16622_v0, %v13352_v28 }
 0x60f   :  { %16626 = vst [vmem:[#allocation20_spill] sm:$0xff] %v13568_v32  ;;  %16627 = vst [vmem:[#allocation21_spill] sm:$0xff] %v13572_v4  ;;  %v16630_v32 = vld [vmem:[#allocation11_spill] sm:$0xff]  ;;  %v16632_v4 = vld [vmem:[#allocation12_spill] sm:$0xff]  ;;  %v13624_v51 = vadd.f32 %v16622_v0, %v13368_v7  ;;  %v13628_v28 = vadd.f32 %v16622_v0, %v13372_v52  ;;  %v13644_v7 = vadd.f32 %v16622_v0, %v13388_v8 }
 0x610   :  { %16628 = vst [vmem:[#allocation28_spill] sm:$0xff] %v13576_v34  ;;  %v13592_v9 = vadd.f32 %v16622_v0, %v16630_v32  ;;  %v13596_v5 = vadd.f32 %v16622_v0, %v16632_v4  ;;  %v16633_v34 = vld [vmem:[#allocation13_spill] sm:$0xff]  ;;  %16634 = vst [vmem:[#allocation24_spill] sm:$0xff] %v13608_v48  ;;  %v13612_v32 = vadd.f32 %v16622_v0, %v13356_v49  ;;  %v16636_v48 = vld [vmem:[#allocation15_spill] sm:$0xff] }
 0x611   :  { %v13600_v61 = vadd.f32 %v16622_v0, %v16633_v34  ;;  %v13620_v34 = vadd.f32 %v16622_v0, %v13364_v38  ;;  %v13632_v49 = vadd.f32 %v16622_v0, %v16636_v48  ;;  %v13640_v38 = vadd.f32 %v16622_v0, %v13384_v60 }
 0x612   :  { %16631 = vst [vmem:[#allocation23_spill] sm:$0xff] %v13592_v9  ;;  %v16635_v9 = vld [vmem:[#allocation14_spill] sm:$0xff]  ;;  %v13648_v52 = vadd.f32 %v16622_v0, %v13392_v56  ;;  %v13652_v48 = vadd.f32 %v16622_v0, %v13396_v53  ;;  %v13664_v8 = vadd.f32 %v16622_v0, %v13411_v58  ;;  %v9992_v56 = vld [vmem:[%s16425_s2 + $0xb8] sm:$0xff]   ;;  %v13671_v53 = vadd.f32 %v16622_v0, %v13415_v55 }
 0x613   :  { %v13616_v4 = vadd.f32 %v16622_v0, %v16635_v9  ;;  %v13636_v9 = vadd.f32 %v16622_v0, %v13380_v54  ;;  %v13656_v54 = vadd.f32 %v16622_v0, %v13400_v40  ;;  %v13675_v40 = vadd.f32 %v16622_v0, %v13419_v15  ;;  %6503 = vmatpush1.bf16.msra.mxu1 %v9992_v56 }
 0x614   :  { %16639 = vst [vmem:[#allocation26_spill] sm:$0xff] %v13664_v8  ;;  %v13683_v58 = vadd.f32 %v16622_v0, %v13427_v36  ;;  %v13687_v8 = vadd.f32 %v16622_v0, %v13431_v44  ;;  %v13691_v55 = vadd.f32 %v16622_v0, %v13435_v17  ;;  %v13695_v15 = vadd.f32 %v16622_v0, %v13439_v1 }
 0x615   :  { %16637 = vst [vmem:[#allocation25_spill] sm:$0xff] %v13636_v9  ;;  %v16638_v9 = vld [vmem:[#allocation16_spill] sm:$0xff]  ;;  %v13703_v36 = vadd.f32 %v16622_v0, %v13447_v6  ;;  %v13707_v44 = vadd.f32 %v16622_v0, %v13451_v37  ;;  %v13711_v17 = vadd.f32 %v16622_v0, %v13455_v19  ;;  %v13715_v1 = vadd.f32 %v16622_v0, %v13460_v33 }
 0x616   :  { %v13660_v60 = vadd.f32 %v16622_v0, %v16638_v9  ;;  %v13679_v9 = vadd.f32 %v16622_v0, %v13423_v59  ;;  %v13699_v59 = vadd.f32 %v16622_v0, %v13443_v63  ;;  %6504 = vmatprep.subr.bf16.mxu1 %v16568_v42  ;;  %v13720_v63 = vadd.f32 %v16622_v0, %v13464_v25  ;;  %v16652_v33 = vld [vmem:[#allocation21_spill] sm:$0xff] }
 0x617   :  { %16640 = vst [vmem:[#allocation27_spill] sm:$0xff] %v13707_v44  ;;  %16641 = vst [vmem:[#allocation8_spill] sm:$0xff] %v13711_v17  ;;  %v16475_v6 = vmax.f32 %v13468_v45, 0.0  ;;  %v16476_v56 = vmax.f32 %v13472_v50, 0.0  ;;  %v16477_v37 = vmax.f32 %v13476_v10, 0.0  ;;  %v16478_v44 = vmax.f32 %v13480_v26, 0.0 }
 0x618   :  { %16642 = vst [vmem:[#allocation9_spill] sm:$0xff] %v13715_v1  ;;  %v16479_v19 = vmax.f32 %v13484_v41, 0.0  ;;  %v16480_v25 = vmax.f32 %v13504_v31, 0.0  ;;  %v16481_v0 = vmax.f32 %v13508_v3, 0.0  ;;  %v16645_v17 = vmax.f32 %v13496_v47, 0.0 }
 0x619   :  { %4118 = vst [vmem:[#allocation4 + $0x19] sm:$0xff] %v16475_v6  ;;  %4119 = vst [vmem:[#allocation4 + $0x21] sm:$0xff] %v16476_v56  ;;  %v16643_v6 = vmax.f32 %v13488_v57, 0.0  ;;  %v16644_v56 = vmax.f32 %v13492_v39, 0.0  ;;  %v16647_v42 = vmax.f32 %v13512_v62, 0.0  ;;  %v3998_v1 = vmax.f32 %v13588_v29, 0.0 }
 0x61a   :  { %4120 = vst [vmem:[#allocation4 + $0x31] sm:$0xff] %v16477_v37  ;;  %4121 = vst [vmem:[#allocation4 + $0x39] sm:$0xff] %v16478_v44  ;;  %v16483_v37 = vmax.f32 %v13528_v16, 0.0  ;;  %v16646_v44 = vmax.f32 %v13500_v21, 0.0  ;;  %v16657_v16 = vmax.f32 %v13544_v11, 0.0  ;;  %v4002_v29 = vmax.f32 %v13604_v13, 0.0 }
 0x61b   :  { %4122 = vst [vmem:[#allocation4 + $0x49] sm:$0xff] %v16479_v19  ;;  %4123 = vst [vmem:[#allocation4 + $0x51] sm:$0xff] %v16643_v6  ;;  %v16651_v6 = vld [vmem:[#allocation20_spill] sm:$0xff]  ;;  %v4001_v19 = vmax.f32 %v13600_v61, 0.0  ;;  %v4005_v61 = vmax.f32 %v13616_v4, 0.0  ;;  %v4006_v13 = vmax.f32 %v13620_v34, 0.0 }
 0x61c   :  { %4124 = vst [vmem:[#allocation4 + $0x61] sm:$0xff] %v16644_v56  ;;  %4125 = vst [vmem:[#allocation4 + $0x69] sm:$0xff] %v16645_v17  ;;  %v16648_v17 = vmax.f32 %v13516_v23, 0.0  ;;  %v4000_v56 = vmax.f32 %v13596_v5, 0.0  ;;  %v4004_v5 = vmax.f32 %v13612_v32, 0.0  ;;  %v4009_v32 = vmax.f32 %v13632_v49, 0.0 }
 0x61d   :  { %4126 = vst [vmem:[#allocation4 + $0x79] sm:$0xff] %v16646_v44  ;;  %4127 = vst [vmem:[#allocation4 + $0x81] sm:$0xff] %v16480_v25  ;;  %v16649_v44 = vmax.f32 %v13520_v20, 0.0  ;;  %v16650_v25 = vmax.f32 %v13524_v35, 0.0  ;;  %v16662_v35 = vmax.f32 %v13560_v46, 0.0  ;;  %v4012_v34 = vmax.f32 %v13644_v7, 0.0 }
 0x61e   :  { %4128 = vst [vmem:[#allocation4 + $0x91] sm:$0xff] %v16481_v0  ;;  %4129 = vst [vmem:[#allocation4 + $0x99] sm:$0xff] %v16647_v42  ;;  %v16653_v42 = vmax.f32 %v13532_v27, 0.0  ;;  %v4015_v49 = vmax.f32 %v13656_v54, 0.0  ;;  %v4022_v54 = vmax.f32 %v13687_v8, 0.0 }
 0x61f   :  { %4130 = vst [vmem:[#allocation4 + $0xa9] sm:$0xff] %v16648_v17  ;;  %4131 = vst [vmem:[#allocation4 + $0xb1] sm:$0xff] %v16649_v44  ;;  %v16654_v17 = vmax.f32 %v13536_v2, 0.0  ;;  %v16655_v44 = vmax.f32 %v13540_v18, 0.0 }
 0x620   :  { %4132 = vst [vmem:[#allocation4 + $0xc1] sm:$0xff] %v16650_v25  ;;  %4133 = vst [vmem:[#allocation4 + $0xc9] sm:$0xff] %v16483_v37  ;;  %v16656_v25 = vld [vmem:[#allocation28_spill] sm:$0xff]  ;;  %v16658_v37 = vmax.f32 %v13548_v43, 0.0 }
 0x621   :  { %4134 = vst [vmem:[#allocation4 + $0xd9] sm:$0xff] %v16653_v42  ;;  %4135 = vst [vmem:[#allocation4 + $0xe1] sm:$0xff] %v16654_v17  ;;  %v16659_v42 = vmax.f32 %v13552_v30, 0.0  ;;  %v16660_v17 = vmax.f32 %v13556_v24, 0.0  ;;  %v16667_v20 = vmax.f32 %v16656_v25, 0.0  ;;  %v5207_v7 = vld [vmem:[#allocation4 + $0x32] sm:$0xff] }
 0x622   :  { %4136 = vst [vmem:[#allocation4 + $0xf1] sm:$0xff] %v16655_v44  ;;  %4137 = vst [vmem:[#allocation4 + $0xf9] sm:$0xff] %v16657_v16  ;;  %v16661_v44 = vld [vmem:[#allocation23_spill] sm:$0xff]  ;;  %v16663_v16 = vmax.f32 %v13564_v14, 0.0 }
 0x623   :  { %4138 = vst [vmem:[#allocation4 + $0x109] sm:$0xff] %v16658_v37  ;;  %4139 = vst [vmem:[#allocation4 + $0x111] sm:$0xff] %v16659_v42  ;;  %v3999_v0 = vmax.f32 %v16661_v44, 0.0  ;;  %v16664_v37 = vmax.f32 %v16651_v6, 0.0  ;;  %v16665_v42 = vmax.f32 %v16652_v33, 0.0 }
 0x624   :  { %4140 = vst [vmem:[#allocation4 + $0x121] sm:$0xff] %v16660_v17  ;;  %4141 = vst [vmem:[#allocation4 + $0x129] sm:$0xff] %v16662_v35  ;;  %v16666_v17 = vld [vmem:[#allocation24_spill] sm:$0xff]  ;;  %v16668_v35 = vmax.f32 %v13580_v22, 0.0 }
 0x625   :  { %4142 = vst [vmem:[#allocation4 + $0x139] sm:$0xff] %v16663_v16  ;;  %4143 = vst [vmem:[#allocation4 + $0x141] sm:$0xff] %v16664_v37  ;;  %v4003_v44 = vmax.f32 %v16666_v17, 0.0  ;;  %v16669_v16 = vmax.f32 %v13584_v12, 0.0  ;;  %v4007_v37 = vmax.f32 %v13624_v51, 0.0  ;;  %v16670_v17 = vld [vmem:[#allocation25_spill] sm:$0xff] }
 0x626   :  { %4144 = vst [vmem:[#allocation4 + $0x151] sm:$0xff] %v16665_v42  ;;  %4145 = vst [vmem:[#allocation4 + $0x159] sm:$0xff] %v16667_v20  ;;  %v4008_v42 = vmax.f32 %v13628_v28, 0.0  ;;  %v4010_v4 = vmax.f32 %v16670_v17, 0.0  ;;  %v4011_v20 = vmax.f32 %v13640_v38, 0.0  ;;  %v4184_v51 = vld [vmem:[#allocation4 + $0x18] sm:$0xff] }
 0x627   :  { %4146 = vst [vmem:[#allocation4 + $0x169] sm:$0xff] %v16668_v35  ;;  %4147 = vst [vmem:[#allocation4 + $0x171] sm:$0xff] %v16669_v16  ;;  %v4013_v35 = vmax.f32 %v13648_v52, 0.0  ;;  %v4185_v28 = vld [vmem:[#allocation4 + $0x20] sm:$0xff]  ;;  %v4018_v38 = vmax.f32 %v13671_v53, 0.0  ;;  %v5210_v53 = vld [vmem:[#allocation4 + $0x52] sm:$0xff] }
 0x628   :  { %4148 = vst [vmem:[#allocation4 + $0x181] sm:$0xff] %v3998_v1  ;;  %4149 = vst [vmem:[#allocation4 + $0x189] sm:$0xff] %v3999_v0  ;;  %v4014_v1 = vmax.f32 %v13652_v48, 0.0  ;;  %v4016_v0 = vmax.f32 %v13660_v60, 0.0  ;;  %v5208_v52 = vld [vmem:[#allocation4 + $0x3a] sm:$0xff]  ;;  %v4019_v48 = vmax.f32 %v13675_v40, 0.0 }
 0x629   :  { %4150 = vst [vmem:[#allocation4 + $0x1c9] sm:$0xff] %v4000_v56  ;;  %4151 = vst [vmem:[#allocation4 + $0x1d1] sm:$0xff] %v4001_v19  ;;  %v16671_v19 = vld [vmem:[#allocation26_spill] sm:$0xff]  ;;  %v4026_v40 = vmax.f32 %v13703_v36, 0.0  ;;  %v16676_v36 = vmax.f32 %v13472_v50, 0.0 }
 0x62a   :  { %4152 = vst [vmem:[#allocation4 + $0x1e1] sm:$0xff] %v4002_v29  ;;  %4153 = vst [vmem:[#allocation4 + $0x1e9] sm:$0xff] %v4003_v44  ;;  %v4017_v56 = vmax.f32 %v16671_v19, 0.0  ;;  %v4020_v29 = vmax.f32 %v13679_v9, 0.0  ;;  %v4021_v44 = vmax.f32 %v13683_v58, 0.0  ;;  %v5209_v60 = vld [vmem:[#allocation4 + $0x4a] sm:$0xff] }
 0x62b   :  { %4154 = vst [vmem:[#allocation4 + $0x1f9] sm:$0xff] %v4004_v5  ;;  %4155 = vst [vmem:[#allocation4 + $0x201] sm:$0xff] %v4005_v61  ;;  %v4023_v5 = vmax.f32 %v13691_v55, 0.0  ;;  %v4024_v61 = vmax.f32 %v13695_v15, 0.0  ;;  %v16672_v9 = vld [vmem:[#allocation27_spill] sm:$0xff]  ;;  %v16673_v58 = vld [vmem:[#allocation8_spill] sm:$0xff] }
 0x62c   :  { %4156 = vst [vmem:[#allocation4 + $0x211] sm:$0xff] %v4006_v13  ;;  %4157 = vst [vmem:[#allocation4 + $0x219] sm:$0xff] %v4007_v37  ;;  %v4025_v13 = vmax.f32 %v13699_v59, 0.0  ;;  %v4027_v8 = vmax.f32 %v16672_v9, 0.0  ;;  %v4028_v16 = vmax.f32 %v16673_v58, 0.0  ;;  %v16674_v37 = vld [vmem:[#allocation9_spill] sm:$0xff] }
 0x62d   :  { %4158 = vst [vmem:[#allocation4 + $0x229] sm:$0xff] %v4008_v42  ;;  %4159 = vst [vmem:[#allocation4 + $0x231] sm:$0xff] %v4009_v32  ;;  %v4029_v42 = vmax.f32 %v16674_v37, 0.0  ;;  %v4030_v32 = vmax.f32 %v13720_v63, 0.0  ;;  %v5211_v55 = vld [vmem:[#allocation4 + $0x62] sm:$0xff]  ;;  %v5212_v15 = vld [vmem:[#allocation4 + $0x6a] sm:$0xff]  ;;  %v13853_v63 = vpack.c.bf16 %v5210_v53, %v5209_v60 }
 0x62e   :  { %4160 = vst [vmem:[#allocation4 + $0x241] sm:$0xff] %v4010_v4  ;;  %4161 = vst [vmem:[#allocation4 + $0x249] sm:$0xff] %v4011_v20  ;;  %v16675_v59 = vmax.f32 %v13468_v45, 0.0  ;;  %v13849_v4 = vpack.c.bf16 %v5208_v52, %v5207_v7  ;;  %v13851_v20 = vpack.c.bf16 %v4185_v28, %v4184_v51  ;;  %v16678_v45 = vmax.f32 %v13480_v26, 0.0  ;;  %v4187_v51 = vld [vmem:[#allocation4 + $0x38] sm:$0xff]  ;;  %v5217_v9 = vld [vmem:[#allocation4 + $0xaa] sm:$0xff] }
 0x62f   :  { %4162 = vst [vmem:[#allocation4 + $0x259] sm:$0xff] %v4012_v34  ;;  %4163 = vst [vmem:[#allocation4 + $0x261] sm:$0xff] %v4013_v35  ;;  %v16677_v34 = vmax.f32 %v13476_v10, 0.0  ;;  %v13860_v50 = vpack.c.bf16 %v5212_v15, %v5211_v55  ;;  %v5213_v28 = vld [vmem:[#allocation4 + $0x7a] sm:$0xff]  ;;  %v16680_v10 = vmax.f32 %v13536_v2, 0.0  ;;  %v5215_v26 = vld [vmem:[#allocation4 + $0x92] sm:$0xff] }
 0x630   :  { %4164 = vst [vmem:[#allocation4 + $0x271] sm:$0xff] %v4014_v1  ;;  %4165 = vst [vmem:[#allocation4 + $0x279] sm:$0xff] %v4015_v49  ;;  %v4375_v17 = vpack.c.bf16 %v16676_v36, %v16675_v59  ;;  %9036 = vmatprep.mubr.bf16.mxu0 %v13849_v4  ;;  %v4186_v1 = vld [vmem:[#allocation4 + $0x30] sm:$0xff]  ;;  %v5214_v49 = vld [vmem:[#allocation4 + $0x82] sm:$0xff]  ;;  %v16682_v7 = vmax.f32 %v13544_v11, 0.0  ;;  %v16686_v2 = vmax.f32 %v13560_v46, 0.0 }
 0x631   :  { %4166 = vst [vmem:[#allocation4 + $0x289] sm:$0xff] %v4016_v0  ;;  %4167 = vst [vmem:[#allocation4 + $0x291] sm:$0xff] %v4017_v56  ;;  %v4376_v35 = vpack.c.bf16 %v16678_v45, %v16677_v34  ;;  %9037 = vmatmul.mubr.bf16.vlgmr.msra.gmra.mrb[128].mxu0 %v13853_v63  ;;  %v16679_v0 = vmax.f32 %v13532_v27, 0.0  ;;  %v5216_v56 = vld [vmem:[#allocation4 + $0x9a] sm:$0xff]  ;;  %v16685_v27 = vmax.f32 %v13556_v24, 0.0  ;;  %v16687_v60 = vmax.f32 %v13564_v14, 0.0 }
 0x632   :  { %4168 = vst [vmem:[#allocation4 + $0x2a1] sm:$0xff] %v4018_v38  ;;  %4169 = vst [vmem:[#allocation4 + $0x2a9] sm:$0xff] %v4019_v48  ;;  %6239 = vmatprep.mubr.bf16.mxu1 %v4375_v17  ;;  %9040 = vmatprep.mubr.bf16.mxu0 %v13860_v50  ;;  %v16681_v38 = vmax.f32 %v13540_v18, 0.0  ;;  %v16683_v48 = vmax.f32 %v13548_v43, 0.0  ;;  %v16688_v18 = vmax.f32 %v16651_v6, 0.0  ;;  %v16689_v11 = vmax.f32 %v16652_v33, 0.0 }
 0x633   :  { %4170 = vst [vmem:[#allocation4 + $0x2b9] sm:$0xff] %v4020_v29  ;;  %4171 = vst [vmem:[#allocation4 + $0x2c1] sm:$0xff] %v4021_v44  ;;  %6240 = vmatmul.mubr.bf16.gmra.mrb[68].mxu1 %v13851_v20  ;;  %v13869_v19 = vpack.c.bf16 %v16680_v10, %v16679_v0  ;;  %v16684_v29 = vmax.f32 %v13552_v30, 0.0  ;;  %v16690_v43 = vmax.f32 %v16656_v25, 0.0  ;;  %v13901_v30 = vpack.c.bf16 %v4187_v51, %v4186_v1  ;;  %v4188_v25 = vld [vmem:[#allocation4 + $0x48] sm:$0xff]  ;;  %v4190_v55 = vld [vmem:[#allocation4 + $0x60] sm:$0xff] }
 0x634   :  { %4172 = vst [vmem:[#allocation4 + $0x2d1] sm:$0xff] %v4022_v54  ;;  %4173 = vst [vmem:[#allocation4 + $0x2d9] sm:$0xff] %v4023_v5  ;;  %6247 = vmatprep.mubr.bf16.mxu1 %v4376_v35  ;;  %v13875_v52 = vpack.c.bf16 %v16682_v7, %v16681_v38  ;;  %v13887_v54 = vpack.c.bf16 %v16686_v2, %v16685_v27  ;;  %v13893_v53 = vpack.c.bf16 %v16688_v18, %v16687_v60  ;;  %v5220_v58 = vld [vmem:[#allocation4 + $0xca] sm:$0xff]  ;;  %v5221_v59 = vld [vmem:[#allocation4 + $0xda] sm:$0xff] }
 0x635   :  { %4174 = vst [vmem:[#allocation4 + $0x2e9] sm:$0xff] %v4024_v61  ;;  %4175 = vst [vmem:[#allocation4 + $0x2f1] sm:$0xff] %v4025_v13  ;;  %v13881_v44 = vpack.c.bf16 %v16684_v29, %v16683_v48  ;;  %v13899_v5 = vpack.c.bf16 %v16690_v43, %v16689_v11  ;;  %v13903_v61 = vpack.c.bf16 %v5214_v49, %v5213_v28  ;;  %v16691_v24 = vmax.f32 %v13580_v22, 0.0  ;;  %v4189_v22 = vld [vmem:[#allocation4 + $0x50] sm:$0xff]  ;;  %v4191_v15 = vld [vmem:[#allocation4 + $0x68] sm:$0xff] }
 0x636   :  { %4176 = vst [vmem:[#allocation4 + $0x301] sm:$0xff] %v4026_v40  ;;  %4177 = vst [vmem:[#allocation4 + $0x309] sm:$0xff] %v4027_v8  ;;  %v16692_v46 = vmax.f32 %v13584_v12, 0.0  ;;  %v16693_v14 = vmax.f32 %v13484_v41, 0.0  ;;  %v16694_v6 = vmax.f32 %v13488_v57, 0.0  ;;  %v13915_v33 = vpack.c.bf16 %v5216_v56, %v5215_v26  ;;  %v5218_v12 = vld [vmem:[#allocation4 + $0xb2] sm:$0xff] }
 0x637   :  { %4178 = vst [vmem:[#allocation4 + $0x319] sm:$0xff] %v4028_v16  ;;  %4179 = vst [vmem:[#allocation4 + $0x321] sm:$0xff] %v4029_v42  ;;  %v5219_v8 = vld [vmem:[#allocation4 + $0xc2] sm:$0xff]  ;;  %v13920_v16 = vpack.c.bf16 %v4189_v22, %v4188_v25  ;;  %v5276_v41 = vpack.c.bf16 %v5218_v12, %v5217_v9  ;;  %v16695_v57 = vmax.f32 %v13492_v39, 0.0  ;;  %v16696_v37 = vmax.f32 %v13496_v47, 0.0  ;;  %v5223_v17 = vld [vmem:[#allocation4 + $0xf2] sm:$0xff] }
 0x638   :  { %4180 = vst [vmem:[#allocation4 + $0x331] sm:$0xff] %v4030_v32  ;;  %v13909_v13 = vpack.c.bf16 %v16692_v46, %v16691_v24  ;;  %v4377_v40 = vpack.c.bf16 %v16694_v6, %v16693_v14  ;;  %v5277_v32 = vpack.c.bf16 %v5220_v58, %v5219_v8  ;;  %v5222_v36 = vld [vmem:[#allocation4 + $0xe2] sm:$0xff]  ;;  %v5224_v34 = vld [vmem:[#allocation4 + $0xfa] sm:$0xff]  ;;  %v13930_v39 = vpack.c.bf16 %v4191_v15, %v4190_v55  ;;  %v5225_v56 = vld [vmem:[#allocation4 + $0x10a] sm:$0xff] }
 0x639   :  { %9041 = vmatmul.mubr.bf16.gmra.mrb[132].mxu0 %v13903_v61  ;;  %v4378_v42 = vpack.c.bf16 %v16696_v37, %v16695_v57  ;;  %v9993_v45 = vld [vmem:[%s16425_s2 + $0xc0] sm:$0xff]   ;;  %v5278_v47 = vpack.c.bf16 %v5222_v36, %v5221_v59  ;;  %v16697_v35 = vmax.f32 %v13500_v21, 0.0  ;;  %v16698_v1 = vmax.f32 %v13504_v31, 0.0  ;;  %v9994_v49 = vld [vmem:[%s16425_s2 + $0xc8] sm:$0xff]   ;;  %v4192_v0 = vld [vmem:[#allocation4 + $0x78] sm:$0xff] }
 0x63a   :  { %9044 = vmatprep.mubr.bf16.mxu0 %v13915_v33  ;;  %v5279_v28 = vpack.c.bf16 %v5224_v34, %v5223_v17  ;;  %6505 = vmatpush1.bf16.msra.mxu1 %v9993_v45  ;;  %v4193_v10 = vld [vmem:[#allocation4 + $0x80] sm:$0xff]  ;;  %v16699_v26 = vmov 0   ;;  %v5226_v21 = vld [vmem:[#allocation4 + $0x112] sm:$0xff]  ;;  %v5228_v7 = vld [vmem:[#allocation4 + $0x12a] sm:$0xff]  ;;  %v16700_v27 = vmax.f32 %v13508_v3, 0.0  ;;  %v16701_v2 = vmax.f32 %v13512_v62, 0.0 }
 0x63b   :  { %6248 = vmatmul.mubr.bf16.gmra.mrb[72].mxu1 %v13901_v30  ;;  %v4379_v51 = vpack.c.bf16 %v16698_v1, %v16697_v35  ;;  %6506 = vmatprep.subr.bf16.mxu1 %v16699_v26  ;;  %v9995_v31 = vld [vmem:[%s16425_s2 + $0xd0] sm:$0xff]   ;;  %v5227_v38 = vld [vmem:[#allocation4 + $0x122] sm:$0xff]  ;;  %v13945_v48 = vpack.c.bf16 %v4193_v10, %v4192_v0  ;;  %v5280_v29 = vpack.c.bf16 %v5226_v21, %v5225_v56  ;;  %v4195_v43 = vld [vmem:[#allocation4 + $0x98] sm:$0xff]  ;;  %v16702_v62 = vmax.f32 %v13516_v23, 0.0 }
 0x63c   :  { %6255 = vmatprep.mubr.bf16.mxu1 %v4377_v40  ;;  %v4380_v60 = vpack.c.bf16 %v16701_v2, %v16700_v27  ;;  %v5281_v18 = vpack.c.bf16 %v5228_v7, %v5227_v38  ;;  %v4194_v11 = vld [vmem:[#allocation4 + $0x90] sm:$0xff]  ;;  %v5229_v24 = vld [vmem:[#allocation4 + $0x13a] sm:$0xff]  ;;  %v5230_v46 = vld [vmem:[#allocation4 + $0x142] sm:$0xff] }
 0x63d   :  { %v5231_v14 = vld [vmem:[#allocation4 + $0x152] sm:$0xff]  ;;  %v5232_v6 = vld [vmem:[#allocation4 + $0x15a] sm:$0xff]  ;;  %v13953_v40 = vpack.c.bf16 %v4195_v43, %v4194_v11  ;;  %v5282_v3 = vpack.c.bf16 %v5230_v46, %v5229_v24  ;;  %v16703_v25 = vld [vmem:[#allocation17_spill] sm:$0xff] }
 0x63e   :  { %6507 = vmatpush1.bf16.msra.mxu1 %v9994_v49  ;;  %v16704_v22 = vmax.f32 %v16703_v25, 0.0  ;;  %v5283_v12 = vpack.c.bf16 %v5232_v6, %v5231_v14  ;;  %v9996_v8 = vld [vmem:[%s16425_s2 + $0xd8] sm:$0xff]   ;;  %v4196_v58 = vld [vmem:[#allocation4 + $0xa8] sm:$0xff]  ;;  %v16705_v15 = vld [vmem:[#allocation18_spill] sm:$0xff] }
 0x63f   :  { %6508 = vmatprep.subr.bf16.mxu1 %v16699_v26  ;;  %v5233_v57 = vld [vmem:[#allocation4 + $0x16a] sm:$0xff]  ;;  %v5234_v37 = vld [vmem:[#allocation4 + $0x172] sm:$0xff]  ;;  %v16706_v59 = vmax.f32 %v16705_v15, 0.0  ;;  %v5238_v35 = vld [vmem:[#allocation4 + $0x1a2] sm:$0xff] }
 0x640   :  { %v4381_v9 = vpack.c.bf16 %v16704_v22, %v16702_v62  ;;  %v5236_v23 = vld [vmem:[#allocation4 + $0x18a] sm:$0xff]  ;;  %v5284_v55 = vpack.c.bf16 %v5234_v37, %v5233_v57  ;;  %v16707_v36 = vld [vmem:[#allocation19_spill] sm:$0xff]  ;;  %v4198_v1 = vld [vmem:[#allocation4 + $0xc0] sm:$0xff] }
 0x641   :  { %9045 = vmatmul.mubr.bf16.gmra.mrb[136].mxu0 %v5276_v41  ;;  %v4197_v41 = vld [vmem:[#allocation4 + $0xb0] sm:$0xff]  ;;  %v16708_v17 = vmax.f32 %v16707_v36, 0.0  ;;  %v5239_v49 = vld [vmem:[#allocation4 + $0x1e2] sm:$0xff]  ;;  %v5241_v7 = vld [vmem:[#allocation4 + $0x1fa] sm:$0xff] }
 0x642   :  { %9048 = vmatprep.mubr.bf16.mxu0 %v5277_v32  ;;  %6509 = vmatpush1.bf16.msra.mxu1 %v9995_v31  ;;  %v13964_v32 = vpack.c.bf16 %v4197_v41, %v4196_v58  ;;  %v5240_v0 = vld [vmem:[#allocation4 + $0x1ea] sm:$0xff]  ;;  %v9997_v21 = vld [vmem:[%s16425_s2 + $0xe0] sm:$0xff]   ;;  %v4200_v31 = vld [vmem:[#allocation4 + $0xd8] sm:$0xff] }
 0x643   :  { %6256 = vmatmul.mubr.bf16.gmra.mrb[76].mxu1 %v13920_v16  ;;  %6510 = vmatprep.subr.bf16.mxu1 %v16699_v26  ;;  %v4382_v34 = vpack.c.bf16 %v16708_v17, %v16706_v59  ;;  %v5287_v56 = vpack.c.bf16 %v5240_v0, %v5239_v49  ;;  %v4201_v38 = vld [vmem:[#allocation4 + $0xe0] sm:$0xff]  ;;  %v5243_v27 = vld [vmem:[#allocation4 + $0x212] sm:$0xff]  ;;  %v5245_v24 = vld [vmem:[#allocation4 + $0x22a] sm:$0xff] }
 0x644   :  { %6263 = vmatprep.mubr.bf16.mxu1 %v4378_v42  ;;  %v5235_v42 = vld [vmem:[#allocation4 + $0x182] sm:$0xff]  ;;  %v5244_v2 = vld [vmem:[#allocation4 + $0x21a] sm:$0xff]  ;;  %v5246_v46 = vld [vmem:[#allocation4 + $0x232] sm:$0xff] }
 0x645   :  { %v5285_v45 = vpack.c.bf16 %v5236_v23, %v5235_v42  ;;  %v5289_v11 = vpack.c.bf16 %v5244_v2, %v5243_v27  ;;  %v4203_v43 = vld [vmem:[#allocation4 + $0xf8] sm:$0xff]  ;;  %v5247_v14 = vld [vmem:[#allocation4 + $0x242] sm:$0xff]  ;;  %v5248_v6 = vld [vmem:[#allocation4 + $0x24a] sm:$0xff]  ;;  %v5290_v62 = vpack.c.bf16 %v5246_v46, %v5245_v24 }
 0x646   :  { %6511 = vmatpush1.bf16.msra.mxu1 %v9996_v8  ;;  %v5291_v25 = vpack.c.bf16 %v5248_v6, %v5247_v14  ;;  %v4204_v22 = vld [vmem:[#allocation4 + $0x108] sm:$0xff]  ;;  %v5251_v58 = vld [vmem:[#allocation4 + $0x272] sm:$0xff]  ;;  %v5252_v41 = vld [vmem:[#allocation4 + $0x27a] sm:$0xff] }
 0x647   :  { %6512 = vmatprep.subr.bf16.mxu1 %v16699_v26  ;;  %v5250_v8 = vld [vmem:[#allocation4 + $0x262] sm:$0xff]  ;;  %v5293_v42 = vpack.c.bf16 %v5252_v41, %v5251_v58  ;;  %v5254_v15 = vld [vmem:[#allocation4 + $0x292] sm:$0xff]  ;;  %v5256_v36 = vld [vmem:[#allocation4 + $0x2aa] sm:$0xff] }
 0x648   :  { %v4207_v23 = vld [vmem:[#allocation4 + $0x128] sm:$0xff]  ;;  %v5260_v49 = vld [vmem:[#allocation4 + $0x2da] sm:$0xff]  ;;  %v4214_v46 = vld [vmem:[#allocation4 + $0x1b0] sm:$0xff] }
 0x649   :  { %9049 = vmatmul.mubr.bf16.gmra.mrb[140].mxu0 %v5278_v47  ;;  %v5237_v47 = vld [vmem:[#allocation4 + $0x19a] sm:$0xff]  ;;  %v5255_v59 = vld [vmem:[#allocation4 + $0x2a2] sm:$0xff] }
 0x64a   :  { %9052 = vmatprep.mubr.bf16.mxu0 %v5279_v28  ;;  %v5286_v28 = vpack.c.bf16 %v5238_v35, %v5237_v47  ;;  %6513 = vmatpush1.bf16.msra.mxu1 %v9997_v21  ;;  %v4208_v47 = vld [vmem:[#allocation4 + $0x138] sm:$0xff]  ;;  %v4209_v35 = vld [vmem:[#allocation4 + $0x140] sm:$0xff]  ;;  %v10037_v14 = vld [vmem:[#allocation4 + $0x8] sm:$0xff] }
 0x64b   :  { %6264 = vmatmul.mubr.bf16.gmra.mrb[80].mxu1 %v13930_v39  ;;  %6514 = vmatprep.subr.bf16.mxu1 %v16699_v26  ;;  %v14003_v0 = vpack.c.bf16 %v4209_v35, %v4208_v47  ;;  %v10000_v2 = vld [vmem:[%s16425_s2 + $0xf8] sm:$0xff]   ;;  %v4344_v6 = vld [vmem:[#allocation4 + $0x1c9] sm:$0xff]  ;;  %v4218_v41 = vld [vmem:[#allocation4 + $0x1e0] sm:$0xff] }
 0x64c   :  { %6271 = vmatprep.mubr.bf16.mxu1 %v4379_v51  ;;  %v4199_v51 = vld [vmem:[#allocation4 + $0xc8] sm:$0xff]  ;;  %v4222_v47 = vld [vmem:[#allocation4 + $0x210] sm:$0xff]  ;;  %v4223_v35 = vld [vmem:[#allocation4 + $0x218] sm:$0xff] }
 0x64d   :  { %v13971_v10 = vpack.c.bf16 %v4199_v51, %v4198_v1  ;;  %v5257_v1 = vld [vmem:[#allocation4 + $0x2ba] sm:$0xff]  ;;  %v5258_v51 = vld [vmem:[#allocation4 + $0x2c2] sm:$0xff] }
 0x651   :  { %9053 = vmatmul.mubr.bf16.gmra.mrb[144].mxu0 %v5280_v29  ;;  %v5242_v29 = vld [vmem:[#allocation4 + $0x202] sm:$0xff] }
 0x652   :  { %9056 = vmatprep.mubr.bf16.mxu0 %v5281_v18  ;;  %v5288_v18 = vpack.c.bf16 %v5242_v29, %v5241_v7  ;;  %v5262_v7 = vld [vmem:[#allocation4 + $0x2f2] sm:$0xff] }
 0x653   :  { %6272 = vmatmul.mubr.bf16.gmra.mrb[84].mxu1 %v13945_v48 }
 0x654   :  { %6279 = vmatprep.mubr.bf16.mxu1 %v4380_v60  ;;  %v13979_v60 = vpack.c.bf16 %v4201_v38, %v4200_v31  ;;  %v4211_v31 = vld [vmem:[#allocation4 + $0x158] sm:$0xff]  ;;  %v5261_v38 = vld [vmem:[#allocation4 + $0x2ea] sm:$0xff] }
 0x655   :  { %v5298_v27 = vpack.c.bf16 %v5262_v7, %v5261_v38 }
 0x659   :  { %9057 = vmatmul.mubr.bf16.gmra.mrb[148].mxu0 %v5282_v3 }
 0x65a   :  { %9060 = vmatprep.mubr.bf16.mxu0 %v5283_v12  ;;  %v5249_v12 = vld [vmem:[#allocation4 + $0x25a] sm:$0xff] }
 0x65b   :  { %6280 = vmatmul.mubr.bf16.gmra.mrb[88].mxu1 %v13953_v40  ;;  %v5292_v37 = vpack.c.bf16 %v5250_v8, %v5249_v12  ;;  %v4347_v12 = vld [vmem:[#allocation4 + $0x1e9] sm:$0xff] }
 0x65c   :  { %6287 = vmatprep.mubr.bf16.mxu1 %v4381_v9  ;;  %v4205_v9 = vld [vmem:[#allocation4 + $0x110] sm:$0xff] }
 0x65d   :  { %v13991_v57 = vpack.c.bf16 %v4205_v9, %v4204_v22  ;;  %v4217_v22 = vld [vmem:[#allocation4 + $0x1d0] sm:$0xff]  ;;  %v4346_v9 = vld [vmem:[#allocation4 + $0x1e1] sm:$0xff] }
 0x65e   :  { %v4392_v58 = vpack.c.bf16 %v4347_v12, %v4346_v9  ;;  %v4361_v9 = vld [vmem:[#allocation4 + $0x291] sm:$0xff] }
 0x661   :  { %9061 = vmatmul.mubr.bf16.gmra.mrb[152].mxu0 %v5284_v55  ;;  %v5253_v55 = vld [vmem:[#allocation4 + $0x28a] sm:$0xff] }
 0x662   :  { %9064 = vmatprep.mubr.bf16.mxu0 %v5285_v45  ;;  %v5295_v45 = vpack.c.bf16 %v5256_v36, %v5255_v59  ;;  %v4221_v59 = vld [vmem:[#allocation4 + $0x200] sm:$0xff]  ;;  %v4350_v36 = vld [vmem:[#allocation4 + $0x211] sm:$0xff] }
 0x663   :  { %6288 = vmatmul.mubr.bf16.gmra.mrb[92].mxu1 %v13964_v32 }
 0x664   :  { %6295 = vmatprep.mubr.bf16.mxu1 %v4382_v34  ;;  %v5294_v34 = vpack.c.bf16 %v5254_v15, %v5253_v55  ;;  %v4220_v15 = vld [vmem:[#allocation4 + $0x1f8] sm:$0xff] }
 0x669   :  { %9065 = vmatmul.mubr.bf16.gmra.mrb[156].mxu0 %v5286_v28  ;;  %v5259_v28 = vld [vmem:[#allocation4 + $0x2d2] sm:$0xff] }
 0x66a   :  { %9068 = vmatprep.mubr.bf16.mxu0 %v5287_v56  ;;  %v5296_v56 = vpack.c.bf16 %v5258_v51, %v5257_v1  ;;  %v5297_v21 = vpack.c.bf16 %v5260_v49, %v5259_v28  ;;  %v4352_v1 = vld [vmem:[#allocation4 + $0x229] sm:$0xff]  ;;  %v4353_v51 = vld [vmem:[#allocation4 + $0x231] sm:$0xff]  ;;  %v14027_v28 = vpack.c.bf16 %v4223_v35, %v4222_v47 }
 0x66b   :  { %6296 = vmatmul.mubr.bf16.gmra.mrb[96].mxu1 %v13971_v10  ;;  %v4395_v49 = vpack.c.bf16 %v4353_v51, %v4352_v1  ;;  %v4236_v1 = vld [vmem:[#allocation4 + $0x2b8] sm:$0xff]  ;;  %v4237_v51 = vld [vmem:[#allocation4 + $0x2c0] sm:$0xff] }
 0x66c   :  { %6303 = vmatprep.mubr.bf16.mxu1 %v13869_v19  ;;  %v4202_v19 = vld [vmem:[#allocation4 + $0xf0] sm:$0xff] }
 0x66d   :  { %v13983_v3 = vpack.c.bf16 %v4203_v43, %v4202_v19  ;;  %v4213_v19 = vld [vmem:[#allocation4 + $0x170] sm:$0xff] }
 0x671   :  { %9069 = vmatmul.mubr.bf16.gmra.mrb[160].mxu0 %v5288_v18  ;;  %v4342_v18 = vld [vmem:[#allocation4 + $0x1b1] sm:$0xff] }
 0x672   :  { %9072 = vmatprep.mubr.bf16.mxu0 %v5289_v11  ;;  %v4343_v11 = vld [vmem:[#allocation4 + $0x1b9] sm:$0xff] }
 0x673   :  { %6304 = vmatmul.mubr.bf16.gmra.mrb[100].mxu1 %v13979_v60  ;;  %v4390_v43 = vpack.c.bf16 %v4343_v11, %v4342_v18  ;;  %v4356_v18 = vld [vmem:[#allocation4 + $0x259] sm:$0xff]  ;;  %v4357_v11 = vld [vmem:[#allocation4 + $0x261] sm:$0xff] }
 0x674   :  { %6311 = vmatprep.mubr.bf16.mxu1 %v13875_v52  ;;  %v9998_v52 = vld [vmem:[%s16425_s2 + $0xe8] sm:$0xff]  }
 0x675   :  { %6515 = vmatpush1.bf16.msra.mxu1 %v9998_v52  ;;  %v4216_v52 = vld [vmem:[#allocation4 + $0x1c8] sm:$0xff] }
 0x676   :  { %6516 = vmatprep.subr.bf16.mxu1 %v16699_v26  ;;  %v14018_v8 = vpack.c.bf16 %v4217_v22, %v4216_v52  ;;  %v4231_v52 = vld [vmem:[#allocation4 + $0x278] sm:$0xff]  ;;  %v4360_v22 = vld [vmem:[#allocation4 + $0x289] sm:$0xff] }
 0x679   :  { %9073 = vmatmul.mubr.bf16.gmra.mrb[164].mxu0 %v5290_v62  ;;  %v4345_v62 = vld [vmem:[#allocation4 + $0x1d1] sm:$0xff] }
 0x67a   :  { %9076 = vmatprep.mubr.bf16.mxu0 %v5291_v25  ;;  %v4391_v25 = vpack.c.bf16 %v4345_v62, %v4344_v6 }
 0x67b   :  { %6312 = vmatmul.mubr.bf16.gmra.mrb[104].mxu1 %v13983_v3 }
 0x67c   :  { %6319 = vmatprep.mubr.bf16.mxu1 %v13881_v44  ;;  %v4206_v44 = vld [vmem:[#allocation4 + $0x120] sm:$0xff] }
 0x67d   :  { %v13995_v17 = vpack.c.bf16 %v4207_v23, %v4206_v44  ;;  %v4349_v44 = vld [vmem:[#allocation4 + $0x201] sm:$0xff] }
 0x681   :  { %9077 = vmatmul.mubr.bf16.gmra.mrb[168].mxu0 %v5292_v37  ;;  %v4219_v37 = vld [vmem:[#allocation4 + $0x1e8] sm:$0xff] }
 0x682   :  { %9080 = vmatprep.mubr.bf16.mxu0 %v5293_v42  ;;  %v4348_v42 = vld [vmem:[#allocation4 + $0x1f9] sm:$0xff]  ;;  %v14021_v23 = vpack.c.bf16 %v4219_v37, %v4218_v41  ;;  %v4232_v41 = vld [vmem:[#allocation4 + $0x288] sm:$0xff]  ;;  %v4233_v37 = vld [vmem:[#allocation4 + $0x290] sm:$0xff] }
 0x683   :  { %6320 = vmatmul.mubr.bf16.gmra.mrb[108].mxu1 %v13991_v57  ;;  %v4393_v55 = vpack.c.bf16 %v4349_v44, %v4348_v42  ;;  %v4362_v42 = vld [vmem:[#allocation4 + $0x2a1] sm:$0xff]  ;;  %v4363_v44 = vld [vmem:[#allocation4 + $0x2a9] sm:$0xff] }
 0x684   :  { %6327 = vmatprep.mubr.bf16.mxu1 %v13887_v54  ;;  %v9999_v54 = vld [vmem:[%s16425_s2 + $0xf0] sm:$0xff]  }
 0x685   :  { %6517 = vmatpush1.bf16.msra.mxu1 %v9999_v54 }
 0x686   :  { %6518 = vmatprep.subr.bf16.mxu1 %v16699_v26 }
 0x689   :  { %9081 = vmatmul.mubr.bf16.gmra.mrb[172].mxu0 %v5294_v34  ;;  %6519 = vmatpush1.bf16.msra.mxu1 %v10000_v2  ;;  %v4351_v34 = vld [vmem:[#allocation4 + $0x219] sm:$0xff]  ;;  %v4227_v2 = vld [vmem:[#allocation4 + $0x248] sm:$0xff] }
 0x68a   :  { %9084 = vmatprep.mubr.bf16.mxu0 %v5295_v45  ;;  %6777 = vmatprep.subr.bf16.mxu1 %v16699_v26  ;;  %v14024_v45 = vpack.c.bf16 %v4221_v59, %v4220_v15  ;;  %v4394_v54 = vpack.c.bf16 %v4351_v34, %v4350_v36  ;;  %v4400_v15 = vpack.c.bf16 %v4363_v44, %v4362_v42  ;;  %v4234_v59 = vld [vmem:[#allocation4 + $0x2a0] sm:$0xff]  ;;  %v4235_v36 = vld [vmem:[#allocation4 + $0x2a8] sm:$0xff] }
 0x68b   :  { %6328 = vmatmul.mubr.bf16.gmra.mrb[112].mxu1 %v13995_v17  ;;  %v4364_v34 = vld [vmem:[#allocation4 + $0x2b9] sm:$0xff]  ;;  %v14045_v47 = vpack.c.bf16 %v4235_v36, %v4234_v59  ;;  %v4243_v59 = vld [vmem:[#allocation4 + $0x308] sm:$0xff] }
 0x68c   :  { %6335 = vmatprep.mubr.bf16.mxu1 %v13893_v53  ;;  %v4210_v53 = vld [vmem:[#allocation4 + $0x150] sm:$0xff] }
 0x68d   :  { %v14007_v29 = vpack.c.bf16 %v4211_v31, %v4210_v53  ;;  %v4354_v53 = vld [vmem:[#allocation4 + $0x241] sm:$0xff]  ;;  %v4355_v31 = vld [vmem:[#allocation4 + $0x249] sm:$0xff] }
 0x68e   :  { %v4396_v7 = vpack.c.bf16 %v4355_v31, %v4354_v53 }
 0x691   :  { %9085 = vmatmul.mubr.bf16.gmra.mrb[176].mxu0 %v5296_v56  ;;  %v4224_v56 = vld [vmem:[#allocation4 + $0x228] sm:$0xff] }
 0x692   :  { %9088 = vmatprep.mubr.bf16.mxu0 %v5297_v21  ;;  %v4225_v21 = vld [vmem:[#allocation4 + $0x230] sm:$0xff] }
 0x693   :  { %6336 = vmatmul.mubr.bf16.gmra.mrb[116].mxu1 %v14003_v0  ;;  %v14030_v38 = vpack.c.bf16 %v4225_v21, %v4224_v56  ;;  %v4367_v56 = vld [vmem:[#allocation4 + $0x2d9] sm:$0xff]  ;;  %v14048_v21 = vpack.c.bf16 %v4237_v51, %v4236_v1 }
 0x694   :  { %6343 = vmatprep.mubr.bf16.mxu1 %v13899_v5  ;;  %v4212_v5 = vld [vmem:[#allocation4 + $0x168] sm:$0xff] }
 0x695   :  { %v14015_v24 = vpack.c.bf16 %v4213_v19, %v4212_v5  ;;  %v4397_v19 = vpack.c.bf16 %v4357_v11, %v4356_v18  ;;  %v4368_v18 = vld [vmem:[#allocation4 + $0x2e9] sm:$0xff]  ;;  %v4369_v11 = vld [vmem:[#allocation4 + $0x2f1] sm:$0xff] }
 0x699   :  { %9089 = vmatmul.mubr.bf16.gmra.mrb[180].mxu0 %v5298_v27  ;;  %v4226_v27 = vld [vmem:[#allocation4 + $0x240] sm:$0xff] }
 0x69a   :  { %v14033_v5 = vpack.c.bf16 %v4227_v2, %v4226_v27  ;;  %v4239_v27 = vld [vmem:[#allocation4 + $0x2d8] sm:$0xff] }
 0x69b   :  { %6344 = vmatmul.mubr.bf16.gmra.mrb[120].mxu1 %v14007_v29 }
 0x69c   :  { %6351 = vmatprep.mubr.bf16.mxu1 %v13909_v13  ;;  %v4262_v13 = vpack.c.bf16 %v10037_v14, %v4214_v46  ;;  %v4229_v46 = vld [vmem:[#allocation4 + $0x260] sm:$0xff]  ;;  %v4358_v14 = vld [vmem:[#allocation4 + $0x271] sm:$0xff] }
 0x6a3   :  { %6352 = vmatmul.mubr.bf16.gmra.mrb[124].mxu1 %v14015_v24 }
 0x6a4   :  { %6359 = vmatprep.mubr.bf16.mxu1 %v4390_v43  ;;  %v4228_v43 = vld [vmem:[#allocation4 + $0x258] sm:$0xff] }
 0x6a5   :  { %v14036_v6 = vpack.c.bf16 %v4229_v46, %v4228_v43 }
 0x6ab   :  { %6360 = vmatmul.mubr.bf16.gmra.mrb[128].mxu1 %v4262_v13  ;;  %v4359_v13 = vld [vmem:[#allocation4 + $0x279] sm:$0xff] }
 0x6ac   :  { %6367 = vmatprep.mubr.bf16.mxu1 %v4391_v25  ;;  %v4398_v62 = vpack.c.bf16 %v4359_v13, %v4358_v14  ;;  %v4230_v25 = vld [vmem:[#allocation4 + $0x270] sm:$0xff]  ;;  %v4403_v14 = vpack.c.bf16 %v4369_v11, %v4368_v18 }
 0x6ad   :  { %v14039_v12 = vpack.c.bf16 %v4231_v52, %v4230_v25  ;;  %v4241_v25 = vld [vmem:[#allocation4 + $0x2f0] sm:$0xff] }
 0x6b3   :  { %6368 = vmatmul.mubr.bf16.gmra.mrb[132].mxu1 %v14018_v8 }
 0x6b4   :  { %6375 = vmatprep.mubr.bf16.mxu1 %v4392_v58  ;;  %v4399_v58 = vpack.c.bf16 %v4361_v9, %v4360_v22  ;;  %v4370_v22 = vld [vmem:[#allocation4 + $0x301] sm:$0xff]  ;;  %v4371_v9 = vld [vmem:[#allocation4 + $0x309] sm:$0xff] }
 0x6b5   :  { %v4404_v42 = vpack.c.bf16 %v4371_v9, %v4370_v22 }
 0x6bb   :  { %6376 = vmatmul.mubr.bf16.gmra.mrb[136].mxu1 %v14021_v23 }
 0x6bc   :  { %6383 = vmatprep.mubr.bf16.mxu1 %v4393_v55  ;;  %v14042_v55 = vpack.c.bf16 %v4233_v37, %v4232_v41 }
 0x6c3   :  { %6384 = vmatmul.mubr.bf16.gmra.mrb[140].mxu1 %v14024_v45 }
 0x6c4   :  { %6391 = vmatprep.mubr.bf16.mxu1 %v4394_v54  ;;  %v4365_v54 = vld [vmem:[#allocation4 + $0x2c1] sm:$0xff] }
 0x6c5   :  { %v4401_v35 = vpack.c.bf16 %v4365_v54, %v4364_v34  ;;  %v4372_v34 = vld [vmem:[#allocation4 + $0x319] sm:$0xff]  ;;  %v4373_v54 = vld [vmem:[#allocation4 + $0x321] sm:$0xff] }
 0x6cb   :  { %6392 = vmatmul.mubr.bf16.gmra.mrb[144].mxu1 %v14027_v28 }
 0x6cc   :  { %6399 = vmatprep.mubr.bf16.mxu1 %v4395_v49  ;;  %v4366_v49 = vld [vmem:[#allocation4 + $0x2d1] sm:$0xff] }
 0x6cd   :  { %v4402_v53 = vpack.c.bf16 %v4367_v56, %v4366_v49  ;;  %v4405_v49 = vpack.c.bf16 %v4373_v54, %v4372_v34 }
 0x6d3   :  { %6400 = vmatmul.mubr.bf16.gmra.mrb[148].mxu1 %v14030_v38 }
 0x6d4   :  { %6407 = vmatprep.mubr.bf16.mxu1 %v4396_v7  ;;  %v4238_v7 = vld [vmem:[#allocation4 + $0x2d0] sm:$0xff] }
 0x6d5   :  { %v14059_v46 = vpack.c.bf16 %v4239_v27, %v4238_v7  ;;  %v4245_v7 = vld [vmem:[#allocation4 + $0x320] sm:$0xff] }
 0x6db   :  { %6408 = vmatmul.mubr.bf16.gmra.mrb[152].mxu1 %v14033_v5 }
 0x6dc   :  { %6415 = vmatprep.mubr.bf16.mxu1 %v4397_v19 }
 0x6e3   :  { %6416 = vmatmul.mubr.bf16.gmra.mrb[156].mxu1 %v14036_v6 }
 0x6e4   :  { %6423 = vmatprep.mubr.bf16.mxu1 %v4398_v62  ;;  %v4240_v62 = vld [vmem:[#allocation4 + $0x2e8] sm:$0xff] }
 0x6e5   :  { %v14070_v37 = vpack.c.bf16 %v4241_v25, %v4240_v62  ;;  %v4438_v62 = vld [vmem:[#allocation4 + $0x2] sm:$0xff]  ;;  %v4439_v25 = vld [vmem:[#allocation4 + $0xa] sm:$0xff] }
 0x6eb   :  { %6424 = vmatmul.mubr.bf16.gmra.mrb[160].mxu1 %v14039_v12 }
 0x6ec   :  { %6431 = vmatprep.mubr.bf16.mxu1 %v4399_v58 }
 0x6f3   :  { %6432 = vmatmul.mubr.bf16.gmra.mrb[164].mxu1 %v14042_v55 }
 0x6f4   :  { %6439 = vmatprep.mubr.bf16.mxu1 %v4400_v15  ;;  %v4242_v15 = vld [vmem:[#allocation4 + $0x300] sm:$0xff] }
 0x6f5   :  { %v14081_v51 = vpack.c.bf16 %v4243_v59, %v4242_v15  ;;  %v10001_v59 = vld [vmem:[%s16425_s2 + $0x100] sm:$0xff]  }
 0x6fb   :  { %6440 = vmatmul.mubr.bf16.gmra.mrb[168].mxu1 %v14045_v47 }
 0x6fc   :  { %6447 = vmatprep.mubr.bf16.mxu1 %v4401_v35 }
 0x703   :  { %6448 = vmatmul.mubr.bf16.gmra.mrb[172].mxu1 %v14048_v21 }
 0x704   :  { %6455 = vmatprep.mubr.bf16.mxu1 %v4402_v53  ;;  %v14051_v31 = vpop.f32.mrb[128].mxu0  ;;  %v4244_v53 = vld [vmem:[#allocation4 + $0x318] sm:$0xff] }
 0x705   :  { %v14053_v2 = vpop.f32.mrb[129].mxu0 }
 0x706   :  { %v14055_v19 = vpop.f32.mrb[130].mxu0 }
 0x707   :  { %v14057_v43 = vpop.f32.mrb[131].mxu0 }
 0x70b   :  { %6456 = vmatmul.mubr.bf16.gmra.mrb[176].mxu1 %v14059_v46 }
 0x70c   :  { %6463 = vmatprep.mubr.bf16.mxu1 %v4403_v14  ;;  %v14062_v13 = vpop.f32.mrb[132].mxu0  ;;  %v14092_v14 = vpack.c.bf16 %v4245_v7, %v4244_v53  ;;  %v4441_v53 = vld [vmem:[#allocation4 + $0x22] sm:$0xff] }
 0x70d   :  { %v14064_v52 = vpop.f32.mrb[133].mxu0 }
 0x70e   :  { %v14066_v58 = vpop.f32.mrb[134].mxu0 }
 0x70f   :  { %v14068_v41 = vpop.f32.mrb[135].mxu0 }
 0x713   :  { %6464 = vmatmul.mubr.bf16.gmra.mrb[180].mxu1 %v14070_v37 }
 0x714   :  { %6471 = vmatprep.mubr.bf16.mxu1 %v4404_v42  ;;  %v14073_v44 = vpop.f32.mrb[136].mxu0  ;;  %v4502_v42 = vpack.c.bf16 %v4439_v25, %v4438_v62 }
 0x715   :  { %v14075_v36 = vpop.f32.mrb[137].mxu0 }
 0x716   :  { %v14077_v35 = vpop.f32.mrb[138].mxu0 }
 0x717   :  { %v14079_v1 = vpop.f32.mrb[139].mxu0 }
 0x71b   :  { %6472 = vmatmul.mubr.bf16.gmra.mrb[184].mxu1 %v14081_v51 }
 0x71c   :  { %6479 = vmatprep.mubr.bf16.mxu1 %v4405_v49  ;;  %v14084_v56 = vpop.f32.mrb[140].mxu0  ;;  %v4440_v49 = vld [vmem:[#allocation4 + $0x1a] sm:$0xff] }
 0x71d   :  { %v14086_v27 = vpop.f32.mrb[141].mxu0 }
 0x71e   :  { %v14088_v18 = vpop.f32.mrb[142].mxu0 }
 0x71f   :  { %v14090_v11 = vpop.f32.mrb[143].mxu0 }
 0x723   :  { %6480 = vmatmul.mubr.bf16.gmra.mrb[188].mxu1 %v14092_v14 }
 0x724   :  { %6520 = vmatprep.mubr.bf16.mxu1 %v13851_v20  ;;  %v14096_v22 = vpop.f32.mrb[144].mxu0  ;;  %v10002_v20 = vld [vmem:[%s16425_s2 + $0x108] sm:$0xff]  }
 0x725   :  { %v14098_v9 = vpop.f32.mrb[145].mxu0 }
 0x726   :  { %v14100_v15 = vpop.f32.mrb[146].mxu0 }
 0x727   :  { %v14105_v34 = vpop.f32.mrb[147].mxu0 }
 0x72b   :  { %6521 = vmatmul.mubr.bf16.vlgmr.msra.gmra.mrb[64].mxu1 %v4502_v42  ;;  %v14123_v42 = vpack.c.bf16 %v4441_v53, %v4440_v49  ;;  %v10005_v49 = vld [vmem:[%s16425_s2 + $0x120] sm:$0xff]  }
 0x72c   :  { %6528 = vmatprep.mubr.bf16.mxu1 %v13901_v30  ;;  %6778 = vmatpush1.bf16.msra.mxu1 %v10001_v59  ;;  %v14112_v54 = vpop.f32.mrb[148].mxu0  ;;  %v10003_v30 = vld [vmem:[%s16425_s2 + $0x110] sm:$0xff]   ;;  %v10004_v59 = vld [vmem:[%s16425_s2 + $0x118] sm:$0xff]  }
 0x72d   :  { %6779 = vmatprep.subr.bf16.mxu1 %v16699_v26  ;;  %16709 = vst [vmem:[#allocation22_spill] sm:$0xff] %v14112_v54  ;;  %v14114_v7 = vpop.f32.mrb[149].mxu0 }
 0x72e   :  { %v14116_v62 = vpop.f32.mrb[150].mxu0 }
 0x72f   :  { %16710 = vst [vmem:[#allocation10_spill] sm:$0xff] %v14116_v62  ;;  %v14121_v25 = vpop.f32.mrb[151].mxu0 }
 0x730   :  { %6780 = vmatpush1.bf16.msra.mxu1 %v10002_v20 }
 0x731   :  { %6781 = vmatprep.subr.bf16.mxu1 %v16699_v26 }
 0x733   :  { %6529 = vmatmul.mubr.bf16.gmra.mrb[68].mxu1 %v14123_v42 }
 0x734   :  { %6536 = vmatprep.mubr.bf16.mxu1 %v13920_v16  ;;  %6782 = vmatpush1.bf16.msra.mxu1 %v10003_v30  ;;  %v14132_v20 = vpop.f32.mrb[152].mxu0  ;;  %v10006_v16 = vld [vmem:[%s16425_s2 + $0x128] sm:$0xff]  }
 0x735   :  { %6783 = vmatprep.subr.bf16.mxu1 %v16699_v26  ;;  %16711 = vst [vmem:[#allocation11_spill] sm:$0xff] %v14132_v20  ;;  %v14134_v62 = vpop.f32.mrb[153].mxu0 }
 0x736   :  { %v14136_v54 = vpop.f32.mrb[154].mxu0 }
 0x737   :  { %16712 = vst [vmem:[#allocation12_spill] sm:$0xff] %v14136_v54  ;;  %v14141_v53 = vpop.f32.mrb[155].mxu0 }
 0x738   :  { %6784 = vmatpush1.bf16.msra.mxu1 %v10004_v59  ;;  %16713 = vst [vmem:[#allocation13_spill] sm:$0xff] %v14141_v53 }
 0x739   :  { %6785 = vmatprep.subr.bf16.mxu1 %v16699_v26 }
 0x73b   :  { %6537 = vmatmul.mubr.bf16.gmra.mrb[72].mxu1 %v13849_v4  ;;  %v10007_v4 = vld [vmem:[%s16425_s2 + $0x130] sm:$0xff]  }
 0x73c   :  { %6544 = vmatprep.mubr.bf16.mxu1 %v13930_v39  ;;  %6786 = vmatpush1.bf16.msra.mxu1 %v10005_v49  ;;  %v14150_v30 = vpop.f32.mrb[156].mxu0  ;;  %v10008_v39 = vld [vmem:[%s16425_s2 + $0x138] sm:$0xff]  }
 0x73d   :  { %6787 = vmatprep.subr.bf16.mxu1 %v16699_v26  ;;  %16714 = vst [vmem:[#allocation14_spill] sm:$0xff] %v14150_v30  ;;  %v14152_v59 = vpop.f32.mrb[157].mxu0 }
 0x73e   :  { %16715 = vst [vmem:[#allocation15_spill] sm:$0xff] %v14152_v59  ;;  %v14154_v54 = vpop.f32.mrb[158].mxu0 }
 0x73f   :  { %16716 = vst [vmem:[#allocation16_spill] sm:$0xff] %v14154_v54  ;;  %v14159_v20 = vpop.f32.mrb[159].mxu0 }
 0x740   :  { %6788 = vmatpush1.bf16.msra.mxu1 %v10006_v16  ;;  %16717 = vst [vmem:[#allocation20_spill] sm:$0xff] %v14159_v20  ;;  %v4833_v20 = vld [vmem:[#allocation4 + $0x9a] sm:$0xff] }
 0x741   :  { %6789 = vmatprep.subr.bf16.mxu1 %v16699_v26 }
 0x743   :  { %6545 = vmatmul.mubr.bf16.gmra.mrb[76].mxu1 %v13853_v63  ;;  %v10009_v63 = vld [vmem:[%s16425_s2 + $0x140] sm:$0xff]  }
 0x744   :  { %6552 = vmatprep.mubr.bf16.mxu1 %v13945_v48  ;;  %6790 = vmatpush1.bf16.msra.mxu1 %v10007_v4  ;;  %v14168_v49 = vpop.f32.mrb[160].mxu0  ;;  %v10010_v48 = vld [vmem:[%s16425_s2 + $0x148] sm:$0xff]  }
 0x745   :  { %6791 = vmatprep.subr.bf16.mxu1 %v16699_v26  ;;  %16718 = vst [vmem:[#allocation21_spill] sm:$0xff] %v14168_v49  ;;  %v14170_v16 = vpop.f32.mrb[161].mxu0 }
 0x746   :  { %16719 = vst [vmem:[#allocation28_spill] sm:$0xff] %v14170_v16  ;;  %v14172_v54 = vpop.f32.mrb[162].mxu0  ;;  %v10019_v16 = vld [vmem:[%s16425_s2 + $0x190] sm:$0xff]  }
 0x747   :  { %16720 = vst [vmem:[#allocation23_spill] sm:$0xff] %v14172_v54  ;;  %v14177_v30 = vpop.f32.mrb[163].mxu0 }
 0x748   :  { %6792 = vmatpush1.bf16.msra.mxu1 %v10008_v39  ;;  %16721 = vst [vmem:[#allocation24_spill] sm:$0xff] %v14177_v30  ;;  %v4825_v30 = vld [vmem:[#allocation4 + $0x3a] sm:$0xff] }
 0x749   :  { %6793 = vmatprep.subr.bf16.mxu1 %v16699_v26 }
 0x74b   :  { %6553 = vmatmul.mubr.bf16.gmra.mrb[80].mxu1 %v13860_v50  ;;  %v10011_v50 = vld [vmem:[%s16425_s2 + $0x150] sm:$0xff]  }
 0x74c   :  { %6560 = vmatprep.mubr.bf16.mxu1 %v13953_v40  ;;  %6794 = vmatpush1.bf16.msra.mxu1 %v10009_v63  ;;  %v14186_v4 = vpop.f32.mrb[164].mxu0 }
 0x74d   :  { %6795 = vmatprep.subr.bf16.mxu1 %v16699_v26  ;;  %16722 = vst [vmem:[#allocation25_spill] sm:$0xff] %v14186_v4  ;;  %v14188_v39 = vpop.f32.mrb[165].mxu0  ;;  %v4453_v4 = vld [vmem:[#allocation4 + $0xb2] sm:$0xff] }
 0x74e   :  { %16723 = vst [vmem:[#allocation26_spill] sm:$0xff] %v14188_v39  ;;  %v14190_v54 = vpop.f32.mrb[166].mxu0 }
 0x74f   :  { %16724 = vst [vmem:[#allocation27_spill] sm:$0xff] %v14190_v54  ;;  %v14195_v49 = vpop.f32.mrb[167].mxu0 }
 0x750   :  { %6796 = vmatpush1.bf16.msra.mxu1 %v10010_v48  ;;  %16725 = vst [vmem:[#allocation8_spill] sm:$0xff] %v14195_v49 }
 0x751   :  { %6797 = vmatprep.subr.bf16.mxu1 %v16699_v26 }
 0x753   :  { %6561 = vmatmul.mubr.bf16.gmra.mrb[84].mxu1 %v13903_v61  ;;  %v10012_v61 = vld [vmem:[%s16425_s2 + $0x158] sm:$0xff]  }
 0x754   :  { %6568 = vmatprep.mubr.bf16.mxu1 %v13964_v32  ;;  %6798 = vmatpush1.bf16.msra.mxu1 %v10011_v50  ;;  %v14201_v40 = vpop.f32.mrb[168].mxu0  ;;  %v4452_v50 = vld [vmem:[#allocation4 + $0xaa] sm:$0xff] }
 0x755   :  { %6799 = vmatprep.subr.bf16.mxu1 %v16699_v26  ;;  %16726 = vst [vmem:[#allocation9_spill] sm:$0xff] %v14201_v40  ;;  %v14203_v63 = vpop.f32.mrb[169].mxu0 }
 0x756   :  { %16727 = vst [vmem:[#allocation17_spill] sm:$0xff] %v14203_v63  ;;  %v14205_v48 = vpop.f32.mrb[170].mxu0  ;;  %v4455_v63 = vld [vmem:[#allocation4 + $0xca] sm:$0xff] }
 0x757   :  { %16728 = vst [vmem:[#allocation18_spill] sm:$0xff] %v14205_v48  ;;  %v14207_v54 = vpop.f32.mrb[171].mxu0 }
 0x758   :  { %16729 = vst [vmem:[#allocation19_spill] sm:$0xff] %v14207_v54  ;;  %6800 = vmatpush1.bf16.msra.mxu1 %v10012_v61 }
 0x759   :  { %6801 = vmatprep.subr.bf16.mxu1 %v16699_v26 }
 0x75b   :  { %6569 = vmatmul.mubr.bf16.gmra.mrb[88].mxu1 %v13915_v33  ;;  %v14223_v33 = vpack.c.bf16 %v4453_v4, %v4452_v50  ;;  %v4456_v50 = vld [vmem:[#allocation4 + $0xda] sm:$0xff] }
 0x75c   :  { %6576 = vmatprep.mubr.bf16.mxu1 %v13971_v10  ;;  %v14214_v32 = vpop.f32.mrb[172].mxu0 }
 0x75d   :  { %16730 = vst [vmem:[#allocation29_spill] sm:$0xff] %v14214_v32  ;;  %v14216_v40 = vpop.f32.mrb[173].mxu0  ;;  %v4454_v32 = vld [vmem:[#allocation4 + $0xc2] sm:$0xff] }
 0x75e   :  { %16731 = vst [vmem:[#allocation30_spill] sm:$0xff] %v14216_v40  ;;  %v14219_v48 = vpop.f32.mrb[174].mxu0  ;;  %v14235_v39 = vpack.c.bf16 %v4455_v63, %v4454_v32 }
 0x75f   :  { %16732 = vst [vmem:[#allocation31_spill] sm:$0xff] %v14219_v48  ;;  %v14221_v54 = vpop.f32.mrb[175].mxu0 }
 0x760   :  { %16733 = vst [vmem:[#allocation32_spill] sm:$0xff] %v14221_v54 }
 0x763   :  { %6577 = vmatmul.mubr.bf16.gmra.mrb[92].mxu1 %v14223_v33 }
 0x764   :  { %6584 = vmatprep.mubr.bf16.mxu1 %v13979_v60  ;;  %v14227_v10 = vpop.f32.mrb[176].mxu0  ;;  %v10013_v60 = vld [vmem:[%s16425_s2 + $0x160] sm:$0xff]  }
 0x765   :  { %16734 = vst [vmem:[#allocation33_spill] sm:$0xff] %v14227_v10  ;;  %v14229_v49 = vpop.f32.mrb[177].mxu0  ;;  %v4457_v10 = vld [vmem:[#allocation4 + $0xe2] sm:$0xff]  ;;  %6802 = vmatpush1.bf16.msra.mxu1 %v10013_v60 }
 0x766   :  { %16735 = vst [vmem:[#allocation34_spill] sm:$0xff] %v14229_v49  ;;  %v14231_v61 = vpop.f32.mrb[178].mxu0  ;;  %6803 = vmatprep.subr.bf16.mxu1 %v16699_v26  ;;  %v14251_v32 = vpack.c.bf16 %v4457_v10, %v4456_v50  ;;  %v10014_v60 = vld [vmem:[%s16425_s2 + $0x168] sm:$0xff]  }
 0x767   :  { %16736 = vst [vmem:[#allocation35_spill] sm:$0xff] %v14231_v61  ;;  %v14233_v40 = vpop.f32.mrb[179].mxu0 }
 0x768   :  { %16737 = vst [vmem:[#allocation36_spill] sm:$0xff] %v14233_v40  ;;  %v4459_v40 = vld [vmem:[#allocation4 + $0xfa] sm:$0xff] }
 0x769   :  { %6804 = vmatpush1.bf16.msra.mxu1 %v10014_v60  ;;  %v4465_v60 = vld [vmem:[#allocation4 + $0x142] sm:$0xff] }
 0x76a   :  { %6805 = vmatprep.subr.bf16.mxu1 %v16699_v26 }
 0x76b   :  { %6585 = vmatmul.mubr.bf16.gmra.mrb[96].mxu1 %v14235_v39 }
 0x76c   :  { %6592 = vmatprep.mubr.bf16.mxu1 %v13983_v3  ;;  %v14242_v4 = vpop.f32.mrb[180].mxu0  ;;  %v4458_v3 = vld [vmem:[#allocation4 + $0xf2] sm:$0xff] }
 0x76d   :  { %16738 = vst [vmem:[#allocation37_spill] sm:$0xff] %v14242_v4  ;;  %v14244_v49 = vpop.f32.mrb[181].mxu0  ;;  %v14255_v4 = vpack.c.bf16 %v4459_v40, %v4458_v3  ;;  %v4463_v40 = vld [vmem:[#allocation4 + $0x12a] sm:$0xff]  ;;  %v4464_v3 = vld [vmem:[#allocation4 + $0x13a] sm:$0xff] }
 0x76e   :  { %16739 = vst [vmem:[#allocation38_spill] sm:$0xff] %v14244_v49  ;;  %v14247_v61 = vpop.f32.mrb[182].mxu0 }
 0x76f   :  { %16740 = vst [vmem:[#allocation39_spill] sm:$0xff] %v14247_v61  ;;  %v14249_v63 = vpop.f32.mrb[183].mxu0  ;;  %v4460_v61 = vld [vmem:[#allocation4 + $0x10a] sm:$0xff] }
 0x770   :  { %16741 = vst [vmem:[#allocation40_spill] sm:$0xff] %v14249_v63  ;;  %v4461_v63 = vld [vmem:[#allocation4 + $0x112] sm:$0xff] }
 0x771   :  { %v14263_v10 = vpack.c.bf16 %v4461_v63, %v4460_v61  ;;  %v14275_v61 = vpack.c.bf16 %v4465_v60, %v4464_v3  ;;  %v4467_v63 = vld [vmem:[#allocation4 + $0x15a] sm:$0xff]  ;;  %v4468_v3 = vld [vmem:[#allocation4 + $0x16a] sm:$0xff]  ;;  %v4469_v60 = vld [vmem:[#allocation4 + $0x172] sm:$0xff] }
 0x773   :  { %6593 = vmatmul.mubr.bf16.gmra.mrb[100].mxu1 %v14251_v32 }
 0x774   :  { %6600 = vmatprep.mubr.bf16.mxu1 %v13991_v57  ;;  %v4462_v57 = vld [vmem:[#allocation4 + $0x122] sm:$0xff] }
 0x775   :  { %v14267_v50 = vpack.c.bf16 %v4463_v40, %v4462_v57  ;;  %v4596_v57 = vld [vmem:[#allocation4 + $0x180] sm:$0xff]  ;;  %v4597_v40 = vld [vmem:[#allocation4 + $0x188] sm:$0xff] }
 0x776   :  { %v4645_v49 = vpack.c.bf16 %v4597_v40, %v4596_v57  ;;  %v4473_v40 = vld [vmem:[#allocation4 + $0x1d2] sm:$0xff] }
 0x77b   :  { %6601 = vmatmul.mubr.bf16.gmra.mrb[104].mxu1 %v14255_v4 }
 0x77c   :  { %6608 = vmatprep.mubr.bf16.mxu1 %v13995_v17  ;;  %v10015_v17 = vld [vmem:[%s16425_s2 + $0x170] sm:$0xff]  }
 0x77d   :  { %6806 = vmatpush1.bf16.msra.mxu1 %v10015_v17  ;;  %v10016_v17 = vld [vmem:[%s16425_s2 + $0x178] sm:$0xff]  }
 0x77e   :  { %6807 = vmatprep.subr.bf16.mxu1 %v16699_v26 }
 0x781   :  { %6808 = vmatpush1.bf16.msra.mxu1 %v10016_v17  ;;  %v4474_v17 = vld [vmem:[#allocation4 + $0x1e2] sm:$0xff] }
 0x782   :  { %7066 = vmatprep.subr.bf16.mxu1 %v16699_v26 }
 0x783   :  { %6609 = vmatmul.mubr.bf16.gmra.mrb[108].mxu1 %v14263_v10 }
 0x784   :  { %6616 = vmatprep.mubr.bf16.mxu1 %v14003_v0  ;;  %v4466_v0 = vld [vmem:[#allocation4 + $0x152] sm:$0xff] }
 0x78b   :  { %6617 = vmatmul.mubr.bf16.gmra.mrb[112].mxu1 %v14267_v50 }
 0x78c   :  { %6624 = vmatprep.mubr.bf16.mxu1 %v14007_v29  ;;  %v14279_v29 = vpack.c.bf16 %v4467_v63, %v4466_v0  ;;  %v4470_v0 = vld [vmem:[#allocation4 + $0x1b2] sm:$0xff]  ;;  %v4471_v63 = vld [vmem:[#allocation4 + $0x1ba] sm:$0xff] }
 0x78d   :  { %v4518_v57 = vpack.c.bf16 %v4471_v63, %v4470_v0  ;;  %v4477_v0 = vld [vmem:[#allocation4 + $0x202] sm:$0xff] }
 0x793   :  { %6625 = vmatmul.mubr.bf16.gmra.mrb[116].mxu1 %v14275_v61 }
 0x794   :  { %6632 = vmatprep.mubr.bf16.mxu1 %v14015_v24  ;;  %v14286_v24 = vpack.c.bf16 %v4469_v60, %v4468_v3  ;;  %v4475_v3 = vld [vmem:[#allocation4 + $0x1ea] sm:$0xff] }
 0x795   :  { %v14295_v60 = vpack.c.bf16 %v4475_v3, %v4474_v17  ;;  %v4483_v3 = vld [vmem:[#allocation4 + $0x24a] sm:$0xff] }
 0x79b   :  { %6633 = vmatmul.mubr.bf16.gmra.mrb[120].mxu1 %v14279_v29 }
 0x79c   :  { %6640 = vmatprep.mubr.bf16.mxu1 %v4645_v49  ;;  %v4472_v49 = vld [vmem:[#allocation4 + $0x1ca] sm:$0xff] }
 0x79d   :  { %v14291_v48 = vpack.c.bf16 %v4473_v40, %v4472_v49  ;;  %v4481_v40 = vld [vmem:[#allocation4 + $0x232] sm:$0xff] }
 0x7a3   :  { %6641 = vmatmul.mubr.bf16.gmra.mrb[124].mxu1 %v14286_v24 }
 0x7a4   :  { %6648 = vmatprep.mubr.bf16.mxu1 %v14018_v8  ;;  %v4476_v8 = vld [vmem:[#allocation4 + $0x1fa] sm:$0xff] }
 0x7a5   :  { %v14299_v63 = vpack.c.bf16 %v4477_v0, %v4476_v8  ;;  %v4485_v0 = vld [vmem:[#allocation4 + $0x262] sm:$0xff] }
 0x7ab   :  { %6649 = vmatmul.mubr.bf16.gmra.mrb[128].mxu1 %v4518_v57  ;;  %v4479_v57 = vld [vmem:[#allocation4 + $0x21a] sm:$0xff] }
 0x7ac   :  { %6656 = vmatprep.mubr.bf16.mxu1 %v14021_v23  ;;  %v4478_v23 = vld [vmem:[#allocation4 + $0x212] sm:$0xff] }
 0x7ad   :  { %v14303_v49 = vpack.c.bf16 %v4479_v57, %v4478_v23  ;;  %v4487_v57 = vld [vmem:[#allocation4 + $0x27a] sm:$0xff] }
 0x7b3   :  { %6657 = vmatmul.mubr.bf16.gmra.mrb[132].mxu1 %v14291_v48 }
 0x7b4   :  { %6664 = vmatprep.mubr.bf16.mxu1 %v14024_v45  ;;  %v4480_v45 = vld [vmem:[#allocation4 + $0x22a] sm:$0xff] }
 0x7b5   :  { %v14307_v17 = vpack.c.bf16 %v4481_v40, %v4480_v45  ;;  %v4489_v40 = vld [vmem:[#allocation4 + $0x292] sm:$0xff] }
 0x7bb   :  { %6665 = vmatmul.mubr.bf16.gmra.mrb[136].mxu1 %v14295_v60 }
 0x7bc   :  { %6672 = vmatprep.mubr.bf16.mxu1 %v14027_v28  ;;  %v4482_v28 = vld [vmem:[#allocation4 + $0x242] sm:$0xff] }
 0x7bd   :  { %v14311_v8 = vpack.c.bf16 %v4483_v3, %v4482_v28  ;;  %v4491_v3 = vld [vmem:[#allocation4 + $0x2aa] sm:$0xff] }
 0x7c3   :  { %6673 = vmatmul.mubr.bf16.gmra.mrb[140].mxu1 %v14299_v63 }
 0x7c4   :  { %6680 = vmatprep.mubr.bf16.mxu1 %v14030_v38  ;;  %v4484_v38 = vld [vmem:[#allocation4 + $0x25a] sm:$0xff] }
 0x7c5   :  { %v14315_v23 = vpack.c.bf16 %v4485_v0, %v4484_v38  ;;  %v4493_v0 = vld [vmem:[#allocation4 + $0x2c2] sm:$0xff] }
 0x7cb   :  { %6681 = vmatmul.mubr.bf16.gmra.mrb[144].mxu1 %v14303_v49 }
 0x7cc   :  { %6688 = vmatprep.mubr.bf16.mxu1 %v14033_v5  ;;  %v4486_v5 = vld [vmem:[#allocation4 + $0x272] sm:$0xff] }
 0x7cd   :  { %v14319_v45 = vpack.c.bf16 %v4487_v57, %v4486_v5  ;;  %v4495_v57 = vld [vmem:[#allocation4 + $0x2da] sm:$0xff] }
 0x7d3   :  { %6689 = vmatmul.mubr.bf16.gmra.mrb[148].mxu1 %v14307_v17 }
 0x7d4   :  { %6696 = vmatprep.mubr.bf16.mxu1 %v14036_v6  ;;  %v4488_v6 = vld [vmem:[#allocation4 + $0x28a] sm:$0xff] }
 0x7d5   :  { %v14323_v28 = vpack.c.bf16 %v4489_v40, %v4488_v6  ;;  %v4497_v40 = vld [vmem:[#allocation4 + $0x2f2] sm:$0xff] }
 0x7db   :  { %6697 = vmatmul.mubr.bf16.gmra.mrb[152].mxu1 %v14311_v8 }
 0x7dc   :  { %6704 = vmatprep.mubr.bf16.mxu1 %v14039_v12  ;;  %v4490_v12 = vld [vmem:[#allocation4 + $0x2a2] sm:$0xff] }
 0x7dd   :  { %v14327_v38 = vpack.c.bf16 %v4491_v3, %v4490_v12  ;;  %v4499_v3 = vld [vmem:[#allocation4 + $0x30a] sm:$0xff] }
 0x7e3   :  { %6705 = vmatmul.mubr.bf16.gmra.mrb[156].mxu1 %v14315_v23 }
 0x7e4   :  { %6712 = vmatprep.mubr.bf16.mxu1 %v14042_v55  ;;  %v4492_v55 = vld [vmem:[#allocation4 + $0x2ba] sm:$0xff] }
 0x7e5   :  { %v14331_v5 = vpack.c.bf16 %v4493_v0, %v4492_v55  ;;  %v4628_v55 = vld [vmem:[#allocation4 + $0x330] sm:$0xff] }
 0x7eb   :  { %6713 = vmatmul.mubr.bf16.gmra.mrb[160].mxu1 %v14319_v45 }
 0x7ec   :  { %6720 = vmatprep.mubr.bf16.mxu1 %v14045_v47  ;;  %v4494_v47 = vld [vmem:[#allocation4 + $0x2d2] sm:$0xff] }
 0x7ed   :  { %v14335_v6 = vpack.c.bf16 %v4495_v57, %v4494_v47  ;;  %v4500_v57 = vld [vmem:[#allocation4 + $0x31a] sm:$0xff] }
 0x7f3   :  { %6721 = vmatmul.mubr.bf16.gmra.mrb[164].mxu1 %v14323_v28 }
 0x7f4   :  { %6728 = vmatprep.mubr.bf16.mxu1 %v14048_v21  ;;  %v4496_v21 = vld [vmem:[#allocation4 + $0x2ea] sm:$0xff] }
 0x7f5   :  { %v14339_v12 = vpack.c.bf16 %v4497_v40, %v4496_v21  ;;  %v4694_v21 = vld [vmem:[#allocation4 + $0x19] sm:$0xff] }
 0x7f6   :  { %v4824_v40 = vld [vmem:[#allocation4 + $0x32] sm:$0xff] }
 0x7fb   :  { %6729 = vmatmul.mubr.bf16.gmra.mrb[168].mxu1 %v14327_v38 }
 0x7fc   :  { %6736 = vmatprep.mubr.bf16.mxu1 %v14059_v46  ;;  %v4498_v46 = vld [vmem:[#allocation4 + $0x302] sm:$0xff] }
 0x7fd   :  { %v14343_v0 = vpack.c.bf16 %v4499_v3, %v4498_v46  ;;  %v10017_v46 = vld [vmem:[%s16425_s2 + $0x180] sm:$0xff]  }
 0x803   :  { %6737 = vmatmul.mubr.bf16.gmra.mrb[172].mxu1 %v14331_v5 }
 0x804   :  { %6744 = vmatprep.mubr.bf16.mxu1 %v14070_v37  ;;  %v4629_v37 = vld [vmem:[#allocation4 + $0x338] sm:$0xff] }
 0x805   :  { %v4661_v47 = vpack.c.bf16 %v4629_v37, %v4628_v55  ;;  %v4887_v55 = vpack.c.bf16 %v4825_v30, %v4824_v40  ;;  %v10018_v37 = vld [vmem:[%s16425_s2 + $0x188] sm:$0xff]  }
 0x806   :  { %v4698_v40 = vld [vmem:[#allocation4 + $0x49] sm:$0xff] }
 0x80b   :  { %6745 = vmatmul.mubr.bf16.gmra.mrb[176].mxu1 %v14335_v6 }
 0x80c   :  { %6752 = vmatprep.mubr.bf16.mxu1 %v14081_v51  ;;  %v4501_v51 = vld [vmem:[#allocation4 + $0x322] sm:$0xff] }
 0x80d   :  { %v14346_v54 = vpack.c.bf16 %v4501_v51, %v4500_v57  ;;  %v4826_v57 = vld [vmem:[#allocation4 + $0x4a] sm:$0xff]  ;;  %v4827_v51 = vld [vmem:[#allocation4 + $0x52] sm:$0xff] }
 0x80e   :  { %v4888_v30 = vpack.c.bf16 %v4827_v51, %v4826_v57  ;;  %v4700_v57 = vld [vmem:[#allocation4 + $0x61] sm:$0xff]  ;;  %v4701_v51 = vld [vmem:[#allocation4 + $0x69] sm:$0xff] }
 0x813   :  { %6753 = vmatmul.mubr.bf16.gmra.mrb[180].mxu1 %v14339_v12 }
 0x814   :  { %6760 = vmatprep.mubr.bf16.mxu1 %v14092_v14  ;;  %v4695_v14 = vld [vmem:[#allocation4 + $0x21] sm:$0xff] }
 0x815   :  { %v4758_v3 = vpack.c.bf16 %v4695_v14, %v4694_v21  ;;  %v10020_v14 = vld [vmem:[%s16425_s2 + $0x198] sm:$0xff]  }
 0x81b   :  { %6761 = vmatmul.mubr.bf16.gmra.mrb[184].mxu1 %v14343_v0 }
 0x81c   :  { %6768 = vmatprep.mubr.bf16.mxu1 %v4661_v47  ;;  %v4697_v47 = vld [vmem:[#allocation4 + $0x39] sm:$0xff] }
 0x823   :  { %6769 = vmatmul.mubr.bf16.gmra.mrb[188].mxu1 %v14346_v54 }
 0x824   :  { %6809 = vmatprep.mubr.bf16.mxu1 %v14123_v42  ;;  %v4696_v42 = vld [vmem:[#allocation4 + $0x31] sm:$0xff] }
 0x825   :  { %v14360_v21 = vpack.c.bf16 %v4697_v47, %v4696_v42  ;;  %v10022_v47 = vld [vmem:[%s16425_s2 + $0x1a8] sm:$0xff]  }
 0x82b   :  { %6810 = vmatmul.mubr.bf16.vlgmr.msra.gmra.mrb[64].mxu1 %v4758_v3  ;;  %v4828_v3 = vld [vmem:[#allocation4 + $0x62] sm:$0xff] }
 0x82c   :  { %6817 = vmatprep.mubr.bf16.mxu1 %v4887_v55  ;;  %7067 = vmatpush1.bf16.msra.mxu1 %v10017_v46  ;;  %v4699_v46 = vld [vmem:[#allocation4 + $0x51] sm:$0xff] }
 0x82d   :  { %7068 = vmatprep.subr.bf16.mxu1 %v16699_v26  ;;  %v4829_v55 = vld [vmem:[#allocation4 + $0x6a] sm:$0xff]  ;;  %v14371_v42 = vpack.c.bf16 %v4699_v46, %v4698_v40  ;;  %v14382_v46 = vpack.c.bf16 %v4701_v51, %v4700_v57  ;;  %v10025_v57 = vld [vmem:[%s16425_s2 + $0x1c0] sm:$0xff]  }
 0x82e   :  { %v10023_v40 = vld [vmem:[%s16425_s2 + $0x1b0] sm:$0xff]  }
 0x830   :  { %7069 = vmatpush1.bf16.msra.mxu1 %v10018_v37  ;;  %v10021_v37 = vld [vmem:[%s16425_s2 + $0x1a0] sm:$0xff]  }
 0x831   :  { %7070 = vmatprep.subr.bf16.mxu1 %v16699_v26 }
 0x833   :  { %6818 = vmatmul.mubr.bf16.gmra.mrb[68].mxu1 %v14360_v21 }
 0x834   :  { %6825 = vmatprep.mubr.bf16.mxu1 %v4888_v30  ;;  %7071 = vmatpush1.bf16.msra.mxu1 %v10019_v16  ;;  %v4889_v16 = vpack.c.bf16 %v4829_v55, %v4828_v3  ;;  %v4830_v30 = vld [vmem:[#allocation4 + $0x7a] sm:$0xff] }
 0x835   :  { %7072 = vmatprep.subr.bf16.mxu1 %v16699_v26  ;;  %v10024_v55 = vld [vmem:[%s16425_s2 + $0x1b8] sm:$0xff]  }
 0x838   :  { %7073 = vmatpush1.bf16.msra.mxu1 %v10020_v14  ;;  %v4831_v14 = vld [vmem:[#allocation4 + $0x82] sm:$0xff] }
 0x839   :  { %7074 = vmatprep.subr.bf16.mxu1 %v16699_v26  ;;  %v4890_v3 = vpack.c.bf16 %v4831_v14, %v4830_v30  ;;  %v10026_v14 = vld [vmem:[%s16425_s2 + $0x1c8] sm:$0xff]  }
 0x83b   :  { %6826 = vmatmul.mubr.bf16.gmra.mrb[72].mxu1 %v14371_v42 }
 0x83c   :  { %6833 = vmatprep.mubr.bf16.mxu1 %v4889_v16  ;;  %7075 = vmatpush1.bf16.msra.mxu1 %v10021_v37  ;;  %v4702_v37 = vld [vmem:[#allocation4 + $0x79] sm:$0xff]  ;;  %v4703_v16 = vld [vmem:[#allocation4 + $0x81] sm:$0xff] }
 0x83d   :  { %7076 = vmatprep.subr.bf16.mxu1 %v16699_v26  ;;  %v14393_v51 = vpack.c.bf16 %v4703_v16, %v4702_v37  ;;  %v4707_v16 = vld [vmem:[#allocation4 + $0xb1] sm:$0xff] }
 0x840   :  { %7077 = vmatpush1.bf16.msra.mxu1 %v10022_v47  ;;  %v4832_v47 = vld [vmem:[#allocation4 + $0x92] sm:$0xff] }
 0x841   :  { %7078 = vmatprep.subr.bf16.mxu1 %v16699_v26  ;;  %v4891_v30 = vpack.c.bf16 %v4833_v20, %v4832_v47  ;;  %v4706_v20 = vld [vmem:[#allocation4 + $0xa9] sm:$0xff] }
 0x842   :  { %v14410_v47 = vpack.c.bf16 %v4707_v16, %v4706_v20  ;;  %v4712_v20 = vld [vmem:[#allocation4 + $0xf1] sm:$0xff]  ;;  %v4713_v16 = vld [vmem:[#allocation4 + $0xf9] sm:$0xff] }
 0x843   :  { %6834 = vmatmul.mubr.bf16.gmra.mrb[76].mxu1 %v14382_v46 }
 0x844   :  { %6841 = vmatprep.mubr.bf16.mxu1 %v4890_v3  ;;  %7079 = vmatpush1.bf16.msra.mxu1 %v10023_v40  ;;  %v4704_v40 = vld [vmem:[#allocation4 + $0x91] sm:$0xff]  ;;  %v4705_v3 = vld [vmem:[#allocation4 + $0x99] sm:$0xff] }
 0x845   :  { %7080 = vmatprep.subr.bf16.mxu1 %v16699_v26  ;;  %v14404_v37 = vpack.c.bf16 %v4705_v3, %v4704_v40  ;;  %v4710_v40 = vld [vmem:[#allocation4 + $0xd9] sm:$0xff]  ;;  %v4711_v3 = vld [vmem:[#allocation4 + $0xe1] sm:$0xff] }
 0x848   :  { %7081 = vmatpush1.bf16.msra.mxu1 %v10024_v55  ;;  %v10027_v55 = vld [vmem:[%s16425_s2 + $0x1d0] sm:$0xff]  }
 0x849   :  { %7082 = vmatprep.subr.bf16.mxu1 %v16699_v26 }
 0x84b   :  { %6842 = vmatmul.mubr.bf16.gmra.mrb[80].mxu1 %v14393_v51 }
 0x84c   :  { %6849 = vmatprep.mubr.bf16.mxu1 %v4891_v30  ;;  %7083 = vmatpush1.bf16.msra.mxu1 %v10025_v57  ;;  %v10028_v57 = vld [vmem:[%s16425_s2 + $0x1d8] sm:$0xff]   ;;  %v4708_v30 = vld [vmem:[#allocation4 + $0xc1] sm:$0xff] }
 0x84d   :  { %7084 = vmatprep.subr.bf16.mxu1 %v16699_v26 }
 0x850   :  { %7085 = vmatpush1.bf16.msra.mxu1 %v10026_v14  ;;  %v4709_v14 = vld [vmem:[#allocation4 + $0xc9] sm:$0xff] }
 0x851   :  { %7086 = vmatprep.subr.bf16.mxu1 %v16699_v26 }
 0x853   :  { %6850 = vmatmul.mubr.bf16.gmra.mrb[84].mxu1 %v14404_v37 }
 0x854   :  { %6857 = vmatprep.mubr.bf16.mxu1 %v14223_v33  ;;  %7087 = vmatpush1.bf16.msra.mxu1 %v10027_v55  ;;  %v14418_v33 = vpack.c.bf16 %v4709_v14, %v4708_v30  ;;  %v14422_v55 = vpack.c.bf16 %v4711_v3, %v4710_v40  ;;  %v4715_v30 = vld [vmem:[#allocation4 + $0x111] sm:$0xff]  ;;  %v4716_v40 = vld [vmem:[#allocation4 + $0x121] sm:$0xff]  ;;  %v4717_v3 = vld [vmem:[#allocation4 + $0x129] sm:$0xff] }
 0x855   :  { %7088 = vmatprep.subr.bf16.mxu1 %v16699_v26 }
 0x858   :  { %7089 = vmatpush1.bf16.msra.mxu1 %v10028_v57  ;;  %v14430_v57 = vpack.c.bf16 %v4713_v16, %v4712_v20  ;;  %v4719_v20 = vld [vmem:[#allocation4 + $0x141] sm:$0xff] }
 0x859   :  { %7090 = vmatprep.subr.bf16.mxu1 %v16699_v26 }
 0x85b   :  { %6858 = vmatmul.mubr.bf16.gmra.mrb[88].mxu1 %v14410_v47 }
 0x85c   :  { %6865 = vmatprep.mubr.bf16.mxu1 %v14235_v39  ;;  %v10029_v39 = vld [vmem:[%s16425_s2 + $0x1e0] sm:$0xff]  }
 0x85d   :  { %7091 = vmatpush1.bf16.msra.mxu1 %v10029_v39  ;;  %v14442_v39 = vpack.c.bf16 %v4717_v3, %v4716_v40  ;;  %v4723_v40 = vld [vmem:[#allocation4 + $0x171] sm:$0xff]  ;;  %v4852_v3 = vld [vmem:[#allocation4 + $0x182] sm:$0xff] }
 0x85e   :  { %7092 = vmatprep.subr.bf16.mxu1 %v16699_v26 }
 0x863   :  { %6866 = vmatmul.mubr.bf16.gmra.mrb[92].mxu1 %v14418_v33 }
 0x864   :  { %6873 = vmatprep.mubr.bf16.mxu1 %v14251_v32  ;;  %v4714_v32 = vld [vmem:[#allocation4 + $0x109] sm:$0xff] }
 0x865   :  { %v14434_v14 = vpack.c.bf16 %v4715_v30, %v4714_v32  ;;  %v4720_v32 = vld [vmem:[#allocation4 + $0x151] sm:$0xff]  ;;  %v4721_v30 = vld [vmem:[#allocation4 + $0x159] sm:$0xff] }
 0x86b   :  { %6874 = vmatmul.mubr.bf16.gmra.mrb[96].mxu1 %v14422_v55 }
 0x86c   :  { %6881 = vmatprep.mubr.bf16.mxu1 %v14255_v4  ;;  %v10030_v4 = vld [vmem:[%s16425_s2 + $0x1e8] sm:$0xff]  }
 0x86d   :  { %7093 = vmatpush1.bf16.msra.mxu1 %v10030_v4  ;;  %v14454_v4 = vpack.c.bf16 %v4721_v30, %v4720_v32  ;;  %v4725_v32 = vld [vmem:[#allocation4 + $0x189] sm:$0xff] }
 0x86e   :  { %7094 = vmatprep.subr.bf16.mxu1 %v16699_v26 }
 0x873   :  { %6882 = vmatmul.mubr.bf16.gmra.mrb[100].mxu1 %v14430_v57 }
 0x874   :  { %6889 = vmatprep.mubr.bf16.mxu1 %v14263_v10  ;;  %v4718_v10 = vld [vmem:[#allocation4 + $0x139] sm:$0xff] }
 0x875   :  { %v14446_v16 = vpack.c.bf16 %v4719_v20, %v4718_v10  ;;  %v4853_v10 = vld [vmem:[#allocation4 + $0x18a] sm:$0xff] }
 0x876   :  { %v4901_v20 = vpack.c.bf16 %v4853_v10, %v4852_v3  ;;  %v4728_v10 = vld [vmem:[#allocation4 + $0x1e1] sm:$0xff] }
 0x87b   :  { %6890 = vmatmul.mubr.bf16.gmra.mrb[104].mxu1 %v14434_v14 }
 0x87c   :  { %6897 = vmatprep.mubr.bf16.mxu1 %v14267_v50  ;;  %v10031_v50 = vld [vmem:[%s16425_s2 + $0x1f0] sm:$0xff]  }
 0x87d   :  { %7095 = vmatpush1.bf16.msra.mxu1 %v10031_v50  ;;  %v4724_v50 = vld [vmem:[#allocation4 + $0x181] sm:$0xff] }
 0x87e   :  { %7096 = vmatprep.subr.bf16.mxu1 %v16699_v26  ;;  %v10032_v26 = vld [vmem:[%s16425_s2 + $0x1f8] sm:$0xff]   ;;  %v14470_v30 = vpack.c.bf16 %v4725_v32, %v4724_v50  ;;  %v4731_v32 = vld [vmem:[#allocation4 + $0x201] sm:$0xff] }
 0x87f   :  { %v4730_v50 = vld [vmem:[#allocation4 + $0x1f9] sm:$0xff] }
 0x880   :  { %v14479_v59 = vpack.c.bf16 %v4731_v32, %v4730_v50  ;;  %v4739_v32 = vld [vmem:[#allocation4 + $0x261] sm:$0xff] }
 0x881   :  { %7097 = vmatpush1.bf16.msra.mxu1 %v10032_v26 }
 0x883   :  { %6898 = vmatmul.mubr.bf16.gmra.mrb[108].mxu1 %v14442_v39 }
 0x884   :  { %6905 = vmatprep.mubr.bf16.mxu1 %v14275_v61  ;;  %v4722_v61 = vld [vmem:[#allocation4 + $0x169] sm:$0xff] }
 0x88b   :  { %6906 = vmatmul.mubr.bf16.gmra.mrb[112].mxu1 %v14446_v16 }
 0x88c   :  { %6913 = vmatprep.mubr.bf16.mxu1 %v14279_v29  ;;  %v14458_v29 = vpack.c.bf16 %v4723_v40, %v4722_v61  ;;  %v4726_v61 = vld [vmem:[#allocation4 + $0x1c9] sm:$0xff]  ;;  %v4727_v40 = vld [vmem:[#allocation4 + $0x1d1] sm:$0xff] }
 0x88d   :  { %v4774_v3 = vpack.c.bf16 %v4727_v40, %v4726_v61  ;;  %v4733_v61 = vld [vmem:[#allocation4 + $0x219] sm:$0xff] }
 0x893   :  { %6914 = vmatmul.mubr.bf16.gmra.mrb[116].mxu1 %v14454_v4 }
 0x894   :  { %6921 = vmatprep.mubr.bf16.mxu1 %v14286_v24  ;;  %v14467_v24 = vld [vmem:[%s16425_s2 + $0x200] sm:$0xff]  }
 0x895   :  { %9100 = vmatprep.subr.bf16.mxu1 %v14467_v24 }
 0x89b   :  { %6922 = vmatmul.mubr.bf16.gmra.mrb[120].mxu1 %v14458_v29 }
 0x89c   :  { %6929 = vmatprep.mubr.bf16.mxu1 %v4901_v20  ;;  %v4729_v20 = vld [vmem:[#allocation4 + $0x1e9] sm:$0xff] }
 0x89d   :  { %v14475_v26 = vpack.c.bf16 %v4729_v20, %v4728_v10  ;;  %v4737_v20 = vld [vmem:[#allocation4 + $0x249] sm:$0xff] }
 0x8a3   :  { %6930 = vmatmul.mubr.bf16.gmra.mrb[124].mxu1 %v14470_v30 }
 0x8a4   :  { %6937 = vmatprep.mubr.bf16.mxu1 %v14291_v48  ;;  %v4732_v48 = vld [vmem:[#allocation4 + $0x211] sm:$0xff] }
 0x8a5   :  { %v14483_v40 = vpack.c.bf16 %v4733_v61, %v4732_v48  ;;  %v4741_v61 = vld [vmem:[#allocation4 + $0x279] sm:$0xff] }
 0x8ab   :  { %6938 = vmatmul.mubr.bf16.gmra.mrb[128].mxu1 %v4774_v3  ;;  %v4735_v3 = vld [vmem:[#allocation4 + $0x231] sm:$0xff] }
 0x8ac   :  { %6945 = vmatprep.mubr.bf16.mxu1 %v14295_v60  ;;  %v4734_v60 = vld [vmem:[#allocation4 + $0x229] sm:$0xff] }
 0x8ad   :  { %v14487_v10 = vpack.c.bf16 %v4735_v3, %v4734_v60  ;;  %v4743_v3 = vld [vmem:[#allocation4 + $0x291] sm:$0xff] }
 0x8b3   :  { %6946 = vmatmul.mubr.bf16.gmra.mrb[132].mxu1 %v14475_v26 }
 0x8b4   :  { %6953 = vmatprep.mubr.bf16.mxu1 %v14299_v63  ;;  %v4736_v63 = vld [vmem:[#allocation4 + $0x241] sm:$0xff] }
 0x8b5   :  { %v14491_v50 = vpack.c.bf16 %v4737_v20, %v4736_v63  ;;  %v4745_v20 = vld [vmem:[#allocation4 + $0x2a9] sm:$0xff] }
 0x8bb   :  { %6954 = vmatmul.mubr.bf16.gmra.mrb[136].mxu1 %v14479_v59 }
 0x8bc   :  { %6961 = vmatprep.mubr.bf16.mxu1 %v14303_v49  ;;  %v4738_v49 = vld [vmem:[#allocation4 + $0x259] sm:$0xff] }
 0x8bd   :  { %v14495_v48 = vpack.c.bf16 %v4739_v32, %v4738_v49  ;;  %v4747_v32 = vld [vmem:[#allocation4 + $0x2c1] sm:$0xff] }
 0x8c3   :  { %6962 = vmatmul.mubr.bf16.gmra.mrb[140].mxu1 %v14483_v40 }
 0x8c4   :  { %6969 = vmatprep.mubr.bf16.mxu1 %v14307_v17  ;;  %v4740_v17 = vld [vmem:[#allocation4 + $0x271] sm:$0xff] }
 0x8c5   :  { %v14499_v60 = vpack.c.bf16 %v4741_v61, %v4740_v17  ;;  %v4749_v61 = vld [vmem:[#allocation4 + $0x2d9] sm:$0xff] }
 0x8cb   :  { %6970 = vmatmul.mubr.bf16.gmra.mrb[144].mxu1 %v14487_v10 }
 0x8cc   :  { %6977 = vmatprep.mubr.bf16.mxu1 %v14311_v8  ;;  %v4742_v8 = vld [vmem:[#allocation4 + $0x289] sm:$0xff] }
 0x8cd   :  { %v14503_v63 = vpack.c.bf16 %v4743_v3, %v4742_v8  ;;  %v4751_v3 = vld [vmem:[#allocation4 + $0x2f1] sm:$0xff] }
 0x8d3   :  { %6978 = vmatmul.mubr.bf16.gmra.mrb[148].mxu1 %v14491_v50 }
 0x8d4   :  { %6985 = vmatprep.mubr.bf16.mxu1 %v14315_v23  ;;  %v4744_v23 = vld [vmem:[#allocation4 + $0x2a1] sm:$0xff] }
 0x8d5   :  { %v14507_v49 = vpack.c.bf16 %v4745_v20, %v4744_v23  ;;  %v4753_v20 = vld [vmem:[#allocation4 + $0x309] sm:$0xff] }
 0x8db   :  { %6986 = vmatmul.mubr.bf16.gmra.mrb[152].mxu1 %v14495_v48 }
 0x8dc   :  { %6993 = vmatprep.mubr.bf16.mxu1 %v14319_v45  ;;  %v4746_v45 = vld [vmem:[#allocation4 + $0x2b9] sm:$0xff] }
 0x8dd   :  { %v14511_v17 = vpack.c.bf16 %v4747_v32, %v4746_v45  ;;  %v4755_v32 = vld [vmem:[#allocation4 + $0x321] sm:$0xff] }
 0x8e3   :  { %6994 = vmatmul.mubr.bf16.gmra.mrb[156].mxu1 %v14499_v60 }
 0x8e4   :  { %7001 = vmatprep.mubr.bf16.mxu1 %v14323_v28  ;;  %v4748_v28 = vld [vmem:[#allocation4 + $0x2d1] sm:$0xff] }
 0x8e5   :  { %v14515_v8 = vpack.c.bf16 %v4749_v61, %v4748_v28  ;;  %v4884_v28 = vld [vmem:[#allocation4 + $0x332] sm:$0xff] }
 0x8eb   :  { %7002 = vmatmul.mubr.bf16.gmra.mrb[160].mxu1 %v14503_v63 }
 0x8ec   :  { %7009 = vmatprep.mubr.bf16.mxu1 %v14327_v38  ;;  %v4750_v38 = vld [vmem:[#allocation4 + $0x2e9] sm:$0xff] }
 0x8ed   :  { %v14519_v23 = vpack.c.bf16 %v4751_v3, %v4750_v38  ;;  %v4757_v3 = vld [vmem:[#allocation4 + $0x339] sm:$0xff] }
 0x8f3   :  { %7010 = vmatmul.mubr.bf16.gmra.mrb[164].mxu1 %v14507_v49 }
 0x8f4   :  { %7017 = vmatprep.mubr.bf16.mxu1 %v14331_v5  ;;  %v4752_v5 = vld [vmem:[#allocation4 + $0x301] sm:$0xff] }
 0x8f5   :  { %v14523_v45 = vpack.c.bf16 %v4753_v20, %v4752_v5  ;;  %v4952_v20 = vld [vmem:[#allocation4 + $0x38] sm:$0xff] }
 0x8fb   :  { %7018 = vmatmul.mubr.bf16.gmra.mrb[168].mxu1 %v14511_v17 }
 0x8fc   :  { %7025 = vmatprep.mubr.bf16.mxu1 %v14335_v6  ;;  %v4754_v6 = vld [vmem:[#allocation4 + $0x319] sm:$0xff] }
 0x8fd   :  { %v14527_v61 = vpack.c.bf16 %v4755_v32, %v4754_v6  ;;  %v10039_v6 = vld [vmem:[%s16425_s2 + $0x208] sm:$0xff]  }
 0x8fe   :  { %v4953_v32 = vld [vmem:[#allocation4 + $0x48] sm:$0xff] }
 0x903   :  { %7026 = vmatmul.mubr.bf16.gmra.mrb[172].mxu1 %v14515_v8 }
 0x904   :  { %7033 = vmatprep.mubr.bf16.mxu1 %v14339_v12  ;;  %v4885_v12 = vld [vmem:[#allocation4 + $0x33a] sm:$0xff] }
 0x905   :  { %v14529_v38 = vpack.c.bf16 %v4885_v12, %v4884_v28  ;;  %v4954_v28 = vld [vmem:[#allocation4 + $0x50] sm:$0xff] }
 0x906   :  { %v5016_v12 = vpack.c.bf16 %v4954_v28, %v4953_v32  ;;  %v10044_v32 = vld [vmem:[%s16425_s2 + $0x230] sm:$0xff]  }
 0x907   :  { %v4959_v28 = vld [vmem:[#allocation4 + $0x90] sm:$0xff] }
 0x90b   :  { %7034 = vmatmul.mubr.bf16.gmra.mrb[176].mxu1 %v14519_v23 }
 0x90c   :  { %7041 = vmatprep.mubr.bf16.mxu1 %v14343_v0  ;;  %v4756_v0 = vld [vmem:[#allocation4 + $0x331] sm:$0xff] }
 0x90d   :  { %v14533_v5 = vpack.c.bf16 %v4757_v3, %v4756_v0  ;;  %v10042_v3 = vld [vmem:[%s16425_s2 + $0x220] sm:$0xff]  }
 0x913   :  { %7042 = vmatmul.mubr.bf16.gmra.mrb[180].mxu1 %v14523_v45 }
 0x914   :  { %7049 = vmatprep.mubr.bf16.mxu1 %v14346_v54  ;;  %v4951_v54 = vld [vmem:[#allocation4 + $0x30] sm:$0xff] }
 0x915   :  { %v5015_v53 = vpack.c.bf16 %v4952_v20, %v4951_v54  ;;  %v4957_v54 = vld [vmem:[#allocation4 + $0x78] sm:$0xff]  ;;  %v4958_v20 = vld [vmem:[#allocation4 + $0x80] sm:$0xff] }
 0x91b   :  { %7050 = vmatmul.mubr.bf16.gmra.mrb[184].mxu1 %v14527_v61 }
 0x91c   :  { %7057 = vmatprep.mubr.bf16.mxu1 %v14529_v38 }
 0x923   :  { %7058 = vmatmul.mubr.bf16.gmra.mrb[188].mxu1 %v14533_v5 }
 0x924   :  { %7098 = vmatprep.mubr.bf16.mxu1 %v14360_v21  ;;  %v10040_v21 = vld [vmem:[%s16425_s2 + $0x210] sm:$0xff]  }
 0x92b   :  { %7099 = vmatmul.mubr.bf16.vlgmr.msra.gmra.mrb[64].mxu1 %v5015_v53  ;;  %v10041_v53 = vld [vmem:[%s16425_s2 + $0x218] sm:$0xff]  }
 0x92c   :  { %7106 = vmatprep.mubr.bf16.mxu1 %v14371_v42  ;;  %9108 = vmatpush3.bf16.msra.mxu1 %v14467_v24  ;;  %v4955_v42 = vld [vmem:[#allocation4 + $0x60] sm:$0xff]  ;;  %v4956_v24 = vld [vmem:[#allocation4 + $0x68] sm:$0xff] }
 0x92d   :  { %9101 = vmatprep.subr.bf16.mxu1 %v10039_v6  ;;  %v5017_v0 = vpack.c.bf16 %v4956_v24, %v4955_v42  ;;  %v4962_v42 = vld [vmem:[#allocation4 + $0xb0] sm:$0xff] }
 0x930   :  { %9109 = vmatpush3.bf16.msra.mxu1 %v10039_v6  ;;  %v5018_v6 = vpack.c.bf16 %v4958_v20, %v4957_v54  ;;  %v4966_v54 = vld [vmem:[#allocation4 + $0xe0] sm:$0xff] }
 0x931   :  { %9102 = vmatprep.subr.bf16.mxu1 %v10040_v21 }
 0x933   :  { %7107 = vmatmul.mubr.bf16.gmra.mrb[68].mxu1 %v5016_v12  ;;  %v4960_v12 = vld [vmem:[#allocation4 + $0x98] sm:$0xff] }
 0x934   :  { %7114 = vmatprep.mubr.bf16.mxu1 %v14382_v46  ;;  %9110 = vmatpush3.bf16.msra.mxu1 %v10040_v21  ;;  %v10043_v46 = vld [vmem:[%s16425_s2 + $0x228] sm:$0xff]   ;;  %v5019_v21 = vpack.c.bf16 %v4960_v12, %v4959_v28  ;;  %v4971_v12 = vld [vmem:[#allocation4 + $0x120] sm:$0xff] }
 0x935   :  { %9103 = vmatprep.subr.bf16.mxu1 %v10041_v53 }
 0x938   :  { %9111 = vmatpush3.bf16.msra.mxu1 %v10041_v53  ;;  %v4961_v53 = vld [vmem:[#allocation4 + $0xa8] sm:$0xff] }
 0x939   :  { %9104 = vmatprep.subr.bf16.mxu1 %v10042_v3  ;;  %v5020_v24 = vpack.c.bf16 %v4962_v42, %v4961_v53  ;;  %v4973_v53 = vld [vmem:[#allocation4 + $0x138] sm:$0xff] }
 0x93b   :  { %7115 = vmatmul.mubr.bf16.gmra.mrb[72].mxu1 %v5017_v0  ;;  %v4964_v0 = vld [vmem:[#allocation4 + $0xc8] sm:$0xff] }
 0x93c   :  { %7122 = vmatprep.mubr.bf16.mxu1 %v14393_v51  ;;  %9112 = vmatpush3.bf16.msra.mxu1 %v10042_v3  ;;  %v10045_v51 = vld [vmem:[%s16425_s2 + $0x238] sm:$0xff]  }
 0x93d   :  { %9105 = vmatprep.subr.bf16.mxu1 %v10043_v46 }
 0x940   :  { %9113 = vmatpush3.bf16.msra.mxu1 %v10043_v46  ;;  %v4965_v46 = vld [vmem:[#allocation4 + $0xd8] sm:$0xff] }
 0x941   :  { %9106 = vmatprep.subr.bf16.mxu1 %v10044_v32  ;;  %v5022_v20 = vpack.c.bf16 %v4966_v54, %v4965_v46  ;;  %v5109_v46 = vld [vmem:[#allocation4 + $0x199] sm:$0xff] }
 0x942   :  { %v4979_v54 = vld [vmem:[#allocation4 + $0x180] sm:$0xff] }
 0x943   :  { %7123 = vmatmul.mubr.bf16.gmra.mrb[76].mxu1 %v5018_v6  ;;  %v4967_v6 = vld [vmem:[#allocation4 + $0xf0] sm:$0xff] }
 0x944   :  { %7130 = vmatprep.mubr.bf16.mxu1 %v14404_v37  ;;  %9114 = vmatpush3.bf16.msra.mxu1 %v10044_v32  ;;  %v4963_v37 = vld [vmem:[#allocation4 + $0xc0] sm:$0xff] }
 0x945   :  { %9107 = vmatprep.subr.bf16.mxu1 %v10045_v51  ;;  %v5021_v3 = vpack.c.bf16 %v4964_v0, %v4963_v37  ;;  %v4977_v0 = vld [vmem:[#allocation4 + $0x168] sm:$0xff] }
 0x948   :  { %9115 = vmatpush3.bf16.msra.mxu1 %v10045_v51  ;;  %v4969_v51 = vld [vmem:[#allocation4 + $0x108] sm:$0xff] }
 0x94b   :  { %7131 = vmatmul.mubr.bf16.gmra.mrb[80].mxu1 %v5019_v21 }
 0x94c   :  { %7138 = vmatprep.mubr.bf16.mxu1 %v14410_v47  ;;  %v4968_v47 = vld [vmem:[#allocation4 + $0xf8] sm:$0xff] }
 0x94d   :  { %v5023_v32 = vpack.c.bf16 %v4968_v47, %v4967_v6 }
 0x953   :  { %7139 = vmatmul.mubr.bf16.gmra.mrb[84].mxu1 %v5020_v24  ;;  %v4975_v24 = vld [vmem:[#allocation4 + $0x150] sm:$0xff] }
 0x954   :  { %7146 = vmatprep.mubr.bf16.mxu1 %v14418_v33  ;;  %v4970_v33 = vld [vmem:[#allocation4 + $0x110] sm:$0xff] }
 0x955   :  { %v5024_v28 = vpack.c.bf16 %v4970_v33, %v4969_v51  ;;  %v4984_v33 = vld [vmem:[#allocation4 + $0x1e8] sm:$0xff] }
 0x95b   :  { %7147 = vmatmul.mubr.bf16.gmra.mrb[88].mxu1 %v5021_v3 }
 0x95c   :  { %7154 = vmatprep.mubr.bf16.mxu1 %v14422_v55  ;;  %v4972_v55 = vld [vmem:[#allocation4 + $0x128] sm:$0xff] }
 0x95d   :  { %v5025_v21 = vpack.c.bf16 %v4972_v55, %v4971_v12  ;;  %v4986_v12 = vld [vmem:[#allocation4 + $0x200] sm:$0xff] }
 0x963   :  { %7155 = vmatmul.mubr.bf16.gmra.mrb[92].mxu1 %v5022_v20  ;;  %v4980_v20 = vld [vmem:[#allocation4 + $0x188] sm:$0xff] }
 0x964   :  { %7162 = vmatprep.mubr.bf16.mxu1 %v14430_v57  ;;  %v4974_v57 = vld [vmem:[#allocation4 + $0x140] sm:$0xff]  ;;  %v5029_v47 = vpack.c.bf16 %v4980_v20, %v4979_v54 }
 0x965   :  { %v5026_v42 = vpack.c.bf16 %v4974_v57, %v4973_v53  ;;  %v4988_v53 = vld [vmem:[#allocation4 + $0x218] sm:$0xff]  ;;  %v4999_v20 = vld [vmem:[#allocation4 + $0x2a0] sm:$0xff] }
 0x96b   :  { %7163 = vmatmul.mubr.bf16.gmra.mrb[96].mxu1 %v5023_v32  ;;  %v14573_v32 = vld [vmem:[#allocation4 + $0x8] sm:$0xff] }
 0x96c   :  { %7170 = vmatprep.mubr.bf16.mxu1 %v14434_v14  ;;  %v4976_v14 = vld [vmem:[#allocation4 + $0x158] sm:$0xff] }
 0x96d   :  { %v5027_v37 = vpack.c.bf16 %v4976_v14, %v4975_v24  ;;  %v4991_v14 = vld [vmem:[#allocation4 + $0x240] sm:$0xff] }
 0x973   :  { %7171 = vmatmul.mubr.bf16.gmra.mrb[100].mxu1 %v5024_v28 }
 0x974   :  { %7178 = vmatprep.mubr.bf16.mxu1 %v14442_v39  ;;  %v4978_v39 = vld [vmem:[#allocation4 + $0x170] sm:$0xff] }
 0x975   :  { %v5028_v3 = vpack.c.bf16 %v4978_v39, %v4977_v0  ;;  %v4993_v0 = vld [vmem:[#allocation4 + $0x258] sm:$0xff] }
 0x97b   :  { %7179 = vmatmul.mubr.bf16.gmra.mrb[104].mxu1 %v5025_v21  ;;  %v4987_v21 = vld [vmem:[#allocation4 + $0x210] sm:$0xff] }
 0x97c   :  { %7186 = vmatprep.mubr.bf16.mxu1 %v14446_v16  ;;  %v5110_v16 = vld [vmem:[#allocation4 + $0x1a1] sm:$0xff]  ;;  %v5033_v57 = vpack.c.bf16 %v4988_v53, %v4987_v21 }
 0x97d   :  { %v5158_v6 = vpack.c.bf16 %v5110_v16, %v5109_v46  ;;  %v4997_v16 = vld [vmem:[#allocation4 + $0x288] sm:$0xff] }
 0x983   :  { %7187 = vmatmul.mubr.bf16.gmra.mrb[108].mxu1 %v5026_v42  ;;  %v4989_v42 = vld [vmem:[#allocation4 + $0x228] sm:$0xff] }
 0x984   :  { %7194 = vmatprep.mubr.bf16.mxu1 %v14454_v4  ;;  %v4981_v4 = vld [vmem:[#allocation4 + $0x198] sm:$0xff] }
 0x985   :  { %v5030_v51 = vpack.c.bf16 %v14573_v32, %v4981_v4 }
 0x98b   :  { %7195 = vmatmul.mubr.bf16.gmra.mrb[112].mxu1 %v5027_v37 }
 0x98c   :  { %7202 = vmatprep.mubr.bf16.mxu1 %v14458_v29  ;;  %v4983_v29 = vld [vmem:[#allocation4 + $0x1e0] sm:$0xff] }
 0x98d   :  { %v5031_v28 = vpack.c.bf16 %v4984_v33, %v4983_v29 }
 0x993   :  { %7203 = vmatmul.mubr.bf16.gmra.mrb[116].mxu1 %v5028_v3  ;;  %v4995_v3 = vld [vmem:[#allocation4 + $0x270] sm:$0xff] }
 0x994   :  { %7210 = vmatprep.mubr.bf16.mxu1 %v14470_v30  ;;  %v4985_v30 = vld [vmem:[#allocation4 + $0x1f8] sm:$0xff] }
 0x995   :  { %v5032_v55 = vpack.c.bf16 %v4986_v12, %v4985_v30 }
 0x99b   :  { %7211 = vmatmul.mubr.bf16.gmra.mrb[120].mxu1 %v5029_v47  ;;  %v5001_v47 = vld [vmem:[#allocation4 + $0x2b8] sm:$0xff] }
 0x99c   :  { %7218 = vmatprep.mubr.bf16.mxu1 %v5158_v6 }
 0x9a3   :  { %7219 = vmatmul.mubr.bf16.gmra.mrb[124].mxu1 %v5030_v51  ;;  %v5003_v51 = vld [vmem:[#allocation4 + $0x2d0] sm:$0xff] }
 0x9a4   :  { %7226 = vmatprep.mubr.bf16.mxu1 %v14475_v26  ;;  %v4990_v26 = vld [vmem:[#allocation4 + $0x230] sm:$0xff] }
 0x9a5   :  { %v5034_v24 = vpack.c.bf16 %v4990_v26, %v4989_v42  ;;  %v5008_v42 = vld [vmem:[#allocation4 + $0x308] sm:$0xff] }
 0x9ab   :  { %7227 = vmatmul.mubr.bf16.gmra.mrb[128].mxu1 %v5031_v28  ;;  %v5006_v28 = vld [vmem:[#allocation4 + $0x2f0] sm:$0xff] }
 0x9ac   :  { %7234 = vmatprep.mubr.bf16.mxu1 %v14479_v59  ;;  %v4992_v59 = vld [vmem:[#allocation4 + $0x248] sm:$0xff] }
 0x9ad   :  { %v5035_v37 = vpack.c.bf16 %v4992_v59, %v4991_v14 }
 0x9b3   :  { %7235 = vmatmul.mubr.bf16.gmra.mrb[132].mxu1 %v5032_v55 }
 0x9b4   :  { %7242 = vmatprep.mubr.bf16.mxu1 %v14483_v40  ;;  %v4994_v40 = vld [vmem:[#allocation4 + $0x260] sm:$0xff] }
 0x9b5   :  { %v5036_v39 = vpack.c.bf16 %v4994_v40, %v4993_v0  ;;  %v5010_v0 = vld [vmem:[#allocation4 + $0x320] sm:$0xff] }
 0x9bb   :  { %7243 = vmatmul.mubr.bf16.gmra.mrb[136].mxu1 %v5033_v57  ;;  %v5007_v57 = vld [vmem:[#allocation4 + $0x300] sm:$0xff] }
 0x9bc   :  { %7250 = vmatprep.mubr.bf16.mxu1 %v14487_v10  ;;  %v4996_v10 = vld [vmem:[#allocation4 + $0x278] sm:$0xff]  ;;  %v5043_v59 = vpack.c.bf16 %v5008_v42, %v5007_v57 }
 0x9bd   :  { %v5037_v46 = vpack.c.bf16 %v4996_v10, %v4995_v3 }
 0x9c3   :  { %7251 = vmatmul.mubr.bf16.gmra.mrb[140].mxu1 %v5034_v24 }
 0x9c4   :  { %7258 = vmatprep.mubr.bf16.mxu1 %v14491_v50  ;;  %v4998_v50 = vld [vmem:[#allocation4 + $0x290] sm:$0xff] }
 0x9c5   :  { %v5038_v54 = vpack.c.bf16 %v4998_v50, %v4997_v16  ;;  %v5012_v50 = vld [vmem:[#allocation4 + $0x338] sm:$0xff] }
 0x9cb   :  { %7259 = vmatmul.mubr.bf16.gmra.mrb[144].mxu1 %v5035_v37  ;;  %v5009_v37 = vld [vmem:[#allocation4 + $0x318] sm:$0xff] }
 0x9cc   :  { %7266 = vmatprep.mubr.bf16.mxu1 %v14495_v48  ;;  %v5000_v48 = vld [vmem:[#allocation4 + $0x2a8] sm:$0xff]  ;;  %v5044_v10 = vpack.c.bf16 %v5010_v0, %v5009_v37 }
 0x9cd   :  { %v5039_v6 = vpack.c.bf16 %v5000_v48, %v4999_v20 }
 0x9d3   :  { %7267 = vmatmul.mubr.bf16.gmra.mrb[148].mxu1 %v5036_v39 }
 0x9d4   :  { %7274 = vmatprep.mubr.bf16.mxu1 %v14499_v60  ;;  %v5002_v60 = vld [vmem:[#allocation4 + $0x2c0] sm:$0xff] }
 0x9d5   :  { %v5040_v4 = vpack.c.bf16 %v5002_v60, %v5001_v47  ;;  %v5013_v60 = vld [vmem:[#allocation4 + $0x348] sm:$0xff] }
 0x9db   :  { %7275 = vmatmul.mubr.bf16.gmra.mrb[152].mxu1 %v5037_v46  ;;  %v5142_v46 = vld [vmem:[#allocation4 + $0x351] sm:$0xff] }
 0x9dc   :  { %7282 = vmatprep.mubr.bf16.mxu1 %v14503_v63  ;;  %v5004_v63 = vld [vmem:[#allocation4 + $0x2d8] sm:$0xff] }
 0x9dd   :  { %v5041_v29 = vpack.c.bf16 %v5004_v63, %v5003_v51  ;;  %v5046_v63 = vpack.c.bf16 %v14573_v32, %v5013_v60 }
 0x9e3   :  { %7283 = vmatmul.mubr.bf16.gmra.mrb[156].mxu1 %v5038_v54 }
 0x9e4   :  { %7290 = vmatprep.mubr.bf16.mxu1 %v14507_v49  ;;  %v5005_v49 = vld [vmem:[#allocation4 + $0x2e8] sm:$0xff] }
 0x9e5   :  { %v5042_v53 = vpack.c.bf16 %v5006_v28, %v5005_v49 }
 0x9eb   :  { %7291 = vmatmul.mubr.bf16.gmra.mrb[160].mxu1 %v5039_v6 }
 0x9ec   :  { %7298 = vmatprep.mubr.bf16.mxu1 %v14511_v17 }
 0x9f3   :  { %7299 = vmatmul.mubr.bf16.gmra.mrb[164].mxu1 %v5040_v4 }
 0x9f4   :  { %7306 = vmatprep.mubr.bf16.mxu1 %v14515_v8 }
 0x9fb   :  { %7307 = vmatmul.mubr.bf16.gmra.mrb[168].mxu1 %v5041_v29  ;;  %v5264_v29 = vld [vmem:[#allocation4 + $0x30a] sm:$0xff] }
 0x9fc   :  { %7314 = vmatprep.mubr.bf16.mxu1 %v14519_v23 }
 0x9fe   :  { %v7100_v33 = vpop.f32.mrb[64].mxu1 }
 0x9ff   :  { %v14589_v30 = vadd.f32 %v14053_v2, %v7100_v33  ;;  %v7102_v12 = vpop.f32.mrb[65].mxu1 }
 0xa00   :  { %v7103_v17 = vpop.f32.mrb[66].mxu1 }
 0xa01   :  { %v14592_v55 = vadd.f32 %v14057_v43, %v7103_v17  ;;  %v7105_v21 = vpop.f32.mrb[67].mxu1  ;;  %v5265_v17 = vld [vmem:[#allocation4 + $0x31a] sm:$0xff] }
 0xa02   :  { %v5266_v21 = vld [vmem:[#allocation4 + $0x322] sm:$0xff] }
 0xa03   :  { %7315 = vmatmul.mubr.bf16.gmra.mrb[172].mxu1 %v5042_v53  ;;  %v5300_v42 = vpack.c.bf16 %v5266_v21, %v5265_v17 }
 0xa04   :  { %7322 = vmatprep.mubr.bf16.mxu1 %v14523_v45 }
 0xa06   :  { %v7108_v8 = vpop.f32.mrb[68].mxu1 }
 0xa07   :  { %v14596_v23 = vadd.f32 %v14051_v31, %v7108_v8  ;;  %v7110_v26 = vpop.f32.mrb[69].mxu1 }
 0xa08   :  { %v7111_v24 = vpop.f32.mrb[70].mxu1  ;;  %v5270_v26 = vld [vmem:[#allocation4 + $0x352] sm:$0xff] }
 0xa09   :  { %v14599_v2 = vadd.f32 %v14055_v19, %v7111_v24  ;;  %v7113_v14 = vpop.f32.mrb[71].mxu1  ;;  %v5141_v19 = vld [vmem:[#allocation4 + $0x349] sm:$0xff] }
 0xa0a   :  { %v5174_v48 = vpack.c.bf16 %v5142_v46, %v5141_v19 }
 0xa0b   :  { %7323 = vmatmul.mubr.bf16.gmra.mrb[176].mxu1 %v5043_v59 }
 0xa0c   :  { %7330 = vmatprep.mubr.bf16.mxu1 %v14527_v61  ;;  %v5011_v61 = vld [vmem:[#allocation4 + $0x330] sm:$0xff] }
 0xa0d   :  { %v5045_v47 = vpack.c.bf16 %v5012_v50, %v5011_v61 }
 0xa0e   :  { %v7116_v43 = vpop.f32.mrb[72].mxu1 }
 0xa0f   :  { %v14603_v45 = vadd.f32 %v14064_v52, %v7116_v43  ;;  %v7118_v40 = vpop.f32.mrb[73].mxu1 }
 0xa10   :  { %v7119_v39 = vpop.f32.mrb[74].mxu1 }
 0xa11   :  { %v14606_v31 = vadd.f32 %v14068_v41, %v7119_v39  ;;  %v7121_v3 = vpop.f32.mrb[75].mxu1 }
 0xa13   :  { %7331 = vmatmul.mubr.bf16.gmra.mrb[180].mxu1 %v5044_v10 }
 0xa14   :  { %7338 = vmatprep.mubr.bf16.mxu1 %v14533_v5 }
 0xa16   :  { %v7124_v16 = vpop.f32.mrb[76].mxu1 }
 0xa17   :  { %v14610_v54 = vadd.f32 %v14062_v13, %v7124_v16  ;;  %v7126_v52 = vpop.f32.mrb[77].mxu1  ;;  %v5263_v13 = vld [vmem:[#allocation4 + $0x302] sm:$0xff] }
 0xa18   :  { %v7127_v20 = vpop.f32.mrb[78].mxu1  ;;  %v5299_v28 = vpack.c.bf16 %v5264_v29, %v5263_v13 }
 0xa19   :  { %v14613_v6 = vadd.f32 %v14066_v58, %v7127_v20  ;;  %v7129_v41 = vpop.f32.mrb[79].mxu1 }
 0xa1b   :  { %7339 = vmatmul.mubr.bf16.gmra.mrb[184].mxu1 %v5045_v47 }
 0xa1c   :  { %7346 = vmatprep.mubr.bf16.mxu1 %v5174_v48 }
 0xa1e   :  { %v7132_v5 = vpop.f32.mrb[80].mxu1 }
 0xa1f   :  { %v14616_v4 = vadd.f32 %v14075_v36, %v7132_v5  ;;  %v7134_v51 = vpop.f32.mrb[81].mxu1 }
 0xa20   :  { %v7135_v33 = vpop.f32.mrb[82].mxu1 }
 0xa21   :  { %v14620_v49 = vadd.f32 %v14079_v1, %v7135_v33  ;;  %v7137_v58 = vpop.f32.mrb[83].mxu1  ;;  %v5269_v1 = vld [vmem:[#allocation4 + $0x34a] sm:$0xff] }
 0xa22   :  { %v5302_v43 = vpack.c.bf16 %v5270_v26, %v5269_v1  ;;  %v16743_v33 = vld [vmem:[#allocation10_spill] sm:$0xff] }
 0xa23   :  { %7347 = vmatmul.mubr.bf16.gmra.mrb[188].mxu1 %v5046_v63  ;;  %v16742_v63 = vld [vmem:[#allocation22_spill] sm:$0xff] }
 0xa24   :  { %9092 = vmatprep.mubr.bf16.mxu1 %v5299_v28 }
 0xa26   :  { %v7140_v12 = vpop.f32.mrb[84].mxu1 }
 0xa27   :  { %v14623_v53 = vadd.f32 %v14073_v44, %v7140_v12  ;;  %v7142_v36 = vpop.f32.mrb[85].mxu1 }
 0xa28   :  { %v7143_v8 = vpop.f32.mrb[86].mxu1  ;;  %v16744_v36 = vld [vmem:[#allocation13_spill] sm:$0xff] }
 0xa29   :  { %v14626_v32 = vadd.f32 %v14077_v35, %v7143_v8  ;;  %v7145_v57 = vpop.f32.mrb[87].mxu1 }
 0xa2b   :  { %9093 = vmatmul.mubr.bf16.vlgmr.msra.gmra.mrb[192].mxu1 %v5300_v42 }
 0xa2c   :  { %9096 = vmatprep.mubr.bf16.mxu1 %v14529_v38 }
 0xa2e   :  { %v7148_v24 = vpop.f32.mrb[88].mxu1 }
 0xa2f   :  { %v14630_v14 = vadd.f32 %v14086_v27, %v7148_v24  ;;  %v7150_v59 = vpop.f32.mrb[89].mxu1  ;;  %v16745_v24 = vld [vmem:[#allocation11_spill] sm:$0xff] }
 0xa30   :  { %v7151_v44 = vpop.f32.mrb[90].mxu1 }
 0xa31   :  { %v14633_v37 = vadd.f32 %v14090_v11, %v7151_v44  ;;  %v7153_v0 = vpop.f32.mrb[91].mxu1 }
 0xa33   :  { %9097 = vmatmul.mubr.bf16.gmra.mrb[196].mxu1 %v5302_v43 }
 0xa36   :  { %v7156_v35 = vpop.f32.mrb[92].mxu1 }
 0xa37   :  { %v14636_v40 = vadd.f32 %v14084_v56, %v7156_v35  ;;  %v7158_v39 = vpop.f32.mrb[93].mxu1 }
 0xa38   :  { %v7159_v38 = vpop.f32.mrb[94].mxu1 }
 0xa39   :  { %v14639_v3 = vadd.f32 %v14088_v18, %v7159_v38  ;;  %v7161_v10 = vpop.f32.mrb[95].mxu1 }
 0xa3e   :  { %v7164_v27 = vpop.f32.mrb[96].mxu1 }
 0xa3f   :  { %v14642_v19 = vadd.f32 %v14098_v9, %v7164_v27  ;;  %v7166_v46 = vpop.f32.mrb[97].mxu1  ;;  %v16747_v27 = vld [vmem:[#allocation15_spill] sm:$0xff] }
 0xa40   :  { %v7167_v16 = vpop.f32.mrb[98].mxu1 }
 0xa41   :  { %v14645_v11 = vadd.f32 %v14105_v34, %v7167_v16  ;;  %v7169_v61 = vpop.f32.mrb[99].mxu1 }
 0xa46   :  { %v7172_v50 = vpop.f32.mrb[100].mxu1 }
 0xa47   :  { %v14648_v56 = vadd.f32 %v14096_v22, %v7172_v50  ;;  %v7174_v52 = vpop.f32.mrb[101].mxu1 }
 0xa48   :  { %v7175_v20 = vpop.f32.mrb[102].mxu1  ;;  %v16748_v52 = vld [vmem:[#allocation20_spill] sm:$0xff] }
 0xa49   :  { %v14651_v18 = vadd.f32 %v14100_v15, %v7175_v20  ;;  %v7177_v48 = vpop.f32.mrb[103].mxu1 }
 0xa4e   :  { %v7180_v41 = vpop.f32.mrb[104].mxu1 }
 0xa4f   :  { %v14654_v9 = vadd.f32 %v14114_v7, %v7180_v41  ;;  %v7182_v47 = vpop.f32.mrb[105].mxu1  ;;  %v7644_v7 = vadd.f32 %v14592_v55, %v14589_v30 }
 0xa50   :  { %v7183_v60 = vpop.f32.mrb[106].mxu1 }
 0xa51   :  { %v14657_v34 = vadd.f32 %v14121_v25, %v7183_v60  ;;  %v7185_v5 = vpop.f32.mrb[107].mxu1  ;;  %v7645_v17 = vadd.f32 %v7644_v7, %v14596_v23 }
 0xa52   :  { %v16749_v5 = vld [vmem:[#allocation14_spill] sm:$0xff] }
 0xa53   :  { %v7646_v42 = vadd.f32 %v7645_v17, %v14599_v2 }
 0xa55   :  { %v7647_v1 = vadd.f32 %v7646_v42, %v14603_v45 }
 0xa56   :  { %v7188_v51 = vpop.f32.mrb[108].mxu1 }
 0xa57   :  { %v14660_v22 = vadd.f32 %v16742_v63, %v7188_v51  ;;  %v7190_v13 = vpop.f32.mrb[109].mxu1  ;;  %v7648_v39 = vadd.f32 %v7647_v1, %v14606_v31  ;;  %v16752_v1 = vld [vmem:[#allocation24_spill] sm:$0xff] }
 0xa58   :  { %v7191_v29 = vpop.f32.mrb[110].mxu1 }
 0xa59   :  { %v14663_v15 = vadd.f32 %v16743_v33, %v7191_v29  ;;  %v7193_v58 = vpop.f32.mrb[111].mxu1  ;;  %v7649_v38 = vadd.f32 %v7648_v39, %v14610_v54  ;;  %v16750_v33 = vld [vmem:[#allocation16_spill] sm:$0xff] }
 0xa5b   :  { %v7650_v61 = vadd.f32 %v7649_v38, %v14613_v6 }
 0xa5d   :  { %v7651_v41 = vadd.f32 %v7650_v61, %v14616_v4 }
 0xa5e   :  { %v7196_v28 = vpop.f32.mrb[112].mxu1 }
 0xa5f   :  { %v14668_v12 = vadd.f32 %v14134_v62, %v7196_v28  ;;  %v7198_v25 = vpop.f32.mrb[113].mxu1  ;;  %v16746_v62 = vld [vmem:[#allocation12_spill] sm:$0xff]  ;;  %v7652_v47 = vadd.f32 %v7651_v41, %v14620_v49 }
 0xa60   :  { %v7199_v21 = vpop.f32.mrb[114].mxu1 }
 0xa61   :  { %v14672_v8 = vadd.f32 %v16744_v36, %v7199_v21  ;;  %v7201_v57 = vpop.f32.mrb[115].mxu1  ;;  %v7653_v13 = vadd.f32 %v7652_v47, %v14623_v53  ;;  %v16751_v21 = vld [vmem:[#allocation28_spill] sm:$0xff]  ;;  %v16758_v47 = vld [vmem:[#allocation26_spill] sm:$0xff] }
 0xa63   :  { %v7654_v28 = vadd.f32 %v7653_v13, %v14626_v32 }
 0xa65   :  { %v7655_v25 = vadd.f32 %v7654_v28, %v14630_v14 }
 0xa66   :  { %v7204_v26 = vpop.f32.mrb[116].mxu1 }
 0xa67   :  { %v14677_v59 = vadd.f32 %v16745_v24, %v7204_v26  ;;  %v7206_v43 = vpop.f32.mrb[117].mxu1 }
 0xa68   :  { %v7207_v44 = vpop.f32.mrb[118].mxu1  ;;  %v7656_v43 = vadd.f32 %v7655_v25, %v14633_v37 }
 0xa69   :  { %v14680_v0 = vadd.f32 %v16746_v62, %v7207_v44  ;;  %v7209_v35 = vpop.f32.mrb[119].mxu1 }
 0xa6a   :  { %v7657_v44 = vadd.f32 %v7656_v43, %v14636_v40  ;;  %v16754_v35 = vld [vmem:[#allocation21_spill] sm:$0xff] }
 0xa6e   :  { %v7212_v10 = vpop.f32.mrb[120].mxu1 }
 0xa6f   :  { %v14685_v46 = vadd.f32 %v16747_v27, %v7212_v10  ;;  %v7214_v16 = vpop.f32.mrb[121].mxu1  ;;  %v7658_v10 = vadd.f32 %v7657_v44, %v14639_v3 }
 0xa70   :  { %v7215_v50 = vpop.f32.mrb[122].mxu1  ;;  %v16756_v16 = vld [vmem:[#allocation23_spill] sm:$0xff] }
 0xa71   :  { %v14689_v20 = vadd.f32 %v16748_v52, %v7215_v50  ;;  %v7217_v48 = vpop.f32.mrb[123].mxu1  ;;  %v7659_v52 = vadd.f32 %v7658_v10, %v14642_v19  ;;  %v16766_v10 = vld [vmem:[#allocation17_spill] sm:$0xff] }
 0xa73   :  { %v7660_v48 = vadd.f32 %v7659_v52, %v14645_v11 }
 0xa76   :  { %v7220_v60 = vpop.f32.mrb[124].mxu1 }
 0xa77   :  { %v14694_v51 = vadd.f32 %v16749_v5, %v7220_v60  ;;  %v7222_v63 = vpop.f32.mrb[125].mxu1 }
 0xa78   :  { %v7223_v29 = vpop.f32.mrb[126].mxu1  ;;  %v7661_v63 = vadd.f32 %v7660_v48, %v14648_v56  ;;  %v16768_v48 = vld [vmem:[#allocation19_spill] sm:$0xff] }
 0xa79   :  { %v14698_v58 = vadd.f32 %v16750_v33, %v7223_v29  ;;  %v7225_v7 = vpop.f32.mrb[127].mxu1  ;;  %v16760_v29 = vld [vmem:[#allocation8_spill] sm:$0xff] }
 0xa7a   :  { %v7662_v28 = vadd.f32 %v7661_v63, %v14651_v18 }
 0xa7c   :  { %v7663_v25 = vadd.f32 %v7662_v28, %v14654_v9 }
 0xa7e   :  { %v7228_v17 = vpop.f32.mrb[128].mxu1 }
 0xa7f   :  { %v14703_v36 = vadd.f32 %v16751_v21, %v7228_v17  ;;  %v7230_v57 = vpop.f32.mrb[129].mxu1  ;;  %v16762_v21 = vld [vmem:[#allocation25_spill] sm:$0xff] }
 0xa80   :  { %v7231_v42 = vpop.f32.mrb[130].mxu1 }
 0xa81   :  { %v14706_v26 = vadd.f32 %v16752_v1, %v7231_v42  ;;  %v7233_v24 = vpop.f32.mrb[131].mxu1 }
 0xa82   :  { %v16764_v24 = vld [vmem:[#allocation27_spill] sm:$0xff] }
 0xa83   :  { %16753 = vst [vmem:[#allocation22_spill] sm:$0xff] %v14706_v26 }
 0xa86   :  { %v7236_v62 = vpop.f32.mrb[132].mxu1 }
 0xa87   :  { %v14711_v39 = vadd.f32 %v16754_v35, %v7236_v62  ;;  %v7238_v38 = vpop.f32.mrb[133].mxu1  ;;  %v7664_v62 = vadd.f32 %v7663_v25, %v14657_v34 }
 0xa88   :  { %v7239_v27 = vpop.f32.mrb[134].mxu1 }
 0xa89   :  { %16755 = vst [vmem:[#allocation10_spill] sm:$0xff] %v14711_v39  ;;  %v14715_v61 = vadd.f32 %v16756_v16, %v7239_v27  ;;  %v7241_v50 = vpop.f32.mrb[135].mxu1  ;;  %v7665_v35 = vadd.f32 %v7664_v62, %v14660_v22 }
 0xa8b   :  { %16757 = vst [vmem:[#allocation13_spill] sm:$0xff] %v14715_v61  ;;  %v7666_v50 = vadd.f32 %v7665_v35, %v14663_v15  ;;  %v16774_v35 = vld [vmem:[#allocation30_spill] sm:$0xff] }
 0xa8e   :  { %v7244_v41 = vpop.f32.mrb[136].mxu1 }
 0xa8f   :  { %v14720_v60 = vadd.f32 %v16758_v47, %v7244_v41  ;;  %v7246_v5 = vpop.f32.mrb[137].mxu1 }
 0xa90   :  { %v7247_v13 = vpop.f32.mrb[138].mxu1  ;;  %v7667_v5 = vadd.f32 %v7666_v50, %v14668_v12  ;;  %v16776_v50 = vld [vmem:[#allocation32_spill] sm:$0xff] }
 0xa91   :  { %16759 = vst [vmem:[#allocation11_spill] sm:$0xff] %v14720_v60  ;;  %v14724_v33 = vadd.f32 %v16760_v29, %v7247_v13  ;;  %v7249_v7 = vpop.f32.mrb[139].mxu1  ;;  %v16770_v29 = vld [vmem:[#allocation9_spill] sm:$0xff] }
 0xa92   :  { %v7668_v63 = vadd.f32 %v7667_v5, %v14672_v8 }
 0xa93   :  { %16761 = vst [vmem:[#allocation12_spill] sm:$0xff] %v14724_v33 }
 0xa94   :  { %v7669_v25 = vadd.f32 %v7668_v63, %v14677_v59 }
 0xa96   :  { %v7252_v17 = vpop.f32.mrb[140].mxu1 }
 0xa97   :  { %v14729_v57 = vadd.f32 %v16762_v21, %v7252_v17  ;;  %v7254_v42 = vpop.f32.mrb[141].mxu1  ;;  %v16772_v21 = vld [vmem:[#allocation18_spill] sm:$0xff] }
 0xa98   :  { %v7255_v1 = vpop.f32.mrb[142].mxu1 }
 0xa99   :  { %16763 = vst [vmem:[#allocation15_spill] sm:$0xff] %v14729_v57  ;;  %v14732_v43 = vadd.f32 %v16764_v24, %v7255_v1  ;;  %v7257_v44 = vpop.f32.mrb[143].mxu1  ;;  %v7670_v24 = vadd.f32 %v7669_v25, %v14680_v0 }
 0xa9b   :  { %16765 = vst [vmem:[#allocation20_spill] sm:$0xff] %v14732_v43  ;;  %v7671_v44 = vadd.f32 %v7670_v24, %v14685_v46 }
 0xa9e   :  { %v7260_v38 = vpop.f32.mrb[144].mxu1 }
 0xa9f   :  { %v14737_v27 = vadd.f32 %v16766_v10, %v7260_v38  ;;  %v7262_v16 = vpop.f32.mrb[145].mxu1 }
 0xaa0   :  { %v7263_v52 = vpop.f32.mrb[146].mxu1 }
 0xaa1   :  { %16767 = vst [vmem:[#allocation14_spill] sm:$0xff] %v14737_v27  ;;  %v14741_v41 = vadd.f32 %v16768_v48, %v7263_v52  ;;  %v7265_v47 = vpop.f32.mrb[147].mxu1 }
 0xaa2   :  { %v7672_v47 = vadd.f32 %v7671_v44, %v14689_v20  ;;  %v16782_v44 = vld [vmem:[#allocation34_spill] sm:$0xff] }
 0xaa3   :  { %16769 = vst [vmem:[#allocation16_spill] sm:$0xff] %v14741_v41 }
 0xaa4   :  { %v7673_v5 = vadd.f32 %v7672_v47, %v14694_v51 }
 0xaa6   :  { %v7268_v13 = vpop.f32.mrb[148].mxu1  ;;  %v7674_v25 = vadd.f32 %v7673_v5, %v14698_v58 }
 0xaa7   :  { %v14746_v7 = vadd.f32 %v16770_v29, %v7268_v13  ;;  %v7270_v28 = vpop.f32.mrb[149].mxu1  ;;  %v16778_v13 = vld [vmem:[#allocation29_spill] sm:$0xff] }
 0xaa8   :  { %v7271_v17 = vpop.f32.mrb[150].mxu1 }
 0xaa9   :  { %16771 = vst [vmem:[#allocation28_spill] sm:$0xff] %v14746_v7  ;;  %v14750_v42 = vadd.f32 %v16772_v21, %v7271_v17  ;;  %v7273_v1 = vpop.f32.mrb[151].mxu1  ;;  %v16780_v21 = vld [vmem:[#allocation31_spill] sm:$0xff] }
 0xaab   :  { %16773 = vst [vmem:[#allocation24_spill] sm:$0xff] %v14750_v42 }
 0xaae   :  { %v7276_v62 = vpop.f32.mrb[152].mxu1 }
 0xaaf   :  { %v14755_v38 = vadd.f32 %v16774_v35, %v7276_v62  ;;  %v7278_v10 = vpop.f32.mrb[153].mxu1  ;;  %v7675_v62 = vadd.f32 %v7674_v25, %v14703_v36  ;;  %v16786_v25 = vld [vmem:[#allocation33_spill] sm:$0xff] }
 0xab0   :  { %v7279_v16 = vpop.f32.mrb[154].mxu1 }
 0xab1   :  { %16775 = vst [vmem:[#allocation21_spill] sm:$0xff] %v14755_v38  ;;  %v14758_v52 = vadd.f32 %v16776_v50, %v7279_v16  ;;  %v7281_v48 = vpop.f32.mrb[155].mxu1  ;;  %v7676_v35 = vadd.f32 %v7675_v62, %v14706_v26 }
 0xab3   :  { %16777 = vst [vmem:[#allocation23_spill] sm:$0xff] %v14758_v52  ;;  %v7677_v48 = vadd.f32 %v7676_v35, %v14711_v39 }
 0xab6   :  { %v7284_v63 = vpop.f32.mrb[156].mxu1 }
 0xab7   :  { %v14763_v29 = vadd.f32 %v16778_v13, %v7284_v63  ;;  %v7286_v28 = vpop.f32.mrb[157].mxu1  ;;  %v16784_v63 = vld [vmem:[#allocation36_spill] sm:$0xff] }
 0xab8   :  { %v7287_v17 = vpop.f32.mrb[158].mxu1  ;;  %v7678_v28 = vadd.f32 %v7677_v48, %v14715_v61 }
 0xab9   :  { %16779 = vst [vmem:[#allocation26_spill] sm:$0xff] %v14763_v29  ;;  %v14767_v1 = vadd.f32 %v16780_v21, %v7287_v17  ;;  %v7289_v24 = vpop.f32.mrb[159].mxu1 }
 0xaba   :  { %v7679_v17 = vadd.f32 %v7678_v28, %v14720_v60 }
 0xabb   :  { %16781 = vst [vmem:[#allocation8_spill] sm:$0xff] %v14767_v1 }
 0xabc   :  { %v7680_v35 = vadd.f32 %v7679_v17, %v14724_v33  ;;  %v16794_v17 = vld [vmem:[#allocation37_spill] sm:$0xff] }
 0xabe   :  { %v7292_v10 = vpop.f32.mrb[160].mxu1 }
 0xabf   :  { %v14772_v16 = vadd.f32 %v16782_v44, %v7292_v10  ;;  %v7294_v50 = vpop.f32.mrb[161].mxu1  ;;  %v16788_v10 = vld [vmem:[#allocation35_spill] sm:$0xff] }
 0xac0   :  { %v7295_v47 = vpop.f32.mrb[162].mxu1 }
 0xac1   :  { %16783 = vst [vmem:[#allocation25_spill] sm:$0xff] %v14772_v16  ;;  %v14776_v13 = vadd.f32 %v16784_v63, %v7295_v47  ;;  %v7297_v5 = vpop.f32.mrb[163].mxu1  ;;  %v7681_v47 = vadd.f32 %v7680_v35, %v14729_v57 }
 0xac2   :  { %v16790_v5 = vld [vmem:[#allocation38_spill] sm:$0xff] }
 0xac3   :  { %16785 = vst [vmem:[#allocation27_spill] sm:$0xff] %v14776_v13  ;;  %v7682_v28 = vadd.f32 %v7681_v47, %v14732_v43 }
 0xac6   :  { %v7300_v21 = vpop.f32.mrb[164].mxu1 }
 0xac7   :  { %v14781_v24 = vadd.f32 %v16786_v25, %v7300_v21  ;;  %v7302_v62 = vpop.f32.mrb[165].mxu1  ;;  %v16792_v21 = vld [vmem:[#allocation40_spill] sm:$0xff] }
 0xac8   :  { %v7303_v26 = vpop.f32.mrb[166].mxu1 }
 0xac9   :  { %16787 = vst [vmem:[#allocation17_spill] sm:$0xff] %v14781_v24  ;;  %v14784_v44 = vadd.f32 %v16788_v10, %v7303_v26  ;;  %v7305_v50 = vpop.f32.mrb[167].mxu1  ;;  %v7683_v26 = vadd.f32 %v7682_v28, %v14737_v27 }
 0xacb   :  { %16789 = vst [vmem:[#allocation19_spill] sm:$0xff] %v14784_v44  ;;  %v7684_v10 = vadd.f32 %v7683_v26, %v14741_v41 }
 0xace   :  { %v7308_v63 = vpop.f32.mrb[168].mxu1 }
 0xacf   :  { %v14789_v39 = vadd.f32 %v16790_v5, %v7308_v63  ;;  %v7310_v48 = vpop.f32.mrb[169].mxu1  ;;  %v7685_v63 = vadd.f32 %v7684_v10, %v14746_v7 }
 0xad0   :  { %v7311_v60 = vpop.f32.mrb[170].mxu1  ;;  %v16796_v48 = vld [vmem:[#allocation39_spill] sm:$0xff] }
 0xad1   :  { %16791 = vst [vmem:[#allocation9_spill] sm:$0xff] %v14789_v39  ;;  %v14793_v25 = vadd.f32 %v16792_v21, %v7311_v60  ;;  %v7313_v62 = vpop.f32.mrb[171].mxu1  ;;  %v7686_v60 = vadd.f32 %v7685_v63, %v14750_v42 }
 0xad3   :  { %16793 = vst [vmem:[#allocation18_spill] sm:$0xff] %v14793_v25  ;;  %v7687_v21 = vadd.f32 %v7686_v60, %v14755_v38 }
 0xad5   :  { %v7688_v41 = vadd.f32 %v7687_v21, %v14758_v52 }
 0xad6   :  { %v7316_v50 = vpop.f32.mrb[172].mxu1 }
 0xad7   :  { %v14798_v33 = vadd.f32 %v16794_v17, %v7316_v50  ;;  %v7318_v35 = vpop.f32.mrb[173].mxu1  ;;  %v7689_v50 = vadd.f32 %v7688_v41, %v14763_v29 }
 0xad8   :  { %v7319_v5 = vpop.f32.mrb[174].mxu1 }
 0xad9   :  { %16795 = vst [vmem:[#allocation30_spill] sm:$0xff] %v14798_v33  ;;  %v14802_v57 = vadd.f32 %v16796_v48, %v7319_v5  ;;  %v7321_v47 = vpop.f32.mrb[175].mxu1  ;;  %v7690_v10 = vadd.f32 %v7689_v50, %v14767_v1 }
 0xadb   :  { %v7691_v48 = vadd.f32 %v7690_v10, %v14772_v16 }
 0xadd   :  { %v7692_v63 = vadd.f32 %v7691_v48, %v14776_v13 }
 0xade   :  { %v7324_v62 = vpop.f32.mrb[176].mxu1 }
 0xadf   :  { %v7326_v28 = vpop.f32.mrb[177].mxu1 }
 0xae0   :  { %v7327_v27 = vpop.f32.mrb[178].mxu1  ;;  %v7693_v28 = vadd.f32 %v7692_v63, %v14781_v24 }
 0xae1   :  { %v7329_v26 = vpop.f32.mrb[179].mxu1 }
 0xae2   :  { %v7694_v21 = vadd.f32 %v7693_v28, %v14784_v44 }
 0xae4   :  { %v7695_v41 = vadd.f32 %v7694_v21, %v14789_v39 }
 0xae6   :  { %v7332_v17 = vpop.f32.mrb[180].mxu1 }
 0xae7   :  { %v7334_v35 = vpop.f32.mrb[181].mxu1 }
 0xae8   :  { %v7335_v7 = vpop.f32.mrb[182].mxu1 }
 0xae9   :  { %v7337_v5 = vpop.f32.mrb[183].mxu1 }
 0xaea   :  { %v7696_v5 = vadd.f32 %v7695_v41, %v14793_v25 }
 0xaec   :  { %v7697_v10 = vadd.f32 %v7696_v5, %v14798_v33 }
 0xaee   :  { %v7340_v47 = vpop.f32.mrb[184].mxu1 }
 0xaef   :  { %v7342_v60 = vpop.f32.mrb[185].mxu1 }
 0xaf0   :  { %v7343_v38 = vpop.f32.mrb[186].mxu1  ;;  %v7698_v60 = vadd.f32 %v7697_v10, %v14802_v57 }
 0xaf1   :  { %v7345_v26 = vpop.f32.mrb[187].mxu1 }
 0xaf6   :  { %v7348_v29 = vpop.f32.mrb[188].mxu1 }
 0xaf7   :  { %v7350_v35 = vpop.f32.mrb[189].mxu1 }
 0xaf8   :  { %v7351_v52 = vpop.f32.mrb[190].mxu1 }
 0xaf9   :  { %v7353_v50 = vpop.f32.mrb[191].mxu1 }
 0xafe   :  { %v9094_v16 = vpop.f32.mrb[192].mxu1 }
 0xaff   :  { %v7622_v48 = vadd.f32 %v9094_v16, %v7332_v17  ;;  %v7613_v13 = vpop.f32.mrb[193].mxu1 }
 0xb00   :  { %v7614_v63 = vadd.f32 %v7613_v13, %v7324_v62  ;;  %v9095_v24 = vpop.f32.mrb[194].mxu1 }
 0xb01   :  { %v7625_v26 = vadd.f32 %v9095_v24, %v7335_v7  ;;  %v7616_v1 = vpop.f32.mrb[195].mxu1 }
 0xb02   :  { %v7699_v28 = vadd.f32 %v7698_v60, %v7614_v63  ;;  %v7617_v44 = vadd.f32 %v7616_v1, %v7327_v27 }
 0xb04   :  { %v7700_v21 = vadd.f32 %v7699_v28, %v7617_v44 }
 0xb06   :  { %v7701_v39 = vadd.f32 %v7700_v21, %v7622_v48  ;;  %v9098_v35 = vpop.f32.mrb[196].mxu1 }
 0xb07   :  { %v7638_v42 = vadd.f32 %v9098_v35, %v7348_v29  ;;  %v7629_v50 = vpop.f32.mrb[197].mxu1 }
 0xb08   :  { %v7630_v43 = vadd.f32 %v7629_v50, %v7340_v47  ;;  %v7702_v41 = vadd.f32 %v7701_v39, %v7625_v26  ;;  %v9099_v25 = vpop.f32.mrb[198].mxu1 }
 0xb09   :  { %v7641_v5 = vadd.f32 %v9099_v25, %v7351_v52  ;;  %v7632_v33 = vpop.f32.mrb[199].mxu1 }
 0xb0a   :  { %v7703_v16 = vadd.f32 %v7702_v41, %v7630_v43  ;;  %v7633_v17 = vadd.f32 %v7632_v33, %v7343_v38 }
 0xb0c   :  { %v7704_v61 = vadd.f32 %v7703_v16, %v7633_v17 }
 0xb0e   :  { %v7705_v10 = vadd.f32 %v7704_v61, %v7638_v42 }
 0xb10   :  { %v7706_v13 = vadd.f32 %v7705_v10, %v7641_v5 }
 0xb12   :  { %v7707_v62 = vrot.slane %v7706_v13, 4 }
 0xb14   :  { %v7708_v7 = vadd.f32 %v7707_v62, %v7706_v13 }
 0xb16   :  { %v7709_v24 = vrot.slane %v7708_v7, 2 }
 0xb18   :  { %v7710_v60 = vadd.f32 %v7709_v24, %v7708_v7 }
 0xb1a   :  { %v7711_v27 = vrot.slane %v7710_v60, 1 }
 0xb1c   :  { %v7712_v1 = vadd.f32 %v7711_v27, %v7710_v60 }
 0xb1e   :  { %v14817_v28 = vmul.f32 0.001953125, %v7712_v1 }
 0xb20   :  { %v14820_v29 = vsub.f32 %v7614_v63, %v14817_v28  ;;  %v14823_v39 = vsub.f32 %v7617_v44, %v14817_v28  ;;  %v14826_v52 = vsub.f32 %v7622_v48, %v14817_v28  ;;  %v14829_v61 = vsub.f32 %v7625_v26, %v14817_v28 }
 0xb21   :  { %v14832_v33 = vsub.f32 %v7630_v43, %v14817_v28  ;;  %v14835_v38 = vsub.f32 %v7633_v17, %v14817_v28  ;;  %v14838_v25 = vsub.f32 %v7638_v42, %v14817_v28  ;;  %v14841_v47 = vsub.f32 %v7641_v5, %v14817_v28 }
 0xb22   :  { %16797 = vst [vmem:[#allocation32_spill] sm:$0xff] %v14820_v29  ;;  %16798 = vst [vmem:[#allocation29_spill] sm:$0xff] %v14823_v39  ;;  %v14845_v44 = vsub.f32 %v14589_v30, %v14817_v28  ;;  %v14849_v48 = vsub.f32 %v14592_v55, %v14817_v28  ;;  %v14853_v43 = vsub.f32 %v14596_v23, %v14817_v28 }
 0xb23   :  { %16799 = vst [vmem:[#allocation31_spill] sm:$0xff] %v14826_v52  ;;  %16800 = vst [vmem:[#allocation34_spill] sm:$0xff] %v14829_v61  ;;  %v14861_v26 = vsub.f32 %v14599_v2, %v14817_v28  ;;  %v14865_v30 = vsub.f32 %v14603_v45, %v14817_v28  ;;  %v14871_v23 = vsub.f32 %v14606_v31, %v14817_v28 }
 0xb24   :  { %16801 = vst [vmem:[#allocation36_spill] sm:$0xff] %v14832_v33  ;;  %v7778_v63 = vmul.f32 %v14845_v44, %v14845_v44  ;;  %v7779_v42 = vmul.f32 %v14849_v48, %v14849_v48  ;;  %v7780_v55 = vmul.f32 %v14853_v43, %v14853_v43  ;;  %v14877_v2 = vsub.f32 %v14610_v54, %v14817_v28 }
 0xb25   :  { %v7781_v35 = vmul.f32 %v14861_v26, %v14861_v26  ;;  %v7782_v45 = vmul.f32 %v14865_v30, %v14865_v30  ;;  %v14883_v5 = vsub.f32 %v14613_v6, %v14817_v28  ;;  %v7783_v31 = vmul.f32 %v14871_v23, %v14871_v23 }
 0xb26   :  { %v7842_v21 = vadd.f32 %v7779_v42, %v7778_v63  ;;  %v14889_v17 = vsub.f32 %v14616_v4, %v14817_v28  ;;  %v7784_v54 = vmul.f32 %v14877_v2, %v14877_v2  ;;  %v14895_v13 = vsub.f32 %v14620_v49, %v14817_v28 }
 0xb27   :  { %v7785_v6 = vmul.f32 %v14883_v5, %v14883_v5  ;;  %v14901_v7 = vsub.f32 %v14623_v53, %v14817_v28  ;;  %v14907_v60 = vsub.f32 %v14626_v32, %v14817_v28  ;;  %v14913_v1 = vsub.f32 %v14630_v14, %v14817_v28 }
 0xb28   :  { %v7843_v50 = vadd.f32 %v7842_v21, %v7780_v55  ;;  %v7786_v4 = vmul.f32 %v14889_v17, %v14889_v17  ;;  %v7787_v49 = vmul.f32 %v14895_v13, %v14895_v13  ;;  %v14919_v42 = vsub.f32 %v14633_v37, %v14817_v28 }
 0xb29   :  { %v7788_v53 = vmul.f32 %v14901_v7, %v14901_v7  ;;  %v7789_v32 = vmul.f32 %v14907_v60, %v14907_v60  ;;  %v14925_v21 = vsub.f32 %v14636_v40, %v14817_v28  ;;  %v7790_v14 = vmul.f32 %v14913_v1, %v14913_v1 }
 0xb2a   :  { %v7844_v41 = vadd.f32 %v7843_v50, %v7781_v35  ;;  %v14931_v50 = vsub.f32 %v14639_v3, %v14817_v28  ;;  %v7791_v37 = vmul.f32 %v14919_v42, %v14919_v42 }
 0xb2b   :  { %v7792_v40 = vmul.f32 %v14925_v21, %v14925_v21 }
 0xb2c   :  { %v7845_v16 = vadd.f32 %v7844_v41, %v7782_v45  ;;  %v14937_v41 = vsub.f32 %v14642_v19, %v14817_v28  ;;  %v7793_v3 = vmul.f32 %v14931_v50, %v14931_v50 }
 0xb2e   :  { %v7846_v10 = vadd.f32 %v7845_v16, %v7783_v31  ;;  %v14943_v16 = vsub.f32 %v14645_v11, %v14817_v28  ;;  %v7794_v19 = vmul.f32 %v14937_v41, %v14937_v41 }
 0xb30   :  { %v7847_v62 = vadd.f32 %v7846_v10, %v7784_v54  ;;  %v14949_v10 = vsub.f32 %v14648_v56, %v14817_v28  ;;  %v7795_v11 = vmul.f32 %v14943_v16, %v14943_v16 }
 0xb32   :  { %v7848_v24 = vadd.f32 %v7847_v62, %v7785_v6  ;;  %v14955_v62 = vsub.f32 %v14651_v18, %v14817_v28  ;;  %v7796_v56 = vmul.f32 %v14949_v10, %v14949_v10 }
 0xb34   :  { %v7849_v27 = vadd.f32 %v7848_v24, %v7786_v4  ;;  %v14961_v24 = vsub.f32 %v14654_v9, %v14817_v28  ;;  %v7797_v18 = vmul.f32 %v14955_v62, %v14955_v62 }
 0xb36   :  { %v7850_v63 = vadd.f32 %v7849_v27, %v7787_v49  ;;  %v14967_v27 = vsub.f32 %v14657_v34, %v14817_v28  ;;  %v7798_v9 = vmul.f32 %v14961_v24, %v14961_v24 }
 0xb38   :  { %v7851_v55 = vadd.f32 %v7850_v63, %v7788_v53  ;;  %v14973_v63 = vsub.f32 %v14660_v22, %v14817_v28  ;;  %v7799_v34 = vmul.f32 %v14967_v27, %v14967_v27 }
 0xb3a   :  { %v7852_v35 = vadd.f32 %v7851_v55, %v7789_v32  ;;  %v14979_v55 = vsub.f32 %v14663_v15, %v14817_v28  ;;  %v7800_v22 = vmul.f32 %v14973_v63, %v14973_v63 }
 0xb3c   :  { %v7853_v45 = vadd.f32 %v7852_v35, %v7790_v14  ;;  %v14985_v35 = vsub.f32 %v14668_v12, %v14817_v28  ;;  %v7801_v15 = vmul.f32 %v14979_v55, %v14979_v55 }
 0xb3e   :  { %v7854_v31 = vadd.f32 %v7853_v45, %v7791_v37  ;;  %v14991_v45 = vsub.f32 %v14672_v8, %v14817_v28  ;;  %v7802_v12 = vmul.f32 %v14985_v35, %v14985_v35 }
 0xb40   :  { %v7855_v54 = vadd.f32 %v7854_v31, %v7792_v40  ;;  %v14997_v31 = vsub.f32 %v14677_v59, %v14817_v28  ;;  %v7803_v8 = vmul.f32 %v14991_v45, %v14991_v45 }
 0xb42   :  { %v7856_v6 = vadd.f32 %v7855_v54, %v7793_v3  ;;  %v15003_v54 = vsub.f32 %v14680_v0, %v14817_v28  ;;  %v7804_v59 = vmul.f32 %v14997_v31, %v14997_v31 }
 0xb44   :  { %v7857_v4 = vadd.f32 %v7856_v6, %v7794_v19  ;;  %v15009_v6 = vsub.f32 %v14685_v46, %v14817_v28  ;;  %v7805_v0 = vmul.f32 %v15003_v54, %v15003_v54 }
 0xb46   :  { %v7858_v49 = vadd.f32 %v7857_v4, %v7795_v11  ;;  %v15015_v4 = vsub.f32 %v14689_v20, %v14817_v28  ;;  %v7806_v46 = vmul.f32 %v15009_v6, %v15009_v6 }
 0xb48   :  { %v7859_v53 = vadd.f32 %v7858_v49, %v7796_v56  ;;  %v15021_v49 = vsub.f32 %v14694_v51, %v14817_v28  ;;  %v7807_v20 = vmul.f32 %v15015_v4, %v15015_v4 }
 0xb4a   :  { %v7860_v32 = vadd.f32 %v7859_v53, %v7797_v18  ;;  %v15027_v53 = vsub.f32 %v14698_v58, %v14817_v28  ;;  %v7808_v51 = vmul.f32 %v15021_v49, %v15021_v49 }
 0xb4c   :  { %v7861_v14 = vadd.f32 %v7860_v32, %v7798_v9  ;;  %v15033_v32 = vsub.f32 %v14703_v36, %v14817_v28  ;;  %v7809_v58 = vmul.f32 %v15027_v53, %v15027_v53 }
 0xb4e   :  { %v7862_v37 = vadd.f32 %v7861_v14, %v7799_v34  ;;  %v16802_v14 = vld [vmem:[#allocation22_spill] sm:$0xff]  ;;  %v7810_v36 = vmul.f32 %v15033_v32, %v15033_v32 }
 0xb50   :  { %v7863_v40 = vadd.f32 %v7862_v37, %v7800_v22  ;;  %v15039_v22 = vsub.f32 %v16802_v14, %v14817_v28 }
 0xb52   :  { %v7864_v3 = vadd.f32 %v7863_v40, %v7801_v15  ;;  %v16803_v15 = vld [vmem:[#allocation10_spill] sm:$0xff] }
 0xb53   :  { %v15045_v40 = vsub.f32 %v16803_v15, %v14817_v28  ;;  %v16809_v15 = vld [vmem:[#allocation20_spill] sm:$0xff] }
 0xb54   :  { %v7865_v19 = vadd.f32 %v7864_v3, %v7802_v12  ;;  %v16804_v3 = vld [vmem:[#allocation13_spill] sm:$0xff] }
 0xb56   :  { %v7866_v11 = vadd.f32 %v7865_v19, %v7803_v8  ;;  %v15051_v8 = vsub.f32 %v16804_v3, %v14817_v28  ;;  %v7811_v19 = vmul.f32 %v15039_v22, %v15039_v22 }
 0xb58   :  { %v7867_v56 = vadd.f32 %v7866_v11, %v7804_v59  ;;  %v16805_v11 = vld [vmem:[#allocation11_spill] sm:$0xff] }
 0xb5a   :  { %v7868_v18 = vadd.f32 %v7867_v56, %v7805_v0  ;;  %v15057_v0 = vsub.f32 %v16805_v11, %v14817_v28  ;;  %v7812_v56 = vmul.f32 %v15045_v40, %v15045_v40 }
 0xb5c   :  { %v7869_v9 = vadd.f32 %v7868_v18, %v7806_v46  ;;  %v16806_v18 = vld [vmem:[#allocation12_spill] sm:$0xff] }
 0xb5e   :  { %v7870_v34 = vadd.f32 %v7869_v9, %v7807_v20  ;;  %v15063_v20 = vsub.f32 %v16806_v18, %v14817_v28  ;;  %v7813_v9 = vmul.f32 %v15051_v8, %v15051_v8 }
 0xb60   :  { %v7871_v37 = vadd.f32 %v7870_v34, %v7808_v51  ;;  %v16807_v34 = vld [vmem:[#allocation15_spill] sm:$0xff] }
 0xb61   :  { %v15069_v14 = vsub.f32 %v16807_v34, %v14817_v28  ;;  %v16815_v34 = vld [vmem:[#allocation28_spill] sm:$0xff] }
 0xb62   :  { %v7872_v12 = vadd.f32 %v7871_v37, %v7809_v58  ;;  %v7814_v58 = vmul.f32 %v15057_v0, %v15057_v0 }
 0xb63   :  { %16808 = vst [vmem:[#allocation33_spill] sm:$0xff] %v15069_v14  ;;  %v7816_v11 = vmul.f32 %v15069_v14, %v15069_v14 }
 0xb64   :  { %v7873_v59 = vadd.f32 %v7872_v12, %v7810_v36  ;;  %v15075_v36 = vsub.f32 %v16809_v15, %v14817_v28  ;;  %v7815_v12 = vmul.f32 %v15063_v20, %v15063_v20  ;;  %v15093_v15 = vsub.f32 %v16815_v34, %v14817_v28  ;;  %v16821_v34 = vld [vmem:[#allocation23_spill] sm:$0xff] }
 0xb66   :  { %v7874_v46 = vadd.f32 %v7873_v59, %v7811_v19  ;;  %16810 = vst [vmem:[#allocation35_spill] sm:$0xff] %v15075_v36  ;;  %v16811_v19 = vld [vmem:[#allocation14_spill] sm:$0xff]  ;;  %16816 = vst [vmem:[#allocation37_spill] sm:$0xff] %v15093_v15 }
 0xb67   :  { %v15081_v59 = vsub.f32 %v16811_v19, %v14817_v28  ;;  %v16817_v19 = vld [vmem:[#allocation24_spill] sm:$0xff] }
 0xb68   :  { %v7875_v51 = vadd.f32 %v7874_v46, %v7812_v56  ;;  %v16813_v46 = vld [vmem:[#allocation16_spill] sm:$0xff]  ;;  %v15099_v14 = vsub.f32 %v16817_v19, %v14817_v28  ;;  %v16823_v19 = vld [vmem:[#allocation26_spill] sm:$0xff] }
 0xb69   :  { %16812 = vst [vmem:[#allocation38_spill] sm:$0xff] %v15081_v59  ;;  %v15087_v18 = vsub.f32 %v16813_v46, %v14817_v28  ;;  %v16819_v46 = vld [vmem:[#allocation21_spill] sm:$0xff] }
 0xb6a   :  { %v7876_v37 = vadd.f32 %v7875_v51, %v7813_v9  ;;  %v7817_v9 = vmul.f32 %v15075_v36, %v15075_v36  ;;  %16818 = vst [vmem:[#allocation39_spill] sm:$0xff] %v15099_v14  ;;  %v15105_v36 = vsub.f32 %v16819_v46, %v14817_v28  ;;  %v16825_v46 = vld [vmem:[#allocation8_spill] sm:$0xff] }
 0xb6b   :  { %16814 = vst [vmem:[#allocation40_spill] sm:$0xff] %v15087_v18 }
 0xb6c   :  { %v7877_v3 = vadd.f32 %v7876_v37, %v7814_v58  ;;  %v7818_v58 = vmul.f32 %v15081_v59, %v15081_v59  ;;  %16820 = vst [vmem:[#allocation22_spill] sm:$0xff] %v15105_v36  ;;  %v15111_v59 = vsub.f32 %v16821_v34, %v14817_v28  ;;  %v16827_v34 = vld [vmem:[#allocation25_spill] sm:$0xff] }
 0xb6e   :  { %v7878_v56 = vadd.f32 %v7877_v3, %v7815_v12  ;;  %v7819_v12 = vmul.f32 %v15087_v18, %v15087_v18  ;;  %16822 = vst [vmem:[#allocation10_spill] sm:$0xff] %v15111_v59  ;;  %v15117_v18 = vsub.f32 %v16823_v19, %v14817_v28  ;;  %v16829_v19 = vld [vmem:[#allocation27_spill] sm:$0xff] }
 0xb70   :  { %v7879_v51 = vadd.f32 %v7878_v56, %v7816_v11  ;;  %v7820_v11 = vmul.f32 %v15093_v15, %v15093_v15  ;;  %16824 = vst [vmem:[#allocation13_spill] sm:$0xff] %v15117_v18  ;;  %v15123_v15 = vsub.f32 %v16825_v46, %v14817_v28  ;;  %v16831_v46 = vld [vmem:[#allocation17_spill] sm:$0xff] }
 0xb72   :  { %v7880_v37 = vadd.f32 %v7879_v51, %v7817_v9  ;;  %v7821_v9 = vmul.f32 %v15099_v14, %v15099_v14  ;;  %16826 = vst [vmem:[#allocation11_spill] sm:$0xff] %v15123_v15  ;;  %v15129_v14 = vsub.f32 %v16827_v34, %v14817_v28  ;;  %v16832_v34 = vld [vmem:[#allocation19_spill] sm:$0xff] }
 0xb74   :  { %v7881_v3 = vadd.f32 %v7880_v37, %v7818_v58  ;;  %v7822_v58 = vmul.f32 %v15105_v36, %v15105_v36  ;;  %16828 = vst [vmem:[#allocation12_spill] sm:$0xff] %v15129_v14  ;;  %v15135_v36 = vsub.f32 %v16829_v19, %v14817_v28  ;;  %v16833_v19 = vld [vmem:[#allocation9_spill] sm:$0xff] }
 0xb76   :  { %v7882_v56 = vadd.f32 %v7881_v3, %v7819_v12  ;;  %v7823_v12 = vmul.f32 %v15111_v59, %v15111_v59  ;;  %16830 = vst [vmem:[#allocation15_spill] sm:$0xff] %v15135_v36  ;;  %v15141_v59 = vsub.f32 %v16831_v46, %v14817_v28  ;;  %v16835_v46 = vld [vmem:[#allocation18_spill] sm:$0xff] }
 0xb78   :  { %v7883_v51 = vadd.f32 %v7882_v56, %v7820_v11  ;;  %v7824_v11 = vmul.f32 %v15117_v18, %v15117_v18  ;;  %v15147_v18 = vsub.f32 %v16832_v34, %v14817_v28  ;;  %v16836_v34 = vld [vmem:[#allocation30_spill] sm:$0xff] }
 0xb7a   :  { %v7884_v37 = vadd.f32 %v7883_v51, %v7821_v9  ;;  %v7825_v9 = vmul.f32 %v15123_v15, %v15123_v15  ;;  %v15153_v15 = vsub.f32 %v16833_v19, %v14817_v28  ;;  %v15171_v19 = vsub.f32 %v14802_v57, %v14817_v28 }
 0xb7b   :  { %v7835_v57 = vmul.f32 %v14823_v39, %v14823_v39 }
 0xb7c   :  { %v7885_v3 = vadd.f32 %v7884_v37, %v7822_v58  ;;  %v7826_v58 = vmul.f32 %v15129_v14, %v15129_v14  ;;  %16834 = vst [vmem:[#allocation20_spill] sm:$0xff] %v15153_v15  ;;  %v15159_v14 = vsub.f32 %v16835_v46, %v14817_v28 }
 0xb7e   :  { %v7886_v56 = vadd.f32 %v7885_v3, %v7823_v12  ;;  %v7827_v12 = vmul.f32 %v15135_v36, %v15135_v36  ;;  %v15165_v36 = vsub.f32 %v16836_v34, %v14817_v28 }
 0xb80   :  { %v7887_v51 = vadd.f32 %v7886_v56, %v7824_v11  ;;  %v7828_v11 = vmul.f32 %v15141_v59, %v15141_v59  ;;  %v7832_v46 = vmul.f32 %v15165_v36, %v15165_v36 }
 0xb82   :  { %v7888_v37 = vadd.f32 %v7887_v51, %v7825_v9  ;;  %v7829_v9 = vmul.f32 %v15147_v18, %v15147_v18 }
 0xb84   :  { %v7889_v3 = vadd.f32 %v7888_v37, %v7826_v58  ;;  %v7830_v58 = vmul.f32 %v15153_v15, %v15153_v15  ;;  %v7834_v15 = vmul.f32 %v14820_v29, %v14820_v29 }
 0xb86   :  { %v7890_v56 = vadd.f32 %v7889_v3, %v7827_v12  ;;  %v7831_v12 = vmul.f32 %v15159_v14, %v15159_v14 }
 0xb88   :  { %v7891_v51 = vadd.f32 %v7890_v56, %v7828_v11  ;;  %v7833_v56 = vmul.f32 %v15171_v19, %v15171_v19 }
 0xb8a   :  { %v7892_v37 = vadd.f32 %v7891_v51, %v7829_v9  ;;  %v7836_v51 = vmul.f32 %v14826_v52, %v14826_v52 }
 0xb8c   :  { %v7893_v3 = vadd.f32 %v7892_v37, %v7830_v58  ;;  %v7837_v37 = vmul.f32 %v14829_v61, %v14829_v61 }
 0xb8e   :  { %v7894_v11 = vadd.f32 %v7893_v3, %v7831_v12  ;;  %v7838_v3 = vmul.f32 %v14832_v33, %v14832_v33 }
 0xb90   :  { %v7895_v34 = vadd.f32 %v7894_v11, %v7832_v46  ;;  %v7839_v11 = vmul.f32 %v14835_v38, %v14835_v38 }
 0xb92   :  { %v7896_v9 = vadd.f32 %v7895_v34, %v7833_v56  ;;  %v7840_v34 = vmul.f32 %v14838_v25, %v14838_v25 }
 0xb94   :  { %v7897_v28 = vadd.f32 %v7896_v9, %v7834_v15  ;;  %v7841_v9 = vmul.f32 %v14841_v47, %v14841_v47 }
 0xb96   :  { %v7898_v58 = vadd.f32 %v7897_v28, %v7835_v57 }
 0xb98   :  { %v7899_v12 = vadd.f32 %v7898_v58, %v7836_v51 }
 0xb9a   :  { %v7900_v46 = vadd.f32 %v7899_v12, %v7837_v37 }
 0xb9c   :  { %v7901_v56 = vadd.f32 %v7900_v46, %v7838_v3  ;;  %v15200_v3 = vld [vmem:[%s16428_s5] ss:$0 sm:$0xff] }
 0xb9e   :  { %v7902_v15 = vadd.f32 %v7901_v56, %v7839_v11 }
 0xba0   :  { %v7903_v57 = vadd.f32 %v7902_v15, %v7840_v34 }
 0xba2   :  { %v7904_v28 = vadd.f32 %v7903_v57, %v7841_v9 }
 0xba4   :  { %v7905_v52 = vrot.slane %v7904_v28, 4 }
 0xba6   :  { %v7906_v61 = vadd.f32 %v7905_v52, %v7904_v28  ;;  %v16838_v28 = vld [vmem:[#allocation33_spill] sm:$0xff] }
 0xba8   :  { %v7907_v51 = vrot.slane %v7906_v61, 2 }
 0xbaa   :  { %v7908_v58 = vadd.f32 %v7907_v51, %v7906_v61  ;;  %v16839_v51 = vld [vmem:[#allocation35_spill] sm:$0xff] }
 0xbac   :  { %v7909_v39 = vrot.slane %v7908_v58, 1 }
 0xbae   :  { %v7910_v33 = vadd.f32 %v7909_v39, %v7908_v58  ;;  %v16840_v58 = vld [vmem:[#allocation38_spill] sm:$0xff] }
 0xbb0   :  { %v7911_v37 = vmul.f32 0.001953125, %v7910_v33  ;;  %v15219_v33 = vld [vmem:[%s16429_s6] ss:$0 sm:$0xff] }
 0xbb1   :  { %16837 = vst [vmem:[#allocation14_spill] sm:$0xff] %v15219_v33 }
 0xbb2   :  { %v7912_v12 = vadd.f32 1e-05, %v7911_v37  ;;  %v16841_v37 = vld [vmem:[#allocation40_spill] sm:$0xff] }
 0xbb4   :  { %10035 = vrsqrt.f32 %v7912_v12  ;;  %v16842_v12 = vld [vmem:[#allocation37_spill] sm:$0xff] }
 0xbbe   :  { %v15195_v29 = vpop.eup %10035 }
 0xbbf   :  { %v7975_v46 = vmul.f32 %v15195_v29, %v14835_v38  ;;  %v15206_v52 = vmul.f32 %v15195_v29, %v14845_v44  ;;  %v15210_v39 = vmul.f32 %v15195_v29, %v14849_v48  ;;  %v15214_v61 = vmul.f32 %v15195_v29, %v14853_v43 }
 0xbc0   :  { %v15223_v38 = vmul.f32 %v15195_v29, %v14861_v26  ;;  %v15227_v44 = vmul.f32 %v15195_v29, %v14865_v30  ;;  %v15231_v48 = vmul.f32 %v15195_v29, %v14871_v23  ;;  %v15235_v43 = vmul.f32 %v15195_v29, %v14877_v2 }
 0xbc1   :  { %v8046_v11 = vmul.f32 %v15200_v3, %v7975_v46  ;;  %v15240_v56 = vmul.f32 %v15195_v29, %v14883_v5  ;;  %v15244_v26 = vmul.f32 %v15195_v29, %v14889_v17  ;;  %v15248_v30 = vmul.f32 %v15195_v29, %v14895_v13  ;;  %v16843_v46 = vld [vmem:[#allocation39_spill] sm:$0xff] }
 0xbc2   :  { %v15252_v23 = vmul.f32 %v15195_v29, %v14901_v7  ;;  %v15256_v2 = vmul.f32 %v15195_v29, %v14907_v60  ;;  %v15260_v5 = vmul.f32 %v15195_v29, %v14913_v1  ;;  %v15264_v17 = vmul.f32 %v15195_v29, %v14919_v42 }
 0xbc3   :  { %v8117_v34 = vadd.f32 %v15219_v33, %v8046_v11  ;;  %v15269_v13 = vmul.f32 %v15195_v29, %v14925_v21  ;;  %v15273_v7 = vmul.f32 %v15195_v29, %v14931_v50  ;;  %v15277_v60 = vmul.f32 %v15195_v29, %v14937_v41  ;;  %v10047_v41 = vld [vmem:[%s16423_s0 + $0x321] sm:$0xff]  ;;  %v16850_v33 = vld [vmem:[#allocation15_spill] sm:$0xff] }
 0xbc4   :  { %v15281_v1 = vmul.f32 %v15195_v29, %v14943_v16  ;;  %v15285_v42 = vmul.f32 %v15195_v29, %v14949_v10  ;;  %v15289_v21 = vmul.f32 %v15195_v29, %v14955_v62  ;;  %v15293_v50 = vmul.f32 %v15195_v29, %v14961_v24 }
 0xbc5   :  { %v8181_v15 = vadd.f32 %v10047_v41, %v8117_v34  ;;  %v15300_v16 = vmul.f32 %v15195_v29, %v14967_v27  ;;  %v15304_v10 = vmul.f32 %v15195_v29, %v14973_v63  ;;  %v15308_v62 = vmul.f32 %v15195_v29, %v14979_v55  ;;  %v16844_v34 = vld [vmem:[#allocation22_spill] sm:$0xff] }
 0xbc6   :  { %v15312_v24 = vmul.f32 %v15195_v29, %v14985_v35  ;;  %v15316_v9 = vmul.f32 %v15195_v29, %v14991_v45  ;;  %v15320_v27 = vmul.f32 %v15195_v29, %v14997_v31  ;;  %v15324_v63 = vmul.f32 %v15195_v29, %v15003_v54 }
 0xbc7   :  { %v8245_v57 = vmax.f32 %v8181_v15, 0.0  ;;  %v15328_v55 = vmul.f32 %v15195_v29, %v15009_v6  ;;  %v15332_v35 = vmul.f32 %v15195_v29, %v15015_v4  ;;  %v15336_v45 = vmul.f32 %v15195_v29, %v15021_v49  ;;  %v16845_v15 = vld [vmem:[#allocation10_spill] sm:$0xff] }
 0xbc8   :  { %v15340_v31 = vmul.f32 %v15195_v29, %v15027_v53  ;;  %v15344_v54 = vmul.f32 %v15195_v29, %v15033_v32  ;;  %v15348_v6 = vmul.f32 %v15195_v29, %v15039_v22  ;;  %v15352_v4 = vmul.f32 %v15195_v29, %v15045_v40 }
 0xbc9   :  { %8309 = vst [vmem:[#allocation5 + $0x1e8] sm:$0xff] %v8245_v57  ;;  %v15356_v49 = vmul.f32 %v15195_v29, %v15051_v8  ;;  %v15360_v53 = vmul.f32 %v15195_v29, %v15057_v0  ;;  %v15364_v32 = vmul.f32 %v15195_v29, %v15063_v20  ;;  %v15368_v22 = vmul.f32 %v15195_v29, %v16838_v28  ;;  %v16846_v28 = vld [vmem:[#allocation13_spill] sm:$0xff] }
 0xbca   :  { %v15372_v40 = vmul.f32 %v15195_v29, %v16839_v51  ;;  %v15376_v8 = vmul.f32 %v15195_v29, %v16840_v58  ;;  %v15380_v0 = vmul.f32 %v15195_v29, %v16841_v37  ;;  %v15384_v20 = vmul.f32 %v15195_v29, %v16842_v12  ;;  %v16848_v58 = vld [vmem:[#allocation11_spill] sm:$0xff]  ;;  %v16849_v12 = vld [vmem:[#allocation12_spill] sm:$0xff] }
 0xbcb   :  { %v15388_v11 = vmul.f32 %v15195_v29, %v16843_v46  ;;  %v15392_v41 = vmul.f32 %v15195_v29, %v16844_v34  ;;  %v15396_v57 = vmul.f32 %v15195_v29, %v16845_v15  ;;  %v15400_v51 = vmul.f32 %v15195_v29, %v16846_v28 }
 0xbcc   :  { %v15404_v37 = vmul.f32 %v15195_v29, %v16848_v58  ;;  %v15408_v46 = vmul.f32 %v15195_v29, %v16849_v12  ;;  %v15412_v34 = vmul.f32 %v15195_v29, %v16850_v33  ;;  %v15416_v15 = vmul.f32 %v15195_v29, %v15141_v59 }
 0xbcd   :  { %16847 = vst [vmem:[#allocation16_spill] sm:$0xff] %v15400_v51  ;;  %v15420_v28 = vmul.f32 %v15195_v29, %v15147_v18  ;;  %v16853_v51 = vld [vmem:[#allocation20_spill] sm:$0xff]  ;;  %v15428_v12 = vmul.f32 %v15195_v29, %v15159_v14  ;;  %v15432_v33 = vmul.f32 %v15195_v29, %v15165_v36  ;;  %v15436_v59 = vmul.f32 %v15195_v29, %v15171_v19 }
 0xbce   :  { %16851 = vst [vmem:[#allocation28_spill] sm:$0xff] %v15416_v15  ;;  %v15424_v58 = vmul.f32 %v15195_v29, %v16853_v51  ;;  %v16857_v15 = vld [vmem:[#allocation32_spill] sm:$0xff] }
 0xbcf   :  { %16852 = vst [vmem:[#allocation24_spill] sm:$0xff] %v15420_v28  ;;  %16855 = vst [vmem:[#allocation23_spill] sm:$0xff] %v15428_v12  ;;  %v15440_v18 = vmul.f32 %v15195_v29, %v16857_v15  ;;  %v16858_v28 = vld [vmem:[#allocation29_spill] sm:$0xff]  ;;  %v16860_v12 = vld [vmem:[#allocation34_spill] sm:$0xff]  ;;  %v15460_v15 = vmul.f32 %v15195_v29, %v14838_v25  ;;  %v15480_v25 = vmul.f32 %v15200_v3, %v15223_v38 }
 0xbd0   :  { %16854 = vst [vmem:[#allocation21_spill] sm:$0xff] %v15424_v58  ;;  %16856 = vst [vmem:[#allocation26_spill] sm:$0xff] %v15432_v33  ;;  %v15444_v51 = vmul.f32 %v15195_v29, %v16858_v28  ;;  %v16859_v58 = vld [vmem:[#allocation31_spill] sm:$0xff]  ;;  %v15452_v36 = vmul.f32 %v15195_v29, %v16860_v12  ;;  %v16861_v33 = vld [vmem:[#allocation36_spill] sm:$0xff]  ;;  %v15464_v28 = vmul.f32 %v15195_v29, %v14841_v47 }
 0xbd1   :  { %v15448_v14 = vmul.f32 %v15195_v29, %v16859_v58  ;;  %v15456_v19 = vmul.f32 %v15195_v29, %v16861_v33  ;;  %v15468_v58 = vmul.f32 %v15200_v3, %v15206_v52  ;;  %v15472_v12 = vmul.f32 %v15200_v3, %v15210_v39 }
 0xbd2   :  { %v15476_v33 = vmul.f32 %v15200_v3, %v15214_v61  ;;  %v15484_v29 = vmul.f32 %v15200_v3, %v15227_v44  ;;  %v15488_v47 = vmul.f32 %v15200_v3, %v15231_v48  ;;  %v15492_v52 = vmul.f32 %v15200_v3, %v15235_v43 }
 0xbd3   :  { %v15496_v39 = vmul.f32 %v15200_v3, %v15240_v56  ;;  %v15500_v61 = vmul.f32 %v15200_v3, %v15244_v26  ;;  %v15504_v38 = vmul.f32 %v15200_v3, %v15248_v30  ;;  %v15508_v44 = vmul.f32 %v15200_v3, %v15252_v23 }
 0xbd4   :  { %v15512_v48 = vmul.f32 %v15200_v3, %v15256_v2  ;;  %v15516_v43 = vmul.f32 %v15200_v3, %v15260_v5  ;;  %v15520_v56 = vmul.f32 %v15200_v3, %v15264_v17  ;;  %v15524_v26 = vmul.f32 %v15200_v3, %v15269_v13 }
 0xbd5   :  { %v15528_v30 = vmul.f32 %v15200_v3, %v15273_v7  ;;  %v15532_v23 = vmul.f32 %v15200_v3, %v15277_v60  ;;  %v15536_v2 = vmul.f32 %v15200_v3, %v15281_v1  ;;  %v15540_v5 = vmul.f32 %v15200_v3, %v15285_v42 }
 0xbd6   :  { %v15544_v17 = vmul.f32 %v15200_v3, %v15289_v21  ;;  %v15548_v13 = vmul.f32 %v15200_v3, %v15293_v50  ;;  %v15552_v7 = vmul.f32 %v15200_v3, %v15300_v16  ;;  %v15556_v60 = vmul.f32 %v15200_v3, %v15304_v10 }
 0xbd7   :  { %v15560_v1 = vmul.f32 %v15200_v3, %v15308_v62  ;;  %v15564_v42 = vmul.f32 %v15200_v3, %v15312_v24  ;;  %v15568_v21 = vmul.f32 %v15200_v3, %v15316_v9  ;;  %v15572_v50 = vmul.f32 %v15200_v3, %v15320_v27 }
 0xbd8   :  { %v15576_v16 = vmul.f32 %v15200_v3, %v15324_v63  ;;  %v15580_v10 = vmul.f32 %v15200_v3, %v15328_v55  ;;  %v15584_v62 = vmul.f32 %v15200_v3, %v15332_v35  ;;  %v15588_v24 = vmul.f32 %v15200_v3, %v15336_v45 }
 0xbd9   :  { %v15592_v9 = vmul.f32 %v15200_v3, %v15340_v31  ;;  %v15596_v27 = vmul.f32 %v15200_v3, %v15344_v54  ;;  %v15600_v63 = vmul.f32 %v15200_v3, %v15348_v6  ;;  %v15604_v55 = vmul.f32 %v15200_v3, %v15352_v4 }
 0xbda   :  { %v15608_v35 = vmul.f32 %v15200_v3, %v15356_v49  ;;  %v15612_v45 = vmul.f32 %v15200_v3, %v15360_v53  ;;  %v15616_v31 = vmul.f32 %v15200_v3, %v15364_v32  ;;  %v15620_v54 = vmul.f32 %v15200_v3, %v15368_v22 }
 0xbdb   :  { %v15624_v6 = vmul.f32 %v15200_v3, %v15372_v40  ;;  %v15628_v4 = vmul.f32 %v15200_v3, %v15376_v8  ;;  %v15632_v49 = vmul.f32 %v15200_v3, %v15380_v0  ;;  %v15636_v53 = vmul.f32 %v15200_v3, %v15384_v20  ;;  %v16864_v8 = vld [vmem:[#allocation16_spill] sm:$0xff] }
 0xbdc   :  { %v15640_v32 = vmul.f32 %v15200_v3, %v15388_v11  ;;  %v15644_v22 = vmul.f32 %v15200_v3, %v15392_v41  ;;  %v15648_v40 = vmul.f32 %v15200_v3, %v15396_v57  ;;  %v15652_v0 = vmul.f32 %v15200_v3, %v16864_v8 }
 0xbdd   :  { %v15656_v20 = vmul.f32 %v15200_v3, %v15404_v37  ;;  %v15660_v11 = vmul.f32 %v15200_v3, %v15408_v46  ;;  %v15664_v41 = vmul.f32 %v15200_v3, %v15412_v34 }
 0xbde   :  { %16862 = vst [vmem:[#allocation8_spill] sm:$0xff] %v15644_v22  ;;  %16863 = vst [vmem:[#allocation25_spill] sm:$0xff] %v15648_v40  ;;  %v16868_v22 = vld [vmem:[#allocation28_spill] sm:$0xff] }
 0xbdf   :  { %16865 = vst [vmem:[#allocation27_spill] sm:$0xff] %v15652_v0  ;;  %16866 = vst [vmem:[#allocation17_spill] sm:$0xff] %v15656_v20  ;;  %v15668_v57 = vmul.f32 %v15200_v3, %v16868_v22  ;;  %v16869_v40 = vld [vmem:[#allocation24_spill] sm:$0xff]  ;;  %v16870_v0 = vld [vmem:[#allocation21_spill] sm:$0xff]  ;;  %v15688_v22 = vmul.f32 %v15200_v3, %v15436_v59  ;;  %v15708_v59 = vmul.f32 %v15200_v3, %v15456_v19 }
 0xbe0   :  { %16867 = vst [vmem:[#allocation19_spill] sm:$0xff] %v15660_v11  ;;  %v15672_v8 = vmul.f32 %v15200_v3, %v16869_v40  ;;  %v15676_v37 = vmul.f32 %v15200_v3, %v16870_v0  ;;  %v16871_v20 = vld [vmem:[#allocation23_spill] sm:$0xff]  ;;  %v16872_v11 = vld [vmem:[#allocation26_spill] sm:$0xff]  ;;  %v15692_v40 = vmul.f32 %v15200_v3, %v15440_v18  ;;  %v15696_v0 = vmul.f32 %v15200_v3, %v15444_v51 }
 0xbe1   :  { %v15680_v46 = vmul.f32 %v15200_v3, %v16871_v20  ;;  %v15684_v34 = vmul.f32 %v15200_v3, %v16872_v11  ;;  %v15700_v20 = vmul.f32 %v15200_v3, %v15448_v14  ;;  %v15704_v11 = vmul.f32 %v15200_v3, %v15452_v36 }
 0xbe2   :  { %16873 = vst [vmem:[#allocation9_spill] sm:$0xff] %v15696_v0  ;;  %v15712_v18 = vmul.f32 %v15200_v3, %v15460_v15  ;;  %v15716_v51 = vmul.f32 %v15200_v3, %v15464_v28  ;;  %v16874_v0 = vld [vmem:[#allocation14_spill] sm:$0xff] }
 0xbe3   :  { %v15720_v14 = vadd.f32 %v16874_v0, %v15468_v58  ;;  %v15724_v36 = vadd.f32 %v16874_v0, %v15472_v12  ;;  %v15728_v19 = vadd.f32 %v16874_v0, %v15476_v33  ;;  %v15732_v15 = vadd.f32 %v16874_v0, %v15480_v25 }
 0xbe4   :  { %v15736_v3 = vadd.f32 %v16874_v0, %v15484_v29  ;;  %v15740_v28 = vadd.f32 %v16874_v0, %v15488_v47  ;;  %v15744_v58 = vadd.f32 %v16874_v0, %v15492_v52  ;;  %v15748_v12 = vadd.f32 %v16874_v0, %v15496_v39 }
 0xbe5   :  { %v15752_v33 = vadd.f32 %v16874_v0, %v15500_v61  ;;  %v15756_v25 = vadd.f32 %v16874_v0, %v15504_v38  ;;  %v15760_v29 = vadd.f32 %v16874_v0, %v15508_v44  ;;  %v15764_v47 = vadd.f32 %v16874_v0, %v15512_v48 }
 0xbe6   :  { %v15768_v52 = vadd.f32 %v16874_v0, %v15516_v43  ;;  %v15772_v39 = vadd.f32 %v16874_v0, %v15520_v56  ;;  %v15776_v61 = vadd.f32 %v16874_v0, %v15524_v26  ;;  %v15780_v38 = vadd.f32 %v16874_v0, %v15528_v30 }
 0xbe7   :  { %v15784_v44 = vadd.f32 %v16874_v0, %v15532_v23  ;;  %v15788_v48 = vadd.f32 %v16874_v0, %v15536_v2  ;;  %v15792_v43 = vadd.f32 %v16874_v0, %v15540_v5  ;;  %v15796_v56 = vadd.f32 %v16874_v0, %v15544_v17 }
 0xbe8   :  { %v15800_v26 = vadd.f32 %v16874_v0, %v15548_v13  ;;  %v15804_v30 = vadd.f32 %v16874_v0, %v15552_v7  ;;  %v15808_v23 = vadd.f32 %v16874_v0, %v15556_v60  ;;  %v15812_v2 = vadd.f32 %v16874_v0, %v15560_v1 }
 0xbe9   :  { %v15816_v5 = vadd.f32 %v16874_v0, %v15564_v42  ;;  %v15820_v17 = vadd.f32 %v16874_v0, %v15568_v21  ;;  %v15824_v13 = vadd.f32 %v16874_v0, %v15572_v50  ;;  %v15828_v7 = vadd.f32 %v16874_v0, %v15576_v16 }
 0xbea   :  { %v15832_v60 = vadd.f32 %v16874_v0, %v15580_v10  ;;  %v15836_v1 = vadd.f32 %v16874_v0, %v15584_v62  ;;  %v15840_v42 = vadd.f32 %v16874_v0, %v15588_v24  ;;  %v15844_v21 = vadd.f32 %v16874_v0, %v15592_v9 }
 0xbeb   :  { %v15848_v50 = vadd.f32 %v16874_v0, %v15596_v27  ;;  %v15852_v16 = vadd.f32 %v16874_v0, %v15600_v63  ;;  %v15856_v10 = vadd.f32 %v16874_v0, %v15604_v55  ;;  %v15860_v62 = vadd.f32 %v16874_v0, %v15608_v35 }
 0xbec   :  { %v15864_v24 = vadd.f32 %v16874_v0, %v15612_v45  ;;  %v15868_v9 = vadd.f32 %v16874_v0, %v15616_v31  ;;  %v15872_v27 = vadd.f32 %v16874_v0, %v15620_v54  ;;  %v15876_v63 = vadd.f32 %v16874_v0, %v15624_v6  ;;  %v16879_v54 = vld [vmem:[#allocation8_spill] sm:$0xff] }
 0xbed   :  { %v15880_v55 = vadd.f32 %v16874_v0, %v15628_v4  ;;  %v15884_v35 = vadd.f32 %v16874_v0, %v15632_v49  ;;  %v15888_v45 = vadd.f32 %v16874_v0, %v15636_v53  ;;  %v15892_v31 = vadd.f32 %v16874_v0, %v15640_v32 }
 0xbee   :  { %16875 = vst [vmem:[#allocation18_spill] sm:$0xff] %v15876_v63  ;;  %v15896_v6 = vadd.f32 %v16874_v0, %v16879_v54  ;;  %v16880_v63 = vld [vmem:[#allocation25_spill] sm:$0xff]  ;;  %v15916_v54 = vadd.f32 %v16874_v0, %v15664_v41  ;;  %v15936_v41 = vadd.f32 %v16874_v0, %v15684_v34  ;;  %v15956_v34 = vadd.f32 %v16874_v0, %v15704_v11 }
 0xbef   :  { %16876 = vst [vmem:[#allocation30_spill] sm:$0xff] %v15880_v55  ;;  %16877 = vst [vmem:[#allocation33_spill] sm:$0xff] %v15884_v35  ;;  %v15900_v4 = vadd.f32 %v16874_v0, %v16880_v63  ;;  %v16881_v55 = vld [vmem:[#allocation27_spill] sm:$0xff]  ;;  %v16882_v35 = vld [vmem:[#allocation17_spill] sm:$0xff]  ;;  %v15920_v63 = vadd.f32 %v16874_v0, %v15668_v57  ;;  %v15940_v57 = vadd.f32 %v16874_v0, %v15688_v22 }
 0xbf0   :  { %16878 = vst [vmem:[#allocation35_spill] sm:$0xff] %v15888_v45  ;;  %v15904_v49 = vadd.f32 %v16874_v0, %v16881_v55  ;;  %v15908_v53 = vadd.f32 %v16874_v0, %v16882_v35  ;;  %v16883_v45 = vld [vmem:[#allocation19_spill] sm:$0xff]  ;;  %v15924_v55 = vadd.f32 %v16874_v0, %v15672_v8  ;;  %v15928_v35 = vadd.f32 %v16874_v0, %v15676_v37  ;;  %v10049_v11 = vld [vmem:[%s16423_s0 + $0x21] sm:$0xff] }
 0xbf1   :  { %v15912_v32 = vadd.f32 %v16874_v0, %v16883_v45  ;;  %v15932_v45 = vadd.f32 %v16874_v0, %v15680_v46  ;;  %v15944_v8 = vadd.f32 %v16874_v0, %v15692_v40  ;;  %v15952_v46 = vadd.f32 %v16874_v0, %v15700_v20  ;;  %v10048_v20 = vld [vmem:[%s16423_s0 + $0x19] sm:$0xff] }
 0xbf2   :  { %16884 = vst [vmem:[#allocation38_spill] sm:$0xff] %v15924_v55  ;;  %v16885_v55 = vld [vmem:[#allocation9_spill] sm:$0xff]  ;;  %v15960_v22 = vadd.f32 %v16874_v0, %v15708_v59  ;;  %v15964_v40 = vadd.f32 %v16874_v0, %v15712_v18  ;;  %v15980_v59 = vadd.f32 %v10049_v11, %v15724_v36  ;;  %v10050_v18 = vld [vmem:[%s16423_s0 + $0x31] sm:$0xff] }
 0xbf3   :  { %v15948_v37 = vadd.f32 %v16874_v0, %v16885_v55  ;;  %16886 = vst [vmem:[#allocation40_spill] sm:$0xff] %v15952_v46  ;;  %v15968_v55 = vadd.f32 %v16874_v0, %v15716_v51  ;;  %v15974_v46 = vadd.f32 %v10048_v20, %v15720_v14  ;;  %v15986_v0 = vadd.f32 %v10050_v18, %v15728_v19  ;;  %v10051_v51 = vld [vmem:[%s16423_s0 + $0x39] sm:$0xff]  ;;  %v10052_v20 = vld [vmem:[%s16423_s0 + $0x49] sm:$0xff]  ;;  %v10053_v11 = vld [vmem:[%s16423_s0 + $0x51] sm:$0xff] }
 0xbf4   :  { %v15992_v14 = vadd.f32 %v10051_v51, %v15732_v15  ;;  %v15998_v36 = vadd.f32 %v10052_v20, %v15736_v3  ;;  %v16004_v19 = vadd.f32 %v10053_v11, %v15740_v28  ;;  %v10054_v18 = vld [vmem:[%s16423_s0 + $0x61] sm:$0xff]  ;;  %v10055_v51 = vld [vmem:[%s16423_s0 + $0x69] sm:$0xff]  ;;  %v10056_v20 = vld [vmem:[%s16423_s0 + $0x79] sm:$0xff] }
 0xbf5   :  { %v16010_v15 = vadd.f32 %v10054_v18, %v15744_v58  ;;  %v16016_v3 = vadd.f32 %v10055_v51, %v15748_v12  ;;  %v16022_v28 = vadd.f32 %v10056_v20, %v15752_v33  ;;  %v10057_v11 = vld [vmem:[%s16423_s0 + $0x81] sm:$0xff]  ;;  %v10058_v18 = vld [vmem:[%s16423_s0 + $0x91] sm:$0xff]  ;;  %v10059_v51 = vld [vmem:[%s16423_s0 + $0x99] sm:$0xff] }
 0xbf6   :  { %v16028_v58 = vadd.f32 %v10057_v11, %v15756_v25  ;;  %v16034_v12 = vadd.f32 %v10058_v18, %v15760_v29  ;;  %v16040_v33 = vadd.f32 %v10059_v51, %v15764_v47  ;;  %v10060_v20 = vld [vmem:[%s16423_s0 + $0xa9] sm:$0xff]  ;;  %v10061_v11 = vld [vmem:[%s16423_s0 + $0xb1] sm:$0xff]  ;;  %v10062_v18 = vld [vmem:[%s16423_s0 + $0xc1] sm:$0xff] }
 0xbf7   :  { %v16046_v25 = vadd.f32 %v10060_v20, %v15768_v52  ;;  %v16052_v29 = vadd.f32 %v10061_v11, %v15772_v39  ;;  %v16058_v47 = vadd.f32 %v10062_v18, %v15776_v61  ;;  %v10063_v51 = vld [vmem:[%s16423_s0 + $0xc9] sm:$0xff]  ;;  %v10064_v20 = vld [vmem:[%s16423_s0 + $0xd9] sm:$0xff]  ;;  %v10065_v11 = vld [vmem:[%s16423_s0 + $0xe1] sm:$0xff] }
 0xbf8   :  { %v16064_v52 = vadd.f32 %v10063_v51, %v15780_v38  ;;  %v16070_v39 = vadd.f32 %v10064_v20, %v15784_v44  ;;  %v16076_v61 = vadd.f32 %v10065_v11, %v15788_v48  ;;  %v10066_v18 = vld [vmem:[%s16423_s0 + $0xf1] sm:$0xff]  ;;  %v10067_v51 = vld [vmem:[%s16423_s0 + $0xf9] sm:$0xff]  ;;  %v10068_v20 = vld [vmem:[%s16423_s0 + $0x109] sm:$0xff] }
 0xbf9   :  { %v16082_v38 = vadd.f32 %v10066_v18, %v15792_v43  ;;  %v16088_v44 = vadd.f32 %v10067_v51, %v15796_v56  ;;  %v16094_v48 = vadd.f32 %v10068_v20, %v15800_v26  ;;  %v10069_v11 = vld [vmem:[%s16423_s0 + $0x111] sm:$0xff]  ;;  %v10070_v18 = vld [vmem:[%s16423_s0 + $0x121] sm:$0xff]  ;;  %v10071_v51 = vld [vmem:[%s16423_s0 + $0x129] sm:$0xff] }
 0xbfa   :  { %v16100_v43 = vadd.f32 %v10069_v11, %v15804_v30  ;;  %v16106_v56 = vadd.f32 %v10070_v18, %v15808_v23  ;;  %v16112_v26 = vadd.f32 %v10071_v51, %v15812_v2  ;;  %v10072_v20 = vld [vmem:[%s16423_s0 + $0x139] sm:$0xff]  ;;  %v10073_v11 = vld [vmem:[%s16423_s0 + $0x141] sm:$0xff]  ;;  %v10074_v18 = vld [vmem:[%s16423_s0 + $0x151] sm:$0xff] }
 0xbfb   :  { %v16118_v30 = vadd.f32 %v10072_v20, %v15816_v5  ;;  %v16124_v23 = vadd.f32 %v10073_v11, %v15820_v17  ;;  %v16130_v2 = vadd.f32 %v10074_v18, %v15824_v13  ;;  %v10075_v51 = vld [vmem:[%s16423_s0 + $0x159] sm:$0xff]  ;;  %v10076_v20 = vld [vmem:[%s16423_s0 + $0x169] sm:$0xff]  ;;  %v10077_v11 = vld [vmem:[%s16423_s0 + $0x171] sm:$0xff] }
 0xbfc   :  { %v16136_v5 = vadd.f32 %v10075_v51, %v15828_v7  ;;  %v16142_v17 = vadd.f32 %v10076_v20, %v15832_v60  ;;  %v16148_v13 = vadd.f32 %v10077_v11, %v15836_v1  ;;  %v10078_v18 = vld [vmem:[%s16423_s0 + $0x181] sm:$0xff]  ;;  %v10079_v51 = vld [vmem:[%s16423_s0 + $0x189] sm:$0xff]  ;;  %v10081_v11 = vld [vmem:[%s16423_s0 + $0x1d1] sm:$0xff] }
 0xbfd   :  { %v16154_v7 = vadd.f32 %v10078_v18, %v15840_v42  ;;  %v16160_v60 = vadd.f32 %v10079_v51, %v15844_v21  ;;  %v10080_v20 = vld [vmem:[%s16423_s0 + $0x1c9] sm:$0xff]  ;;  %v16172_v42 = vadd.f32 %v10081_v11, %v15852_v16  ;;  %v10082_v18 = vld [vmem:[%s16423_s0 + $0x1e1] sm:$0xff] }
 0xbfe   :  { %v16166_v1 = vadd.f32 %v10080_v20, %v15848_v50  ;;  %v16178_v21 = vadd.f32 %v10082_v18, %v15856_v10  ;;  %v10083_v51 = vld [vmem:[%s16423_s0 + $0x1e9] sm:$0xff]  ;;  %v10084_v20 = vld [vmem:[%s16423_s0 + $0x1f9] sm:$0xff]  ;;  %v10085_v11 = vld [vmem:[%s16423_s0 + $0x201] sm:$0xff] }
 0xbff   :  { %v16184_v50 = vadd.f32 %v10083_v51, %v15860_v62  ;;  %v16190_v16 = vadd.f32 %v10084_v20, %v15864_v24  ;;  %v16196_v10 = vadd.f32 %v10085_v11, %v15868_v9  ;;  %v10086_v18 = vld [vmem:[%s16423_s0 + $0x211] sm:$0xff]  ;;  %v10087_v51 = vld [vmem:[%s16423_s0 + $0x219] sm:$0xff] }
 0xc00   :  { %v16202_v62 = vadd.f32 %v10086_v18, %v15872_v27  ;;  %v16890_v24 = vld [vmem:[#allocation18_spill] sm:$0xff]  ;;  %v16893_v27 = vld [vmem:[#allocation33_spill] sm:$0xff] }
 0xc01   :  { %16887 = vst [vmem:[#allocation37_spill] sm:$0xff] %v16190_v16  ;;  %16888 = vst [vmem:[#allocation39_spill] sm:$0xff] %v16196_v10  ;;  %v16208_v20 = vadd.f32 %v10087_v51, %v16890_v24  ;;  %v10088_v16 = vld [vmem:[%s16423_s0 + $0x229] sm:$0xff]  ;;  %v10089_v10 = vld [vmem:[%s16423_s0 + $0x231] sm:$0xff] }
 0xc02   :  { %16889 = vst [vmem:[#allocation22_spill] sm:$0xff] %v16202_v62  ;;  %v16892_v9 = vld [vmem:[#allocation30_spill] sm:$0xff]  ;;  %v16220_v18 = vadd.f32 %v10089_v10, %v16893_v27  ;;  %v10090_v62 = vld [vmem:[%s16423_s0 + $0x241] sm:$0xff]  ;;  %v16894_v51 = vld [vmem:[#allocation35_spill] sm:$0xff] }
 0xc03   :  { %16891 = vst [vmem:[#allocation10_spill] sm:$0xff] %v16208_v20  ;;  %v16214_v11 = vadd.f32 %v10088_v16, %v16892_v9  ;;  %v16226_v24 = vadd.f32 %v10090_v62, %v16894_v51  ;;  %v10091_v20 = vld [vmem:[%s16423_s0 + $0x249] sm:$0xff]  ;;  %v10092_v9 = vld [vmem:[%s16423_s0 + $0x259] sm:$0xff]  ;;  %v10093_v27 = vld [vmem:[%s16423_s0 + $0x261] sm:$0xff] }
 0xc04   :  { %v16232_v16 = vadd.f32 %v10091_v20, %v15892_v31  ;;  %v16238_v10 = vadd.f32 %v10092_v9, %v15896_v6  ;;  %v16244_v62 = vadd.f32 %v10093_v27, %v15900_v4  ;;  %v10094_v51 = vld [vmem:[%s16423_s0 + $0x271] sm:$0xff]  ;;  %v10095_v20 = vld [vmem:[%s16423_s0 + $0x279] sm:$0xff]  ;;  %v10096_v9 = vld [vmem:[%s16423_s0 + $0x289] sm:$0xff] }
 0xc05   :  { %v16250_v31 = vadd.f32 %v10094_v51, %v15904_v49  ;;  %v16256_v6 = vadd.f32 %v10095_v20, %v15908_v53  ;;  %v16262_v4 = vadd.f32 %v10096_v9, %v15912_v32  ;;  %v10097_v27 = vld [vmem:[%s16423_s0 + $0x291] sm:$0xff]  ;;  %v10098_v51 = vld [vmem:[%s16423_s0 + $0x2a1] sm:$0xff]  ;;  %v10099_v20 = vld [vmem:[%s16423_s0 + $0x2a9] sm:$0xff] }
 0xc06   :  { %v16268_v49 = vadd.f32 %v10097_v27, %v15916_v54  ;;  %v16274_v53 = vadd.f32 %v10098_v51, %v15920_v63  ;;  %v16896_v32 = vld [vmem:[#allocation38_spill] sm:$0xff]  ;;  %v10101_v27 = vld [vmem:[%s16423_s0 + $0x2c1] sm:$0xff] }
 0xc07   :  { %16895 = vst [vmem:[#allocation13_spill] sm:$0xff] %v16262_v4  ;;  %v16280_v9 = vadd.f32 %v10099_v20, %v16896_v32  ;;  %v10100_v4 = vld [vmem:[%s16423_s0 + $0x2b9] sm:$0xff]  ;;  %v16292_v63 = vadd.f32 %v10101_v27, %v15932_v45  ;;  %v10102_v51 = vld [vmem:[%s16423_s0 + $0x2d1] sm:$0xff] }
 0xc08   :  { %v16286_v54 = vadd.f32 %v10100_v4, %v15928_v35  ;;  %v16298_v20 = vadd.f32 %v10102_v51, %v15936_v41  ;;  %v10103_v32 = vld [vmem:[%s16423_s0 + $0x2d9] sm:$0xff]  ;;  %v10104_v4 = vld [vmem:[%s16423_s0 + $0x2e9] sm:$0xff]  ;;  %v10105_v27 = vld [vmem:[%s16423_s0 + $0x2f1] sm:$0xff] }
 0xc09   :  { %v16304_v35 = vadd.f32 %v10103_v32, %v15940_v57  ;;  %v16310_v45 = vadd.f32 %v10104_v4, %v15944_v8  ;;  %v16316_v41 = vadd.f32 %v10105_v27, %v15948_v37  ;;  %v10106_v51 = vld [vmem:[%s16423_s0 + $0x301] sm:$0xff]  ;;  %v10108_v4 = vld [vmem:[%s16423_s0 + $0x319] sm:$0xff]  ;;  %v10109_v27 = vld [vmem:[%s16423_s0 + $0x331] sm:$0xff] }
 0xc0a   :  { %v16898_v57 = vld [vmem:[#allocation40_spill] sm:$0xff]  ;;  %v16334_v37 = vadd.f32 %v10108_v4, %v15960_v22  ;;  %v8186_v22 = vmax.f32 %v15986_v0, 0.0  ;;  %v8187_v4 = vmax.f32 %v15992_v14, 0.0  ;;  %v8196_v0 = vmax.f32 %v16046_v25, 0.0 }
 0xc0b   :  { %16897 = vst [vmem:[#allocation11_spill] sm:$0xff] %v16304_v35  ;;  %v16322_v32 = vadd.f32 %v10106_v51, %v16898_v57  ;;  %v10107_v35 = vld [vmem:[%s16423_s0 + $0x309] sm:$0xff]  ;;  %v16340_v51 = vadd.f32 %v10109_v27, %v15964_v40  ;;  %v10110_v57 = vld [vmem:[%s16423_s0 + $0x339] sm:$0xff]  ;;  %v8189_v40 = vmax.f32 %v16004_v19, 0.0  ;;  %v8190_v27 = vmax.f32 %v16010_v15, 0.0  ;;  %s10137_s0 = smov [#allocation5]  }
 0xc0c   :  { %v16328_v8 = vadd.f32 %v10107_v35, %v15956_v34  ;;  %16901 = vst [vmem:[#allocation20_spill] sm:$0xff] %v16334_v37  ;;  %v16346_v34 = vadd.f32 %v10110_v57, %v15968_v55  ;;  %v8184_v35 = vmax.f32 %v15974_v46, 0.0  ;;  %v8188_v37 = vmax.f32 %v15998_v36, 0.0  ;;  %8250 = vst [vmem:[#allocation5 + $0x10] sm:$0xff] %v8186_v22  ;;  %s8317_s17 = sshll.u32 %s10137_s0, 4  ;;  %s8318_s17 = int_to_ptr.vmem [resolvable:$true] %s8317_s17 }
 0xc0d   :  { %16899 = vst [vmem:[#allocation12_spill] sm:$0xff] %v16322_v32  ;;  %16902 = vst [vmem:[#allocation32_spill] sm:$0xff] %v16340_v51  ;;  %v8191_v51 = vmax.f32 %v16016_v3, 0.0  ;;  %v8192_v32 = vmax.f32 %v16022_v28, 0.0  ;;  %v8193_v55 = vmax.f32 %v16028_v58, 0.0  ;;  %v8194_v46 = vmax.f32 %v16034_v12, 0.0  ;;  %p10116_p1 = scmp.lt.s32.totalorder %s8318_s17, %s8318_s17 }
 0xc0e   :  { %16900 = vst [vmem:[#allocation15_spill] sm:$0xff] %v16328_v8  ;;  %v8185_v8 = vmax.f32 %v15980_v59, 0.0  ;;  %8248 = vst [vmem:[#allocation5] sm:$0xff] %v8184_v35  ;;  %v8195_v59 = vmax.f32 %v16040_v33, 0.0  ;;  %v8197_v14 = vmax.f32 %v16052_v29, 0.0  ;;  %v8198_v36 = vmax.f32 %v16058_v47, 0.0 }
 0xc0f   :  { %8251 = vst [vmem:[#allocation5 + $0x18] sm:$0xff] %v8187_v4  ;;  %8252 = vst [vmem:[#allocation5 + $0x20] sm:$0xff] %v8188_v37  ;;  %v8199_v19 = vmax.f32 %v16064_v52, 0.0  ;;  %v8200_v15 = vmax.f32 %v16070_v39, 0.0  ;;  %v8201_v3 = vmax.f32 %v16076_v61, 0.0  ;;  %v8202_v28 = vmax.f32 %v16082_v38, 0.0 }
 0xc10   :  { %8249 = vst [vmem:[#allocation5 + $0x8] sm:$0xff] %v8185_v8  ;;  %8253 = vst [vmem:[#allocation5 + $0x28] sm:$0xff] %v8189_v40  ;;  %v8203_v58 = vmax.f32 %v16088_v44, 0.0  ;;  %v8204_v12 = vmax.f32 %v16094_v48, 0.0  ;;  %v8205_v33 = vmax.f32 %v16100_v43, 0.0  ;;  %v8206_v25 = vmax.f32 %v16106_v56, 0.0 }
 0xc11   :  { %8254 = vst [vmem:[#allocation5 + $0x30] sm:$0xff] %v8190_v27  ;;  %8255 = vst [vmem:[#allocation5 + $0x38] sm:$0xff] %v8191_v51  ;;  %v8207_v29 = vmax.f32 %v16112_v26, 0.0  ;;  %v8208_v47 = vmax.f32 %v16118_v30, 0.0  ;;  %v8209_v52 = vmax.f32 %v16124_v23, 0.0  ;;  %v8210_v39 = vmax.f32 %v16130_v2, 0.0 }
 0xc12   :  { %8256 = vst [vmem:[#allocation5 + $0x40] sm:$0xff] %v8192_v32  ;;  %8257 = vst [vmem:[#allocation5 + $0x48] sm:$0xff] %v8193_v55  ;;  %v8211_v61 = vmax.f32 %v16136_v5, 0.0  ;;  %v8212_v38 = vmax.f32 %v16142_v17, 0.0  ;;  %v8213_v44 = vmax.f32 %v16148_v13, 0.0  ;;  %v8214_v48 = vmax.f32 %v16154_v7, 0.0 }
 0xc13   :  { %8258 = vst [vmem:[#allocation5 + $0x50] sm:$0xff] %v8194_v46  ;;  %8259 = vst [vmem:[#allocation5 + $0x58] sm:$0xff] %v8195_v59  ;;  %v8215_v43 = vmax.f32 %v16160_v60, 0.0  ;;  %v8216_v56 = vmax.f32 %v16166_v1, 0.0  ;;  %v8217_v26 = vmax.f32 %v16172_v42, 0.0  ;;  %v8218_v30 = vmax.f32 %v16178_v21, 0.0 }
 0xc14   :  { %8260 = vst [vmem:[#allocation5 + $0x60] sm:$0xff] %v8196_v0  ;;  %8261 = vst [vmem:[#allocation5 + $0x68] sm:$0xff] %v8197_v14  ;;  %v8219_v23 = vmax.f32 %v16184_v50, 0.0  ;;  %v16903_v2 = vld [vmem:[#allocation37_spill] sm:$0xff]  ;;  %v16904_v17 = vld [vmem:[#allocation39_spill] sm:$0xff]  ;;  %v8224_v42 = vmax.f32 %v16214_v11, 0.0 }
 0xc15   :  { %8262 = vst [vmem:[#allocation5 + $0x70] sm:$0xff] %v8198_v36  ;;  %8263 = vst [vmem:[#allocation5 + $0x78] sm:$0xff] %v8199_v19  ;;  %v8220_v5 = vmax.f32 %v16903_v2, 0.0  ;;  %v8221_v13 = vmax.f32 %v16904_v17, 0.0  ;;  %v16905_v7 = vld [vmem:[#allocation22_spill] sm:$0xff]  ;;  %v8225_v21 = vmax.f32 %v16220_v18, 0.0 }
 0xc16   :  { %8264 = vst [vmem:[#allocation5 + $0x80] sm:$0xff] %v8200_v15  ;;  %8265 = vst [vmem:[#allocation5 + $0x88] sm:$0xff] %v8201_v3  ;;  %v8222_v32 = vmax.f32 %v16905_v7, 0.0  ;;  %v16906_v60 = vld [vmem:[#allocation10_spill] sm:$0xff]  ;;  %v8226_v8 = vmax.f32 %v16226_v24, 0.0  ;;  %v8227_v50 = vmax.f32 %v16232_v16, 0.0 }
 0xc17   :  { %8266 = vst [vmem:[#allocation5 + $0x90] sm:$0xff] %v8202_v28  ;;  %8267 = vst [vmem:[#allocation5 + $0x98] sm:$0xff] %v8203_v58  ;;  %v8223_v1 = vmax.f32 %v16906_v60, 0.0  ;;  %v8228_v37 = vmax.f32 %v16238_v10, 0.0  ;;  %v8229_v51 = vmax.f32 %v16244_v62, 0.0  ;;  %v8230_v57 = vmax.f32 %v16250_v31, 0.0 }
 0xc18   :  { %8268 = vst [vmem:[#allocation5 + $0xa0] sm:$0xff] %v8204_v12  ;;  %8269 = vst [vmem:[#allocation5 + $0xa8] sm:$0xff] %v8205_v33  ;;  %v8231_v11 = vmax.f32 %v16256_v6, 0.0  ;;  %v16907_v18 = vld [vmem:[#allocation13_spill] sm:$0xff]  ;;  %v8233_v35 = vmax.f32 %v16268_v49, 0.0  ;;  %v8234_v22 = vmax.f32 %v16274_v53, 0.0 }
 0xc19   :  { %8270 = vst [vmem:[#allocation5 + $0xb0] sm:$0xff] %v8206_v25  ;;  %8271 = vst [vmem:[#allocation5 + $0xb8] sm:$0xff] %v8207_v29  ;;  %v8232_v24 = vmax.f32 %v16907_v18, 0.0  ;;  %v8235_v16 = vmax.f32 %v16280_v9, 0.0  ;;  %v8236_v10 = vmax.f32 %v16286_v54, 0.0  ;;  %v8237_v62 = vmax.f32 %v16292_v63, 0.0 }
 0xc1a   :  { %8272 = vst [vmem:[#allocation5 + $0xc0] sm:$0xff] %v8208_v47  ;;  %8273 = vst [vmem:[#allocation5 + $0xc8] sm:$0xff] %v8209_v52  ;;  %v8238_v31 = vmax.f32 %v16298_v20, 0.0  ;;  %v16908_v6 = vld [vmem:[#allocation11_spill] sm:$0xff]  ;;  %v8240_v53 = vmax.f32 %v16310_v45, 0.0  ;;  %v8241_v4 = vmax.f32 %v16316_v41, 0.0 }
 0xc1b   :  { %8274 = vst [vmem:[#allocation5 + $0xd0] sm:$0xff] %v8210_v39  ;;  %8275 = vst [vmem:[#allocation5 + $0xd8] sm:$0xff] %v8211_v61  ;;  %v8239_v49 = vmax.f32 %v16908_v6, 0.0  ;;  %v16909_v40 = vld [vmem:[#allocation12_spill] sm:$0xff]  ;;  %v16910_v9 = vld [vmem:[#allocation15_spill] sm:$0xff]  ;;  %v8247_v59 = vmax.f32 %v16346_v34, 0.0 }
 0xc1c   :  { %8276 = vst [vmem:[#allocation5 + $0xe0] sm:$0xff] %v8212_v38  ;;  %8277 = vst [vmem:[#allocation5 + $0xe8] sm:$0xff] %v8213_v44  ;;  %v8242_v27 = vmax.f32 %v16909_v40, 0.0  ;;  %v8243_v54 = vmax.f32 %v16910_v9, 0.0  ;;  %v16911_v63 = vld [vmem:[#allocation20_spill] sm:$0xff]  ;;  %s10111_s18 = scalar_lea.vmem %s8318_s17, 8192 }
 0xc1d   :  { %8278 = vst [vmem:[#allocation5 + $0xf0] sm:$0xff] %v8214_v48  ;;  %8279 = vst [vmem:[#allocation5 + $0xf8] sm:$0xff] %v8215_v43  ;;  %v8244_v20 = vmax.f32 %v16911_v63, 0.0  ;;  %v16912_v55 = vld [vmem:[#allocation32_spill] sm:$0xff]  ;;  %p10112_p0 = scmp.ne.s32.totalorder %s8318_s17, %s10111_s18  ;;  %p10117_p2 = scmp.lt.s32.totalorder %s10111_s18, %s10111_s18 }
 0xc1e   :  { %8280 = vst [vmem:[#allocation5 + $0x100] sm:$0xff] %v8216_v56  ;;  %8281 = vst [vmem:[#allocation5 + $0x108] sm:$0xff] %v8217_v26  ;;  %v8246_v46 = vmax.f32 %v16912_v55, 0.0 }
 0xc1f   :  { %8282 = vst [vmem:[#allocation5 + $0x110] sm:$0xff] %v8218_v30  ;;  %8283 = vst [vmem:[#allocation5 + $0x118] sm:$0xff] %v8219_v23  ;;  %p10118_p3 = por %p10117_p2, %p10116_p1 }
 0xc20   :  { %8284 = vst [vmem:[#allocation5 + $0x120] sm:$0xff] %v8220_v5  ;;  %8285 = vst [vmem:[#allocation5 + $0x128] sm:$0xff] %v8221_v13 }
 0xc21   :  { %8286 = vst [vmem:[#allocation5 + $0x130] sm:$0xff] %v8222_v32  ;;  %8287 = vst [vmem:[#allocation5 + $0x138] sm:$0xff] %v8223_v1  ;;  %p10119_p4 = pnand %p10118_p3, %p10112_p0 }
 0xc22   :  { %8288 = vst [vmem:[#allocation5 + $0x140] sm:$0xff] %v8224_v42  ;;  %8289 = vst [vmem:[#allocation5 + $0x148] sm:$0xff] %v8225_v21 }
 0xc23   :  { %8290 = vst [vmem:[#allocation5 + $0x150] sm:$0xff] %v8226_v8  ;;  %8291 = vst [vmem:[#allocation5 + $0x158] sm:$0xff] %v8227_v50 }
 0xc24   :  { %8292 = vst [vmem:[#allocation5 + $0x160] sm:$0xff] %v8228_v37  ;;  %8293 = vst [vmem:[#allocation5 + $0x168] sm:$0xff] %v8229_v51 }
 0xc25   :  { %8294 = vst [vmem:[#allocation5 + $0x170] sm:$0xff] %v8230_v57  ;;  %8295 = vst [vmem:[#allocation5 + $0x178] sm:$0xff] %v8231_v11 }
 0xc26   :  { %8296 = vst [vmem:[#allocation5 + $0x180] sm:$0xff] %v8232_v24  ;;  %8297 = vst [vmem:[#allocation5 + $0x188] sm:$0xff] %v8233_v35 }
 0xc27   :  { %8298 = vst [vmem:[#allocation5 + $0x190] sm:$0xff] %v8234_v22  ;;  %8299 = vst [vmem:[#allocation5 + $0x198] sm:$0xff] %v8235_v16 }
 0xc28   :  { %8300 = vst [vmem:[#allocation5 + $0x1a0] sm:$0xff] %v8236_v10  ;;  %8301 = vst [vmem:[#allocation5 + $0x1a8] sm:$0xff] %v8237_v62 }
 0xc29   :  { %8302 = vst [vmem:[#allocation5 + $0x1b0] sm:$0xff] %v8238_v31  ;;  %8303 = vst [vmem:[#allocation5 + $0x1b8] sm:$0xff] %v8239_v49 }
 0xc2a   :  { %8304 = vst [vmem:[#allocation5 + $0x1c0] sm:$0xff] %v8240_v53  ;;  %8305 = vst [vmem:[#allocation5 + $0x1c8] sm:$0xff] %v8241_v4 }
 0xc2b   :  { %8306 = vst [vmem:[#allocation5 + $0x1d0] sm:$0xff] %v8242_v27  ;;  %8307 = vst [vmem:[#allocation5 + $0x1d8] sm:$0xff] %v8243_v54 }
 0xc2c   :  { %8308 = vst [vmem:[#allocation5 + $0x1e0] sm:$0xff] %v8244_v20  ;;  %8310 = vst [vmem:[#allocation5 + $0x1f0] sm:$0xff] %v8246_v46 }
 0xc2d   :  { %8311 = vst [vmem:[#allocation5 + $0x1f8] sm:$0xff] %v8247_v59 }
 0xc2e   :  { %10122 = shalt.err (!%p10119_p4)
}
 0xc2f   :  { %s10123_s21 = scalar_lea.hbm %s16430_s7, 8192 }
 0xc30   :  { %p10124_p5 = scmp.ne.s32.totalorder %s16430_s7, %s10123_s21  ;;  %p10127_p6 = scmp.lt.u32.totalorder %s10123_s21, %s16430_s7 }
 0xc32   :  { %p10129_p7 = pnand %p10127_p6, %p10124_p5 }
 0xc34   :  { %10132 = shalt.err (!%p10129_p7)
}
 0xc35   :  { %s10138_s26 = smov 128   ;;  %s10139_s27 = smov 8  }
 0xc36   :  { %8323 = dma.vmem_to_hbm [thread:$0]  %s8318_s17, 8192, %s16430_s7, [#allocation6], %s10138_s26, %s10138_s26, %s10139_s27  }
 0xc37   :  { %10133 = dma.done.wait [#allocation6], 8192  }
 0xc38   :  { %10134 = vsyncadd [#allocation6], 4294959104 }
 0xc39   :  { %8327 = vsyncpa [#allocation6], 1 }

</bundles_post_ra>
